<compile_context>
chip_gen: v7x
topology: tpu7x:2x2x1
jax: 0.10.0
libtpu: 0.0.40
codegen_flags: <defaults>
</compile_context>

<pallas_src>
import jax
import jax.numpy as jnp
from jax import lax
from jax.experimental import pallas as pl
from jax.experimental.pallas import tpu as pltpu


# Finite stand-in for -inf in masked_fill: identical results for rows with at least one
# valid key (exp underflows to exactly 0); fully-masked rows stay finite instead of NaN.
_MASK_NEG = -1e30

_PARAM_ORDER = (
    "conv_w", "conv_b", "linkkey",
    "self_wq", "self_bq", "self_wk", "self_bk", "self_wv", "self_bv",
    "self_wo", "self_bo", "self_g", "self_beta",
    "link_wq", "link_bq", "link_wk", "link_bk", "link_wv", "link_bv",
    "link_wo", "link_bo", "link_g", "link_beta",
    "ffn_w1", "ffn_b1", "ffn_w2", "ffn_b2", "ffn_g", "ffn_beta",
)


# ---------------------------------------------------------------------------
# In-kernel helpers (traced inside the Pallas kernel body)
# ---------------------------------------------------------------------------

def _mm(a, b):
    """a @ b with bf16 MXU operands and f32 accumulation."""
    return jnp.dot(a.astype(jnp.bfloat16), b.astype(jnp.bfloat16),
                   preferred_element_type=jnp.float32)


def _mm_nt(a, b):
    """a @ b.T (contract last dims of both) on the MXU, bf16 in / f32 out."""
    return lax.dot_general(a.astype(jnp.bfloat16), b.astype(jnp.bfloat16),
                           (((1,), (1,)), ((), ())),
                           preferred_element_type=jnp.float32)


def _addnorm(residual, delta, gamma, beta):
    """Post-norm AddNorm: LayerNorm(residual + delta), eps=1e-5, f32 math."""
    y = residual + delta
    mu = jnp.mean(y, axis=-1, keepdims=True)
    var = jnp.mean(jnp.square(y - mu), axis=-1, keepdims=True)
    return (y - mu) * lax.rsqrt(var + 1e-5) * gamma + beta


def _mha(q_in, k_in, v_in, wq, bq, wk, bk, wv, bv, wo, bo, mask):
    """Multi-head attention with per-head, pre-split weights.

    q_in: [T, Dq]; k_in/v_in: [S, Dk]; wq/wk/wv: [H, D*, dh]; bq/bk/bv: [H, 1, dh];
    wo: [H, dh, C]; bo: [1, C]; mask broadcasts against [T, S] (1 = keep).
    concat(heads) @ Wo is computed as sum_h head_h @ Wo[h], so no lane slicing of
    activations and no concatenation is ever needed inside the kernel.
    """
    heads, _, dh = wq.shape
    scale = float(dh) ** -0.5
    ctx = jnp.zeros((q_in.shape[0], wo.shape[-1]), jnp.float32)
    for h in range(heads):                           # static head loop, 2-D dots only
        qh = _mm(q_in, wq[h]) + bq[h]                # [T, dh]
        kh = _mm(k_in, wk[h]) + bk[h]                # [S, dh]
        vh = _mm(v_in, wv[h]) + bv[h]                # [S, dh]
        s = _mm_nt(qh, kh) * scale                   # [T, S]
        s = jnp.where(mask > 0.0, s, _MASK_NEG)
        s = s - jnp.max(s, axis=-1, keepdims=True)
        e = jnp.exp(s)
        p = e * pl.reciprocal(jnp.sum(e, axis=-1, keepdims=True), approx=True)
        ctx = ctx + _mm(_mm(p, vh), wo[h])           # fold head-concat into Wo[h] accumulation
    return ctx + bo


# ---------------------------------------------------------------------------
# Fused kernel: conv + all blocks, one grid step per batch element
# ---------------------------------------------------------------------------

def _link_attention_kernel(x_ref, style_ref, maskc_ref, maskr_ref, *refs):
    *prm_refs, o_ref = refs
    assert len(prm_refs) == len(_PARAM_ORDER)
    prm = dict(zip(_PARAM_ORDER, prm_refs))

    x_in = x_ref[0]            # [T, C]   f32
    style = style_ref[0]       # [S, styles]
    mask_col = maskc_ref[0]    # [T, 1]
    mask_row = maskr_ref[0]    # [1, T]
    T, C = x_in.shape

    # ---- depthwise Conv1d (cross-correlation) + ReLU + mask ------------------
    conv_k = prm["conv_w"].shape[0]
    padn = conv_k // 2
    conv_w = prm["conv_w"][...]                      # [K, C] f32
    conv_b = prm["conv_b"][...]                      # [1, C]
    if padn > 0:
        # tile-aligned (multiple of 8 rows) zero halo -> cheap, safe concat
        pad_rows = ((padn + 7) // 8) * 8
        zpad = jnp.zeros((pad_rows, C), jnp.float32)
        xp = jnp.concatenate([zpad, x_in, zpad], axis=0)   # [T + 2*pad_rows, C]
        base = pad_rows - padn
    else:
        xp = x_in
        base = 0
    acc = jnp.zeros((T, C), jnp.float32)
    for k in range(conv_k):                          # static unrolled MAC (VPU)
        acc = acc + xp[base + k:base + k + T, :] * conv_w[k:k + 1, :]
    x = jnp.maximum(acc + conv_b, 0.0) * mask_col

    # ---- masks built in-kernel (never materialized in HBM) -------------------
    mask_self = mask_col * mask_row                  # [T, T]
    linkkey = prm["linkkey"][...]                    # [P, styles], grid-invariant

    nblocks = prm["self_wq"].shape[0]
    for i in range(nblocks):                         # static block loop
        # self-attention + AddNorm
        attn = _mha(x, x, x,
                    prm["self_wq"][i], prm["self_bq"][i],
                    prm["self_wk"][i], prm["self_bk"][i],
                    prm["self_wv"][i], prm["self_bv"][i],
                    prm["self_wo"][i], prm["self_bo"][i],
                    mask_self)
        x = _addnorm(x, attn, prm["self_g"][i], prm["self_beta"][i])

        # link attention (keys = link prototypes, values = style) + AddNorm
        attn = _mha(x, linkkey, style,
                    prm["link_wq"][i], prm["link_bq"][i],
                    prm["link_wk"][i], prm["link_bk"][i],
                    prm["link_wv"][i], prm["link_bv"][i],
                    prm["link_wo"][i], prm["link_bo"][i],
                    mask_col)
        x = _addnorm(x, attn, prm["link_g"][i], prm["link_beta"][i])

        # FFN + AddNorm, then per-row mask
        # TODO(synk): dropout (p=0.0) is a no-op at inference and is not modeled.
        h1 = jnp.maximum(_mm(x, prm["ffn_w1"][i]) + prm["ffn_b1"][i], 0.0)
        y = _mm(h1, prm["ffn_w2"][i]) + prm["ffn_b2"][i]
        x = _addnorm(x, y, prm["ffn_g"][i], prm["ffn_beta"][i])
        x = x * mask_col

    o_ref[0] = x.astype(o_ref.dtype)


# ---------------------------------------------------------------------------
# Pallas wrapper
# ---------------------------------------------------------------------------

def _const_spec(arr):
    nd = arr.ndim
    return pl.BlockSpec(arr.shape, lambda *_: (0,) * nd)   # grid-invariant, VMEM-resident


def link_attention_forward(params, contents, style, mask=None):
    B, T, C = contents.shape
    _, S, styles = style.shape
    P = params["linkkey"].shape[0]
    assert S == P, "style length must equal the number of prototypes"

    if mask is None:
        mask = jnp.ones((B, T), jnp.float32)   # numerically identical to the mask=None path
    mask = mask.astype(jnp.float32)
    mask_col = mask[:, :, None]   # [B, T, 1]
    mask_row = mask[:, None, :]   # [B, 1, T]

    weights = [params[name] for name in _PARAM_ORDER]

    in_specs = [
        pl.BlockSpec((1, T, C), lambda b: (b, 0, 0)),
        pl.BlockSpec((1, S, styles), lambda b: (b, 0, 0)),
        pl.BlockSpec((1, T, 1), lambda b: (b, 0, 0)),
        pl.BlockSpec((1, 1, T), lambda b: (b, 0, 0)),
    ] + [_const_spec(w) for w in weights]

    return pl.pallas_call(
        _link_attention_kernel,
        out_shape=jax.ShapeDtypeStruct((B, T, C), jnp.float32),
        grid=(B,),
        in_specs=in_specs,
        out_specs=pl.BlockSpec((1, T, C), lambda b: (b, 0, 0)),
        compiler_params=pltpu.CompilerParams(
            dimension_semantics=("parallel",)),   # shards batch over the 2 TCs on v7x
    )(contents, style, mask_col, mask_row, *weights)


# ---------------------------------------------------------------------------
# Parameter initialization (kernel-ready layout)
# ---------------------------------------------------------------------------

def _linear_init(key, din, dout):
    kw, kb = jax.random.split(key)
    bound = 1.0 / (din ** 0.5)
    w = jax.random.uniform(kw, (din, dout), jnp.float32, -bound, bound)
    b = jax.random.uniform(kb, (1, dout), jnp.float32, -bound, bound)
    return w, b


def _split_heads_in(a, heads):
    # [din, C] (or [1, C]) -> [H, din, dh]: split output channels per head.
    din, c = a.shape
    return jnp.transpose(a.reshape(din, heads, c // heads), (1, 0, 2))


def _split_heads_out(w, heads):
    # [C, C] -> [H, dh, C]: split the input rows of the output projection so that
    # concat_heads(o) @ Wo == sum_h o_h @ Wo[h].
    c, cout = w.shape
    return w.reshape(heads, c // heads, cout)


def _mha_init(key, kdim, qdim, channels, heads):
    kq, kk, kv, ko = jax.random.split(key, 4)
    wq, bq = _linear_init(kq, qdim, channels)
    wk, bk = _linear_init(kk, kdim, channels)
    wv, bv = _linear_init(kv, kdim, channels)
    wo, bo = _linear_init(ko, channels, channels)
    return {
        "wq": _split_heads_in(wq, heads), "bq": _split_heads_in(bq, heads),
        "wk": _split_heads_in(wk, heads), "bk": _split_heads_in(bk, heads),
        "wv": _split_heads_in(wv, heads), "bv": _split_heads_in(bv, heads),
        "wo": _split_heads_out(wo, heads), "bo": bo,
        "g": jnp.ones((1, channels), jnp.float32),
        "beta": jnp.zeros((1, channels), jnp.float32),
    }


def _ffn_init(key, channels, ffn):
    k1, k2 = jax.random.split(key)
    w1, b1 = _linear_init(k1, channels, ffn)
    w2, b2 = _linear_init(k2, ffn, channels)
    return {"w1": w1, "b1": b1, "w2": w2, "b2": b2,
            "g": jnp.ones((1, channels), jnp.float32),
            "beta": jnp.zeros((1, channels), jnp.float32)}


_BF16_KEYS = ("wq", "wk", "wv", "wo", "w1", "w2")   # MXU operands stored in bf16


def _stack_blocks(dicts, prefix):
    out = {}
    for name in dicts[0]:
        arr = jnp.stack([d[name] for d in dicts], axis=0)
        if name in _BF16_KEYS:
            arr = arr.astype(jnp.bfloat16)
        out[prefix + name] = arr
    return out


def init_params(key, kernels, contexts, styles, heads, ffn, prototypes, blocks):
    assert kernels % 2 == 1, "odd kernel size expected (padding = K // 2 keeps length)"
    assert contexts % heads == 0
    keys = jax.random.split(key, 1 + blocks)
    kcw, kcb, klk = jax.random.split(keys[0], 3)
    bound = 1.0 / (kernels ** 0.5)   # depthwise conv: fan_in = 1 * kernels
    params = {
        # conv weight stored [K, contexts] (torch weight [contexts, 1, K] transposed)
        "conv_w": jax.random.uniform(kcw, (kernels, contexts), jnp.float32, -bound, bound),
        "conv_b": jax.random.uniform(kcb, (1, contexts), jnp.float32, -bound, bound),
        "linkkey": jax.random.normal(klk, (prototypes, styles), jnp.float32),
    }
    selfs, links, ffns = [], [], []
    for i in range(blocks):
        ks, kl, kf = jax.random.split(keys[1 + i], 3)
        selfs.append(_mha_init(ks, contexts, contexts, contexts, heads))
        links.append(_mha_init(kl, styles, contexts, contexts, heads))
        ffns.append(_ffn_init(kf, contexts, ffn))
    params.update(_stack_blocks(selfs, "self_"))
    params.update(_stack_blocks(links, "link_"))
    params.update(_stack_blocks(ffns, "ffn_"))
    return params


# ---------------------------------------------------------------------------
# Main
# ---------------------------------------------------------------------------

if __name__ == "__main__":
    kernels, contexts, styles = 3, 32, 16
    heads, ffn, prototypes, blocks = 4, 64, 8, 2
    B, T = 2, 16

    root = jax.random.PRNGKey(0)
    kp, kc, ks = jax.random.split(root, 3)
    params = init_params(kp, kernels, contexts, styles, heads, ffn, prototypes, blocks)
    contents = jax.random.normal(kc, (B, T, contexts), jnp.float32)
    style = jax.random.normal(ks, (B, prototypes, styles), jnp.float32)

    fwd = jax.jit(link_attention_forward)
    out = jax.block_until_ready(fwd(params, contents, style))

    assert out.shape == (B, T, contexts), out.shape
    assert bool(jnp.all(jnp.isfinite(out)))
    print("KERNEL_OK")
</pallas_src>

<mosaic_0001>
module attributes {stable_mosaic.version = 11 : i64} {
  func.func @_link_attention_kernel(%arg0: i32, %arg1: memref<1x16x32xf32, #tpu.memory_space<vmem>>, %arg2: memref<1x8x16xf32, #tpu.memory_space<vmem>>, %arg3: memref<1x16x1xf32, #tpu.memory_space<vmem>>, %arg4: memref<1x1x16xf32, #tpu.memory_space<vmem>>, %arg5: memref<3x32xf32, #tpu.memory_space<vmem>>, %arg6: memref<1x32xf32, #tpu.memory_space<vmem>>, %arg7: memref<8x16xf32, #tpu.memory_space<vmem>>, %arg8: memref<2x4x32x8xbf16, #tpu.memory_space<vmem>>, %arg9: memref<2x4x1x8xf32, #tpu.memory_space<vmem>>, %arg10: memref<2x4x32x8xbf16, #tpu.memory_space<vmem>>, %arg11: memref<2x4x1x8xf32, #tpu.memory_space<vmem>>, %arg12: memref<2x4x32x8xbf16, #tpu.memory_space<vmem>>, %arg13: memref<2x4x1x8xf32, #tpu.memory_space<vmem>>, %arg14: memref<2x4x8x32xbf16, #tpu.memory_space<vmem>>, %arg15: memref<2x1x32xf32, #tpu.memory_space<vmem>>, %arg16: memref<2x1x32xf32, #tpu.memory_space<vmem>>, %arg17: memref<2x1x32xf32, #tpu.memory_space<vmem>>, %arg18: memref<2x4x32x8xbf16, #tpu.memory_space<vmem>>, %arg19: memref<2x4x1x8xf32, #tpu.memory_space<vmem>>, %arg20: memref<2x4x16x8xbf16, #tpu.memory_space<vmem>>, %arg21: memref<2x4x1x8xf32, #tpu.memory_space<vmem>>, %arg22: memref<2x4x16x8xbf16, #tpu.memory_space<vmem>>, %arg23: memref<2x4x1x8xf32, #tpu.memory_space<vmem>>, %arg24: memref<2x4x8x32xbf16, #tpu.memory_space<vmem>>, %arg25: memref<2x1x32xf32, #tpu.memory_space<vmem>>, %arg26: memref<2x1x32xf32, #tpu.memory_space<vmem>>, %arg27: memref<2x1x32xf32, #tpu.memory_space<vmem>>, %arg28: memref<2x32x64xbf16, #tpu.memory_space<vmem>>, %arg29: memref<2x1x64xf32, #tpu.memory_space<vmem>>, %arg30: memref<2x64x32xbf16, #tpu.memory_space<vmem>>, %arg31: memref<2x1x32xf32, #tpu.memory_space<vmem>>, %arg32: memref<2x1x32xf32, #tpu.memory_space<vmem>>, %arg33: memref<2x1x32xf32, #tpu.memory_space<vmem>>, %arg34: memref<1x16x32xf32, #tpu.memory_space<vmem>>) attributes {dimension_semantics = [#tpu.dimension_semantics<parallel>], iteration_bounds = array<i64: 2>, scalar_prefetch = 0 : i64, scratch_operands = 0 : i64, tpu.core_type = #tpu.core_type<tc>, window_params = [{transform_indices = @transform_0, window_bounds = array<i64: 1, 16, 32>}, {transform_indices = @transform_1, window_bounds = array<i64: 1, 8, 16>}, {transform_indices = @transform_2, window_bounds = array<i64: 1, 16, 1>}, {transform_indices = @transform_3, window_bounds = array<i64: 1, 1, 16>}, {pipeline_mode = #tpu.pipeline_mode<synchronous>, transform_indices = @transform_4, window_bounds = array<i64: 3, 32>}, {pipeline_mode = #tpu.pipeline_mode<synchronous>, transform_indices = @transform_5, window_bounds = array<i64: 1, 32>}, {pipeline_mode = #tpu.pipeline_mode<synchronous>, transform_indices = @transform_6, window_bounds = array<i64: 8, 16>}, {pipeline_mode = #tpu.pipeline_mode<synchronous>, transform_indices = @transform_7, window_bounds = array<i64: 2, 4, 32, 8>}, {pipeline_mode = #tpu.pipeline_mode<synchronous>, transform_indices = @transform_8, window_bounds = array<i64: 2, 4, 1, 8>}, {pipeline_mode = #tpu.pipeline_mode<synchronous>, transform_indices = @transform_9, window_bounds = array<i64: 2, 4, 32, 8>}, {pipeline_mode = #tpu.pipeline_mode<synchronous>, transform_indices = @transform_10, window_bounds = array<i64: 2, 4, 1, 8>}, {pipeline_mode = #tpu.pipeline_mode<synchronous>, transform_indices = @transform_11, window_bounds = array<i64: 2, 4, 32, 8>}, {pipeline_mode = #tpu.pipeline_mode<synchronous>, transform_indices = @transform_12, window_bounds = array<i64: 2, 4, 1, 8>}, {pipeline_mode = #tpu.pipeline_mode<synchronous>, transform_indices = @transform_13, window_bounds = array<i64: 2, 4, 8, 32>}, {pipeline_mode = #tpu.pipeline_mode<synchronous>, transform_indices = @transform_14, window_bounds = array<i64: 2, 1, 32>}, {pipeline_mode = #tpu.pipeline_mode<synchronous>, transform_indices = @transform_15, window_bounds = array<i64: 2, 1, 32>}, {pipeline_mode = #tpu.pipeline_mode<synchronous>, transform_indices = @transform_16, window_bounds = array<i64: 2, 1, 32>}, {pipeline_mode = #tpu.pipeline_mode<synchronous>, transform_indices = @transform_17, window_bounds = array<i64: 2, 4, 32, 8>}, {pipeline_mode = #tpu.pipeline_mode<synchronous>, transform_indices = @transform_18, window_bounds = array<i64: 2, 4, 1, 8>}, {pipeline_mode = #tpu.pipeline_mode<synchronous>, transform_indices = @transform_19, window_bounds = array<i64: 2, 4, 16, 8>}, {pipeline_mode = #tpu.pipeline_mode<synchronous>, transform_indices = @transform_20, window_bounds = array<i64: 2, 4, 1, 8>}, {pipeline_mode = #tpu.pipeline_mode<synchronous>, transform_indices = @transform_21, window_bounds = array<i64: 2, 4, 16, 8>}, {pipeline_mode = #tpu.pipeline_mode<synchronous>, transform_indices = @transform_22, window_bounds = array<i64: 2, 4, 1, 8>}, {pipeline_mode = #tpu.pipeline_mode<synchronous>, transform_indices = @transform_23, window_bounds = array<i64: 2, 4, 8, 32>}, {pipeline_mode = #tpu.pipeline_mode<synchronous>, transform_indices = @transform_24, window_bounds = array<i64: 2, 1, 32>}, {pipeline_mode = #tpu.pipeline_mode<synchronous>, transform_indices = @transform_25, window_bounds = array<i64: 2, 1, 32>}, {pipeline_mode = #tpu.pipeline_mode<synchronous>, transform_indices = @transform_26, window_bounds = array<i64: 2, 1, 32>}, {pipeline_mode = #tpu.pipeline_mode<synchronous>, transform_indices = @transform_27, window_bounds = array<i64: 2, 32, 64>}, {pipeline_mode = #tpu.pipeline_mode<synchronous>, transform_indices = @transform_28, window_bounds = array<i64: 2, 1, 64>}, {pipeline_mode = #tpu.pipeline_mode<synchronous>, transform_indices = @transform_29, window_bounds = array<i64: 2, 64, 32>}, {pipeline_mode = #tpu.pipeline_mode<synchronous>, transform_indices = @transform_30, window_bounds = array<i64: 2, 1, 32>}, {pipeline_mode = #tpu.pipeline_mode<synchronous>, transform_indices = @transform_31, window_bounds = array<i64: 2, 1, 32>}, {pipeline_mode = #tpu.pipeline_mode<synchronous>, transform_indices = @transform_32, window_bounds = array<i64: 2, 1, 32>}, {transform_indices = @transform_33, window_bounds = array<i64: 1, 16, 32>}]} {
    %c0 = arith.constant 0 : index
    %c0_0 = arith.constant 0 : index
    %c0_1 = arith.constant 0 : index
    %0 = vector.load %arg1[%c0, %c0_0, %c0_1] : memref<1x16x32xf32, #tpu.memory_space<vmem>>, vector<1x16x32xf32>
    %1 = vector.shape_cast %0 : vector<1x16x32xf32> to vector<16x32xf32>
    %c0_2 = arith.constant 0 : index
    %c0_3 = arith.constant 0 : index
    %c0_4 = arith.constant 0 : index
    %2 = vector.load %arg2[%c0_2, %c0_3, %c0_4] : memref<1x8x16xf32, #tpu.memory_space<vmem>>, vector<1x8x16xf32>
    %3 = vector.shape_cast %2 : vector<1x8x16xf32> to vector<8x16xf32>
    %c0_5 = arith.constant 0 : index
    %c0_6 = arith.constant 0 : index
    %c0_7 = arith.constant 0 : index
    %4 = vector.load %arg3[%c0_5, %c0_6, %c0_7] : memref<1x16x1xf32, #tpu.memory_space<vmem>>, vector<1x16x1xf32>
    %5 = vector.shape_cast %4 : vector<1x16x1xf32> to vector<16x1xf32>
    %c0_8 = arith.constant 0 : index
    %c0_9 = arith.constant 0 : index
    %c0_10 = arith.constant 0 : index
    %6 = vector.load %arg4[%c0_8, %c0_9, %c0_10] : memref<1x1x16xf32, #tpu.memory_space<vmem>>, vector<1x1x16xf32>
    %7 = vector.shape_cast %6 : vector<1x1x16xf32> to vector<1x16xf32>
    %c0_11 = arith.constant 0 : index
    %c0_12 = arith.constant 0 : index
    %8 = vector.load %arg5[%c0_11, %c0_12] : memref<3x32xf32, #tpu.memory_space<vmem>>, vector<3x32xf32>
    %c0_13 = arith.constant 0 : index
    %c0_14 = arith.constant 0 : index
    %9 = vector.load %arg6[%c0_13, %c0_14] : memref<1x32xf32, #tpu.memory_space<vmem>>, vector<1x32xf32>
    %cst = arith.constant 0.000000e+00 : f32
    %10 = vector.broadcast %cst : f32 to vector<8x32xf32>
    %11 = tpu.concatenate %10, %1, %10 in 0 : vector<8x32xf32>, vector<16x32xf32>, vector<8x32xf32> -> vector<32x32xf32>
    %cst_15 = arith.constant 0.000000e+00 : f32
    %12 = vector.broadcast %cst_15 : f32 to vector<16x32xf32>
    %13 = vector.extract_strided_slice %11 {offsets = [7, 0], sizes = [16, 32], strides = [1, 1]} : vector<32x32xf32> to vector<16x32xf32>
    %14 = vector.extract_strided_slice %8 {offsets = [0, 0], sizes = [1, 32], strides = [1, 1]} : vector<3x32xf32> to vector<1x32xf32>
    %15 = vector.broadcast %14 : vector<1x32xf32> to vector<16x32xf32>
    %16 = arith.mulf %13, %15 : vector<16x32xf32>
    %17 = arith.addf %12, %16 : vector<16x32xf32>
    %18 = vector.extract_strided_slice %11 {offsets = [8, 0], sizes = [16, 32], strides = [1, 1]} : vector<32x32xf32> to vector<16x32xf32>
    %19 = vector.extract_strided_slice %8 {offsets = [1, 0], sizes = [1, 32], strides = [1, 1]} : vector<3x32xf32> to vector<1x32xf32>
    %20 = vector.broadcast %19 : vector<1x32xf32> to vector<16x32xf32>
    %21 = arith.mulf %18, %20 : vector<16x32xf32>
    %22 = arith.addf %17, %21 : vector<16x32xf32>
    %23 = vector.extract_strided_slice %11 {offsets = [9, 0], sizes = [16, 32], strides = [1, 1]} : vector<32x32xf32> to vector<16x32xf32>
    %24 = vector.extract_strided_slice %8 {offsets = [2, 0], sizes = [1, 32], strides = [1, 1]} : vector<3x32xf32> to vector<1x32xf32>
    %25 = vector.broadcast %24 : vector<1x32xf32> to vector<16x32xf32>
    %26 = arith.mulf %23, %25 : vector<16x32xf32>
    %27 = arith.addf %22, %26 : vector<16x32xf32>
    %28 = vector.broadcast %9 : vector<1x32xf32> to vector<16x32xf32>
    %29 = arith.addf %27, %28 : vector<16x32xf32>
    %cst_16 = arith.constant 0.000000e+00 : f32
    %30 = vector.broadcast %cst_16 : f32 to vector<16x32xf32>
    %31 = arith.maximumf %29, %30 : vector<16x32xf32>
    %32 = vector.broadcast %5 : vector<16x1xf32> to vector<16x32xf32>
    %33 = arith.mulf %31, %32 : vector<16x32xf32>
    %34 = vector.broadcast %5 : vector<16x1xf32> to vector<16x16xf32>
    %35 = vector.broadcast %7 : vector<1x16xf32> to vector<16x16xf32>
    %36 = arith.mulf %34, %35 : vector<16x16xf32>
    %c0_17 = arith.constant 0 : index
    %c0_18 = arith.constant 0 : index
    %37 = vector.load %arg7[%c0_17, %c0_18] : memref<8x16xf32, #tpu.memory_space<vmem>>, vector<8x16xf32>
    %c0_19 = arith.constant 0 : index
    %c0_20 = arith.constant 0 : index
    %c0_21 = arith.constant 0 : index
    %c0_22 = arith.constant 0 : index
    %38 = vector.load %arg8[%c0_19, %c0_20, %c0_21, %c0_22] : memref<2x4x32x8xbf16, #tpu.memory_space<vmem>>, vector<1x4x32x8xbf16>
    %39 = vector.shape_cast %38 : vector<1x4x32x8xbf16> to vector<4x32x8xbf16>
    %c0_23 = arith.constant 0 : index
    %c0_24 = arith.constant 0 : index
    %c0_25 = arith.constant 0 : index
    %c0_26 = arith.constant 0 : index
    %40 = vector.load %arg9[%c0_23, %c0_24, %c0_25, %c0_26] : memref<2x4x1x8xf32, #tpu.memory_space<vmem>>, vector<1x4x1x8xf32>
    %41 = vector.shape_cast %40 : vector<1x4x1x8xf32> to vector<4x1x8xf32>
    %c0_27 = arith.constant 0 : index
    %c0_28 = arith.constant 0 : index
    %c0_29 = arith.constant 0 : index
    %c0_30 = arith.constant 0 : index
    %42 = vector.load %arg10[%c0_27, %c0_28, %c0_29, %c0_30] : memref<2x4x32x8xbf16, #tpu.memory_space<vmem>>, vector<1x4x32x8xbf16>
    %43 = vector.shape_cast %42 : vector<1x4x32x8xbf16> to vector<4x32x8xbf16>
    %c0_31 = arith.constant 0 : index
    %c0_32 = arith.constant 0 : index
    %c0_33 = arith.constant 0 : index
    %c0_34 = arith.constant 0 : index
    %44 = vector.load %arg11[%c0_31, %c0_32, %c0_33, %c0_34] : memref<2x4x1x8xf32, #tpu.memory_space<vmem>>, vector<1x4x1x8xf32>
    %45 = vector.shape_cast %44 : vector<1x4x1x8xf32> to vector<4x1x8xf32>
    %c0_35 = arith.constant 0 : index
    %c0_36 = arith.constant 0 : index
    %c0_37 = arith.constant 0 : index
    %c0_38 = arith.constant 0 : index
    %46 = vector.load %arg12[%c0_35, %c0_36, %c0_37, %c0_38] : memref<2x4x32x8xbf16, #tpu.memory_space<vmem>>, vector<1x4x32x8xbf16>
    %47 = vector.shape_cast %46 : vector<1x4x32x8xbf16> to vector<4x32x8xbf16>
    %c0_39 = arith.constant 0 : index
    %c0_40 = arith.constant 0 : index
    %c0_41 = arith.constant 0 : index
    %c0_42 = arith.constant 0 : index
    %48 = vector.load %arg13[%c0_39, %c0_40, %c0_41, %c0_42] : memref<2x4x1x8xf32, #tpu.memory_space<vmem>>, vector<1x4x1x8xf32>
    %49 = vector.shape_cast %48 : vector<1x4x1x8xf32> to vector<4x1x8xf32>
    %c0_43 = arith.constant 0 : index
    %c0_44 = arith.constant 0 : index
    %c0_45 = arith.constant 0 : index
    %c0_46 = arith.constant 0 : index
    %50 = vector.load %arg14[%c0_43, %c0_44, %c0_45, %c0_46] : memref<2x4x8x32xbf16, #tpu.memory_space<vmem>>, vector<1x4x8x32xbf16>
    %51 = vector.shape_cast %50 : vector<1x4x8x32xbf16> to vector<4x8x32xbf16>
    %c0_47 = arith.constant 0 : index
    %c0_48 = arith.constant 0 : index
    %c0_49 = arith.constant 0 : index
    %52 = vector.load %arg15[%c0_47, %c0_48, %c0_49] : memref<2x1x32xf32, #tpu.memory_space<vmem>>, vector<1x1x32xf32>
    %53 = vector.shape_cast %52 : vector<1x1x32xf32> to vector<1x32xf32>
    %cst_50 = arith.constant 0.000000e+00 : f32
    %54 = vector.broadcast %cst_50 : f32 to vector<16x32xf32>
    %55 = vector.extract_strided_slice %39 {offsets = [0, 0, 0], sizes = [1, 32, 8], strides = [1, 1, 1]} : vector<4x32x8xbf16> to vector<1x32x8xbf16>
    %56 = vector.shape_cast %55 : vector<1x32x8xbf16> to vector<32x8xbf16>
    %57 = arith.truncf %33 : vector<16x32xf32> to vector<16x32xbf16>
    %cst_51 = arith.constant dense<0.000000e+00> : vector<16x8xf32>
    %58 = tpu.matmul %57, %56, %cst_51 {dimension_numbers = #tpu.dot_dimension_numbers<[1], [0], [0], [1], [0, 0, 1, 1], [], []>} : vector<16x32xbf16>, vector<32x8xbf16>, vector<16x8xf32> -> vector<16x8xf32>
    %59 = vector.extract_strided_slice %41 {offsets = [0, 0, 0], sizes = [1, 1, 8], strides = [1, 1, 1]} : vector<4x1x8xf32> to vector<1x1x8xf32>
    %60 = vector.shape_cast %59 : vector<1x1x8xf32> to vector<1x8xf32>
    %61 = vector.broadcast %60 : vector<1x8xf32> to vector<16x8xf32>
    %62 = arith.addf %58, %61 : vector<16x8xf32>
    %63 = vector.extract_strided_slice %43 {offsets = [0, 0, 0], sizes = [1, 32, 8], strides = [1, 1, 1]} : vector<4x32x8xbf16> to vector<1x32x8xbf16>
    %64 = vector.shape_cast %63 : vector<1x32x8xbf16> to vector<32x8xbf16>
    %65 = arith.truncf %33 : vector<16x32xf32> to vector<16x32xbf16>
    %cst_52 = arith.constant dense<0.000000e+00> : vector<16x8xf32>
    %66 = tpu.matmul %65, %64, %cst_52 {dimension_numbers = #tpu.dot_dimension_numbers<[1], [0], [0], [1], [0, 0, 1, 1], [], []>} : vector<16x32xbf16>, vector<32x8xbf16>, vector<16x8xf32> -> vector<16x8xf32>
    %67 = vector.extract_strided_slice %45 {offsets = [0, 0, 0], sizes = [1, 1, 8], strides = [1, 1, 1]} : vector<4x1x8xf32> to vector<1x1x8xf32>
    %68 = vector.shape_cast %67 : vector<1x1x8xf32> to vector<1x8xf32>
    %69 = vector.broadcast %68 : vector<1x8xf32> to vector<16x8xf32>
    %70 = arith.addf %66, %69 : vector<16x8xf32>
    %71 = vector.extract_strided_slice %47 {offsets = [0, 0, 0], sizes = [1, 32, 8], strides = [1, 1, 1]} : vector<4x32x8xbf16> to vector<1x32x8xbf16>
    %72 = vector.shape_cast %71 : vector<1x32x8xbf16> to vector<32x8xbf16>
    %73 = arith.truncf %33 : vector<16x32xf32> to vector<16x32xbf16>
    %cst_53 = arith.constant dense<0.000000e+00> : vector<16x8xf32>
    %74 = tpu.matmul %73, %72, %cst_53 {dimension_numbers = #tpu.dot_dimension_numbers<[1], [0], [0], [1], [0, 0, 1, 1], [], []>} : vector<16x32xbf16>, vector<32x8xbf16>, vector<16x8xf32> -> vector<16x8xf32>
    %75 = vector.extract_strided_slice %49 {offsets = [0, 0, 0], sizes = [1, 1, 8], strides = [1, 1, 1]} : vector<4x1x8xf32> to vector<1x1x8xf32>
    %76 = vector.shape_cast %75 : vector<1x1x8xf32> to vector<1x8xf32>
    %77 = vector.broadcast %76 : vector<1x8xf32> to vector<16x8xf32>
    %78 = arith.addf %74, %77 : vector<16x8xf32>
    %79 = arith.truncf %62 : vector<16x8xf32> to vector<16x8xbf16>
    %80 = arith.truncf %70 : vector<16x8xf32> to vector<16x8xbf16>
    %cst_54 = arith.constant dense<0.000000e+00> : vector<16x16xf32>
    %81 = tpu.matmul %79, %80, %cst_54 {dimension_numbers = #tpu.dot_dimension_numbers<[1], [1], [0], [0], [0, 0, 1, 0], [], []>} : vector<16x8xbf16>, vector<16x8xbf16>, vector<16x16xf32> -> vector<16x16xf32>
    %cst_55 = arith.constant 0.353553385 : f32
    %82 = vector.broadcast %cst_55 : f32 to vector<16x16xf32>
    %83 = arith.mulf %81, %82 : vector<16x16xf32>
    %cst_56 = arith.constant 0.000000e+00 : f32
    %84 = vector.broadcast %cst_56 : f32 to vector<16x16xf32>
    %85 = arith.cmpf ogt, %36, %84 : vector<16x16xf32>
    %cst_57 = arith.constant -1.000000e+30 : f32
    %86 = vector.broadcast %cst_57 : f32 to vector<16x16xf32>
    %87 = arith.select %85, %83, %86 : vector<16x16xi1>, vector<16x16xf32>
    %cst_58 = arith.constant dense<0xFF800000> : vector<16xf32>
    %88 = vector.multi_reduction <maximumf>, %87, %cst_58 [1] : vector<16x16xf32> to vector<16xf32>
    %89 = vector.shape_cast %88 : vector<16xf32> to vector<16x1xf32>
    %90 = vector.broadcast %89 : vector<16x1xf32> to vector<16x16xf32>
    %91 = arith.subf %87, %90 : vector<16x16xf32>
    %92 = math.exp %91 : vector<16x16xf32>
    %cst_59 = arith.constant dense<0.000000e+00> : vector<16xf32>
    %93 = vector.multi_reduction <add>, %92, %cst_59 [1] : vector<16x16xf32> to vector<16xf32>
    %94 = vector.shape_cast %93 : vector<16xf32> to vector<16x1xf32>
    %95 = tpu.reciprocal %94 {approx = true} : vector<16x1xf32> -> vector<16x1xf32>
    %96 = vector.broadcast %95 : vector<16x1xf32> to vector<16x16xf32>
    %97 = arith.mulf %92, %96 : vector<16x16xf32>
    %98 = arith.truncf %97 : vector<16x16xf32> to vector<16x16xbf16>
    %99 = arith.truncf %78 : vector<16x8xf32> to vector<16x8xbf16>
    %cst_60 = arith.constant dense<0.000000e+00> : vector<16x8xf32>
    %100 = tpu.matmul %98, %99, %cst_60 {dimension_numbers = #tpu.dot_dimension_numbers<[1], [0], [0], [1], [0, 0, 1, 1], [], []>} : vector<16x16xbf16>, vector<16x8xbf16>, vector<16x8xf32> -> vector<16x8xf32>
    %101 = vector.extract_strided_slice %51 {offsets = [0, 0, 0], sizes = [1, 8, 32], strides = [1, 1, 1]} : vector<4x8x32xbf16> to vector<1x8x32xbf16>
    %102 = vector.shape_cast %101 : vector<1x8x32xbf16> to vector<8x32xbf16>
    %103 = arith.truncf %100 : vector<16x8xf32> to vector<16x8xbf16>
    %cst_61 = arith.constant dense<0.000000e+00> : vector<16x32xf32>
    %104 = tpu.matmul %103, %102, %cst_61 {dimension_numbers = #tpu.dot_dimension_numbers<[1], [0], [0], [1], [0, 0, 1, 1], [], []>} : vector<16x8xbf16>, vector<8x32xbf16>, vector<16x32xf32> -> vector<16x32xf32>
    %105 = arith.addf %54, %104 : vector<16x32xf32>
    %106 = vector.extract_strided_slice %39 {offsets = [1, 0, 0], sizes = [1, 32, 8], strides = [1, 1, 1]} : vector<4x32x8xbf16> to vector<1x32x8xbf16>
    %107 = vector.shape_cast %106 : vector<1x32x8xbf16> to vector<32x8xbf16>
    %108 = arith.truncf %33 : vector<16x32xf32> to vector<16x32xbf16>
    %cst_62 = arith.constant dense<0.000000e+00> : vector<16x8xf32>
    %109 = tpu.matmul %108, %107, %cst_62 {dimension_numbers = #tpu.dot_dimension_numbers<[1], [0], [0], [1], [0, 0, 1, 1], [], []>} : vector<16x32xbf16>, vector<32x8xbf16>, vector<16x8xf32> -> vector<16x8xf32>
    %110 = vector.extract_strided_slice %41 {offsets = [1, 0, 0], sizes = [1, 1, 8], strides = [1, 1, 1]} : vector<4x1x8xf32> to vector<1x1x8xf32>
    %111 = vector.shape_cast %110 : vector<1x1x8xf32> to vector<1x8xf32>
    %112 = vector.broadcast %111 : vector<1x8xf32> to vector<16x8xf32>
    %113 = arith.addf %109, %112 : vector<16x8xf32>
    %114 = vector.extract_strided_slice %43 {offsets = [1, 0, 0], sizes = [1, 32, 8], strides = [1, 1, 1]} : vector<4x32x8xbf16> to vector<1x32x8xbf16>
    %115 = vector.shape_cast %114 : vector<1x32x8xbf16> to vector<32x8xbf16>
    %116 = arith.truncf %33 : vector<16x32xf32> to vector<16x32xbf16>
    %cst_63 = arith.constant dense<0.000000e+00> : vector<16x8xf32>
    %117 = tpu.matmul %116, %115, %cst_63 {dimension_numbers = #tpu.dot_dimension_numbers<[1], [0], [0], [1], [0, 0, 1, 1], [], []>} : vector<16x32xbf16>, vector<32x8xbf16>, vector<16x8xf32> -> vector<16x8xf32>
    %118 = vector.extract_strided_slice %45 {offsets = [1, 0, 0], sizes = [1, 1, 8], strides = [1, 1, 1]} : vector<4x1x8xf32> to vector<1x1x8xf32>
    %119 = vector.shape_cast %118 : vector<1x1x8xf32> to vector<1x8xf32>
    %120 = vector.broadcast %119 : vector<1x8xf32> to vector<16x8xf32>
    %121 = arith.addf %117, %120 : vector<16x8xf32>
    %122 = vector.extract_strided_slice %47 {offsets = [1, 0, 0], sizes = [1, 32, 8], strides = [1, 1, 1]} : vector<4x32x8xbf16> to vector<1x32x8xbf16>
    %123 = vector.shape_cast %122 : vector<1x32x8xbf16> to vector<32x8xbf16>
    %124 = arith.truncf %33 : vector<16x32xf32> to vector<16x32xbf16>
    %cst_64 = arith.constant dense<0.000000e+00> : vector<16x8xf32>
    %125 = tpu.matmul %124, %123, %cst_64 {dimension_numbers = #tpu.dot_dimension_numbers<[1], [0], [0], [1], [0, 0, 1, 1], [], []>} : vector<16x32xbf16>, vector<32x8xbf16>, vector<16x8xf32> -> vector<16x8xf32>
    %126 = vector.extract_strided_slice %49 {offsets = [1, 0, 0], sizes = [1, 1, 8], strides = [1, 1, 1]} : vector<4x1x8xf32> to vector<1x1x8xf32>
    %127 = vector.shape_cast %126 : vector<1x1x8xf32> to vector<1x8xf32>
    %128 = vector.broadcast %127 : vector<1x8xf32> to vector<16x8xf32>
    %129 = arith.addf %125, %128 : vector<16x8xf32>
    %130 = arith.truncf %113 : vector<16x8xf32> to vector<16x8xbf16>
    %131 = arith.truncf %121 : vector<16x8xf32> to vector<16x8xbf16>
    %cst_65 = arith.constant dense<0.000000e+00> : vector<16x16xf32>
    %132 = tpu.matmul %130, %131, %cst_65 {dimension_numbers = #tpu.dot_dimension_numbers<[1], [1], [0], [0], [0, 0, 1, 0], [], []>} : vector<16x8xbf16>, vector<16x8xbf16>, vector<16x16xf32> -> vector<16x16xf32>
    %cst_66 = arith.constant 0.353553385 : f32
    %133 = vector.broadcast %cst_66 : f32 to vector<16x16xf32>
    %134 = arith.mulf %132, %133 : vector<16x16xf32>
    %cst_67 = arith.constant 0.000000e+00 : f32
    %135 = vector.broadcast %cst_67 : f32 to vector<16x16xf32>
    %136 = arith.cmpf ogt, %36, %135 : vector<16x16xf32>
    %cst_68 = arith.constant -1.000000e+30 : f32
    %137 = vector.broadcast %cst_68 : f32 to vector<16x16xf32>
    %138 = arith.select %136, %134, %137 : vector<16x16xi1>, vector<16x16xf32>
    %cst_69 = arith.constant dense<0xFF800000> : vector<16xf32>
    %139 = vector.multi_reduction <maximumf>, %138, %cst_69 [1] : vector<16x16xf32> to vector<16xf32>
    %140 = vector.shape_cast %139 : vector<16xf32> to vector<16x1xf32>
    %141 = vector.broadcast %140 : vector<16x1xf32> to vector<16x16xf32>
    %142 = arith.subf %138, %141 : vector<16x16xf32>
    %143 = math.exp %142 : vector<16x16xf32>
    %cst_70 = arith.constant dense<0.000000e+00> : vector<16xf32>
    %144 = vector.multi_reduction <add>, %143, %cst_70 [1] : vector<16x16xf32> to vector<16xf32>
    %145 = vector.shape_cast %144 : vector<16xf32> to vector<16x1xf32>
    %146 = tpu.reciprocal %145 {approx = true} : vector<16x1xf32> -> vector<16x1xf32>
    %147 = vector.broadcast %146 : vector<16x1xf32> to vector<16x16xf32>
    %148 = arith.mulf %143, %147 : vector<16x16xf32>
    %149 = arith.truncf %148 : vector<16x16xf32> to vector<16x16xbf16>
    %150 = arith.truncf %129 : vector<16x8xf32> to vector<16x8xbf16>
    %cst_71 = arith.constant dense<0.000000e+00> : vector<16x8xf32>
    %151 = tpu.matmul %149, %150, %cst_71 {dimension_numbers = #tpu.dot_dimension_numbers<[1], [0], [0], [1], [0, 0, 1, 1], [], []>} : vector<16x16xbf16>, vector<16x8xbf16>, vector<16x8xf32> -> vector<16x8xf32>
    %152 = vector.extract_strided_slice %51 {offsets = [1, 0, 0], sizes = [1, 8, 32], strides = [1, 1, 1]} : vector<4x8x32xbf16> to vector<1x8x32xbf16>
    %153 = vector.shape_cast %152 : vector<1x8x32xbf16> to vector<8x32xbf16>
    %154 = arith.truncf %151 : vector<16x8xf32> to vector<16x8xbf16>
    %cst_72 = arith.constant dense<0.000000e+00> : vector<16x32xf32>
    %155 = tpu.matmul %154, %153, %cst_72 {dimension_numbers = #tpu.dot_dimension_numbers<[1], [0], [0], [1], [0, 0, 1, 1], [], []>} : vector<16x8xbf16>, vector<8x32xbf16>, vector<16x32xf32> -> vector<16x32xf32>
    %156 = arith.addf %105, %155 : vector<16x32xf32>
    %157 = vector.extract_strided_slice %39 {offsets = [2, 0, 0], sizes = [1, 32, 8], strides = [1, 1, 1]} : vector<4x32x8xbf16> to vector<1x32x8xbf16>
    %158 = vector.shape_cast %157 : vector<1x32x8xbf16> to vector<32x8xbf16>
    %159 = arith.truncf %33 : vector<16x32xf32> to vector<16x32xbf16>
    %cst_73 = arith.constant dense<0.000000e+00> : vector<16x8xf32>
    %160 = tpu.matmul %159, %158, %cst_73 {dimension_numbers = #tpu.dot_dimension_numbers<[1], [0], [0], [1], [0, 0, 1, 1], [], []>} : vector<16x32xbf16>, vector<32x8xbf16>, vector<16x8xf32> -> vector<16x8xf32>
    %161 = vector.extract_strided_slice %41 {offsets = [2, 0, 0], sizes = [1, 1, 8], strides = [1, 1, 1]} : vector<4x1x8xf32> to vector<1x1x8xf32>
    %162 = vector.shape_cast %161 : vector<1x1x8xf32> to vector<1x8xf32>
    %163 = vector.broadcast %162 : vector<1x8xf32> to vector<16x8xf32>
    %164 = arith.addf %160, %163 : vector<16x8xf32>
    %165 = vector.extract_strided_slice %43 {offsets = [2, 0, 0], sizes = [1, 32, 8], strides = [1, 1, 1]} : vector<4x32x8xbf16> to vector<1x32x8xbf16>
    %166 = vector.shape_cast %165 : vector<1x32x8xbf16> to vector<32x8xbf16>
    %167 = arith.truncf %33 : vector<16x32xf32> to vector<16x32xbf16>
    %cst_74 = arith.constant dense<0.000000e+00> : vector<16x8xf32>
    %168 = tpu.matmul %167, %166, %cst_74 {dimension_numbers = #tpu.dot_dimension_numbers<[1], [0], [0], [1], [0, 0, 1, 1], [], []>} : vector<16x32xbf16>, vector<32x8xbf16>, vector<16x8xf32> -> vector<16x8xf32>
    %169 = vector.extract_strided_slice %45 {offsets = [2, 0, 0], sizes = [1, 1, 8], strides = [1, 1, 1]} : vector<4x1x8xf32> to vector<1x1x8xf32>
    %170 = vector.shape_cast %169 : vector<1x1x8xf32> to vector<1x8xf32>
    %171 = vector.broadcast %170 : vector<1x8xf32> to vector<16x8xf32>
    %172 = arith.addf %168, %171 : vector<16x8xf32>
    %173 = vector.extract_strided_slice %47 {offsets = [2, 0, 0], sizes = [1, 32, 8], strides = [1, 1, 1]} : vector<4x32x8xbf16> to vector<1x32x8xbf16>
    %174 = vector.shape_cast %173 : vector<1x32x8xbf16> to vector<32x8xbf16>
    %175 = arith.truncf %33 : vector<16x32xf32> to vector<16x32xbf16>
    %cst_75 = arith.constant dense<0.000000e+00> : vector<16x8xf32>
    %176 = tpu.matmul %175, %174, %cst_75 {dimension_numbers = #tpu.dot_dimension_numbers<[1], [0], [0], [1], [0, 0, 1, 1], [], []>} : vector<16x32xbf16>, vector<32x8xbf16>, vector<16x8xf32> -> vector<16x8xf32>
    %177 = vector.extract_strided_slice %49 {offsets = [2, 0, 0], sizes = [1, 1, 8], strides = [1, 1, 1]} : vector<4x1x8xf32> to vector<1x1x8xf32>
    %178 = vector.shape_cast %177 : vector<1x1x8xf32> to vector<1x8xf32>
    %179 = vector.broadcast %178 : vector<1x8xf32> to vector<16x8xf32>
    %180 = arith.addf %176, %179 : vector<16x8xf32>
    %181 = arith.truncf %164 : vector<16x8xf32> to vector<16x8xbf16>
    %182 = arith.truncf %172 : vector<16x8xf32> to vector<16x8xbf16>
    %cst_76 = arith.constant dense<0.000000e+00> : vector<16x16xf32>
    %183 = tpu.matmul %181, %182, %cst_76 {dimension_numbers = #tpu.dot_dimension_numbers<[1], [1], [0], [0], [0, 0, 1, 0], [], []>} : vector<16x8xbf16>, vector<16x8xbf16>, vector<16x16xf32> -> vector<16x16xf32>
    %cst_77 = arith.constant 0.353553385 : f32
    %184 = vector.broadcast %cst_77 : f32 to vector<16x16xf32>
    %185 = arith.mulf %183, %184 : vector<16x16xf32>
    %cst_78 = arith.constant 0.000000e+00 : f32
    %186 = vector.broadcast %cst_78 : f32 to vector<16x16xf32>
    %187 = arith.cmpf ogt, %36, %186 : vector<16x16xf32>
    %cst_79 = arith.constant -1.000000e+30 : f32
    %188 = vector.broadcast %cst_79 : f32 to vector<16x16xf32>
    %189 = arith.select %187, %185, %188 : vector<16x16xi1>, vector<16x16xf32>
    %cst_80 = arith.constant dense<0xFF800000> : vector<16xf32>
    %190 = vector.multi_reduction <maximumf>, %189, %cst_80 [1] : vector<16x16xf32> to vector<16xf32>
    %191 = vector.shape_cast %190 : vector<16xf32> to vector<16x1xf32>
    %192 = vector.broadcast %191 : vector<16x1xf32> to vector<16x16xf32>
    %193 = arith.subf %189, %192 : vector<16x16xf32>
    %194 = math.exp %193 : vector<16x16xf32>
    %cst_81 = arith.constant dense<0.000000e+00> : vector<16xf32>
    %195 = vector.multi_reduction <add>, %194, %cst_81 [1] : vector<16x16xf32> to vector<16xf32>
    %196 = vector.shape_cast %195 : vector<16xf32> to vector<16x1xf32>
    %197 = tpu.reciprocal %196 {approx = true} : vector<16x1xf32> -> vector<16x1xf32>
    %198 = vector.broadcast %197 : vector<16x1xf32> to vector<16x16xf32>
    %199 = arith.mulf %194, %198 : vector<16x16xf32>
    %200 = arith.truncf %199 : vector<16x16xf32> to vector<16x16xbf16>
    %201 = arith.truncf %180 : vector<16x8xf32> to vector<16x8xbf16>
    %cst_82 = arith.constant dense<0.000000e+00> : vector<16x8xf32>
    %202 = tpu.matmul %200, %201, %cst_82 {dimension_numbers = #tpu.dot_dimension_numbers<[1], [0], [0], [1], [0, 0, 1, 1], [], []>} : vector<16x16xbf16>, vector<16x8xbf16>, vector<16x8xf32> -> vector<16x8xf32>
    %203 = vector.extract_strided_slice %51 {offsets = [2, 0, 0], sizes = [1, 8, 32], strides = [1, 1, 1]} : vector<4x8x32xbf16> to vector<1x8x32xbf16>
    %204 = vector.shape_cast %203 : vector<1x8x32xbf16> to vector<8x32xbf16>
    %205 = arith.truncf %202 : vector<16x8xf32> to vector<16x8xbf16>
    %cst_83 = arith.constant dense<0.000000e+00> : vector<16x32xf32>
    %206 = tpu.matmul %205, %204, %cst_83 {dimension_numbers = #tpu.dot_dimension_numbers<[1], [0], [0], [1], [0, 0, 1, 1], [], []>} : vector<16x8xbf16>, vector<8x32xbf16>, vector<16x32xf32> -> vector<16x32xf32>
    %207 = arith.addf %156, %206 : vector<16x32xf32>
    %208 = vector.extract_strided_slice %39 {offsets = [3, 0, 0], sizes = [1, 32, 8], strides = [1, 1, 1]} : vector<4x32x8xbf16> to vector<1x32x8xbf16>
    %209 = vector.shape_cast %208 : vector<1x32x8xbf16> to vector<32x8xbf16>
    %210 = arith.truncf %33 : vector<16x32xf32> to vector<16x32xbf16>
    %cst_84 = arith.constant dense<0.000000e+00> : vector<16x8xf32>
    %211 = tpu.matmul %210, %209, %cst_84 {dimension_numbers = #tpu.dot_dimension_numbers<[1], [0], [0], [1], [0, 0, 1, 1], [], []>} : vector<16x32xbf16>, vector<32x8xbf16>, vector<16x8xf32> -> vector<16x8xf32>
    %212 = vector.extract_strided_slice %41 {offsets = [3, 0, 0], sizes = [1, 1, 8], strides = [1, 1, 1]} : vector<4x1x8xf32> to vector<1x1x8xf32>
    %213 = vector.shape_cast %212 : vector<1x1x8xf32> to vector<1x8xf32>
    %214 = vector.broadcast %213 : vector<1x8xf32> to vector<16x8xf32>
    %215 = arith.addf %211, %214 : vector<16x8xf32>
    %216 = vector.extract_strided_slice %43 {offsets = [3, 0, 0], sizes = [1, 32, 8], strides = [1, 1, 1]} : vector<4x32x8xbf16> to vector<1x32x8xbf16>
    %217 = vector.shape_cast %216 : vector<1x32x8xbf16> to vector<32x8xbf16>
    %218 = arith.truncf %33 : vector<16x32xf32> to vector<16x32xbf16>
    %cst_85 = arith.constant dense<0.000000e+00> : vector<16x8xf32>
    %219 = tpu.matmul %218, %217, %cst_85 {dimension_numbers = #tpu.dot_dimension_numbers<[1], [0], [0], [1], [0, 0, 1, 1], [], []>} : vector<16x32xbf16>, vector<32x8xbf16>, vector<16x8xf32> -> vector<16x8xf32>
    %220 = vector.extract_strided_slice %45 {offsets = [3, 0, 0], sizes = [1, 1, 8], strides = [1, 1, 1]} : vector<4x1x8xf32> to vector<1x1x8xf32>
    %221 = vector.shape_cast %220 : vector<1x1x8xf32> to vector<1x8xf32>
    %222 = vector.broadcast %221 : vector<1x8xf32> to vector<16x8xf32>
    %223 = arith.addf %219, %222 : vector<16x8xf32>
    %224 = vector.extract_strided_slice %47 {offsets = [3, 0, 0], sizes = [1, 32, 8], strides = [1, 1, 1]} : vector<4x32x8xbf16> to vector<1x32x8xbf16>
    %225 = vector.shape_cast %224 : vector<1x32x8xbf16> to vector<32x8xbf16>
    %226 = arith.truncf %33 : vector<16x32xf32> to vector<16x32xbf16>
    %cst_86 = arith.constant dense<0.000000e+00> : vector<16x8xf32>
    %227 = tpu.matmul %226, %225, %cst_86 {dimension_numbers = #tpu.dot_dimension_numbers<[1], [0], [0], [1], [0, 0, 1, 1], [], []>} : vector<16x32xbf16>, vector<32x8xbf16>, vector<16x8xf32> -> vector<16x8xf32>
    %228 = vector.extract_strided_slice %49 {offsets = [3, 0, 0], sizes = [1, 1, 8], strides = [1, 1, 1]} : vector<4x1x8xf32> to vector<1x1x8xf32>
    %229 = vector.shape_cast %228 : vector<1x1x8xf32> to vector<1x8xf32>
    %230 = vector.broadcast %229 : vector<1x8xf32> to vector<16x8xf32>
    %231 = arith.addf %227, %230 : vector<16x8xf32>
    %232 = arith.truncf %215 : vector<16x8xf32> to vector<16x8xbf16>
    %233 = arith.truncf %223 : vector<16x8xf32> to vector<16x8xbf16>
    %cst_87 = arith.constant dense<0.000000e+00> : vector<16x16xf32>
    %234 = tpu.matmul %232, %233, %cst_87 {dimension_numbers = #tpu.dot_dimension_numbers<[1], [1], [0], [0], [0, 0, 1, 0], [], []>} : vector<16x8xbf16>, vector<16x8xbf16>, vector<16x16xf32> -> vector<16x16xf32>
    %cst_88 = arith.constant 0.353553385 : f32
    %235 = vector.broadcast %cst_88 : f32 to vector<16x16xf32>
    %236 = arith.mulf %234, %235 : vector<16x16xf32>
    %cst_89 = arith.constant 0.000000e+00 : f32
    %237 = vector.broadcast %cst_89 : f32 to vector<16x16xf32>
    %238 = arith.cmpf ogt, %36, %237 : vector<16x16xf32>
    %cst_90 = arith.constant -1.000000e+30 : f32
    %239 = vector.broadcast %cst_90 : f32 to vector<16x16xf32>
    %240 = arith.select %238, %236, %239 : vector<16x16xi1>, vector<16x16xf32>
    %cst_91 = arith.constant dense<0xFF800000> : vector<16xf32>
    %241 = vector.multi_reduction <maximumf>, %240, %cst_91 [1] : vector<16x16xf32> to vector<16xf32>
    %242 = vector.shape_cast %241 : vector<16xf32> to vector<16x1xf32>
    %243 = vector.broadcast %242 : vector<16x1xf32> to vector<16x16xf32>
    %244 = arith.subf %240, %243 : vector<16x16xf32>
    %245 = math.exp %244 : vector<16x16xf32>
    %cst_92 = arith.constant dense<0.000000e+00> : vector<16xf32>
    %246 = vector.multi_reduction <add>, %245, %cst_92 [1] : vector<16x16xf32> to vector<16xf32>
    %247 = vector.shape_cast %246 : vector<16xf32> to vector<16x1xf32>
    %248 = tpu.reciprocal %247 {approx = true} : vector<16x1xf32> -> vector<16x1xf32>
    %249 = vector.broadcast %248 : vector<16x1xf32> to vector<16x16xf32>
    %250 = arith.mulf %245, %249 : vector<16x16xf32>
    %251 = arith.truncf %250 : vector<16x16xf32> to vector<16x16xbf16>
    %252 = arith.truncf %231 : vector<16x8xf32> to vector<16x8xbf16>
    %cst_93 = arith.constant dense<0.000000e+00> : vector<16x8xf32>
    %253 = tpu.matmul %251, %252, %cst_93 {dimension_numbers = #tpu.dot_dimension_numbers<[1], [0], [0], [1], [0, 0, 1, 1], [], []>} : vector<16x16xbf16>, vector<16x8xbf16>, vector<16x8xf32> -> vector<16x8xf32>
    %254 = vector.extract_strided_slice %51 {offsets = [3, 0, 0], sizes = [1, 8, 32], strides = [1, 1, 1]} : vector<4x8x32xbf16> to vector<1x8x32xbf16>
    %255 = vector.shape_cast %254 : vector<1x8x32xbf16> to vector<8x32xbf16>
    %256 = arith.truncf %253 : vector<16x8xf32> to vector<16x8xbf16>
    %cst_94 = arith.constant dense<0.000000e+00> : vector<16x32xf32>
    %257 = tpu.matmul %256, %255, %cst_94 {dimension_numbers = #tpu.dot_dimension_numbers<[1], [0], [0], [1], [0, 0, 1, 1], [], []>} : vector<16x8xbf16>, vector<8x32xbf16>, vector<16x32xf32> -> vector<16x32xf32>
    %258 = arith.addf %207, %257 : vector<16x32xf32>
    %259 = vector.broadcast %53 : vector<1x32xf32> to vector<16x32xf32>
    %260 = arith.addf %258, %259 : vector<16x32xf32>
    %c0_95 = arith.constant 0 : index
    %c0_96 = arith.constant 0 : index
    %c0_97 = arith.constant 0 : index
    %261 = vector.load %arg16[%c0_95, %c0_96, %c0_97] : memref<2x1x32xf32, #tpu.memory_space<vmem>>, vector<1x1x32xf32>
    %262 = vector.shape_cast %261 : vector<1x1x32xf32> to vector<1x32xf32>
    %c0_98 = arith.constant 0 : index
    %c0_99 = arith.constant 0 : index
    %c0_100 = arith.constant 0 : index
    %263 = vector.load %arg17[%c0_98, %c0_99, %c0_100] : memref<2x1x32xf32, #tpu.memory_space<vmem>>, vector<1x1x32xf32>
    %264 = vector.shape_cast %263 : vector<1x1x32xf32> to vector<1x32xf32>
    %265 = arith.addf %33, %260 : vector<16x32xf32>
    %cst_101 = arith.constant dense<0.000000e+00> : vector<16xf32>
    %266 = vector.multi_reduction <add>, %265, %cst_101 [1] : vector<16x32xf32> to vector<16xf32>
    %267 = vector.shape_cast %266 : vector<16xf32> to vector<16x1xf32>
    %cst_102 = arith.constant 3.200000e+01 : f32
    %268 = vector.broadcast %cst_102 : f32 to vector<16x1xf32>
    %269 = arith.divf %267, %268 : vector<16x1xf32>
    %270 = vector.broadcast %269 : vector<16x1xf32> to vector<16x32xf32>
    %271 = arith.subf %265, %270 : vector<16x32xf32>
    %272 = arith.mulf %271, %271 : vector<16x32xf32>
    %cst_103 = arith.constant dense<0.000000e+00> : vector<16xf32>
    %273 = vector.multi_reduction <add>, %272, %cst_103 [1] : vector<16x32xf32> to vector<16xf32>
    %274 = vector.shape_cast %273 : vector<16xf32> to vector<16x1xf32>
    %cst_104 = arith.constant 3.200000e+01 : f32
    %275 = vector.broadcast %cst_104 : f32 to vector<16x1xf32>
    %276 = arith.divf %274, %275 : vector<16x1xf32>
    %277 = vector.broadcast %269 : vector<16x1xf32> to vector<16x32xf32>
    %278 = arith.subf %265, %277 : vector<16x32xf32>
    %cst_105 = arith.constant 9.99999974E-6 : f32
    %279 = vector.broadcast %cst_105 : f32 to vector<16x1xf32>
    %280 = arith.addf %276, %279 : vector<16x1xf32>
    %281 = math.rsqrt %280 : vector<16x1xf32>
    %282 = vector.broadcast %281 : vector<16x1xf32> to vector<16x32xf32>
    %283 = arith.mulf %278, %282 : vector<16x32xf32>
    %284 = vector.broadcast %262 : vector<1x32xf32> to vector<16x32xf32>
    %285 = arith.mulf %283, %284 : vector<16x32xf32>
    %286 = vector.broadcast %264 : vector<1x32xf32> to vector<16x32xf32>
    %287 = arith.addf %285, %286 : vector<16x32xf32>
    %c0_106 = arith.constant 0 : index
    %c0_107 = arith.constant 0 : index
    %c0_108 = arith.constant 0 : index
    %c0_109 = arith.constant 0 : index
    %288 = vector.load %arg18[%c0_106, %c0_107, %c0_108, %c0_109] : memref<2x4x32x8xbf16, #tpu.memory_space<vmem>>, vector<1x4x32x8xbf16>
    %289 = vector.shape_cast %288 : vector<1x4x32x8xbf16> to vector<4x32x8xbf16>
    %c0_110 = arith.constant 0 : index
    %c0_111 = arith.constant 0 : index
    %c0_112 = arith.constant 0 : index
    %c0_113 = arith.constant 0 : index
    %290 = vector.load %arg19[%c0_110, %c0_111, %c0_112, %c0_113] : memref<2x4x1x8xf32, #tpu.memory_space<vmem>>, vector<1x4x1x8xf32>
    %291 = vector.shape_cast %290 : vector<1x4x1x8xf32> to vector<4x1x8xf32>
    %c0_114 = arith.constant 0 : index
    %c0_115 = arith.constant 0 : index
    %c0_116 = arith.constant 0 : index
    %c0_117 = arith.constant 0 : index
    %292 = vector.load %arg20[%c0_114, %c0_115, %c0_116, %c0_117] : memref<2x4x16x8xbf16, #tpu.memory_space<vmem>>, vector<1x4x16x8xbf16>
    %293 = vector.shape_cast %292 : vector<1x4x16x8xbf16> to vector<4x16x8xbf16>
    %c0_118 = arith.constant 0 : index
    %c0_119 = arith.constant 0 : index
    %c0_120 = arith.constant 0 : index
    %c0_121 = arith.constant 0 : index
    %294 = vector.load %arg21[%c0_118, %c0_119, %c0_120, %c0_121] : memref<2x4x1x8xf32, #tpu.memory_space<vmem>>, vector<1x4x1x8xf32>
    %295 = vector.shape_cast %294 : vector<1x4x1x8xf32> to vector<4x1x8xf32>
    %c0_122 = arith.constant 0 : index
    %c0_123 = arith.constant 0 : index
    %c0_124 = arith.constant 0 : index
    %c0_125 = arith.constant 0 : index
    %296 = vector.load %arg22[%c0_122, %c0_123, %c0_124, %c0_125] : memref<2x4x16x8xbf16, #tpu.memory_space<vmem>>, vector<1x4x16x8xbf16>
    %297 = vector.shape_cast %296 : vector<1x4x16x8xbf16> to vector<4x16x8xbf16>
    %c0_126 = arith.constant 0 : index
    %c0_127 = arith.constant 0 : index
    %c0_128 = arith.constant 0 : index
    %c0_129 = arith.constant 0 : index
    %298 = vector.load %arg23[%c0_126, %c0_127, %c0_128, %c0_129] : memref<2x4x1x8xf32, #tpu.memory_space<vmem>>, vector<1x4x1x8xf32>
    %299 = vector.shape_cast %298 : vector<1x4x1x8xf32> to vector<4x1x8xf32>
    %c0_130 = arith.constant 0 : index
    %c0_131 = arith.constant 0 : index
    %c0_132 = arith.constant 0 : index
    %c0_133 = arith.constant 0 : index
    %300 = vector.load %arg24[%c0_130, %c0_131, %c0_132, %c0_133] : memref<2x4x8x32xbf16, #tpu.memory_space<vmem>>, vector<1x4x8x32xbf16>
    %301 = vector.shape_cast %300 : vector<1x4x8x32xbf16> to vector<4x8x32xbf16>
    %c0_134 = arith.constant 0 : index
    %c0_135 = arith.constant 0 : index
    %c0_136 = arith.constant 0 : index
    %302 = vector.load %arg25[%c0_134, %c0_135, %c0_136] : memref<2x1x32xf32, #tpu.memory_space<vmem>>, vector<1x1x32xf32>
    %303 = vector.shape_cast %302 : vector<1x1x32xf32> to vector<1x32xf32>
    %cst_137 = arith.constant 0.000000e+00 : f32
    %304 = vector.broadcast %cst_137 : f32 to vector<16x32xf32>
    %305 = vector.extract_strided_slice %289 {offsets = [0, 0, 0], sizes = [1, 32, 8], strides = [1, 1, 1]} : vector<4x32x8xbf16> to vector<1x32x8xbf16>
    %306 = vector.shape_cast %305 : vector<1x32x8xbf16> to vector<32x8xbf16>
    %307 = arith.truncf %287 : vector<16x32xf32> to vector<16x32xbf16>
    %cst_138 = arith.constant dense<0.000000e+00> : vector<16x8xf32>
    %308 = tpu.matmul %307, %306, %cst_138 {dimension_numbers = #tpu.dot_dimension_numbers<[1], [0], [0], [1], [0, 0, 1, 1], [], []>} : vector<16x32xbf16>, vector<32x8xbf16>, vector<16x8xf32> -> vector<16x8xf32>
    %309 = vector.extract_strided_slice %291 {offsets = [0, 0, 0], sizes = [1, 1, 8], strides = [1, 1, 1]} : vector<4x1x8xf32> to vector<1x1x8xf32>
    %310 = vector.shape_cast %309 : vector<1x1x8xf32> to vector<1x8xf32>
    %311 = vector.broadcast %310 : vector<1x8xf32> to vector<16x8xf32>
    %312 = arith.addf %308, %311 : vector<16x8xf32>
    %313 = vector.extract_strided_slice %293 {offsets = [0, 0, 0], sizes = [1, 16, 8], strides = [1, 1, 1]} : vector<4x16x8xbf16> to vector<1x16x8xbf16>
    %314 = vector.shape_cast %313 : vector<1x16x8xbf16> to vector<16x8xbf16>
    %315 = arith.truncf %37 : vector<8x16xf32> to vector<8x16xbf16>
    %cst_139 = arith.constant dense<0.000000e+00> : vector<8x8xf32>
    %316 = tpu.matmul %315, %314, %cst_139 {dimension_numbers = #tpu.dot_dimension_numbers<[1], [0], [0], [1], [0, 0, 1, 1], [], []>} : vector<8x16xbf16>, vector<16x8xbf16>, vector<8x8xf32> -> vector<8x8xf32>
    %317 = vector.extract_strided_slice %295 {offsets = [0, 0, 0], sizes = [1, 1, 8], strides = [1, 1, 1]} : vector<4x1x8xf32> to vector<1x1x8xf32>
    %318 = vector.shape_cast %317 : vector<1x1x8xf32> to vector<1x8xf32>
    %319 = vector.broadcast %318 : vector<1x8xf32> to vector<8x8xf32>
    %320 = arith.addf %316, %319 : vector<8x8xf32>
    %321 = vector.extract_strided_slice %297 {offsets = [0, 0, 0], sizes = [1, 16, 8], strides = [1, 1, 1]} : vector<4x16x8xbf16> to vector<1x16x8xbf16>
    %322 = vector.shape_cast %321 : vector<1x16x8xbf16> to vector<16x8xbf16>
    %323 = arith.truncf %3 : vector<8x16xf32> to vector<8x16xbf16>
    %cst_140 = arith.constant dense<0.000000e+00> : vector<8x8xf32>
    %324 = tpu.matmul %323, %322, %cst_140 {dimension_numbers = #tpu.dot_dimension_numbers<[1], [0], [0], [1], [0, 0, 1, 1], [], []>} : vector<8x16xbf16>, vector<16x8xbf16>, vector<8x8xf32> -> vector<8x8xf32>
    %325 = vector.extract_strided_slice %299 {offsets = [0, 0, 0], sizes = [1, 1, 8], strides = [1, 1, 1]} : vector<4x1x8xf32> to vector<1x1x8xf32>
    %326 = vector.shape_cast %325 : vector<1x1x8xf32> to vector<1x8xf32>
    %327 = vector.broadcast %326 : vector<1x8xf32> to vector<8x8xf32>
    %328 = arith.addf %324, %327 : vector<8x8xf32>
    %329 = arith.truncf %312 : vector<16x8xf32> to vector<16x8xbf16>
    %330 = arith.truncf %320 : vector<8x8xf32> to vector<8x8xbf16>
    %cst_141 = arith.constant dense<0.000000e+00> : vector<16x8xf32>
    %331 = tpu.matmul %329, %330, %cst_141 {dimension_numbers = #tpu.dot_dimension_numbers<[1], [1], [0], [0], [0, 0, 1, 0], [], []>} : vector<16x8xbf16>, vector<8x8xbf16>, vector<16x8xf32> -> vector<16x8xf32>
    %cst_142 = arith.constant 0.353553385 : f32
    %332 = vector.broadcast %cst_142 : f32 to vector<16x8xf32>
    %333 = arith.mulf %331, %332 : vector<16x8xf32>
    %cst_143 = arith.constant 0.000000e+00 : f32
    %334 = vector.broadcast %cst_143 : f32 to vector<16x1xf32>
    %335 = arith.cmpf ogt, %5, %334 : vector<16x1xf32>
    %cst_144 = arith.constant -1.000000e+30 : f32
    %336 = vector.shape_cast %335 : vector<16x1xi1> to vector<16x1xi1>
    %337 = vector.broadcast %336 : vector<16x1xi1> to vector<16x8xi1>
    %338 = vector.broadcast %cst_144 : f32 to vector<16x8xf32>
    %339 = arith.select %337, %333, %338 : vector<16x8xi1>, vector<16x8xf32>
    %cst_145 = arith.constant dense<0xFF800000> : vector<16xf32>
    %340 = vector.multi_reduction <maximumf>, %339, %cst_145 [1] : vector<16x8xf32> to vector<16xf32>
    %341 = vector.shape_cast %340 : vector<16xf32> to vector<16x1xf32>
    %342 = vector.broadcast %341 : vector<16x1xf32> to vector<16x8xf32>
    %343 = arith.subf %339, %342 : vector<16x8xf32>
    %344 = math.exp %343 : vector<16x8xf32>
    %cst_146 = arith.constant dense<0.000000e+00> : vector<16xf32>
    %345 = vector.multi_reduction <add>, %344, %cst_146 [1] : vector<16x8xf32> to vector<16xf32>
    %346 = vector.shape_cast %345 : vector<16xf32> to vector<16x1xf32>
    %347 = tpu.reciprocal %346 {approx = true} : vector<16x1xf32> -> vector<16x1xf32>
    %348 = vector.broadcast %347 : vector<16x1xf32> to vector<16x8xf32>
    %349 = arith.mulf %344, %348 : vector<16x8xf32>
    %350 = arith.truncf %349 : vector<16x8xf32> to vector<16x8xbf16>
    %351 = arith.truncf %328 : vector<8x8xf32> to vector<8x8xbf16>
    %cst_147 = arith.constant dense<0.000000e+00> : vector<16x8xf32>
    %352 = tpu.matmul %350, %351, %cst_147 {dimension_numbers = #tpu.dot_dimension_numbers<[1], [0], [0], [1], [0, 0, 1, 1], [], []>} : vector<16x8xbf16>, vector<8x8xbf16>, vector<16x8xf32> -> vector<16x8xf32>
    %353 = vector.extract_strided_slice %301 {offsets = [0, 0, 0], sizes = [1, 8, 32], strides = [1, 1, 1]} : vector<4x8x32xbf16> to vector<1x8x32xbf16>
    %354 = vector.shape_cast %353 : vector<1x8x32xbf16> to vector<8x32xbf16>
    %355 = arith.truncf %352 : vector<16x8xf32> to vector<16x8xbf16>
    %cst_148 = arith.constant dense<0.000000e+00> : vector<16x32xf32>
    %356 = tpu.matmul %355, %354, %cst_148 {dimension_numbers = #tpu.dot_dimension_numbers<[1], [0], [0], [1], [0, 0, 1, 1], [], []>} : vector<16x8xbf16>, vector<8x32xbf16>, vector<16x32xf32> -> vector<16x32xf32>
    %357 = arith.addf %304, %356 : vector<16x32xf32>
    %358 = vector.extract_strided_slice %289 {offsets = [1, 0, 0], sizes = [1, 32, 8], strides = [1, 1, 1]} : vector<4x32x8xbf16> to vector<1x32x8xbf16>
    %359 = vector.shape_cast %358 : vector<1x32x8xbf16> to vector<32x8xbf16>
    %360 = arith.truncf %287 : vector<16x32xf32> to vector<16x32xbf16>
    %cst_149 = arith.constant dense<0.000000e+00> : vector<16x8xf32>
    %361 = tpu.matmul %360, %359, %cst_149 {dimension_numbers = #tpu.dot_dimension_numbers<[1], [0], [0], [1], [0, 0, 1, 1], [], []>} : vector<16x32xbf16>, vector<32x8xbf16>, vector<16x8xf32> -> vector<16x8xf32>
    %362 = vector.extract_strided_slice %291 {offsets = [1, 0, 0], sizes = [1, 1, 8], strides = [1, 1, 1]} : vector<4x1x8xf32> to vector<1x1x8xf32>
    %363 = vector.shape_cast %362 : vector<1x1x8xf32> to vector<1x8xf32>
    %364 = vector.broadcast %363 : vector<1x8xf32> to vector<16x8xf32>
    %365 = arith.addf %361, %364 : vector<16x8xf32>
    %366 = vector.extract_strided_slice %293 {offsets = [1, 0, 0], sizes = [1, 16, 8], strides = [1, 1, 1]} : vector<4x16x8xbf16> to vector<1x16x8xbf16>
    %367 = vector.shape_cast %366 : vector<1x16x8xbf16> to vector<16x8xbf16>
    %368 = arith.truncf %37 : vector<8x16xf32> to vector<8x16xbf16>
    %cst_150 = arith.constant dense<0.000000e+00> : vector<8x8xf32>
    %369 = tpu.matmul %368, %367, %cst_150 {dimension_numbers = #tpu.dot_dimension_numbers<[1], [0], [0], [1], [0, 0, 1, 1], [], []>} : vector<8x16xbf16>, vector<16x8xbf16>, vector<8x8xf32> -> vector<8x8xf32>
    %370 = vector.extract_strided_slice %295 {offsets = [1, 0, 0], sizes = [1, 1, 8], strides = [1, 1, 1]} : vector<4x1x8xf32> to vector<1x1x8xf32>
    %371 = vector.shape_cast %370 : vector<1x1x8xf32> to vector<1x8xf32>
    %372 = vector.broadcast %371 : vector<1x8xf32> to vector<8x8xf32>
    %373 = arith.addf %369, %372 : vector<8x8xf32>
    %374 = vector.extract_strided_slice %297 {offsets = [1, 0, 0], sizes = [1, 16, 8], strides = [1, 1, 1]} : vector<4x16x8xbf16> to vector<1x16x8xbf16>
    %375 = vector.shape_cast %374 : vector<1x16x8xbf16> to vector<16x8xbf16>
    %376 = arith.truncf %3 : vector<8x16xf32> to vector<8x16xbf16>
    %cst_151 = arith.constant dense<0.000000e+00> : vector<8x8xf32>
    %377 = tpu.matmul %376, %375, %cst_151 {dimension_numbers = #tpu.dot_dimension_numbers<[1], [0], [0], [1], [0, 0, 1, 1], [], []>} : vector<8x16xbf16>, vector<16x8xbf16>, vector<8x8xf32> -> vector<8x8xf32>
    %378 = vector.extract_strided_slice %299 {offsets = [1, 0, 0], sizes = [1, 1, 8], strides = [1, 1, 1]} : vector<4x1x8xf32> to vector<1x1x8xf32>
    %379 = vector.shape_cast %378 : vector<1x1x8xf32> to vector<1x8xf32>
    %380 = vector.broadcast %379 : vector<1x8xf32> to vector<8x8xf32>
    %381 = arith.addf %377, %380 : vector<8x8xf32>
    %382 = arith.truncf %365 : vector<16x8xf32> to vector<16x8xbf16>
    %383 = arith.truncf %373 : vector<8x8xf32> to vector<8x8xbf16>
    %cst_152 = arith.constant dense<0.000000e+00> : vector<16x8xf32>
    %384 = tpu.matmul %382, %383, %cst_152 {dimension_numbers = #tpu.dot_dimension_numbers<[1], [1], [0], [0], [0, 0, 1, 0], [], []>} : vector<16x8xbf16>, vector<8x8xbf16>, vector<16x8xf32> -> vector<16x8xf32>
    %cst_153 = arith.constant 0.353553385 : f32
    %385 = vector.broadcast %cst_153 : f32 to vector<16x8xf32>
    %386 = arith.mulf %384, %385 : vector<16x8xf32>
    %cst_154 = arith.constant 0.000000e+00 : f32
    %387 = vector.broadcast %cst_154 : f32 to vector<16x1xf32>
    %388 = arith.cmpf ogt, %5, %387 : vector<16x1xf32>
    %cst_155 = arith.constant -1.000000e+30 : f32
    %389 = vector.shape_cast %388 : vector<16x1xi1> to vector<16x1xi1>
    %390 = vector.broadcast %389 : vector<16x1xi1> to vector<16x8xi1>
    %391 = vector.broadcast %cst_155 : f32 to vector<16x8xf32>
    %392 = arith.select %390, %386, %391 : vector<16x8xi1>, vector<16x8xf32>
    %cst_156 = arith.constant dense<0xFF800000> : vector<16xf32>
    %393 = vector.multi_reduction <maximumf>, %392, %cst_156 [1] : vector<16x8xf32> to vector<16xf32>
    %394 = vector.shape_cast %393 : vector<16xf32> to vector<16x1xf32>
    %395 = vector.broadcast %394 : vector<16x1xf32> to vector<16x8xf32>
    %396 = arith.subf %392, %395 : vector<16x8xf32>
    %397 = math.exp %396 : vector<16x8xf32>
    %cst_157 = arith.constant dense<0.000000e+00> : vector<16xf32>
    %398 = vector.multi_reduction <add>, %397, %cst_157 [1] : vector<16x8xf32> to vector<16xf32>
    %399 = vector.shape_cast %398 : vector<16xf32> to vector<16x1xf32>
    %400 = tpu.reciprocal %399 {approx = true} : vector<16x1xf32> -> vector<16x1xf32>
    %401 = vector.broadcast %400 : vector<16x1xf32> to vector<16x8xf32>
    %402 = arith.mulf %397, %401 : vector<16x8xf32>
    %403 = arith.truncf %402 : vector<16x8xf32> to vector<16x8xbf16>
    %404 = arith.truncf %381 : vector<8x8xf32> to vector<8x8xbf16>
    %cst_158 = arith.constant dense<0.000000e+00> : vector<16x8xf32>
    %405 = tpu.matmul %403, %404, %cst_158 {dimension_numbers = #tpu.dot_dimension_numbers<[1], [0], [0], [1], [0, 0, 1, 1], [], []>} : vector<16x8xbf16>, vector<8x8xbf16>, vector<16x8xf32> -> vector<16x8xf32>
    %406 = vector.extract_strided_slice %301 {offsets = [1, 0, 0], sizes = [1, 8, 32], strides = [1, 1, 1]} : vector<4x8x32xbf16> to vector<1x8x32xbf16>
    %407 = vector.shape_cast %406 : vector<1x8x32xbf16> to vector<8x32xbf16>
    %408 = arith.truncf %405 : vector<16x8xf32> to vector<16x8xbf16>
    %cst_159 = arith.constant dense<0.000000e+00> : vector<16x32xf32>
    %409 = tpu.matmul %408, %407, %cst_159 {dimension_numbers = #tpu.dot_dimension_numbers<[1], [0], [0], [1], [0, 0, 1, 1], [], []>} : vector<16x8xbf16>, vector<8x32xbf16>, vector<16x32xf32> -> vector<16x32xf32>
    %410 = arith.addf %357, %409 : vector<16x32xf32>
    %411 = vector.extract_strided_slice %289 {offsets = [2, 0, 0], sizes = [1, 32, 8], strides = [1, 1, 1]} : vector<4x32x8xbf16> to vector<1x32x8xbf16>
    %412 = vector.shape_cast %411 : vector<1x32x8xbf16> to vector<32x8xbf16>
    %413 = arith.truncf %287 : vector<16x32xf32> to vector<16x32xbf16>
    %cst_160 = arith.constant dense<0.000000e+00> : vector<16x8xf32>
    %414 = tpu.matmul %413, %412, %cst_160 {dimension_numbers = #tpu.dot_dimension_numbers<[1], [0], [0], [1], [0, 0, 1, 1], [], []>} : vector<16x32xbf16>, vector<32x8xbf16>, vector<16x8xf32> -> vector<16x8xf32>
    %415 = vector.extract_strided_slice %291 {offsets = [2, 0, 0], sizes = [1, 1, 8], strides = [1, 1, 1]} : vector<4x1x8xf32> to vector<1x1x8xf32>
    %416 = vector.shape_cast %415 : vector<1x1x8xf32> to vector<1x8xf32>
    %417 = vector.broadcast %416 : vector<1x8xf32> to vector<16x8xf32>
    %418 = arith.addf %414, %417 : vector<16x8xf32>
    %419 = vector.extract_strided_slice %293 {offsets = [2, 0, 0], sizes = [1, 16, 8], strides = [1, 1, 1]} : vector<4x16x8xbf16> to vector<1x16x8xbf16>
    %420 = vector.shape_cast %419 : vector<1x16x8xbf16> to vector<16x8xbf16>
    %421 = arith.truncf %37 : vector<8x16xf32> to vector<8x16xbf16>
    %cst_161 = arith.constant dense<0.000000e+00> : vector<8x8xf32>
    %422 = tpu.matmul %421, %420, %cst_161 {dimension_numbers = #tpu.dot_dimension_numbers<[1], [0], [0], [1], [0, 0, 1, 1], [], []>} : vector<8x16xbf16>, vector<16x8xbf16>, vector<8x8xf32> -> vector<8x8xf32>
    %423 = vector.extract_strided_slice %295 {offsets = [2, 0, 0], sizes = [1, 1, 8], strides = [1, 1, 1]} : vector<4x1x8xf32> to vector<1x1x8xf32>
    %424 = vector.shape_cast %423 : vector<1x1x8xf32> to vector<1x8xf32>
    %425 = vector.broadcast %424 : vector<1x8xf32> to vector<8x8xf32>
    %426 = arith.addf %422, %425 : vector<8x8xf32>
    %427 = vector.extract_strided_slice %297 {offsets = [2, 0, 0], sizes = [1, 16, 8], strides = [1, 1, 1]} : vector<4x16x8xbf16> to vector<1x16x8xbf16>
    %428 = vector.shape_cast %427 : vector<1x16x8xbf16> to vector<16x8xbf16>
    %429 = arith.truncf %3 : vector<8x16xf32> to vector<8x16xbf16>
    %cst_162 = arith.constant dense<0.000000e+00> : vector<8x8xf32>
    %430 = tpu.matmul %429, %428, %cst_162 {dimension_numbers = #tpu.dot_dimension_numbers<[1], [0], [0], [1], [0, 0, 1, 1], [], []>} : vector<8x16xbf16>, vector<16x8xbf16>, vector<8x8xf32> -> vector<8x8xf32>
    %431 = vector.extract_strided_slice %299 {offsets = [2, 0, 0], sizes = [1, 1, 8], strides = [1, 1, 1]} : vector<4x1x8xf32> to vector<1x1x8xf32>
    %432 = vector.shape_cast %431 : vector<1x1x8xf32> to vector<1x8xf32>
    %433 = vector.broadcast %432 : vector<1x8xf32> to vector<8x8xf32>
    %434 = arith.addf %430, %433 : vector<8x8xf32>
    %435 = arith.truncf %418 : vector<16x8xf32> to vector<16x8xbf16>
    %436 = arith.truncf %426 : vector<8x8xf32> to vector<8x8xbf16>
    %cst_163 = arith.constant dense<0.000000e+00> : vector<16x8xf32>
    %437 = tpu.matmul %435, %436, %cst_163 {dimension_numbers = #tpu.dot_dimension_numbers<[1], [1], [0], [0], [0, 0, 1, 0], [], []>} : vector<16x8xbf16>, vector<8x8xbf16>, vector<16x8xf32> -> vector<16x8xf32>
    %cst_164 = arith.constant 0.353553385 : f32
    %438 = vector.broadcast %cst_164 : f32 to vector<16x8xf32>
    %439 = arith.mulf %437, %438 : vector<16x8xf32>
    %cst_165 = arith.constant 0.000000e+00 : f32
    %440 = vector.broadcast %cst_165 : f32 to vector<16x1xf32>
    %441 = arith.cmpf ogt, %5, %440 : vector<16x1xf32>
    %cst_166 = arith.constant -1.000000e+30 : f32
    %442 = vector.shape_cast %441 : vector<16x1xi1> to vector<16x1xi1>
    %443 = vector.broadcast %442 : vector<16x1xi1> to vector<16x8xi1>
    %444 = vector.broadcast %cst_166 : f32 to vector<16x8xf32>
    %445 = arith.select %443, %439, %444 : vector<16x8xi1>, vector<16x8xf32>
    %cst_167 = arith.constant dense<0xFF800000> : vector<16xf32>
    %446 = vector.multi_reduction <maximumf>, %445, %cst_167 [1] : vector<16x8xf32> to vector<16xf32>
    %447 = vector.shape_cast %446 : vector<16xf32> to vector<16x1xf32>
    %448 = vector.broadcast %447 : vector<16x1xf32> to vector<16x8xf32>
    %449 = arith.subf %445, %448 : vector<16x8xf32>
    %450 = math.exp %449 : vector<16x8xf32>
    %cst_168 = arith.constant dense<0.000000e+00> : vector<16xf32>
    %451 = vector.multi_reduction <add>, %450, %cst_168 [1] : vector<16x8xf32> to vector<16xf32>
    %452 = vector.shape_cast %451 : vector<16xf32> to vector<16x1xf32>
    %453 = tpu.reciprocal %452 {approx = true} : vector<16x1xf32> -> vector<16x1xf32>
    %454 = vector.broadcast %453 : vector<16x1xf32> to vector<16x8xf32>
    %455 = arith.mulf %450, %454 : vector<16x8xf32>
    %456 = arith.truncf %455 : vector<16x8xf32> to vector<16x8xbf16>
    %457 = arith.truncf %434 : vector<8x8xf32> to vector<8x8xbf16>
    %cst_169 = arith.constant dense<0.000000e+00> : vector<16x8xf32>
    %458 = tpu.matmul %456, %457, %cst_169 {dimension_numbers = #tpu.dot_dimension_numbers<[1], [0], [0], [1], [0, 0, 1, 1], [], []>} : vector<16x8xbf16>, vector<8x8xbf16>, vector<16x8xf32> -> vector<16x8xf32>
    %459 = vector.extract_strided_slice %301 {offsets = [2, 0, 0], sizes = [1, 8, 32], strides = [1, 1, 1]} : vector<4x8x32xbf16> to vector<1x8x32xbf16>
    %460 = vector.shape_cast %459 : vector<1x8x32xbf16> to vector<8x32xbf16>
    %461 = arith.truncf %458 : vector<16x8xf32> to vector<16x8xbf16>
    %cst_170 = arith.constant dense<0.000000e+00> : vector<16x32xf32>
    %462 = tpu.matmul %461, %460, %cst_170 {dimension_numbers = #tpu.dot_dimension_numbers<[1], [0], [0], [1], [0, 0, 1, 1], [], []>} : vector<16x8xbf16>, vector<8x32xbf16>, vector<16x32xf32> -> vector<16x32xf32>
    %463 = arith.addf %410, %462 : vector<16x32xf32>
    %464 = vector.extract_strided_slice %289 {offsets = [3, 0, 0], sizes = [1, 32, 8], strides = [1, 1, 1]} : vector<4x32x8xbf16> to vector<1x32x8xbf16>
    %465 = vector.shape_cast %464 : vector<1x32x8xbf16> to vector<32x8xbf16>
    %466 = arith.truncf %287 : vector<16x32xf32> to vector<16x32xbf16>
    %cst_171 = arith.constant dense<0.000000e+00> : vector<16x8xf32>
    %467 = tpu.matmul %466, %465, %cst_171 {dimension_numbers = #tpu.dot_dimension_numbers<[1], [0], [0], [1], [0, 0, 1, 1], [], []>} : vector<16x32xbf16>, vector<32x8xbf16>, vector<16x8xf32> -> vector<16x8xf32>
    %468 = vector.extract_strided_slice %291 {offsets = [3, 0, 0], sizes = [1, 1, 8], strides = [1, 1, 1]} : vector<4x1x8xf32> to vector<1x1x8xf32>
    %469 = vector.shape_cast %468 : vector<1x1x8xf32> to vector<1x8xf32>
    %470 = vector.broadcast %469 : vector<1x8xf32> to vector<16x8xf32>
    %471 = arith.addf %467, %470 : vector<16x8xf32>
    %472 = vector.extract_strided_slice %293 {offsets = [3, 0, 0], sizes = [1, 16, 8], strides = [1, 1, 1]} : vector<4x16x8xbf16> to vector<1x16x8xbf16>
    %473 = vector.shape_cast %472 : vector<1x16x8xbf16> to vector<16x8xbf16>
    %474 = arith.truncf %37 : vector<8x16xf32> to vector<8x16xbf16>
    %cst_172 = arith.constant dense<0.000000e+00> : vector<8x8xf32>
    %475 = tpu.matmul %474, %473, %cst_172 {dimension_numbers = #tpu.dot_dimension_numbers<[1], [0], [0], [1], [0, 0, 1, 1], [], []>} : vector<8x16xbf16>, vector<16x8xbf16>, vector<8x8xf32> -> vector<8x8xf32>
    %476 = vector.extract_strided_slice %295 {offsets = [3, 0, 0], sizes = [1, 1, 8], strides = [1, 1, 1]} : vector<4x1x8xf32> to vector<1x1x8xf32>
    %477 = vector.shape_cast %476 : vector<1x1x8xf32> to vector<1x8xf32>
    %478 = vector.broadcast %477 : vector<1x8xf32> to vector<8x8xf32>
    %479 = arith.addf %475, %478 : vector<8x8xf32>
    %480 = vector.extract_strided_slice %297 {offsets = [3, 0, 0], sizes = [1, 16, 8], strides = [1, 1, 1]} : vector<4x16x8xbf16> to vector<1x16x8xbf16>
    %481 = vector.shape_cast %480 : vector<1x16x8xbf16> to vector<16x8xbf16>
    %482 = arith.truncf %3 : vector<8x16xf32> to vector<8x16xbf16>
    %cst_173 = arith.constant dense<0.000000e+00> : vector<8x8xf32>
    %483 = tpu.matmul %482, %481, %cst_173 {dimension_numbers = #tpu.dot_dimension_numbers<[1], [0], [0], [1], [0, 0, 1, 1], [], []>} : vector<8x16xbf16>, vector<16x8xbf16>, vector<8x8xf32> -> vector<8x8xf32>
    %484 = vector.extract_strided_slice %299 {offsets = [3, 0, 0], sizes = [1, 1, 8], strides = [1, 1, 1]} : vector<4x1x8xf32> to vector<1x1x8xf32>
    %485 = vector.shape_cast %484 : vector<1x1x8xf32> to vector<1x8xf32>
    %486 = vector.broadcast %485 : vector<1x8xf32> to vector<8x8xf32>
    %487 = arith.addf %483, %486 : vector<8x8xf32>
    %488 = arith.truncf %471 : vector<16x8xf32> to vector<16x8xbf16>
    %489 = arith.truncf %479 : vector<8x8xf32> to vector<8x8xbf16>
    %cst_174 = arith.constant dense<0.000000e+00> : vector<16x8xf32>
    %490 = tpu.matmul %488, %489, %cst_174 {dimension_numbers = #tpu.dot_dimension_numbers<[1], [1], [0], [0], [0, 0, 1, 0], [], []>} : vector<16x8xbf16>, vector<8x8xbf16>, vector<16x8xf32> -> vector<16x8xf32>
    %cst_175 = arith.constant 0.353553385 : f32
    %491 = vector.broadcast %cst_175 : f32 to vector<16x8xf32>
    %492 = arith.mulf %490, %491 : vector<16x8xf32>
    %cst_176 = arith.constant 0.000000e+00 : f32
    %493 = vector.broadcast %cst_176 : f32 to vector<16x1xf32>
    %494 = arith.cmpf ogt, %5, %493 : vector<16x1xf32>
    %cst_177 = arith.constant -1.000000e+30 : f32
    %495 = vector.shape_cast %494 : vector<16x1xi1> to vector<16x1xi1>
    %496 = vector.broadcast %495 : vector<16x1xi1> to vector<16x8xi1>
    %497 = vector.broadcast %cst_177 : f32 to vector<16x8xf32>
    %498 = arith.select %496, %492, %497 : vector<16x8xi1>, vector<16x8xf32>
    %cst_178 = arith.constant dense<0xFF800000> : vector<16xf32>
    %499 = vector.multi_reduction <maximumf>, %498, %cst_178 [1] : vector<16x8xf32> to vector<16xf32>
    %500 = vector.shape_cast %499 : vector<16xf32> to vector<16x1xf32>
    %501 = vector.broadcast %500 : vector<16x1xf32> to vector<16x8xf32>
    %502 = arith.subf %498, %501 : vector<16x8xf32>
    %503 = math.exp %502 : vector<16x8xf32>
    %cst_179 = arith.constant dense<0.000000e+00> : vector<16xf32>
    %504 = vector.multi_reduction <add>, %503, %cst_179 [1] : vector<16x8xf32> to vector<16xf32>
    %505 = vector.shape_cast %504 : vector<16xf32> to vector<16x1xf32>
    %506 = tpu.reciprocal %505 {approx = true} : vector<16x1xf32> -> vector<16x1xf32>
    %507 = vector.broadcast %506 : vector<16x1xf32> to vector<16x8xf32>
    %508 = arith.mulf %503, %507 : vector<16x8xf32>
    %509 = arith.truncf %508 : vector<16x8xf32> to vector<16x8xbf16>
    %510 = arith.truncf %487 : vector<8x8xf32> to vector<8x8xbf16>
    %cst_180 = arith.constant dense<0.000000e+00> : vector<16x8xf32>
    %511 = tpu.matmul %509, %510, %cst_180 {dimension_numbers = #tpu.dot_dimension_numbers<[1], [0], [0], [1], [0, 0, 1, 1], [], []>} : vector<16x8xbf16>, vector<8x8xbf16>, vector<16x8xf32> -> vector<16x8xf32>
    %512 = vector.extract_strided_slice %301 {offsets = [3, 0, 0], sizes = [1, 8, 32], strides = [1, 1, 1]} : vector<4x8x32xbf16> to vector<1x8x32xbf16>
    %513 = vector.shape_cast %512 : vector<1x8x32xbf16> to vector<8x32xbf16>
    %514 = arith.truncf %511 : vector<16x8xf32> to vector<16x8xbf16>
    %cst_181 = arith.constant dense<0.000000e+00> : vector<16x32xf32>
    %515 = tpu.matmul %514, %513, %cst_181 {dimension_numbers = #tpu.dot_dimension_numbers<[1], [0], [0], [1], [0, 0, 1, 1], [], []>} : vector<16x8xbf16>, vector<8x32xbf16>, vector<16x32xf32> -> vector<16x32xf32>
    %516 = arith.addf %463, %515 : vector<16x32xf32>
    %517 = vector.broadcast %303 : vector<1x32xf32> to vector<16x32xf32>
    %518 = arith.addf %516, %517 : vector<16x32xf32>
    %c0_182 = arith.constant 0 : index
    %c0_183 = arith.constant 0 : index
    %c0_184 = arith.constant 0 : index
    %519 = vector.load %arg26[%c0_182, %c0_183, %c0_184] : memref<2x1x32xf32, #tpu.memory_space<vmem>>, vector<1x1x32xf32>
    %520 = vector.shape_cast %519 : vector<1x1x32xf32> to vector<1x32xf32>
    %c0_185 = arith.constant 0 : index
    %c0_186 = arith.constant 0 : index
    %c0_187 = arith.constant 0 : index
    %521 = vector.load %arg27[%c0_185, %c0_186, %c0_187] : memref<2x1x32xf32, #tpu.memory_space<vmem>>, vector<1x1x32xf32>
    %522 = vector.shape_cast %521 : vector<1x1x32xf32> to vector<1x32xf32>
    %523 = arith.addf %287, %518 : vector<16x32xf32>
    %cst_188 = arith.constant dense<0.000000e+00> : vector<16xf32>
    %524 = vector.multi_reduction <add>, %523, %cst_188 [1] : vector<16x32xf32> to vector<16xf32>
    %525 = vector.shape_cast %524 : vector<16xf32> to vector<16x1xf32>
    %cst_189 = arith.constant 3.200000e+01 : f32
    %526 = vector.broadcast %cst_189 : f32 to vector<16x1xf32>
    %527 = arith.divf %525, %526 : vector<16x1xf32>
    %528 = vector.broadcast %527 : vector<16x1xf32> to vector<16x32xf32>
    %529 = arith.subf %523, %528 : vector<16x32xf32>
    %530 = arith.mulf %529, %529 : vector<16x32xf32>
    %cst_190 = arith.constant dense<0.000000e+00> : vector<16xf32>
    %531 = vector.multi_reduction <add>, %530, %cst_190 [1] : vector<16x32xf32> to vector<16xf32>
    %532 = vector.shape_cast %531 : vector<16xf32> to vector<16x1xf32>
    %cst_191 = arith.constant 3.200000e+01 : f32
    %533 = vector.broadcast %cst_191 : f32 to vector<16x1xf32>
    %534 = arith.divf %532, %533 : vector<16x1xf32>
    %535 = vector.broadcast %527 : vector<16x1xf32> to vector<16x32xf32>
    %536 = arith.subf %523, %535 : vector<16x32xf32>
    %cst_192 = arith.constant 9.99999974E-6 : f32
    %537 = vector.broadcast %cst_192 : f32 to vector<16x1xf32>
    %538 = arith.addf %534, %537 : vector<16x1xf32>
    %539 = math.rsqrt %538 : vector<16x1xf32>
    %540 = vector.broadcast %539 : vector<16x1xf32> to vector<16x32xf32>
    %541 = arith.mulf %536, %540 : vector<16x32xf32>
    %542 = vector.broadcast %520 : vector<1x32xf32> to vector<16x32xf32>
    %543 = arith.mulf %541, %542 : vector<16x32xf32>
    %544 = vector.broadcast %522 : vector<1x32xf32> to vector<16x32xf32>
    %545 = arith.addf %543, %544 : vector<16x32xf32>
    %c0_193 = arith.constant 0 : index
    %c0_194 = arith.constant 0 : index
    %c0_195 = arith.constant 0 : index
    %546 = vector.load %arg28[%c0_193, %c0_194, %c0_195] : memref<2x32x64xbf16, #tpu.memory_space<vmem>>, vector<1x32x64xbf16>
    %547 = vector.shape_cast %546 : vector<1x32x64xbf16> to vector<32x64xbf16>
    %548 = arith.truncf %545 : vector<16x32xf32> to vector<16x32xbf16>
    %cst_196 = arith.constant dense<0.000000e+00> : vector<16x64xf32>
    %549 = tpu.matmul %548, %547, %cst_196 {dimension_numbers = #tpu.dot_dimension_numbers<[1], [0], [0], [1], [0, 0, 1, 1], [], []>} : vector<16x32xbf16>, vector<32x64xbf16>, vector<16x64xf32> -> vector<16x64xf32>
    %c0_197 = arith.constant 0 : index
    %c0_198 = arith.constant 0 : index
    %c0_199 = arith.constant 0 : index
    %550 = vector.load %arg29[%c0_197, %c0_198, %c0_199] : memref<2x1x64xf32, #tpu.memory_space<vmem>>, vector<1x1x64xf32>
    %551 = vector.shape_cast %550 : vector<1x1x64xf32> to vector<1x64xf32>
    %552 = vector.broadcast %551 : vector<1x64xf32> to vector<16x64xf32>
    %553 = arith.addf %549, %552 : vector<16x64xf32>
    %cst_200 = arith.constant 0.000000e+00 : f32
    %554 = vector.broadcast %cst_200 : f32 to vector<16x64xf32>
    %555 = arith.maximumf %553, %554 : vector<16x64xf32>
    %c0_201 = arith.constant 0 : index
    %c0_202 = arith.constant 0 : index
    %c0_203 = arith.constant 0 : index
    %556 = vector.load %arg30[%c0_201, %c0_202, %c0_203] : memref<2x64x32xbf16, #tpu.memory_space<vmem>>, vector<1x64x32xbf16>
    %557 = vector.shape_cast %556 : vector<1x64x32xbf16> to vector<64x32xbf16>
    %558 = arith.truncf %555 : vector<16x64xf32> to vector<16x64xbf16>
    %cst_204 = arith.constant dense<0.000000e+00> : vector<16x32xf32>
    %559 = tpu.matmul %558, %557, %cst_204 {dimension_numbers = #tpu.dot_dimension_numbers<[1], [0], [0], [1], [0, 0, 1, 1], [], []>} : vector<16x64xbf16>, vector<64x32xbf16>, vector<16x32xf32> -> vector<16x32xf32>
    %c0_205 = arith.constant 0 : index
    %c0_206 = arith.constant 0 : index
    %c0_207 = arith.constant 0 : index
    %560 = vector.load %arg31[%c0_205, %c0_206, %c0_207] : memref<2x1x32xf32, #tpu.memory_space<vmem>>, vector<1x1x32xf32>
    %561 = vector.shape_cast %560 : vector<1x1x32xf32> to vector<1x32xf32>
    %562 = vector.broadcast %561 : vector<1x32xf32> to vector<16x32xf32>
    %563 = arith.addf %559, %562 : vector<16x32xf32>
    %c0_208 = arith.constant 0 : index
    %c0_209 = arith.constant 0 : index
    %c0_210 = arith.constant 0 : index
    %564 = vector.load %arg32[%c0_208, %c0_209, %c0_210] : memref<2x1x32xf32, #tpu.memory_space<vmem>>, vector<1x1x32xf32>
    %565 = vector.shape_cast %564 : vector<1x1x32xf32> to vector<1x32xf32>
    %c0_211 = arith.constant 0 : index
    %c0_212 = arith.constant 0 : index
    %c0_213 = arith.constant 0 : index
    %566 = vector.load %arg33[%c0_211, %c0_212, %c0_213] : memref<2x1x32xf32, #tpu.memory_space<vmem>>, vector<1x1x32xf32>
    %567 = vector.shape_cast %566 : vector<1x1x32xf32> to vector<1x32xf32>
    %568 = arith.addf %545, %563 : vector<16x32xf32>
    %cst_214 = arith.constant dense<0.000000e+00> : vector<16xf32>
    %569 = vector.multi_reduction <add>, %568, %cst_214 [1] : vector<16x32xf32> to vector<16xf32>
    %570 = vector.shape_cast %569 : vector<16xf32> to vector<16x1xf32>
    %cst_215 = arith.constant 3.200000e+01 : f32
    %571 = vector.broadcast %cst_215 : f32 to vector<16x1xf32>
    %572 = arith.divf %570, %571 : vector<16x1xf32>
    %573 = vector.broadcast %572 : vector<16x1xf32> to vector<16x32xf32>
    %574 = arith.subf %568, %573 : vector<16x32xf32>
    %575 = arith.mulf %574, %574 : vector<16x32xf32>
    %cst_216 = arith.constant dense<0.000000e+00> : vector<16xf32>
    %576 = vector.multi_reduction <add>, %575, %cst_216 [1] : vector<16x32xf32> to vector<16xf32>
    %577 = vector.shape_cast %576 : vector<16xf32> to vector<16x1xf32>
    %cst_217 = arith.constant 3.200000e+01 : f32
    %578 = vector.broadcast %cst_217 : f32 to vector<16x1xf32>
    %579 = arith.divf %577, %578 : vector<16x1xf32>
    %580 = vector.broadcast %572 : vector<16x1xf32> to vector<16x32xf32>
    %581 = arith.subf %568, %580 : vector<16x32xf32>
    %cst_218 = arith.constant 9.99999974E-6 : f32
    %582 = vector.broadcast %cst_218 : f32 to vector<16x1xf32>
    %583 = arith.addf %579, %582 : vector<16x1xf32>
    %584 = math.rsqrt %583 : vector<16x1xf32>
    %585 = vector.broadcast %584 : vector<16x1xf32> to vector<16x32xf32>
    %586 = arith.mulf %581, %585 : vector<16x32xf32>
    %587 = vector.broadcast %565 : vector<1x32xf32> to vector<16x32xf32>
    %588 = arith.mulf %586, %587 : vector<16x32xf32>
    %589 = vector.broadcast %567 : vector<1x32xf32> to vector<16x32xf32>
    %590 = arith.addf %588, %589 : vector<16x32xf32>
    %591 = vector.broadcast %5 : vector<16x1xf32> to vector<16x32xf32>
    %592 = arith.mulf %590, %591 : vector<16x32xf32>
    %c1 = arith.constant 1 : index
    %c0_219 = arith.constant 0 : index
    %c0_220 = arith.constant 0 : index
    %c0_221 = arith.constant 0 : index
    %593 = vector.load %arg8[%c1, %c0_219, %c0_220, %c0_221] : memref<2x4x32x8xbf16, #tpu.memory_space<vmem>>, vector<1x4x32x8xbf16>
    %594 = vector.shape_cast %593 : vector<1x4x32x8xbf16> to vector<4x32x8xbf16>
    %c1_222 = arith.constant 1 : index
    %c0_223 = arith.constant 0 : index
    %c0_224 = arith.constant 0 : index
    %c0_225 = arith.constant 0 : index
    %595 = vector.load %arg9[%c1_222, %c0_223, %c0_224, %c0_225] : memref<2x4x1x8xf32, #tpu.memory_space<vmem>>, vector<1x4x1x8xf32>
    %596 = vector.shape_cast %595 : vector<1x4x1x8xf32> to vector<4x1x8xf32>
    %c1_226 = arith.constant 1 : index
    %c0_227 = arith.constant 0 : index
    %c0_228 = arith.constant 0 : index
    %c0_229 = arith.constant 0 : index
    %597 = vector.load %arg10[%c1_226, %c0_227, %c0_228, %c0_229] : memref<2x4x32x8xbf16, #tpu.memory_space<vmem>>, vector<1x4x32x8xbf16>
    %598 = vector.shape_cast %597 : vector<1x4x32x8xbf16> to vector<4x32x8xbf16>
    %c1_230 = arith.constant 1 : index
    %c0_231 = arith.constant 0 : index
    %c0_232 = arith.constant 0 : index
    %c0_233 = arith.constant 0 : index
    %599 = vector.load %arg11[%c1_230, %c0_231, %c0_232, %c0_233] : memref<2x4x1x8xf32, #tpu.memory_space<vmem>>, vector<1x4x1x8xf32>
    %600 = vector.shape_cast %599 : vector<1x4x1x8xf32> to vector<4x1x8xf32>
    %c1_234 = arith.constant 1 : index
    %c0_235 = arith.constant 0 : index
    %c0_236 = arith.constant 0 : index
    %c0_237 = arith.constant 0 : index
    %601 = vector.load %arg12[%c1_234, %c0_235, %c0_236, %c0_237] : memref<2x4x32x8xbf16, #tpu.memory_space<vmem>>, vector<1x4x32x8xbf16>
    %602 = vector.shape_cast %601 : vector<1x4x32x8xbf16> to vector<4x32x8xbf16>
    %c1_238 = arith.constant 1 : index
    %c0_239 = arith.constant 0 : index
    %c0_240 = arith.constant 0 : index
    %c0_241 = arith.constant 0 : index
    %603 = vector.load %arg13[%c1_238, %c0_239, %c0_240, %c0_241] : memref<2x4x1x8xf32, #tpu.memory_space<vmem>>, vector<1x4x1x8xf32>
    %604 = vector.shape_cast %603 : vector<1x4x1x8xf32> to vector<4x1x8xf32>
    %c1_242 = arith.constant 1 : index
    %c0_243 = arith.constant 0 : index
    %c0_244 = arith.constant 0 : index
    %c0_245 = arith.constant 0 : index
    %605 = vector.load %arg14[%c1_242, %c0_243, %c0_244, %c0_245] : memref<2x4x8x32xbf16, #tpu.memory_space<vmem>>, vector<1x4x8x32xbf16>
    %606 = vector.shape_cast %605 : vector<1x4x8x32xbf16> to vector<4x8x32xbf16>
    %c1_246 = arith.constant 1 : index
    %c0_247 = arith.constant 0 : index
    %c0_248 = arith.constant 0 : index
    %607 = vector.load %arg15[%c1_246, %c0_247, %c0_248] : memref<2x1x32xf32, #tpu.memory_space<vmem>>, vector<1x1x32xf32>
    %608 = vector.shape_cast %607 : vector<1x1x32xf32> to vector<1x32xf32>
    %cst_249 = arith.constant 0.000000e+00 : f32
    %609 = vector.broadcast %cst_249 : f32 to vector<16x32xf32>
    %610 = vector.extract_strided_slice %594 {offsets = [0, 0, 0], sizes = [1, 32, 8], strides = [1, 1, 1]} : vector<4x32x8xbf16> to vector<1x32x8xbf16>
    %611 = vector.shape_cast %610 : vector<1x32x8xbf16> to vector<32x8xbf16>
    %612 = arith.truncf %592 : vector<16x32xf32> to vector<16x32xbf16>
    %cst_250 = arith.constant dense<0.000000e+00> : vector<16x8xf32>
    %613 = tpu.matmul %612, %611, %cst_250 {dimension_numbers = #tpu.dot_dimension_numbers<[1], [0], [0], [1], [0, 0, 1, 1], [], []>} : vector<16x32xbf16>, vector<32x8xbf16>, vector<16x8xf32> -> vector<16x8xf32>
    %614 = vector.extract_strided_slice %596 {offsets = [0, 0, 0], sizes = [1, 1, 8], strides = [1, 1, 1]} : vector<4x1x8xf32> to vector<1x1x8xf32>
    %615 = vector.shape_cast %614 : vector<1x1x8xf32> to vector<1x8xf32>
    %616 = vector.broadcast %615 : vector<1x8xf32> to vector<16x8xf32>
    %617 = arith.addf %613, %616 : vector<16x8xf32>
    %618 = vector.extract_strided_slice %598 {offsets = [0, 0, 0], sizes = [1, 32, 8], strides = [1, 1, 1]} : vector<4x32x8xbf16> to vector<1x32x8xbf16>
    %619 = vector.shape_cast %618 : vector<1x32x8xbf16> to vector<32x8xbf16>
    %620 = arith.truncf %592 : vector<16x32xf32> to vector<16x32xbf16>
    %cst_251 = arith.constant dense<0.000000e+00> : vector<16x8xf32>
    %621 = tpu.matmul %620, %619, %cst_251 {dimension_numbers = #tpu.dot_dimension_numbers<[1], [0], [0], [1], [0, 0, 1, 1], [], []>} : vector<16x32xbf16>, vector<32x8xbf16>, vector<16x8xf32> -> vector<16x8xf32>
    %622 = vector.extract_strided_slice %600 {offsets = [0, 0, 0], sizes = [1, 1, 8], strides = [1, 1, 1]} : vector<4x1x8xf32> to vector<1x1x8xf32>
    %623 = vector.shape_cast %622 : vector<1x1x8xf32> to vector<1x8xf32>
    %624 = vector.broadcast %623 : vector<1x8xf32> to vector<16x8xf32>
    %625 = arith.addf %621, %624 : vector<16x8xf32>
    %626 = vector.extract_strided_slice %602 {offsets = [0, 0, 0], sizes = [1, 32, 8], strides = [1, 1, 1]} : vector<4x32x8xbf16> to vector<1x32x8xbf16>
    %627 = vector.shape_cast %626 : vector<1x32x8xbf16> to vector<32x8xbf16>
    %628 = arith.truncf %592 : vector<16x32xf32> to vector<16x32xbf16>
    %cst_252 = arith.constant dense<0.000000e+00> : vector<16x8xf32>
    %629 = tpu.matmul %628, %627, %cst_252 {dimension_numbers = #tpu.dot_dimension_numbers<[1], [0], [0], [1], [0, 0, 1, 1], [], []>} : vector<16x32xbf16>, vector<32x8xbf16>, vector<16x8xf32> -> vector<16x8xf32>
    %630 = vector.extract_strided_slice %604 {offsets = [0, 0, 0], sizes = [1, 1, 8], strides = [1, 1, 1]} : vector<4x1x8xf32> to vector<1x1x8xf32>
    %631 = vector.shape_cast %630 : vector<1x1x8xf32> to vector<1x8xf32>
    %632 = vector.broadcast %631 : vector<1x8xf32> to vector<16x8xf32>
    %633 = arith.addf %629, %632 : vector<16x8xf32>
    %634 = arith.truncf %617 : vector<16x8xf32> to vector<16x8xbf16>
    %635 = arith.truncf %625 : vector<16x8xf32> to vector<16x8xbf16>
    %cst_253 = arith.constant dense<0.000000e+00> : vector<16x16xf32>
    %636 = tpu.matmul %634, %635, %cst_253 {dimension_numbers = #tpu.dot_dimension_numbers<[1], [1], [0], [0], [0, 0, 1, 0], [], []>} : vector<16x8xbf16>, vector<16x8xbf16>, vector<16x16xf32> -> vector<16x16xf32>
    %cst_254 = arith.constant 0.353553385 : f32
    %637 = vector.broadcast %cst_254 : f32 to vector<16x16xf32>
    %638 = arith.mulf %636, %637 : vector<16x16xf32>
    %cst_255 = arith.constant 0.000000e+00 : f32
    %639 = vector.broadcast %cst_255 : f32 to vector<16x16xf32>
    %640 = arith.cmpf ogt, %36, %639 : vector<16x16xf32>
    %cst_256 = arith.constant -1.000000e+30 : f32
    %641 = vector.broadcast %cst_256 : f32 to vector<16x16xf32>
    %642 = arith.select %640, %638, %641 : vector<16x16xi1>, vector<16x16xf32>
    %cst_257 = arith.constant dense<0xFF800000> : vector<16xf32>
    %643 = vector.multi_reduction <maximumf>, %642, %cst_257 [1] : vector<16x16xf32> to vector<16xf32>
    %644 = vector.shape_cast %643 : vector<16xf32> to vector<16x1xf32>
    %645 = vector.broadcast %644 : vector<16x1xf32> to vector<16x16xf32>
    %646 = arith.subf %642, %645 : vector<16x16xf32>
    %647 = math.exp %646 : vector<16x16xf32>
    %cst_258 = arith.constant dense<0.000000e+00> : vector<16xf32>
    %648 = vector.multi_reduction <add>, %647, %cst_258 [1] : vector<16x16xf32> to vector<16xf32>
    %649 = vector.shape_cast %648 : vector<16xf32> to vector<16x1xf32>
    %650 = tpu.reciprocal %649 {approx = true} : vector<16x1xf32> -> vector<16x1xf32>
    %651 = vector.broadcast %650 : vector<16x1xf32> to vector<16x16xf32>
    %652 = arith.mulf %647, %651 : vector<16x16xf32>
    %653 = arith.truncf %652 : vector<16x16xf32> to vector<16x16xbf16>
    %654 = arith.truncf %633 : vector<16x8xf32> to vector<16x8xbf16>
    %cst_259 = arith.constant dense<0.000000e+00> : vector<16x8xf32>
    %655 = tpu.matmul %653, %654, %cst_259 {dimension_numbers = #tpu.dot_dimension_numbers<[1], [0], [0], [1], [0, 0, 1, 1], [], []>} : vector<16x16xbf16>, vector<16x8xbf16>, vector<16x8xf32> -> vector<16x8xf32>
    %656 = vector.extract_strided_slice %606 {offsets = [0, 0, 0], sizes = [1, 8, 32], strides = [1, 1, 1]} : vector<4x8x32xbf16> to vector<1x8x32xbf16>
    %657 = vector.shape_cast %656 : vector<1x8x32xbf16> to vector<8x32xbf16>
    %658 = arith.truncf %655 : vector<16x8xf32> to vector<16x8xbf16>
    %cst_260 = arith.constant dense<0.000000e+00> : vector<16x32xf32>
    %659 = tpu.matmul %658, %657, %cst_260 {dimension_numbers = #tpu.dot_dimension_numbers<[1], [0], [0], [1], [0, 0, 1, 1], [], []>} : vector<16x8xbf16>, vector<8x32xbf16>, vector<16x32xf32> -> vector<16x32xf32>
    %660 = arith.addf %609, %659 : vector<16x32xf32>
    %661 = vector.extract_strided_slice %594 {offsets = [1, 0, 0], sizes = [1, 32, 8], strides = [1, 1, 1]} : vector<4x32x8xbf16> to vector<1x32x8xbf16>
    %662 = vector.shape_cast %661 : vector<1x32x8xbf16> to vector<32x8xbf16>
    %663 = arith.truncf %592 : vector<16x32xf32> to vector<16x32xbf16>
    %cst_261 = arith.constant dense<0.000000e+00> : vector<16x8xf32>
    %664 = tpu.matmul %663, %662, %cst_261 {dimension_numbers = #tpu.dot_dimension_numbers<[1], [0], [0], [1], [0, 0, 1, 1], [], []>} : vector<16x32xbf16>, vector<32x8xbf16>, vector<16x8xf32> -> vector<16x8xf32>
    %665 = vector.extract_strided_slice %596 {offsets = [1, 0, 0], sizes = [1, 1, 8], strides = [1, 1, 1]} : vector<4x1x8xf32> to vector<1x1x8xf32>
    %666 = vector.shape_cast %665 : vector<1x1x8xf32> to vector<1x8xf32>
    %667 = vector.broadcast %666 : vector<1x8xf32> to vector<16x8xf32>
    %668 = arith.addf %664, %667 : vector<16x8xf32>
    %669 = vector.extract_strided_slice %598 {offsets = [1, 0, 0], sizes = [1, 32, 8], strides = [1, 1, 1]} : vector<4x32x8xbf16> to vector<1x32x8xbf16>
    %670 = vector.shape_cast %669 : vector<1x32x8xbf16> to vector<32x8xbf16>
    %671 = arith.truncf %592 : vector<16x32xf32> to vector<16x32xbf16>
    %cst_262 = arith.constant dense<0.000000e+00> : vector<16x8xf32>
    %672 = tpu.matmul %671, %670, %cst_262 {dimension_numbers = #tpu.dot_dimension_numbers<[1], [0], [0], [1], [0, 0, 1, 1], [], []>} : vector<16x32xbf16>, vector<32x8xbf16>, vector<16x8xf32> -> vector<16x8xf32>
    %673 = vector.extract_strided_slice %600 {offsets = [1, 0, 0], sizes = [1, 1, 8], strides = [1, 1, 1]} : vector<4x1x8xf32> to vector<1x1x8xf32>
    %674 = vector.shape_cast %673 : vector<1x1x8xf32> to vector<1x8xf32>
    %675 = vector.broadcast %674 : vector<1x8xf32> to vector<16x8xf32>
    %676 = arith.addf %672, %675 : vector<16x8xf32>
    %677 = vector.extract_strided_slice %602 {offsets = [1, 0, 0], sizes = [1, 32, 8], strides = [1, 1, 1]} : vector<4x32x8xbf16> to vector<1x32x8xbf16>
    %678 = vector.shape_cast %677 : vector<1x32x8xbf16> to vector<32x8xbf16>
    %679 = arith.truncf %592 : vector<16x32xf32> to vector<16x32xbf16>
    %cst_263 = arith.constant dense<0.000000e+00> : vector<16x8xf32>
    %680 = tpu.matmul %679, %678, %cst_263 {dimension_numbers = #tpu.dot_dimension_numbers<[1], [0], [0], [1], [0, 0, 1, 1], [], []>} : vector<16x32xbf16>, vector<32x8xbf16>, vector<16x8xf32> -> vector<16x8xf32>
    %681 = vector.extract_strided_slice %604 {offsets = [1, 0, 0], sizes = [1, 1, 8], strides = [1, 1, 1]} : vector<4x1x8xf32> to vector<1x1x8xf32>
    %682 = vector.shape_cast %681 : vector<1x1x8xf32> to vector<1x8xf32>
    %683 = vector.broadcast %682 : vector<1x8xf32> to vector<16x8xf32>
    %684 = arith.addf %680, %683 : vector<16x8xf32>
    %685 = arith.truncf %668 : vector<16x8xf32> to vector<16x8xbf16>
    %686 = arith.truncf %676 : vector<16x8xf32> to vector<16x8xbf16>
    %cst_264 = arith.constant dense<0.000000e+00> : vector<16x16xf32>
    %687 = tpu.matmul %685, %686, %cst_264 {dimension_numbers = #tpu.dot_dimension_numbers<[1], [1], [0], [0], [0, 0, 1, 0], [], []>} : vector<16x8xbf16>, vector<16x8xbf16>, vector<16x16xf32> -> vector<16x16xf32>
    %cst_265 = arith.constant 0.353553385 : f32
    %688 = vector.broadcast %cst_265 : f32 to vector<16x16xf32>
    %689 = arith.mulf %687, %688 : vector<16x16xf32>
    %cst_266 = arith.constant 0.000000e+00 : f32
    %690 = vector.broadcast %cst_266 : f32 to vector<16x16xf32>
    %691 = arith.cmpf ogt, %36, %690 : vector<16x16xf32>
    %cst_267 = arith.constant -1.000000e+30 : f32
    %692 = vector.broadcast %cst_267 : f32 to vector<16x16xf32>
    %693 = arith.select %691, %689, %692 : vector<16x16xi1>, vector<16x16xf32>
    %cst_268 = arith.constant dense<0xFF800000> : vector<16xf32>
    %694 = vector.multi_reduction <maximumf>, %693, %cst_268 [1] : vector<16x16xf32> to vector<16xf32>
    %695 = vector.shape_cast %694 : vector<16xf32> to vector<16x1xf32>
    %696 = vector.broadcast %695 : vector<16x1xf32> to vector<16x16xf32>
    %697 = arith.subf %693, %696 : vector<16x16xf32>
    %698 = math.exp %697 : vector<16x16xf32>
    %cst_269 = arith.constant dense<0.000000e+00> : vector<16xf32>
    %699 = vector.multi_reduction <add>, %698, %cst_269 [1] : vector<16x16xf32> to vector<16xf32>
    %700 = vector.shape_cast %699 : vector<16xf32> to vector<16x1xf32>
    %701 = tpu.reciprocal %700 {approx = true} : vector<16x1xf32> -> vector<16x1xf32>
    %702 = vector.broadcast %701 : vector<16x1xf32> to vector<16x16xf32>
    %703 = arith.mulf %698, %702 : vector<16x16xf32>
    %704 = arith.truncf %703 : vector<16x16xf32> to vector<16x16xbf16>
    %705 = arith.truncf %684 : vector<16x8xf32> to vector<16x8xbf16>
    %cst_270 = arith.constant dense<0.000000e+00> : vector<16x8xf32>
    %706 = tpu.matmul %704, %705, %cst_270 {dimension_numbers = #tpu.dot_dimension_numbers<[1], [0], [0], [1], [0, 0, 1, 1], [], []>} : vector<16x16xbf16>, vector<16x8xbf16>, vector<16x8xf32> -> vector<16x8xf32>
    %707 = vector.extract_strided_slice %606 {offsets = [1, 0, 0], sizes = [1, 8, 32], strides = [1, 1, 1]} : vector<4x8x32xbf16> to vector<1x8x32xbf16>
    %708 = vector.shape_cast %707 : vector<1x8x32xbf16> to vector<8x32xbf16>
    %709 = arith.truncf %706 : vector<16x8xf32> to vector<16x8xbf16>
    %cst_271 = arith.constant dense<0.000000e+00> : vector<16x32xf32>
    %710 = tpu.matmul %709, %708, %cst_271 {dimension_numbers = #tpu.dot_dimension_numbers<[1], [0], [0], [1], [0, 0, 1, 1], [], []>} : vector<16x8xbf16>, vector<8x32xbf16>, vector<16x32xf32> -> vector<16x32xf32>
    %711 = arith.addf %660, %710 : vector<16x32xf32>
    %712 = vector.extract_strided_slice %594 {offsets = [2, 0, 0], sizes = [1, 32, 8], strides = [1, 1, 1]} : vector<4x32x8xbf16> to vector<1x32x8xbf16>
    %713 = vector.shape_cast %712 : vector<1x32x8xbf16> to vector<32x8xbf16>
    %714 = arith.truncf %592 : vector<16x32xf32> to vector<16x32xbf16>
    %cst_272 = arith.constant dense<0.000000e+00> : vector<16x8xf32>
    %715 = tpu.matmul %714, %713, %cst_272 {dimension_numbers = #tpu.dot_dimension_numbers<[1], [0], [0], [1], [0, 0, 1, 1], [], []>} : vector<16x32xbf16>, vector<32x8xbf16>, vector<16x8xf32> -> vector<16x8xf32>
    %716 = vector.extract_strided_slice %596 {offsets = [2, 0, 0], sizes = [1, 1, 8], strides = [1, 1, 1]} : vector<4x1x8xf32> to vector<1x1x8xf32>
    %717 = vector.shape_cast %716 : vector<1x1x8xf32> to vector<1x8xf32>
    %718 = vector.broadcast %717 : vector<1x8xf32> to vector<16x8xf32>
    %719 = arith.addf %715, %718 : vector<16x8xf32>
    %720 = vector.extract_strided_slice %598 {offsets = [2, 0, 0], sizes = [1, 32, 8], strides = [1, 1, 1]} : vector<4x32x8xbf16> to vector<1x32x8xbf16>
    %721 = vector.shape_cast %720 : vector<1x32x8xbf16> to vector<32x8xbf16>
    %722 = arith.truncf %592 : vector<16x32xf32> to vector<16x32xbf16>
    %cst_273 = arith.constant dense<0.000000e+00> : vector<16x8xf32>
    %723 = tpu.matmul %722, %721, %cst_273 {dimension_numbers = #tpu.dot_dimension_numbers<[1], [0], [0], [1], [0, 0, 1, 1], [], []>} : vector<16x32xbf16>, vector<32x8xbf16>, vector<16x8xf32> -> vector<16x8xf32>
    %724 = vector.extract_strided_slice %600 {offsets = [2, 0, 0], sizes = [1, 1, 8], strides = [1, 1, 1]} : vector<4x1x8xf32> to vector<1x1x8xf32>
    %725 = vector.shape_cast %724 : vector<1x1x8xf32> to vector<1x8xf32>
    %726 = vector.broadcast %725 : vector<1x8xf32> to vector<16x8xf32>
    %727 = arith.addf %723, %726 : vector<16x8xf32>
    %728 = vector.extract_strided_slice %602 {offsets = [2, 0, 0], sizes = [1, 32, 8], strides = [1, 1, 1]} : vector<4x32x8xbf16> to vector<1x32x8xbf16>
    %729 = vector.shape_cast %728 : vector<1x32x8xbf16> to vector<32x8xbf16>
    %730 = arith.truncf %592 : vector<16x32xf32> to vector<16x32xbf16>
    %cst_274 = arith.constant dense<0.000000e+00> : vector<16x8xf32>
    %731 = tpu.matmul %730, %729, %cst_274 {dimension_numbers = #tpu.dot_dimension_numbers<[1], [0], [0], [1], [0, 0, 1, 1], [], []>} : vector<16x32xbf16>, vector<32x8xbf16>, vector<16x8xf32> -> vector<16x8xf32>
    %732 = vector.extract_strided_slice %604 {offsets = [2, 0, 0], sizes = [1, 1, 8], strides = [1, 1, 1]} : vector<4x1x8xf32> to vector<1x1x8xf32>
    %733 = vector.shape_cast %732 : vector<1x1x8xf32> to vector<1x8xf32>
    %734 = vector.broadcast %733 : vector<1x8xf32> to vector<16x8xf32>
    %735 = arith.addf %731, %734 : vector<16x8xf32>
    %736 = arith.truncf %719 : vector<16x8xf32> to vector<16x8xbf16>
    %737 = arith.truncf %727 : vector<16x8xf32> to vector<16x8xbf16>
    %cst_275 = arith.constant dense<0.000000e+00> : vector<16x16xf32>
    %738 = tpu.matmul %736, %737, %cst_275 {dimension_numbers = #tpu.dot_dimension_numbers<[1], [1], [0], [0], [0, 0, 1, 0], [], []>} : vector<16x8xbf16>, vector<16x8xbf16>, vector<16x16xf32> -> vector<16x16xf32>
    %cst_276 = arith.constant 0.353553385 : f32
    %739 = vector.broadcast %cst_276 : f32 to vector<16x16xf32>
    %740 = arith.mulf %738, %739 : vector<16x16xf32>
    %cst_277 = arith.constant 0.000000e+00 : f32
    %741 = vector.broadcast %cst_277 : f32 to vector<16x16xf32>
    %742 = arith.cmpf ogt, %36, %741 : vector<16x16xf32>
    %cst_278 = arith.constant -1.000000e+30 : f32
    %743 = vector.broadcast %cst_278 : f32 to vector<16x16xf32>
    %744 = arith.select %742, %740, %743 : vector<16x16xi1>, vector<16x16xf32>
    %cst_279 = arith.constant dense<0xFF800000> : vector<16xf32>
    %745 = vector.multi_reduction <maximumf>, %744, %cst_279 [1] : vector<16x16xf32> to vector<16xf32>
    %746 = vector.shape_cast %745 : vector<16xf32> to vector<16x1xf32>
    %747 = vector.broadcast %746 : vector<16x1xf32> to vector<16x16xf32>
    %748 = arith.subf %744, %747 : vector<16x16xf32>
    %749 = math.exp %748 : vector<16x16xf32>
    %cst_280 = arith.constant dense<0.000000e+00> : vector<16xf32>
    %750 = vector.multi_reduction <add>, %749, %cst_280 [1] : vector<16x16xf32> to vector<16xf32>
    %751 = vector.shape_cast %750 : vector<16xf32> to vector<16x1xf32>
    %752 = tpu.reciprocal %751 {approx = true} : vector<16x1xf32> -> vector<16x1xf32>
    %753 = vector.broadcast %752 : vector<16x1xf32> to vector<16x16xf32>
    %754 = arith.mulf %749, %753 : vector<16x16xf32>
    %755 = arith.truncf %754 : vector<16x16xf32> to vector<16x16xbf16>
    %756 = arith.truncf %735 : vector<16x8xf32> to vector<16x8xbf16>
    %cst_281 = arith.constant dense<0.000000e+00> : vector<16x8xf32>
    %757 = tpu.matmul %755, %756, %cst_281 {dimension_numbers = #tpu.dot_dimension_numbers<[1], [0], [0], [1], [0, 0, 1, 1], [], []>} : vector<16x16xbf16>, vector<16x8xbf16>, vector<16x8xf32> -> vector<16x8xf32>
    %758 = vector.extract_strided_slice %606 {offsets = [2, 0, 0], sizes = [1, 8, 32], strides = [1, 1, 1]} : vector<4x8x32xbf16> to vector<1x8x32xbf16>
    %759 = vector.shape_cast %758 : vector<1x8x32xbf16> to vector<8x32xbf16>
    %760 = arith.truncf %757 : vector<16x8xf32> to vector<16x8xbf16>
    %cst_282 = arith.constant dense<0.000000e+00> : vector<16x32xf32>
    %761 = tpu.matmul %760, %759, %cst_282 {dimension_numbers = #tpu.dot_dimension_numbers<[1], [0], [0], [1], [0, 0, 1, 1], [], []>} : vector<16x8xbf16>, vector<8x32xbf16>, vector<16x32xf32> -> vector<16x32xf32>
    %762 = arith.addf %711, %761 : vector<16x32xf32>
    %763 = vector.extract_strided_slice %594 {offsets = [3, 0, 0], sizes = [1, 32, 8], strides = [1, 1, 1]} : vector<4x32x8xbf16> to vector<1x32x8xbf16>
    %764 = vector.shape_cast %763 : vector<1x32x8xbf16> to vector<32x8xbf16>
    %765 = arith.truncf %592 : vector<16x32xf32> to vector<16x32xbf16>
    %cst_283 = arith.constant dense<0.000000e+00> : vector<16x8xf32>
    %766 = tpu.matmul %765, %764, %cst_283 {dimension_numbers = #tpu.dot_dimension_numbers<[1], [0], [0], [1], [0, 0, 1, 1], [], []>} : vector<16x32xbf16>, vector<32x8xbf16>, vector<16x8xf32> -> vector<16x8xf32>
    %767 = vector.extract_strided_slice %596 {offsets = [3, 0, 0], sizes = [1, 1, 8], strides = [1, 1, 1]} : vector<4x1x8xf32> to vector<1x1x8xf32>
    %768 = vector.shape_cast %767 : vector<1x1x8xf32> to vector<1x8xf32>
    %769 = vector.broadcast %768 : vector<1x8xf32> to vector<16x8xf32>
    %770 = arith.addf %766, %769 : vector<16x8xf32>
    %771 = vector.extract_strided_slice %598 {offsets = [3, 0, 0], sizes = [1, 32, 8], strides = [1, 1, 1]} : vector<4x32x8xbf16> to vector<1x32x8xbf16>
    %772 = vector.shape_cast %771 : vector<1x32x8xbf16> to vector<32x8xbf16>
    %773 = arith.truncf %592 : vector<16x32xf32> to vector<16x32xbf16>
    %cst_284 = arith.constant dense<0.000000e+00> : vector<16x8xf32>
    %774 = tpu.matmul %773, %772, %cst_284 {dimension_numbers = #tpu.dot_dimension_numbers<[1], [0], [0], [1], [0, 0, 1, 1], [], []>} : vector<16x32xbf16>, vector<32x8xbf16>, vector<16x8xf32> -> vector<16x8xf32>
    %775 = vector.extract_strided_slice %600 {offsets = [3, 0, 0], sizes = [1, 1, 8], strides = [1, 1, 1]} : vector<4x1x8xf32> to vector<1x1x8xf32>
    %776 = vector.shape_cast %775 : vector<1x1x8xf32> to vector<1x8xf32>
    %777 = vector.broadcast %776 : vector<1x8xf32> to vector<16x8xf32>
    %778 = arith.addf %774, %777 : vector<16x8xf32>
    %779 = vector.extract_strided_slice %602 {offsets = [3, 0, 0], sizes = [1, 32, 8], strides = [1, 1, 1]} : vector<4x32x8xbf16> to vector<1x32x8xbf16>
    %780 = vector.shape_cast %779 : vector<1x32x8xbf16> to vector<32x8xbf16>
    %781 = arith.truncf %592 : vector<16x32xf32> to vector<16x32xbf16>
    %cst_285 = arith.constant dense<0.000000e+00> : vector<16x8xf32>
    %782 = tpu.matmul %781, %780, %cst_285 {dimension_numbers = #tpu.dot_dimension_numbers<[1], [0], [0], [1], [0, 0, 1, 1], [], []>} : vector<16x32xbf16>, vector<32x8xbf16>, vector<16x8xf32> -> vector<16x8xf32>
    %783 = vector.extract_strided_slice %604 {offsets = [3, 0, 0], sizes = [1, 1, 8], strides = [1, 1, 1]} : vector<4x1x8xf32> to vector<1x1x8xf32>
    %784 = vector.shape_cast %783 : vector<1x1x8xf32> to vector<1x8xf32>
    %785 = vector.broadcast %784 : vector<1x8xf32> to vector<16x8xf32>
    %786 = arith.addf %782, %785 : vector<16x8xf32>
    %787 = arith.truncf %770 : vector<16x8xf32> to vector<16x8xbf16>
    %788 = arith.truncf %778 : vector<16x8xf32> to vector<16x8xbf16>
    %cst_286 = arith.constant dense<0.000000e+00> : vector<16x16xf32>
    %789 = tpu.matmul %787, %788, %cst_286 {dimension_numbers = #tpu.dot_dimension_numbers<[1], [1], [0], [0], [0, 0, 1, 0], [], []>} : vector<16x8xbf16>, vector<16x8xbf16>, vector<16x16xf32> -> vector<16x16xf32>
    %cst_287 = arith.constant 0.353553385 : f32
    %790 = vector.broadcast %cst_287 : f32 to vector<16x16xf32>
    %791 = arith.mulf %789, %790 : vector<16x16xf32>
    %cst_288 = arith.constant 0.000000e+00 : f32
    %792 = vector.broadcast %cst_288 : f32 to vector<16x16xf32>
    %793 = arith.cmpf ogt, %36, %792 : vector<16x16xf32>
    %cst_289 = arith.constant -1.000000e+30 : f32
    %794 = vector.broadcast %cst_289 : f32 to vector<16x16xf32>
    %795 = arith.select %793, %791, %794 : vector<16x16xi1>, vector<16x16xf32>
    %cst_290 = arith.constant dense<0xFF800000> : vector<16xf32>
    %796 = vector.multi_reduction <maximumf>, %795, %cst_290 [1] : vector<16x16xf32> to vector<16xf32>
    %797 = vector.shape_cast %796 : vector<16xf32> to vector<16x1xf32>
    %798 = vector.broadcast %797 : vector<16x1xf32> to vector<16x16xf32>
    %799 = arith.subf %795, %798 : vector<16x16xf32>
    %800 = math.exp %799 : vector<16x16xf32>
    %cst_291 = arith.constant dense<0.000000e+00> : vector<16xf32>
    %801 = vector.multi_reduction <add>, %800, %cst_291 [1] : vector<16x16xf32> to vector<16xf32>
    %802 = vector.shape_cast %801 : vector<16xf32> to vector<16x1xf32>
    %803 = tpu.reciprocal %802 {approx = true} : vector<16x1xf32> -> vector<16x1xf32>
    %804 = vector.broadcast %803 : vector<16x1xf32> to vector<16x16xf32>
    %805 = arith.mulf %800, %804 : vector<16x16xf32>
    %806 = arith.truncf %805 : vector<16x16xf32> to vector<16x16xbf16>
    %807 = arith.truncf %786 : vector<16x8xf32> to vector<16x8xbf16>
    %cst_292 = arith.constant dense<0.000000e+00> : vector<16x8xf32>
    %808 = tpu.matmul %806, %807, %cst_292 {dimension_numbers = #tpu.dot_dimension_numbers<[1], [0], [0], [1], [0, 0, 1, 1], [], []>} : vector<16x16xbf16>, vector<16x8xbf16>, vector<16x8xf32> -> vector<16x8xf32>
    %809 = vector.extract_strided_slice %606 {offsets = [3, 0, 0], sizes = [1, 8, 32], strides = [1, 1, 1]} : vector<4x8x32xbf16> to vector<1x8x32xbf16>
    %810 = vector.shape_cast %809 : vector<1x8x32xbf16> to vector<8x32xbf16>
    %811 = arith.truncf %808 : vector<16x8xf32> to vector<16x8xbf16>
    %cst_293 = arith.constant dense<0.000000e+00> : vector<16x32xf32>
    %812 = tpu.matmul %811, %810, %cst_293 {dimension_numbers = #tpu.dot_dimension_numbers<[1], [0], [0], [1], [0, 0, 1, 1], [], []>} : vector<16x8xbf16>, vector<8x32xbf16>, vector<16x32xf32> -> vector<16x32xf32>
    %813 = arith.addf %762, %812 : vector<16x32xf32>
    %814 = vector.broadcast %608 : vector<1x32xf32> to vector<16x32xf32>
    %815 = arith.addf %813, %814 : vector<16x32xf32>
    %c1_294 = arith.constant 1 : index
    %c0_295 = arith.constant 0 : index
    %c0_296 = arith.constant 0 : index
    %816 = vector.load %arg16[%c1_294, %c0_295, %c0_296] : memref<2x1x32xf32, #tpu.memory_space<vmem>>, vector<1x1x32xf32>
    %817 = vector.shape_cast %816 : vector<1x1x32xf32> to vector<1x32xf32>
    %c1_297 = arith.constant 1 : index
    %c0_298 = arith.constant 0 : index
    %c0_299 = arith.constant 0 : index
    %818 = vector.load %arg17[%c1_297, %c0_298, %c0_299] : memref<2x1x32xf32, #tpu.memory_space<vmem>>, vector<1x1x32xf32>
    %819 = vector.shape_cast %818 : vector<1x1x32xf32> to vector<1x32xf32>
    %820 = arith.addf %592, %815 : vector<16x32xf32>
    %cst_300 = arith.constant dense<0.000000e+00> : vector<16xf32>
    %821 = vector.multi_reduction <add>, %820, %cst_300 [1] : vector<16x32xf32> to vector<16xf32>
    %822 = vector.shape_cast %821 : vector<16xf32> to vector<16x1xf32>
    %cst_301 = arith.constant 3.200000e+01 : f32
    %823 = vector.broadcast %cst_301 : f32 to vector<16x1xf32>
    %824 = arith.divf %822, %823 : vector<16x1xf32>
    %825 = vector.broadcast %824 : vector<16x1xf32> to vector<16x32xf32>
    %826 = arith.subf %820, %825 : vector<16x32xf32>
    %827 = arith.mulf %826, %826 : vector<16x32xf32>
    %cst_302 = arith.constant dense<0.000000e+00> : vector<16xf32>
    %828 = vector.multi_reduction <add>, %827, %cst_302 [1] : vector<16x32xf32> to vector<16xf32>
    %829 = vector.shape_cast %828 : vector<16xf32> to vector<16x1xf32>
    %cst_303 = arith.constant 3.200000e+01 : f32
    %830 = vector.broadcast %cst_303 : f32 to vector<16x1xf32>
    %831 = arith.divf %829, %830 : vector<16x1xf32>
    %832 = vector.broadcast %824 : vector<16x1xf32> to vector<16x32xf32>
    %833 = arith.subf %820, %832 : vector<16x32xf32>
    %cst_304 = arith.constant 9.99999974E-6 : f32
    %834 = vector.broadcast %cst_304 : f32 to vector<16x1xf32>
    %835 = arith.addf %831, %834 : vector<16x1xf32>
    %836 = math.rsqrt %835 : vector<16x1xf32>
    %837 = vector.broadcast %836 : vector<16x1xf32> to vector<16x32xf32>
    %838 = arith.mulf %833, %837 : vector<16x32xf32>
    %839 = vector.broadcast %817 : vector<1x32xf32> to vector<16x32xf32>
    %840 = arith.mulf %838, %839 : vector<16x32xf32>
    %841 = vector.broadcast %819 : vector<1x32xf32> to vector<16x32xf32>
    %842 = arith.addf %840, %841 : vector<16x32xf32>
    %c1_305 = arith.constant 1 : index
    %c0_306 = arith.constant 0 : index
    %c0_307 = arith.constant 0 : index
    %c0_308 = arith.constant 0 : index
    %843 = vector.load %arg18[%c1_305, %c0_306, %c0_307, %c0_308] : memref<2x4x32x8xbf16, #tpu.memory_space<vmem>>, vector<1x4x32x8xbf16>
    %844 = vector.shape_cast %843 : vector<1x4x32x8xbf16> to vector<4x32x8xbf16>
    %c1_309 = arith.constant 1 : index
    %c0_310 = arith.constant 0 : index
    %c0_311 = arith.constant 0 : index
    %c0_312 = arith.constant 0 : index
    %845 = vector.load %arg19[%c1_309, %c0_310, %c0_311, %c0_312] : memref<2x4x1x8xf32, #tpu.memory_space<vmem>>, vector<1x4x1x8xf32>
    %846 = vector.shape_cast %845 : vector<1x4x1x8xf32> to vector<4x1x8xf32>
    %c1_313 = arith.constant 1 : index
    %c0_314 = arith.constant 0 : index
    %c0_315 = arith.constant 0 : index
    %c0_316 = arith.constant 0 : index
    %847 = vector.load %arg20[%c1_313, %c0_314, %c0_315, %c0_316] : memref<2x4x16x8xbf16, #tpu.memory_space<vmem>>, vector<1x4x16x8xbf16>
    %848 = vector.shape_cast %847 : vector<1x4x16x8xbf16> to vector<4x16x8xbf16>
    %c1_317 = arith.constant 1 : index
    %c0_318 = arith.constant 0 : index
    %c0_319 = arith.constant 0 : index
    %c0_320 = arith.constant 0 : index
    %849 = vector.load %arg21[%c1_317, %c0_318, %c0_319, %c0_320] : memref<2x4x1x8xf32, #tpu.memory_space<vmem>>, vector<1x4x1x8xf32>
    %850 = vector.shape_cast %849 : vector<1x4x1x8xf32> to vector<4x1x8xf32>
    %c1_321 = arith.constant 1 : index
    %c0_322 = arith.constant 0 : index
    %c0_323 = arith.constant 0 : index
    %c0_324 = arith.constant 0 : index
    %851 = vector.load %arg22[%c1_321, %c0_322, %c0_323, %c0_324] : memref<2x4x16x8xbf16, #tpu.memory_space<vmem>>, vector<1x4x16x8xbf16>
    %852 = vector.shape_cast %851 : vector<1x4x16x8xbf16> to vector<4x16x8xbf16>
    %c1_325 = arith.constant 1 : index
    %c0_326 = arith.constant 0 : index
    %c0_327 = arith.constant 0 : index
    %c0_328 = arith.constant 0 : index
    %853 = vector.load %arg23[%c1_325, %c0_326, %c0_327, %c0_328] : memref<2x4x1x8xf32, #tpu.memory_space<vmem>>, vector<1x4x1x8xf32>
    %854 = vector.shape_cast %853 : vector<1x4x1x8xf32> to vector<4x1x8xf32>
    %c1_329 = arith.constant 1 : index
    %c0_330 = arith.constant 0 : index
    %c0_331 = arith.constant 0 : index
    %c0_332 = arith.constant 0 : index
    %855 = vector.load %arg24[%c1_329, %c0_330, %c0_331, %c0_332] : memref<2x4x8x32xbf16, #tpu.memory_space<vmem>>, vector<1x4x8x32xbf16>
    %856 = vector.shape_cast %855 : vector<1x4x8x32xbf16> to vector<4x8x32xbf16>
    %c1_333 = arith.constant 1 : index
    %c0_334 = arith.constant 0 : index
    %c0_335 = arith.constant 0 : index
    %857 = vector.load %arg25[%c1_333, %c0_334, %c0_335] : memref<2x1x32xf32, #tpu.memory_space<vmem>>, vector<1x1x32xf32>
    %858 = vector.shape_cast %857 : vector<1x1x32xf32> to vector<1x32xf32>
    %cst_336 = arith.constant 0.000000e+00 : f32
    %859 = vector.broadcast %cst_336 : f32 to vector<16x32xf32>
    %860 = vector.extract_strided_slice %844 {offsets = [0, 0, 0], sizes = [1, 32, 8], strides = [1, 1, 1]} : vector<4x32x8xbf16> to vector<1x32x8xbf16>
    %861 = vector.shape_cast %860 : vector<1x32x8xbf16> to vector<32x8xbf16>
    %862 = arith.truncf %842 : vector<16x32xf32> to vector<16x32xbf16>
    %cst_337 = arith.constant dense<0.000000e+00> : vector<16x8xf32>
    %863 = tpu.matmul %862, %861, %cst_337 {dimension_numbers = #tpu.dot_dimension_numbers<[1], [0], [0], [1], [0, 0, 1, 1], [], []>} : vector<16x32xbf16>, vector<32x8xbf16>, vector<16x8xf32> -> vector<16x8xf32>
    %864 = vector.extract_strided_slice %846 {offsets = [0, 0, 0], sizes = [1, 1, 8], strides = [1, 1, 1]} : vector<4x1x8xf32> to vector<1x1x8xf32>
    %865 = vector.shape_cast %864 : vector<1x1x8xf32> to vector<1x8xf32>
    %866 = vector.broadcast %865 : vector<1x8xf32> to vector<16x8xf32>
    %867 = arith.addf %863, %866 : vector<16x8xf32>
    %868 = vector.extract_strided_slice %848 {offsets = [0, 0, 0], sizes = [1, 16, 8], strides = [1, 1, 1]} : vector<4x16x8xbf16> to vector<1x16x8xbf16>
    %869 = vector.shape_cast %868 : vector<1x16x8xbf16> to vector<16x8xbf16>
    %870 = arith.truncf %37 : vector<8x16xf32> to vector<8x16xbf16>
    %cst_338 = arith.constant dense<0.000000e+00> : vector<8x8xf32>
    %871 = tpu.matmul %870, %869, %cst_338 {dimension_numbers = #tpu.dot_dimension_numbers<[1], [0], [0], [1], [0, 0, 1, 1], [], []>} : vector<8x16xbf16>, vector<16x8xbf16>, vector<8x8xf32> -> vector<8x8xf32>
    %872 = vector.extract_strided_slice %850 {offsets = [0, 0, 0], sizes = [1, 1, 8], strides = [1, 1, 1]} : vector<4x1x8xf32> to vector<1x1x8xf32>
    %873 = vector.shape_cast %872 : vector<1x1x8xf32> to vector<1x8xf32>
    %874 = vector.broadcast %873 : vector<1x8xf32> to vector<8x8xf32>
    %875 = arith.addf %871, %874 : vector<8x8xf32>
    %876 = vector.extract_strided_slice %852 {offsets = [0, 0, 0], sizes = [1, 16, 8], strides = [1, 1, 1]} : vector<4x16x8xbf16> to vector<1x16x8xbf16>
    %877 = vector.shape_cast %876 : vector<1x16x8xbf16> to vector<16x8xbf16>
    %878 = arith.truncf %3 : vector<8x16xf32> to vector<8x16xbf16>
    %cst_339 = arith.constant dense<0.000000e+00> : vector<8x8xf32>
    %879 = tpu.matmul %878, %877, %cst_339 {dimension_numbers = #tpu.dot_dimension_numbers<[1], [0], [0], [1], [0, 0, 1, 1], [], []>} : vector<8x16xbf16>, vector<16x8xbf16>, vector<8x8xf32> -> vector<8x8xf32>
    %880 = vector.extract_strided_slice %854 {offsets = [0, 0, 0], sizes = [1, 1, 8], strides = [1, 1, 1]} : vector<4x1x8xf32> to vector<1x1x8xf32>
    %881 = vector.shape_cast %880 : vector<1x1x8xf32> to vector<1x8xf32>
    %882 = vector.broadcast %881 : vector<1x8xf32> to vector<8x8xf32>
    %883 = arith.addf %879, %882 : vector<8x8xf32>
    %884 = arith.truncf %867 : vector<16x8xf32> to vector<16x8xbf16>
    %885 = arith.truncf %875 : vector<8x8xf32> to vector<8x8xbf16>
    %cst_340 = arith.constant dense<0.000000e+00> : vector<16x8xf32>
    %886 = tpu.matmul %884, %885, %cst_340 {dimension_numbers = #tpu.dot_dimension_numbers<[1], [1], [0], [0], [0, 0, 1, 0], [], []>} : vector<16x8xbf16>, vector<8x8xbf16>, vector<16x8xf32> -> vector<16x8xf32>
    %cst_341 = arith.constant 0.353553385 : f32
    %887 = vector.broadcast %cst_341 : f32 to vector<16x8xf32>
    %888 = arith.mulf %886, %887 : vector<16x8xf32>
    %cst_342 = arith.constant 0.000000e+00 : f32
    %889 = vector.broadcast %cst_342 : f32 to vector<16x1xf32>
    %890 = arith.cmpf ogt, %5, %889 : vector<16x1xf32>
    %cst_343 = arith.constant -1.000000e+30 : f32
    %891 = vector.shape_cast %890 : vector<16x1xi1> to vector<16x1xi1>
    %892 = vector.broadcast %891 : vector<16x1xi1> to vector<16x8xi1>
    %893 = vector.broadcast %cst_343 : f32 to vector<16x8xf32>
    %894 = arith.select %892, %888, %893 : vector<16x8xi1>, vector<16x8xf32>
    %cst_344 = arith.constant dense<0xFF800000> : vector<16xf32>
    %895 = vector.multi_reduction <maximumf>, %894, %cst_344 [1] : vector<16x8xf32> to vector<16xf32>
    %896 = vector.shape_cast %895 : vector<16xf32> to vector<16x1xf32>
    %897 = vector.broadcast %896 : vector<16x1xf32> to vector<16x8xf32>
    %898 = arith.subf %894, %897 : vector<16x8xf32>
    %899 = math.exp %898 : vector<16x8xf32>
    %cst_345 = arith.constant dense<0.000000e+00> : vector<16xf32>
    %900 = vector.multi_reduction <add>, %899, %cst_345 [1] : vector<16x8xf32> to vector<16xf32>
    %901 = vector.shape_cast %900 : vector<16xf32> to vector<16x1xf32>
    %902 = tpu.reciprocal %901 {approx = true} : vector<16x1xf32> -> vector<16x1xf32>
    %903 = vector.broadcast %902 : vector<16x1xf32> to vector<16x8xf32>
    %904 = arith.mulf %899, %903 : vector<16x8xf32>
    %905 = arith.truncf %904 : vector<16x8xf32> to vector<16x8xbf16>
    %906 = arith.truncf %883 : vector<8x8xf32> to vector<8x8xbf16>
    %cst_346 = arith.constant dense<0.000000e+00> : vector<16x8xf32>
    %907 = tpu.matmul %905, %906, %cst_346 {dimension_numbers = #tpu.dot_dimension_numbers<[1], [0], [0], [1], [0, 0, 1, 1], [], []>} : vector<16x8xbf16>, vector<8x8xbf16>, vector<16x8xf32> -> vector<16x8xf32>
    %908 = vector.extract_strided_slice %856 {offsets = [0, 0, 0], sizes = [1, 8, 32], strides = [1, 1, 1]} : vector<4x8x32xbf16> to vector<1x8x32xbf16>
    %909 = vector.shape_cast %908 : vector<1x8x32xbf16> to vector<8x32xbf16>
    %910 = arith.truncf %907 : vector<16x8xf32> to vector<16x8xbf16>
    %cst_347 = arith.constant dense<0.000000e+00> : vector<16x32xf32>
    %911 = tpu.matmul %910, %909, %cst_347 {dimension_numbers = #tpu.dot_dimension_numbers<[1], [0], [0], [1], [0, 0, 1, 1], [], []>} : vector<16x8xbf16>, vector<8x32xbf16>, vector<16x32xf32> -> vector<16x32xf32>
    %912 = arith.addf %859, %911 : vector<16x32xf32>
    %913 = vector.extract_strided_slice %844 {offsets = [1, 0, 0], sizes = [1, 32, 8], strides = [1, 1, 1]} : vector<4x32x8xbf16> to vector<1x32x8xbf16>
    %914 = vector.shape_cast %913 : vector<1x32x8xbf16> to vector<32x8xbf16>
    %915 = arith.truncf %842 : vector<16x32xf32> to vector<16x32xbf16>
    %cst_348 = arith.constant dense<0.000000e+00> : vector<16x8xf32>
    %916 = tpu.matmul %915, %914, %cst_348 {dimension_numbers = #tpu.dot_dimension_numbers<[1], [0], [0], [1], [0, 0, 1, 1], [], []>} : vector<16x32xbf16>, vector<32x8xbf16>, vector<16x8xf32> -> vector<16x8xf32>
    %917 = vector.extract_strided_slice %846 {offsets = [1, 0, 0], sizes = [1, 1, 8], strides = [1, 1, 1]} : vector<4x1x8xf32> to vector<1x1x8xf32>
    %918 = vector.shape_cast %917 : vector<1x1x8xf32> to vector<1x8xf32>
    %919 = vector.broadcast %918 : vector<1x8xf32> to vector<16x8xf32>
    %920 = arith.addf %916, %919 : vector<16x8xf32>
    %921 = vector.extract_strided_slice %848 {offsets = [1, 0, 0], sizes = [1, 16, 8], strides = [1, 1, 1]} : vector<4x16x8xbf16> to vector<1x16x8xbf16>
    %922 = vector.shape_cast %921 : vector<1x16x8xbf16> to vector<16x8xbf16>
    %923 = arith.truncf %37 : vector<8x16xf32> to vector<8x16xbf16>
    %cst_349 = arith.constant dense<0.000000e+00> : vector<8x8xf32>
    %924 = tpu.matmul %923, %922, %cst_349 {dimension_numbers = #tpu.dot_dimension_numbers<[1], [0], [0], [1], [0, 0, 1, 1], [], []>} : vector<8x16xbf16>, vector<16x8xbf16>, vector<8x8xf32> -> vector<8x8xf32>
    %925 = vector.extract_strided_slice %850 {offsets = [1, 0, 0], sizes = [1, 1, 8], strides = [1, 1, 1]} : vector<4x1x8xf32> to vector<1x1x8xf32>
    %926 = vector.shape_cast %925 : vector<1x1x8xf32> to vector<1x8xf32>
    %927 = vector.broadcast %926 : vector<1x8xf32> to vector<8x8xf32>
    %928 = arith.addf %924, %927 : vector<8x8xf32>
    %929 = vector.extract_strided_slice %852 {offsets = [1, 0, 0], sizes = [1, 16, 8], strides = [1, 1, 1]} : vector<4x16x8xbf16> to vector<1x16x8xbf16>
    %930 = vector.shape_cast %929 : vector<1x16x8xbf16> to vector<16x8xbf16>
    %931 = arith.truncf %3 : vector<8x16xf32> to vector<8x16xbf16>
    %cst_350 = arith.constant dense<0.000000e+00> : vector<8x8xf32>
    %932 = tpu.matmul %931, %930, %cst_350 {dimension_numbers = #tpu.dot_dimension_numbers<[1], [0], [0], [1], [0, 0, 1, 1], [], []>} : vector<8x16xbf16>, vector<16x8xbf16>, vector<8x8xf32> -> vector<8x8xf32>
    %933 = vector.extract_strided_slice %854 {offsets = [1, 0, 0], sizes = [1, 1, 8], strides = [1, 1, 1]} : vector<4x1x8xf32> to vector<1x1x8xf32>
    %934 = vector.shape_cast %933 : vector<1x1x8xf32> to vector<1x8xf32>
    %935 = vector.broadcast %934 : vector<1x8xf32> to vector<8x8xf32>
    %936 = arith.addf %932, %935 : vector<8x8xf32>
    %937 = arith.truncf %920 : vector<16x8xf32> to vector<16x8xbf16>
    %938 = arith.truncf %928 : vector<8x8xf32> to vector<8x8xbf16>
    %cst_351 = arith.constant dense<0.000000e+00> : vector<16x8xf32>
    %939 = tpu.matmul %937, %938, %cst_351 {dimension_numbers = #tpu.dot_dimension_numbers<[1], [1], [0], [0], [0, 0, 1, 0], [], []>} : vector<16x8xbf16>, vector<8x8xbf16>, vector<16x8xf32> -> vector<16x8xf32>
    %cst_352 = arith.constant 0.353553385 : f32
    %940 = vector.broadcast %cst_352 : f32 to vector<16x8xf32>
    %941 = arith.mulf %939, %940 : vector<16x8xf32>
    %cst_353 = arith.constant 0.000000e+00 : f32
    %942 = vector.broadcast %cst_353 : f32 to vector<16x1xf32>
    %943 = arith.cmpf ogt, %5, %942 : vector<16x1xf32>
    %cst_354 = arith.constant -1.000000e+30 : f32
    %944 = vector.shape_cast %943 : vector<16x1xi1> to vector<16x1xi1>
    %945 = vector.broadcast %944 : vector<16x1xi1> to vector<16x8xi1>
    %946 = vector.broadcast %cst_354 : f32 to vector<16x8xf32>
    %947 = arith.select %945, %941, %946 : vector<16x8xi1>, vector<16x8xf32>
    %cst_355 = arith.constant dense<0xFF800000> : vector<16xf32>
    %948 = vector.multi_reduction <maximumf>, %947, %cst_355 [1] : vector<16x8xf32> to vector<16xf32>
    %949 = vector.shape_cast %948 : vector<16xf32> to vector<16x1xf32>
    %950 = vector.broadcast %949 : vector<16x1xf32> to vector<16x8xf32>
    %951 = arith.subf %947, %950 : vector<16x8xf32>
    %952 = math.exp %951 : vector<16x8xf32>
    %cst_356 = arith.constant dense<0.000000e+00> : vector<16xf32>
    %953 = vector.multi_reduction <add>, %952, %cst_356 [1] : vector<16x8xf32> to vector<16xf32>
    %954 = vector.shape_cast %953 : vector<16xf32> to vector<16x1xf32>
    %955 = tpu.reciprocal %954 {approx = true} : vector<16x1xf32> -> vector<16x1xf32>
    %956 = vector.broadcast %955 : vector<16x1xf32> to vector<16x8xf32>
    %957 = arith.mulf %952, %956 : vector<16x8xf32>
    %958 = arith.truncf %957 : vector<16x8xf32> to vector<16x8xbf16>
    %959 = arith.truncf %936 : vector<8x8xf32> to vector<8x8xbf16>
    %cst_357 = arith.constant dense<0.000000e+00> : vector<16x8xf32>
    %960 = tpu.matmul %958, %959, %cst_357 {dimension_numbers = #tpu.dot_dimension_numbers<[1], [0], [0], [1], [0, 0, 1, 1], [], []>} : vector<16x8xbf16>, vector<8x8xbf16>, vector<16x8xf32> -> vector<16x8xf32>
    %961 = vector.extract_strided_slice %856 {offsets = [1, 0, 0], sizes = [1, 8, 32], strides = [1, 1, 1]} : vector<4x8x32xbf16> to vector<1x8x32xbf16>
    %962 = vector.shape_cast %961 : vector<1x8x32xbf16> to vector<8x32xbf16>
    %963 = arith.truncf %960 : vector<16x8xf32> to vector<16x8xbf16>
    %cst_358 = arith.constant dense<0.000000e+00> : vector<16x32xf32>
    %964 = tpu.matmul %963, %962, %cst_358 {dimension_numbers = #tpu.dot_dimension_numbers<[1], [0], [0], [1], [0, 0, 1, 1], [], []>} : vector<16x8xbf16>, vector<8x32xbf16>, vector<16x32xf32> -> vector<16x32xf32>
    %965 = arith.addf %912, %964 : vector<16x32xf32>
    %966 = vector.extract_strided_slice %844 {offsets = [2, 0, 0], sizes = [1, 32, 8], strides = [1, 1, 1]} : vector<4x32x8xbf16> to vector<1x32x8xbf16>
    %967 = vector.shape_cast %966 : vector<1x32x8xbf16> to vector<32x8xbf16>
    %968 = arith.truncf %842 : vector<16x32xf32> to vector<16x32xbf16>
    %cst_359 = arith.constant dense<0.000000e+00> : vector<16x8xf32>
    %969 = tpu.matmul %968, %967, %cst_359 {dimension_numbers = #tpu.dot_dimension_numbers<[1], [0], [0], [1], [0, 0, 1, 1], [], []>} : vector<16x32xbf16>, vector<32x8xbf16>, vector<16x8xf32> -> vector<16x8xf32>
    %970 = vector.extract_strided_slice %846 {offsets = [2, 0, 0], sizes = [1, 1, 8], strides = [1, 1, 1]} : vector<4x1x8xf32> to vector<1x1x8xf32>
    %971 = vector.shape_cast %970 : vector<1x1x8xf32> to vector<1x8xf32>
    %972 = vector.broadcast %971 : vector<1x8xf32> to vector<16x8xf32>
    %973 = arith.addf %969, %972 : vector<16x8xf32>
    %974 = vector.extract_strided_slice %848 {offsets = [2, 0, 0], sizes = [1, 16, 8], strides = [1, 1, 1]} : vector<4x16x8xbf16> to vector<1x16x8xbf16>
    %975 = vector.shape_cast %974 : vector<1x16x8xbf16> to vector<16x8xbf16>
    %976 = arith.truncf %37 : vector<8x16xf32> to vector<8x16xbf16>
    %cst_360 = arith.constant dense<0.000000e+00> : vector<8x8xf32>
    %977 = tpu.matmul %976, %975, %cst_360 {dimension_numbers = #tpu.dot_dimension_numbers<[1], [0], [0], [1], [0, 0, 1, 1], [], []>} : vector<8x16xbf16>, vector<16x8xbf16>, vector<8x8xf32> -> vector<8x8xf32>
    %978 = vector.extract_strided_slice %850 {offsets = [2, 0, 0], sizes = [1, 1, 8], strides = [1, 1, 1]} : vector<4x1x8xf32> to vector<1x1x8xf32>
    %979 = vector.shape_cast %978 : vector<1x1x8xf32> to vector<1x8xf32>
    %980 = vector.broadcast %979 : vector<1x8xf32> to vector<8x8xf32>
    %981 = arith.addf %977, %980 : vector<8x8xf32>
    %982 = vector.extract_strided_slice %852 {offsets = [2, 0, 0], sizes = [1, 16, 8], strides = [1, 1, 1]} : vector<4x16x8xbf16> to vector<1x16x8xbf16>
    %983 = vector.shape_cast %982 : vector<1x16x8xbf16> to vector<16x8xbf16>
    %984 = arith.truncf %3 : vector<8x16xf32> to vector<8x16xbf16>
    %cst_361 = arith.constant dense<0.000000e+00> : vector<8x8xf32>
    %985 = tpu.matmul %984, %983, %cst_361 {dimension_numbers = #tpu.dot_dimension_numbers<[1], [0], [0], [1], [0, 0, 1, 1], [], []>} : vector<8x16xbf16>, vector<16x8xbf16>, vector<8x8xf32> -> vector<8x8xf32>
    %986 = vector.extract_strided_slice %854 {offsets = [2, 0, 0], sizes = [1, 1, 8], strides = [1, 1, 1]} : vector<4x1x8xf32> to vector<1x1x8xf32>
    %987 = vector.shape_cast %986 : vector<1x1x8xf32> to vector<1x8xf32>
    %988 = vector.broadcast %987 : vector<1x8xf32> to vector<8x8xf32>
    %989 = arith.addf %985, %988 : vector<8x8xf32>
    %990 = arith.truncf %973 : vector<16x8xf32> to vector<16x8xbf16>
    %991 = arith.truncf %981 : vector<8x8xf32> to vector<8x8xbf16>
    %cst_362 = arith.constant dense<0.000000e+00> : vector<16x8xf32>
    %992 = tpu.matmul %990, %991, %cst_362 {dimension_numbers = #tpu.dot_dimension_numbers<[1], [1], [0], [0], [0, 0, 1, 0], [], []>} : vector<16x8xbf16>, vector<8x8xbf16>, vector<16x8xf32> -> vector<16x8xf32>
    %cst_363 = arith.constant 0.353553385 : f32
    %993 = vector.broadcast %cst_363 : f32 to vector<16x8xf32>
    %994 = arith.mulf %992, %993 : vector<16x8xf32>
    %cst_364 = arith.constant 0.000000e+00 : f32
    %995 = vector.broadcast %cst_364 : f32 to vector<16x1xf32>
    %996 = arith.cmpf ogt, %5, %995 : vector<16x1xf32>
    %cst_365 = arith.constant -1.000000e+30 : f32
    %997 = vector.shape_cast %996 : vector<16x1xi1> to vector<16x1xi1>
    %998 = vector.broadcast %997 : vector<16x1xi1> to vector<16x8xi1>
    %999 = vector.broadcast %cst_365 : f32 to vector<16x8xf32>
    %1000 = arith.select %998, %994, %999 : vector<16x8xi1>, vector<16x8xf32>
    %cst_366 = arith.constant dense<0xFF800000> : vector<16xf32>
    %1001 = vector.multi_reduction <maximumf>, %1000, %cst_366 [1] : vector<16x8xf32> to vector<16xf32>
    %1002 = vector.shape_cast %1001 : vector<16xf32> to vector<16x1xf32>
    %1003 = vector.broadcast %1002 : vector<16x1xf32> to vector<16x8xf32>
    %1004 = arith.subf %1000, %1003 : vector<16x8xf32>
    %1005 = math.exp %1004 : vector<16x8xf32>
    %cst_367 = arith.constant dense<0.000000e+00> : vector<16xf32>
    %1006 = vector.multi_reduction <add>, %1005, %cst_367 [1] : vector<16x8xf32> to vector<16xf32>
    %1007 = vector.shape_cast %1006 : vector<16xf32> to vector<16x1xf32>
    %1008 = tpu.reciprocal %1007 {approx = true} : vector<16x1xf32> -> vector<16x1xf32>
    %1009 = vector.broadcast %1008 : vector<16x1xf32> to vector<16x8xf32>
    %1010 = arith.mulf %1005, %1009 : vector<16x8xf32>
    %1011 = arith.truncf %1010 : vector<16x8xf32> to vector<16x8xbf16>
    %1012 = arith.truncf %989 : vector<8x8xf32> to vector<8x8xbf16>
    %cst_368 = arith.constant dense<0.000000e+00> : vector<16x8xf32>
    %1013 = tpu.matmul %1011, %1012, %cst_368 {dimension_numbers = #tpu.dot_dimension_numbers<[1], [0], [0], [1], [0, 0, 1, 1], [], []>} : vector<16x8xbf16>, vector<8x8xbf16>, vector<16x8xf32> -> vector<16x8xf32>
    %1014 = vector.extract_strided_slice %856 {offsets = [2, 0, 0], sizes = [1, 8, 32], strides = [1, 1, 1]} : vector<4x8x32xbf16> to vector<1x8x32xbf16>
    %1015 = vector.shape_cast %1014 : vector<1x8x32xbf16> to vector<8x32xbf16>
    %1016 = arith.truncf %1013 : vector<16x8xf32> to vector<16x8xbf16>
    %cst_369 = arith.constant dense<0.000000e+00> : vector<16x32xf32>
    %1017 = tpu.matmul %1016, %1015, %cst_369 {dimension_numbers = #tpu.dot_dimension_numbers<[1], [0], [0], [1], [0, 0, 1, 1], [], []>} : vector<16x8xbf16>, vector<8x32xbf16>, vector<16x32xf32> -> vector<16x32xf32>
    %1018 = arith.addf %965, %1017 : vector<16x32xf32>
    %1019 = vector.extract_strided_slice %844 {offsets = [3, 0, 0], sizes = [1, 32, 8], strides = [1, 1, 1]} : vector<4x32x8xbf16> to vector<1x32x8xbf16>
    %1020 = vector.shape_cast %1019 : vector<1x32x8xbf16> to vector<32x8xbf16>
    %1021 = arith.truncf %842 : vector<16x32xf32> to vector<16x32xbf16>
    %cst_370 = arith.constant dense<0.000000e+00> : vector<16x8xf32>
    %1022 = tpu.matmul %1021, %1020, %cst_370 {dimension_numbers = #tpu.dot_dimension_numbers<[1], [0], [0], [1], [0, 0, 1, 1], [], []>} : vector<16x32xbf16>, vector<32x8xbf16>, vector<16x8xf32> -> vector<16x8xf32>
    %1023 = vector.extract_strided_slice %846 {offsets = [3, 0, 0], sizes = [1, 1, 8], strides = [1, 1, 1]} : vector<4x1x8xf32> to vector<1x1x8xf32>
    %1024 = vector.shape_cast %1023 : vector<1x1x8xf32> to vector<1x8xf32>
    %1025 = vector.broadcast %1024 : vector<1x8xf32> to vector<16x8xf32>
    %1026 = arith.addf %1022, %1025 : vector<16x8xf32>
    %1027 = vector.extract_strided_slice %848 {offsets = [3, 0, 0], sizes = [1, 16, 8], strides = [1, 1, 1]} : vector<4x16x8xbf16> to vector<1x16x8xbf16>
    %1028 = vector.shape_cast %1027 : vector<1x16x8xbf16> to vector<16x8xbf16>
    %1029 = arith.truncf %37 : vector<8x16xf32> to vector<8x16xbf16>
    %cst_371 = arith.constant dense<0.000000e+00> : vector<8x8xf32>
    %1030 = tpu.matmul %1029, %1028, %cst_371 {dimension_numbers = #tpu.dot_dimension_numbers<[1], [0], [0], [1], [0, 0, 1, 1], [], []>} : vector<8x16xbf16>, vector<16x8xbf16>, vector<8x8xf32> -> vector<8x8xf32>
    %1031 = vector.extract_strided_slice %850 {offsets = [3, 0, 0], sizes = [1, 1, 8], strides = [1, 1, 1]} : vector<4x1x8xf32> to vector<1x1x8xf32>
    %1032 = vector.shape_cast %1031 : vector<1x1x8xf32> to vector<1x8xf32>
    %1033 = vector.broadcast %1032 : vector<1x8xf32> to vector<8x8xf32>
    %1034 = arith.addf %1030, %1033 : vector<8x8xf32>
    %1035 = vector.extract_strided_slice %852 {offsets = [3, 0, 0], sizes = [1, 16, 8], strides = [1, 1, 1]} : vector<4x16x8xbf16> to vector<1x16x8xbf16>
    %1036 = vector.shape_cast %1035 : vector<1x16x8xbf16> to vector<16x8xbf16>
    %1037 = arith.truncf %3 : vector<8x16xf32> to vector<8x16xbf16>
    %cst_372 = arith.constant dense<0.000000e+00> : vector<8x8xf32>
    %1038 = tpu.matmul %1037, %1036, %cst_372 {dimension_numbers = #tpu.dot_dimension_numbers<[1], [0], [0], [1], [0, 0, 1, 1], [], []>} : vector<8x16xbf16>, vector<16x8xbf16>, vector<8x8xf32> -> vector<8x8xf32>
    %1039 = vector.extract_strided_slice %854 {offsets = [3, 0, 0], sizes = [1, 1, 8], strides = [1, 1, 1]} : vector<4x1x8xf32> to vector<1x1x8xf32>
    %1040 = vector.shape_cast %1039 : vector<1x1x8xf32> to vector<1x8xf32>
    %1041 = vector.broadcast %1040 : vector<1x8xf32> to vector<8x8xf32>
    %1042 = arith.addf %1038, %1041 : vector<8x8xf32>
    %1043 = arith.truncf %1026 : vector<16x8xf32> to vector<16x8xbf16>
    %1044 = arith.truncf %1034 : vector<8x8xf32> to vector<8x8xbf16>
    %cst_373 = arith.constant dense<0.000000e+00> : vector<16x8xf32>
    %1045 = tpu.matmul %1043, %1044, %cst_373 {dimension_numbers = #tpu.dot_dimension_numbers<[1], [1], [0], [0], [0, 0, 1, 0], [], []>} : vector<16x8xbf16>, vector<8x8xbf16>, vector<16x8xf32> -> vector<16x8xf32>
    %cst_374 = arith.constant 0.353553385 : f32
    %1046 = vector.broadcast %cst_374 : f32 to vector<16x8xf32>
    %1047 = arith.mulf %1045, %1046 : vector<16x8xf32>
    %cst_375 = arith.constant 0.000000e+00 : f32
    %1048 = vector.broadcast %cst_375 : f32 to vector<16x1xf32>
    %1049 = arith.cmpf ogt, %5, %1048 : vector<16x1xf32>
    %cst_376 = arith.constant -1.000000e+30 : f32
    %1050 = vector.shape_cast %1049 : vector<16x1xi1> to vector<16x1xi1>
    %1051 = vector.broadcast %1050 : vector<16x1xi1> to vector<16x8xi1>
    %1052 = vector.broadcast %cst_376 : f32 to vector<16x8xf32>
    %1053 = arith.select %1051, %1047, %1052 : vector<16x8xi1>, vector<16x8xf32>
    %cst_377 = arith.constant dense<0xFF800000> : vector<16xf32>
    %1054 = vector.multi_reduction <maximumf>, %1053, %cst_377 [1] : vector<16x8xf32> to vector<16xf32>
    %1055 = vector.shape_cast %1054 : vector<16xf32> to vector<16x1xf32>
    %1056 = vector.broadcast %1055 : vector<16x1xf32> to vector<16x8xf32>
    %1057 = arith.subf %1053, %1056 : vector<16x8xf32>
    %1058 = math.exp %1057 : vector<16x8xf32>
    %cst_378 = arith.constant dense<0.000000e+00> : vector<16xf32>
    %1059 = vector.multi_reduction <add>, %1058, %cst_378 [1] : vector<16x8xf32> to vector<16xf32>
    %1060 = vector.shape_cast %1059 : vector<16xf32> to vector<16x1xf32>
    %1061 = tpu.reciprocal %1060 {approx = true} : vector<16x1xf32> -> vector<16x1xf32>
    %1062 = vector.broadcast %1061 : vector<16x1xf32> to vector<16x8xf32>
    %1063 = arith.mulf %1058, %1062 : vector<16x8xf32>
    %1064 = arith.truncf %1063 : vector<16x8xf32> to vector<16x8xbf16>
    %1065 = arith.truncf %1042 : vector<8x8xf32> to vector<8x8xbf16>
    %cst_379 = arith.constant dense<0.000000e+00> : vector<16x8xf32>
    %1066 = tpu.matmul %1064, %1065, %cst_379 {dimension_numbers = #tpu.dot_dimension_numbers<[1], [0], [0], [1], [0, 0, 1, 1], [], []>} : vector<16x8xbf16>, vector<8x8xbf16>, vector<16x8xf32> -> vector<16x8xf32>
    %1067 = vector.extract_strided_slice %856 {offsets = [3, 0, 0], sizes = [1, 8, 32], strides = [1, 1, 1]} : vector<4x8x32xbf16> to vector<1x8x32xbf16>
    %1068 = vector.shape_cast %1067 : vector<1x8x32xbf16> to vector<8x32xbf16>
    %1069 = arith.truncf %1066 : vector<16x8xf32> to vector<16x8xbf16>
    %cst_380 = arith.constant dense<0.000000e+00> : vector<16x32xf32>
    %1070 = tpu.matmul %1069, %1068, %cst_380 {dimension_numbers = #tpu.dot_dimension_numbers<[1], [0], [0], [1], [0, 0, 1, 1], [], []>} : vector<16x8xbf16>, vector<8x32xbf16>, vector<16x32xf32> -> vector<16x32xf32>
    %1071 = arith.addf %1018, %1070 : vector<16x32xf32>
    %1072 = vector.broadcast %858 : vector<1x32xf32> to vector<16x32xf32>
    %1073 = arith.addf %1071, %1072 : vector<16x32xf32>
    %c1_381 = arith.constant 1 : index
    %c0_382 = arith.constant 0 : index
    %c0_383 = arith.constant 0 : index
    %1074 = vector.load %arg26[%c1_381, %c0_382, %c0_383] : memref<2x1x32xf32, #tpu.memory_space<vmem>>, vector<1x1x32xf32>
    %1075 = vector.shape_cast %1074 : vector<1x1x32xf32> to vector<1x32xf32>
    %c1_384 = arith.constant 1 : index
    %c0_385 = arith.constant 0 : index
    %c0_386 = arith.constant 0 : index
    %1076 = vector.load %arg27[%c1_384, %c0_385, %c0_386] : memref<2x1x32xf32, #tpu.memory_space<vmem>>, vector<1x1x32xf32>
    %1077 = vector.shape_cast %1076 : vector<1x1x32xf32> to vector<1x32xf32>
    %1078 = arith.addf %842, %1073 : vector<16x32xf32>
    %cst_387 = arith.constant dense<0.000000e+00> : vector<16xf32>
    %1079 = vector.multi_reduction <add>, %1078, %cst_387 [1] : vector<16x32xf32> to vector<16xf32>
    %1080 = vector.shape_cast %1079 : vector<16xf32> to vector<16x1xf32>
    %cst_388 = arith.constant 3.200000e+01 : f32
    %1081 = vector.broadcast %cst_388 : f32 to vector<16x1xf32>
    %1082 = arith.divf %1080, %1081 : vector<16x1xf32>
    %1083 = vector.broadcast %1082 : vector<16x1xf32> to vector<16x32xf32>
    %1084 = arith.subf %1078, %1083 : vector<16x32xf32>
    %1085 = arith.mulf %1084, %1084 : vector<16x32xf32>
    %cst_389 = arith.constant dense<0.000000e+00> : vector<16xf32>
    %1086 = vector.multi_reduction <add>, %1085, %cst_389 [1] : vector<16x32xf32> to vector<16xf32>
    %1087 = vector.shape_cast %1086 : vector<16xf32> to vector<16x1xf32>
    %cst_390 = arith.constant 3.200000e+01 : f32
    %1088 = vector.broadcast %cst_390 : f32 to vector<16x1xf32>
    %1089 = arith.divf %1087, %1088 : vector<16x1xf32>
    %1090 = vector.broadcast %1082 : vector<16x1xf32> to vector<16x32xf32>
    %1091 = arith.subf %1078, %1090 : vector<16x32xf32>
    %cst_391 = arith.constant 9.99999974E-6 : f32
    %1092 = vector.broadcast %cst_391 : f32 to vector<16x1xf32>
    %1093 = arith.addf %1089, %1092 : vector<16x1xf32>
    %1094 = math.rsqrt %1093 : vector<16x1xf32>
    %1095 = vector.broadcast %1094 : vector<16x1xf32> to vector<16x32xf32>
    %1096 = arith.mulf %1091, %1095 : vector<16x32xf32>
    %1097 = vector.broadcast %1075 : vector<1x32xf32> to vector<16x32xf32>
    %1098 = arith.mulf %1096, %1097 : vector<16x32xf32>
    %1099 = vector.broadcast %1077 : vector<1x32xf32> to vector<16x32xf32>
    %1100 = arith.addf %1098, %1099 : vector<16x32xf32>
    %c1_392 = arith.constant 1 : index
    %c0_393 = arith.constant 0 : index
    %c0_394 = arith.constant 0 : index
    %1101 = vector.load %arg28[%c1_392, %c0_393, %c0_394] : memref<2x32x64xbf16, #tpu.memory_space<vmem>>, vector<1x32x64xbf16>
    %1102 = vector.shape_cast %1101 : vector<1x32x64xbf16> to vector<32x64xbf16>
    %1103 = arith.truncf %1100 : vector<16x32xf32> to vector<16x32xbf16>
    %cst_395 = arith.constant dense<0.000000e+00> : vector<16x64xf32>
    %1104 = tpu.matmul %1103, %1102, %cst_395 {dimension_numbers = #tpu.dot_dimension_numbers<[1], [0], [0], [1], [0, 0, 1, 1], [], []>} : vector<16x32xbf16>, vector<32x64xbf16>, vector<16x64xf32> -> vector<16x64xf32>
    %c1_396 = arith.constant 1 : index
    %c0_397 = arith.constant 0 : index
    %c0_398 = arith.constant 0 : index
    %1105 = vector.load %arg29[%c1_396, %c0_397, %c0_398] : memref<2x1x64xf32, #tpu.memory_space<vmem>>, vector<1x1x64xf32>
    %1106 = vector.shape_cast %1105 : vector<1x1x64xf32> to vector<1x64xf32>
    %1107 = vector.broadcast %1106 : vector<1x64xf32> to vector<16x64xf32>
    %1108 = arith.addf %1104, %1107 : vector<16x64xf32>
    %cst_399 = arith.constant 0.000000e+00 : f32
    %1109 = vector.broadcast %cst_399 : f32 to vector<16x64xf32>
    %1110 = arith.maximumf %1108, %1109 : vector<16x64xf32>
    %c1_400 = arith.constant 1 : index
    %c0_401 = arith.constant 0 : index
    %c0_402 = arith.constant 0 : index
    %1111 = vector.load %arg30[%c1_400, %c0_401, %c0_402] : memref<2x64x32xbf16, #tpu.memory_space<vmem>>, vector<1x64x32xbf16>
    %1112 = vector.shape_cast %1111 : vector<1x64x32xbf16> to vector<64x32xbf16>
    %1113 = arith.truncf %1110 : vector<16x64xf32> to vector<16x64xbf16>
    %cst_403 = arith.constant dense<0.000000e+00> : vector<16x32xf32>
    %1114 = tpu.matmul %1113, %1112, %cst_403 {dimension_numbers = #tpu.dot_dimension_numbers<[1], [0], [0], [1], [0, 0, 1, 1], [], []>} : vector<16x64xbf16>, vector<64x32xbf16>, vector<16x32xf32> -> vector<16x32xf32>
    %c1_404 = arith.constant 1 : index
    %c0_405 = arith.constant 0 : index
    %c0_406 = arith.constant 0 : index
    %1115 = vector.load %arg31[%c1_404, %c0_405, %c0_406] : memref<2x1x32xf32, #tpu.memory_space<vmem>>, vector<1x1x32xf32>
    %1116 = vector.shape_cast %1115 : vector<1x1x32xf32> to vector<1x32xf32>
    %1117 = vector.broadcast %1116 : vector<1x32xf32> to vector<16x32xf32>
    %1118 = arith.addf %1114, %1117 : vector<16x32xf32>
    %c1_407 = arith.constant 1 : index
    %c0_408 = arith.constant 0 : index
    %c0_409 = arith.constant 0 : index
    %1119 = vector.load %arg32[%c1_407, %c0_408, %c0_409] : memref<2x1x32xf32, #tpu.memory_space<vmem>>, vector<1x1x32xf32>
    %1120 = vector.shape_cast %1119 : vector<1x1x32xf32> to vector<1x32xf32>
    %c1_410 = arith.constant 1 : index
    %c0_411 = arith.constant 0 : index
    %c0_412 = arith.constant 0 : index
    %1121 = vector.load %arg33[%c1_410, %c0_411, %c0_412] : memref<2x1x32xf32, #tpu.memory_space<vmem>>, vector<1x1x32xf32>
    %1122 = vector.shape_cast %1121 : vector<1x1x32xf32> to vector<1x32xf32>
    %1123 = arith.addf %1100, %1118 : vector<16x32xf32>
    %cst_413 = arith.constant dense<0.000000e+00> : vector<16xf32>
    %1124 = vector.multi_reduction <add>, %1123, %cst_413 [1] : vector<16x32xf32> to vector<16xf32>
    %1125 = vector.shape_cast %1124 : vector<16xf32> to vector<16x1xf32>
    %cst_414 = arith.constant 3.200000e+01 : f32
    %1126 = vector.broadcast %cst_414 : f32 to vector<16x1xf32>
    %1127 = arith.divf %1125, %1126 : vector<16x1xf32>
    %1128 = vector.broadcast %1127 : vector<16x1xf32> to vector<16x32xf32>
    %1129 = arith.subf %1123, %1128 : vector<16x32xf32>
    %1130 = arith.mulf %1129, %1129 : vector<16x32xf32>
    %cst_415 = arith.constant dense<0.000000e+00> : vector<16xf32>
    %1131 = vector.multi_reduction <add>, %1130, %cst_415 [1] : vector<16x32xf32> to vector<16xf32>
    %1132 = vector.shape_cast %1131 : vector<16xf32> to vector<16x1xf32>
    %cst_416 = arith.constant 3.200000e+01 : f32
    %1133 = vector.broadcast %cst_416 : f32 to vector<16x1xf32>
    %1134 = arith.divf %1132, %1133 : vector<16x1xf32>
    %1135 = vector.broadcast %1127 : vector<16x1xf32> to vector<16x32xf32>
    %1136 = arith.subf %1123, %1135 : vector<16x32xf32>
    %cst_417 = arith.constant 9.99999974E-6 : f32
    %1137 = vector.broadcast %cst_417 : f32 to vector<16x1xf32>
    %1138 = arith.addf %1134, %1137 : vector<16x1xf32>
    %1139 = math.rsqrt %1138 : vector<16x1xf32>
    %1140 = vector.broadcast %1139 : vector<16x1xf32> to vector<16x32xf32>
    %1141 = arith.mulf %1136, %1140 : vector<16x32xf32>
    %1142 = vector.broadcast %1120 : vector<1x32xf32> to vector<16x32xf32>
    %1143 = arith.mulf %1141, %1142 : vector<16x32xf32>
    %1144 = vector.broadcast %1122 : vector<1x32xf32> to vector<16x32xf32>
    %1145 = arith.addf %1143, %1144 : vector<16x32xf32>
    %1146 = vector.broadcast %5 : vector<16x1xf32> to vector<16x32xf32>
    %1147 = arith.mulf %1145, %1146 : vector<16x32xf32>
    %c0_418 = arith.constant 0 : index
    %c0_419 = arith.constant 0 : index
    %c0_420 = arith.constant 0 : index
    %1148 = vector.load %arg34[%c0_418, %c0_419, %c0_420] : memref<1x16x32xf32, #tpu.memory_space<vmem>>, vector<1x16x32xf32>
    %1149 = vector.shape_cast %1148 : vector<1x16x32xf32> to vector<16x32xf32>
    %1150 = vector.shape_cast %1147 : vector<16x32xf32> to vector<1x16x32xf32>
    tpu.vector_store %arg34[%c0_418, %c0_419, %c0_420], %1150 {strides = array<i32>} : memref<1x16x32xf32, #tpu.memory_space<vmem>>, vector<1x16x32xf32>,
    return
  }
  func.func @transform_0(%arg0: i32) -> (i32, i32, i32) {
    %c0_i32 = arith.constant 0 : i32
    %c0_i32_0 = arith.constant 0 : i32
    %c0_i32_1 = arith.constant 0 : i32
    return %arg0, %c0_i32, %c0_i32_0 : i32, i32, i32
  }
  func.func @transform_1(%arg0: i32) -> (i32, i32, i32) {
    %c0_i32 = arith.constant 0 : i32
    %c0_i32_0 = arith.constant 0 : i32
    %c0_i32_1 = arith.constant 0 : i32
    return %arg0, %c0_i32, %c0_i32_0 : i32, i32, i32
  }
  func.func @transform_2(%arg0: i32) -> (i32, i32, i32) {
    %c0_i32 = arith.constant 0 : i32
    %c0_i32_0 = arith.constant 0 : i32
    %c0_i32_1 = arith.constant 0 : i32
    return %arg0, %c0_i32, %c0_i32_0 : i32, i32, i32
  }
  func.func @transform_3(%arg0: i32) -> (i32, i32, i32) {
    %c0_i32 = arith.constant 0 : i32
    %c0_i32_0 = arith.constant 0 : i32
    %c0_i32_1 = arith.constant 0 : i32
    return %arg0, %c0_i32, %c0_i32_0 : i32, i32, i32
  }
  func.func @transform_4(%arg0: i32) -> (i32, i32) {
    %c0_i32 = arith.constant 0 : i32
    %c0_i32_0 = arith.constant 0 : i32
    %c0_i32_1 = arith.constant 0 : i32
    return %c0_i32, %c0_i32_0 : i32, i32
  }
  func.func @transform_5(%arg0: i32) -> (i32, i32) {
    %c0_i32 = arith.constant 0 : i32
    %c0_i32_0 = arith.constant 0 : i32
    %c0_i32_1 = arith.constant 0 : i32
    return %c0_i32, %c0_i32_0 : i32, i32
  }
  func.func @transform_6(%arg0: i32) -> (i32, i32) {
    %c0_i32 = arith.constant 0 : i32
    %c0_i32_0 = arith.constant 0 : i32
    %c0_i32_1 = arith.constant 0 : i32
    return %c0_i32, %c0_i32_0 : i32, i32
  }
  func.func @transform_7(%arg0: i32) -> (i32, i32, i32, i32) {
    %c0_i32 = arith.constant 0 : i32
    %c0_i32_0 = arith.constant 0 : i32
    %c0_i32_1 = arith.constant 0 : i32
    %c0_i32_2 = arith.constant 0 : i32
    %c0_i32_3 = arith.constant 0 : i32
    return %c0_i32, %c0_i32_0, %c0_i32_1, %c0_i32_2 : i32, i32, i32, i32
  }
  func.func @transform_8(%arg0: i32) -> (i32, i32, i32, i32) {
    %c0_i32 = arith.constant 0 : i32
    %c0_i32_0 = arith.constant 0 : i32
    %c0_i32_1 = arith.constant 0 : i32
    %c0_i32_2 = arith.constant 0 : i32
    %c0_i32_3 = arith.constant 0 : i32
    return %c0_i32, %c0_i32_0, %c0_i32_1, %c0_i32_2 : i32, i32, i32, i32
  }
  func.func @transform_9(%arg0: i32) -> (i32, i32, i32, i32) {
    %c0_i32 = arith.constant 0 : i32
    %c0_i32_0 = arith.constant 0 : i32
    %c0_i32_1 = arith.constant 0 : i32
    %c0_i32_2 = arith.constant 0 : i32
    %c0_i32_3 = arith.constant 0 : i32
    return %c0_i32, %c0_i32_0, %c0_i32_1, %c0_i32_2 : i32, i32, i32, i32
  }
  func.func @transform_10(%arg0: i32) -> (i32, i32, i32, i32) {
    %c0_i32 = arith.constant 0 : i32
    %c0_i32_0 = arith.constant 0 : i32
    %c0_i32_1 = arith.constant 0 : i32
    %c0_i32_2 = arith.constant 0 : i32
    %c0_i32_3 = arith.constant 0 : i32
    return %c0_i32, %c0_i32_0, %c0_i32_1, %c0_i32_2 : i32, i32, i32, i32
  }
  func.func @transform_11(%arg0: i32) -> (i32, i32, i32, i32) {
    %c0_i32 = arith.constant 0 : i32
    %c0_i32_0 = arith.constant 0 : i32
    %c0_i32_1 = arith.constant 0 : i32
    %c0_i32_2 = arith.constant 0 : i32
    %c0_i32_3 = arith.constant 0 : i32
    return %c0_i32, %c0_i32_0, %c0_i32_1, %c0_i32_2 : i32, i32, i32, i32
  }
  func.func @transform_12(%arg0: i32) -> (i32, i32, i32, i32) {
    %c0_i32 = arith.constant 0 : i32
    %c0_i32_0 = arith.constant 0 : i32
    %c0_i32_1 = arith.constant 0 : i32
    %c0_i32_2 = arith.constant 0 : i32
    %c0_i32_3 = arith.constant 0 : i32
    return %c0_i32, %c0_i32_0, %c0_i32_1, %c0_i32_2 : i32, i32, i32, i32
  }
  func.func @transform_13(%arg0: i32) -> (i32, i32, i32, i32) {
    %c0_i32 = arith.constant 0 : i32
    %c0_i32_0 = arith.constant 0 : i32
    %c0_i32_1 = arith.constant 0 : i32
    %c0_i32_2 = arith.constant 0 : i32
    %c0_i32_3 = arith.constant 0 : i32
    return %c0_i32, %c0_i32_0, %c0_i32_1, %c0_i32_2 : i32, i32, i32, i32
  }
  func.func @transform_14(%arg0: i32) -> (i32, i32, i32) {
    %c0_i32 = arith.constant 0 : i32
    %c0_i32_0 = arith.constant 0 : i32
    %c0_i32_1 = arith.constant 0 : i32
    %c0_i32_2 = arith.constant 0 : i32
    return %c0_i32, %c0_i32_0, %c0_i32_1 : i32, i32, i32
  }
  func.func @transform_15(%arg0: i32) -> (i32, i32, i32) {
    %c0_i32 = arith.constant 0 : i32
    %c0_i32_0 = arith.constant 0 : i32
    %c0_i32_1 = arith.constant 0 : i32
    %c0_i32_2 = arith.constant 0 : i32
    return %c0_i32, %c0_i32_0, %c0_i32_1 : i32, i32, i32
  }
  func.func @transform_16(%arg0: i32) -> (i32, i32, i32) {
    %c0_i32 = arith.constant 0 : i32
    %c0_i32_0 = arith.constant 0 : i32
    %c0_i32_1 = arith.constant 0 : i32
    %c0_i32_2 = arith.constant 0 : i32
    return %c0_i32, %c0_i32_0, %c0_i32_1 : i32, i32, i32
  }
  func.func @transform_17(%arg0: i32) -> (i32, i32, i32, i32) {
    %c0_i32 = arith.constant 0 : i32
    %c0_i32_0 = arith.constant 0 : i32
    %c0_i32_1 = arith.constant 0 : i32
    %c0_i32_2 = arith.constant 0 : i32
    %c0_i32_3 = arith.constant 0 : i32
    return %c0_i32, %c0_i32_0, %c0_i32_1, %c0_i32_2 : i32, i32, i32, i32
  }
  func.func @transform_18(%arg0: i32) -> (i32, i32, i32, i32) {
    %c0_i32 = arith.constant 0 : i32
    %c0_i32_0 = arith.constant 0 : i32
    %c0_i32_1 = arith.constant 0 : i32
    %c0_i32_2 = arith.constant 0 : i32
    %c0_i32_3 = arith.constant 0 : i32
    return %c0_i32, %c0_i32_0, %c0_i32_1, %c0_i32_2 : i32, i32, i32, i32
  }
  func.func @transform_19(%arg0: i32) -> (i32, i32, i32, i32) {
    %c0_i32 = arith.constant 0 : i32
    %c0_i32_0 = arith.constant 0 : i32
    %c0_i32_1 = arith.constant 0 : i32
    %c0_i32_2 = arith.constant 0 : i32
    %c0_i32_3 = arith.constant 0 : i32
    return %c0_i32, %c0_i32_0, %c0_i32_1, %c0_i32_2 : i32, i32, i32, i32
  }
  func.func @transform_20(%arg0: i32) -> (i32, i32, i32, i32) {
    %c0_i32 = arith.constant 0 : i32
    %c0_i32_0 = arith.constant 0 : i32
    %c0_i32_1 = arith.constant 0 : i32
    %c0_i32_2 = arith.constant 0 : i32
    %c0_i32_3 = arith.constant 0 : i32
    return %c0_i32, %c0_i32_0, %c0_i32_1, %c0_i32_2 : i32, i32, i32, i32
  }
  func.func @transform_21(%arg0: i32) -> (i32, i32, i32, i32) {
    %c0_i32 = arith.constant 0 : i32
    %c0_i32_0 = arith.constant 0 : i32
    %c0_i32_1 = arith.constant 0 : i32
    %c0_i32_2 = arith.constant 0 : i32
    %c0_i32_3 = arith.constant 0 : i32
    return %c0_i32, %c0_i32_0, %c0_i32_1, %c0_i32_2 : i32, i32, i32, i32
  }
  func.func @transform_22(%arg0: i32) -> (i32, i32, i32, i32) {
    %c0_i32 = arith.constant 0 : i32
    %c0_i32_0 = arith.constant 0 : i32
    %c0_i32_1 = arith.constant 0 : i32
    %c0_i32_2 = arith.constant 0 : i32
    %c0_i32_3 = arith.constant 0 : i32
    return %c0_i32, %c0_i32_0, %c0_i32_1, %c0_i32_2 : i32, i32, i32, i32
  }
  func.func @transform_23(%arg0: i32) -> (i32, i32, i32, i32) {
    %c0_i32 = arith.constant 0 : i32
    %c0_i32_0 = arith.constant 0 : i32
    %c0_i32_1 = arith.constant 0 : i32
    %c0_i32_2 = arith.constant 0 : i32
    %c0_i32_3 = arith.constant 0 : i32
    return %c0_i32, %c0_i32_0, %c0_i32_1, %c0_i32_2 : i32, i32, i32, i32
  }
  func.func @transform_24(%arg0: i32) -> (i32, i32, i32) {
    %c0_i32 = arith.constant 0 : i32
    %c0_i32_0 = arith.constant 0 : i32
    %c0_i32_1 = arith.constant 0 : i32
    %c0_i32_2 = arith.constant 0 : i32
    return %c0_i32, %c0_i32_0, %c0_i32_1 : i32, i32, i32
  }
  func.func @transform_25(%arg0: i32) -> (i32, i32, i32) {
    %c0_i32 = arith.constant 0 : i32
    %c0_i32_0 = arith.constant 0 : i32
    %c0_i32_1 = arith.constant 0 : i32
    %c0_i32_2 = arith.constant 0 : i32
    return %c0_i32, %c0_i32_0, %c0_i32_1 : i32, i32, i32
  }
  func.func @transform_26(%arg0: i32) -> (i32, i32, i32) {
    %c0_i32 = arith.constant 0 : i32
    %c0_i32_0 = arith.constant 0 : i32
    %c0_i32_1 = arith.constant 0 : i32
    %c0_i32_2 = arith.constant 0 : i32
    return %c0_i32, %c0_i32_0, %c0_i32_1 : i32, i32, i32
  }
  func.func @transform_27(%arg0: i32) -> (i32, i32, i32) {
    %c0_i32 = arith.constant 0 : i32
    %c0_i32_0 = arith.constant 0 : i32
    %c0_i32_1 = arith.constant 0 : i32
    %c0_i32_2 = arith.constant 0 : i32
    return %c0_i32, %c0_i32_0, %c0_i32_1 : i32, i32, i32
  }
  func.func @transform_28(%arg0: i32) -> (i32, i32, i32) {
    %c0_i32 = arith.constant 0 : i32
    %c0_i32_0 = arith.constant 0 : i32
    %c0_i32_1 = arith.constant 0 : i32
    %c0_i32_2 = arith.constant 0 : i32
    return %c0_i32, %c0_i32_0, %c0_i32_1 : i32, i32, i32
  }
  func.func @transform_29(%arg0: i32) -> (i32, i32, i32) {
    %c0_i32 = arith.constant 0 : i32
    %c0_i32_0 = arith.constant 0 : i32
    %c0_i32_1 = arith.constant 0 : i32
    %c0_i32_2 = arith.constant 0 : i32
    return %c0_i32, %c0_i32_0, %c0_i32_1 : i32, i32, i32
  }
  func.func @transform_30(%arg0: i32) -> (i32, i32, i32) {
    %c0_i32 = arith.constant 0 : i32
    %c0_i32_0 = arith.constant 0 : i32
    %c0_i32_1 = arith.constant 0 : i32
    %c0_i32_2 = arith.constant 0 : i32
    return %c0_i32, %c0_i32_0, %c0_i32_1 : i32, i32, i32
  }
  func.func @transform_31(%arg0: i32) -> (i32, i32, i32) {
    %c0_i32 = arith.constant 0 : i32
    %c0_i32_0 = arith.constant 0 : i32
    %c0_i32_1 = arith.constant 0 : i32
    %c0_i32_2 = arith.constant 0 : i32
    return %c0_i32, %c0_i32_0, %c0_i32_1 : i32, i32, i32
  }
  func.func @transform_32(%arg0: i32) -> (i32, i32, i32) {
    %c0_i32 = arith.constant 0 : i32
    %c0_i32_0 = arith.constant 0 : i32
    %c0_i32_1 = arith.constant 0 : i32
    %c0_i32_2 = arith.constant 0 : i32
    return %c0_i32, %c0_i32_0, %c0_i32_1 : i32, i32, i32
  }
  func.func @transform_33(%arg0: i32) -> (i32, i32, i32) {
    %c0_i32 = arith.constant 0 : i32
    %c0_i32_0 = arith.constant 0 : i32
    %c0_i32_1 = arith.constant 0 : i32
    return %arg0, %c0_i32, %c0_i32_0 : i32, i32, i32
  }
}

</mosaic_0001>

<bundles_post_ra>
// kernel: link_attention_forward.1
= control target key start
LH: loop header
LB: loop body
LE: loop exit
PB: predicated region body
PF: predicated region fallthrough
CT: control target
= control target key end

     0   :  { %s9682_s6 = smov 1   ;;  %s9683_s10 = smov 2   ;;  %s11088_s0 = inlined_call_operand.smem [shape: u32[34], index: -1, kind: input, shape index: {}] }
   0x1   :  { %s9729_s5 = sld [smem:[%s11088_s0]]   ;;  %s9684_s14 = smov 3  }
   0x2   :  { %s9734_s9 = sld [smem:[%s11088_s0 + %s9682_s6]]   ;;  %s9685_s18 = smov 4  }
   0x3   :  { %s9739_s13 = sld [smem:[%s11088_s0 + %s9683_s10]]   ;;  %s9686_s22 = smov 5  }
   0x4   :  { %s9744_s17 = sld [smem:[%s11088_s0 + %s9684_s14]]   ;;  %s9687_s26 = smov 6  }
   0x5   :  { %s9749_s21 = sld [smem:[%s11088_s0 + %s9685_s18]]   ;;  %s9688_s30 = smov 7  }
   0x6   :  { %s9754_s25 = sld [smem:[%s11088_s0 + %s9686_s22]]   ;;  %s9689_s4 = smov 8  }
   0x7   :  { %11121 = sst [smem:[#allocation5_spill]] %s9729_s5  ;;  %s9690_s10 = smov 9  }
   0x8   :  { %11122 = sst [smem:[#allocation6_spill]] %s9734_s9  ;;  %s9691_s15 = smov 10  }
   0x9   :  { %11123 = sst [smem:[#allocation7_spill]] %s9739_s13  ;;  %s9692_s20 = smov 11  }
   0xa   :  { %11124 = sst [smem:[#allocation8_spill]] %s9744_s17  ;;  %s9694_s1 = smov 13  }
   0xb   :  { %11125 = sst [smem:[#allocation9_spill]] %s9749_s21  ;;  %s9695_s7 = smov 14  }
   0xc   :  { %11126 = sst [smem:[#allocation10_spill]] %s9754_s25  ;;  %s9697_s22 = smov 16  }
   0xd   :  { %s9759_s29 = sld [smem:[%s11088_s0 + %s9687_s26]]   ;;  %s9693_s26 = smov 12  }
   0xe   :  { %s9764_s3 = sld [smem:[%s11088_s0 + %s9688_s30]]   ;;  %s9698_s28 = smov 17  }
   0xf   :  { %s9769_s8 = sld [smem:[%s11088_s0 + %s9689_s4]]  }
  0x10   :  { %s9774_s14 = sld [smem:[%s11088_s0 + %s9690_s10]]  }
  0x11   :  { %s9779_s19 = sld [smem:[%s11088_s0 + %s9691_s15]]   ;;  %s9696_s15 = smov 15  }
  0x12   :  { %s9784_s24 = sld [smem:[%s11088_s0 + %s9692_s20]]  }
  0x13   :  { %11127 = sst [smem:[#allocation11_spill]] %s9759_s29 }
  0x14   :  { %11128 = sst [smem:[#allocation12_spill]] %s9764_s3 }
  0x15   :  { %11129 = sst [smem:[#allocation13_spill]] %s9769_s8 }
  0x16   :  { %s9789_s30 = sld [smem:[%s11088_s0 + %s9693_s26]]  }
  0x17   :  { %s9794_s6 = sld [smem:[%s11088_s0 + %s9694_s1]]  }
  0x18   :  { %s9799_s12 = sld [smem:[%s11088_s0 + %s9695_s7]]   ;;  %s9699_s7 = smov 18  }
  0x19   :  { %s9804_s20 = sld [smem:[%s11088_s0 + %s9696_s15]]   ;;  %s9700_s15 = smov 19  }
  0x1a   :  { %s9809_s27 = sld [smem:[%s11088_s0 + %s9697_s22]]   ;;  %s9701_s22 = smov 20  }
  0x1b   :  { %s9814_s4 = sld [smem:[%s11088_s0 + %s9698_s28]]   ;;  %s9702_s28 = smov 21  }
  0x1c   :  { %s9819_s9 = sld [smem:[%s11088_s0 + %s9699_s7]]   ;;  %s9703_s7 = smov 22  }
  0x1d   :  { %11130 = sst [smem:[#allocation14_spill]] %s9794_s6 }
  0x1e   :  { %11131 = sst [smem:[#allocation15_spill]] %s9799_s12 }
  0x1f   :  { %11132 = sst [smem:[#allocation16_spill]] %s9804_s20 }
  0x20   :  { %11133 = sst [smem:[#allocation17_spill]] %s9809_s27 }
  0x21   :  { %11134 = sst [smem:[#allocation18_spill]] %s9814_s4 }
  0x22   :  { %11135 = sst [smem:[#allocation19_spill]] %s9819_s9 }
  0x23   :  { %s9824_s20 = sld [smem:[%s11088_s0 + %s9700_s15]]   ;;  %s9704_s15 = smov 23  }
  0x24   :  { %s9829_s27 = sld [smem:[%s11088_s0 + %s9701_s22]]   ;;  %s9705_s22 = smov 24  }
  0x25   :  { %s9834_s4 = sld [smem:[%s11088_s0 + %s9702_s28]]   ;;  %s9706_s28 = smov 25  }
  0x26   :  { %s9839_s9 = sld [smem:[%s11088_s0 + %s9703_s7]]   ;;  %s9707_s7 = smov 26  }
  0x27   :  { %s9844_s29 = sld [smem:[%s11088_s0 + %s9704_s15]]   ;;  %s9708_s15 = smov 27  }
  0x2a   :  { %11136 = sst [smem:[#allocation20_spill]] %s9829_s27 }
  0x2b   :  { %11137 = sst [smem:[#allocation21_spill]] %s9834_s4 }
  0x2c   :  { %11138 = sst [smem:[#allocation22_spill]] %s9839_s9 }
  0x2d   :  { %11139 = sst [smem:[#allocation23_spill]] %s9844_s29 }
  0x2e   :  { %s9849_s27 = sld [smem:[%s11088_s0 + %s9705_s22]]   ;;  %s9709_s22 = smov 28  }
  0x2f   :  { %s9854_s4 = sld [smem:[%s11088_s0 + %s9706_s28]]   ;;  %s9710_s28 = smov 29  }
  0x30   :  { %s9859_s9 = sld [smem:[%s11088_s0 + %s9707_s7]]   ;;  %s9711_s7 = smov 30  }
  0x31   :  { %s9864_s29 = sld [smem:[%s11088_s0 + %s9708_s15]]   ;;  %s9712_s15 = smov 31  }
  0x34   :  { %11140 = sst [smem:[#allocation24_spill]] %s9849_s27 }
  0x35   :  { %11141 = sst [smem:[#allocation25_spill]] %s9854_s4 }
  0x36   :  { %11142 = sst [smem:[#allocation26_spill]] %s9859_s9 }
  0x37   :  { %11143 = sst [smem:[#allocation27_spill]] %s9864_s29 }
  0x38   :  { %s9869_s27 = sld [smem:[%s11088_s0 + %s9709_s22]]   ;;  %s9713_s22 = smov 32  }
  0x39   :  { %s9874_s4 = sld [smem:[%s11088_s0 + %s9710_s28]]   ;;  %s9714_s28 = smov 33  }
  0x3a   :  { %s9879_s9 = sld [smem:[%s11088_s0 + %s9711_s7]]  }
  0x3b   :  { %s9884_s29 = sld [smem:[%s11088_s0 + %s9712_s15]]  }
  0x3e   :  { %11144 = sst [smem:[#allocation28_spill]] %s9869_s27 }
  0x3f   :  { %11145 = sst [smem:[#allocation29_spill]] %s9874_s4 }
  0x40   :  { %11146 = sst [smem:[#allocation30_spill]] %s9879_s9 }
  0x41   :  { %s9889_s27 = sld [smem:[%s11088_s0 + %s9713_s22]]  }
  0x42   :  { %s9894_s4 = sld [smem:[%s11088_s0 + %s9714_s28]]  }
  0x48   :  { %11147 = sst [smem:[#allocation31_spill]] %s9894_s4 }
  0x49   :  { %72 = vsyncpa [#allocation3], 0 }
  0x4a   :  { %74 = vsyncpa [#allocation3 + $0x1], 0  ;;  %s9896_s7 = smov 0   ;;  %s9898_s10 = smov 0  }
  0x4b   :  { %s9900_s11 = smov 0   ;;  %s9902_s15 = smov 0  }
  0x4c LB: > { %s11148_s12 = sld [smem:[#allocation15_spill]]  ;;  %s11149_s9 = sld [smem:[#allocation30_spill]]  ;;  %s9668_s7 = sphi %s9896_s7, %s11193_s7   ;;  %s9680_s15 = sphi %s9902_s15, %s11190_s15   ;;  %s9676_s11 = sphi %s9900_s11, %s11192_s11   ;;  %s9672_s10 = sphi %s9898_s10, %s11194_s10  }
  0x4d   : > { %s11150_s8 = sld [smem:[#allocation13_spill]]  ;;  %s11151_s6 = sld [smem:[#allocation14_spill]] }
  0x4e   : > { %s11152_s3 = sld [smem:[#allocation12_spill]]  ;;  %11153 = sst [smem:[#allocation32_spill]] %s9668_s7 }
  0x4f   : > { %11154 = sst [smem:[#allocation33_spill]] %s9676_s11  ;;  %s9917_s0 = sadd.s32 4294967295, %s9680_s15  }
  0x50   : > { %s7947_s16 = sadd.s32 4294967294, %s9680_s15   ;;  %s9921_s18 = sadd.s32 1, %s9680_s15  }
  0x51   : > { %11155 = sst [smem:[#allocation34_spill]] %s9921_s18  ;;  %s800_s22 = sadd.s32 1, %s9676_s11 }
  0x52   : > { %s797_s23 = ssub.s32 %s9680_s15, %s9921_s18  ;;  %p810_p0 = scmp.ne.s32.totalorder %s9676_s11, %s9672_s10 }
  0x53   : > { %p798_p1 = scmp.eq.s32.totalorder %s797_s23, 0  ;;  %p811_p2 = scmp.eq.s32.totalorder %s9917_s0, 1 }
  0x54   : > { %p816_p3 = scmp.ne.s32.totalorder %s9672_s10, %s9668_s7  ;;  %p817_p4 = scmp.eq.s32.totalorder %s7947_s16, 1 }
  0x55   : > { %s9932_s26 = scalar_select %p798_p1, %s9676_s11, %s800_s22  }
  0x56   : > { %p9934_p5 = por %p811_p2, %p810_p0  ;;  %p9938_p6 = por %p817_p4, %p816_p3 }
  0x57   : > { %11156 = sst [smem:[#allocation35_spill]] %s9932_s26  ;;  %p7950_p7 = scmp.ge.s32.totalorder %s9680_s15, 1 }
  0x58   : > { %s11157_s28 = scalar_select %p9934_p5, 1, 0 }
  0x59   : > { %s11159_s1 = scalar_select %p9938_p6, 1, 0 }
  0x5a   : > { %11158 = sst [smem:[#allocation36_spill]] %s11157_s28  ;;  %p951_p8 = scmp.lt.s32.totalorder %s9680_s15, 3 }
  0x5b   : > { %11160 = sst [smem:[#allocation37_spill]] %s11159_s1 }
  0x5c   : > { %p952_p9 = pnand %p7950_p7, %p951_p8 }
  0x5d   : > { %s11161_s13 = sld [smem:[#allocation7_spill]] (!%p952_p9)  ;;  %p1047_p10 = scmp.lt.s32.totalorder (!%p952_p9), %s9917_s0, 1  ;;  %v9715_v0 = vmov (!%p952_p9), 0   ;;  %v9360_v3 = vld [vmem:[%s11152_s3] sm:$0xff] (!%p952_p9)   ;;  %v9716_v5 = vmov (!%p952_p9), 0.0   ;;  %v9362_v6 = vld [vmem:[%s11152_s3 + $0x8] sm:$0xff] (!%p952_p9)   ;;  %v1073_v8 = vlaneseq (!%p952_p9) }
  0x5e   : > { %955 = sbr.rel (%p952_p9) target bundleno = 18772 (0x4954), region = 152  ;;  %9358 = vset.pattern.permute.xlu0 (!%p952_p9), %v9715_v0  ;;  %9359 = vset.pattern.permute.xlu1 (!%p952_p9), %v9715_v0  ;;  %v9361_v4 = vld [vmem:[%s9784_s24] sm:$0xff] (!%p952_p9)   ;;  %s11162_s21 = sld [smem:[#allocation9_spill]] (!%p952_p9)  ;;  %v9363_v7 = vld [vmem:[%s9784_s24 + $0x8] sm:$0xff] (!%p952_p9)   ;;  %vm9717_vm0 = vmmov (!%p952_p9), 0   ;;  %vm1091_vm1 = vcmask (!%p952_p9), 1046528  }
  0x5f   : > { %8601 = vmatprep.subr.bf16.mxu1 (!%p952_p9), %v9716_v5  ;;  %8617 = vmatprep.subr.bf16.mxu0 (!%p952_p9), %v9716_v5  ;;  %s11163_s5 = sld [smem:[#allocation5_spill]] (!%p952_p9)  ;;  %v1074_v9 = vshrl.u32 (!%p952_p9), %v1073_v8, 7  ;;  %s11164_s17 = sld [smem:[#allocation8_spill]] (!%p952_p9)  ;;  %vm1111_vm2 = vcmask (!%p952_p9), 1045504   ;;  %vm1236_vm3 = vsmask.f32 (!%p952_p9), 4352 }
  0x60   : > { %8602 = vmatpush3.bf16.msra.mxu1 (!%p952_p9), %v9360_v3  ;;  %8618 = vmatpush3.bf16.msra.mxu0 (!%p952_p9), %v9361_v4  ;;  %s11165_s25 = sld [smem:[#allocation10_spill]] (!%p952_p9)  ;;  %vm1266_vm4 = vcmask (!%p952_p9), 261120   ;;  %v9364_v8 = vld [vmem:[%s9774_s14] sm:$0xff] (!%p952_p9)   ;;  %vm1431_vm5 = vcmask (!%p952_p9), 64512   ;;  %vm1485_vm6 = vcmask (!%p952_p9), 130048   ;;  %vm1857_vm9 = vcmask (!%p952_p9), 1043456  }
  0x61   : > { %8603 = vmatprep.subr.bf16.mxu1 (!%p952_p9), %v9716_v5  ;;  %8619 = vmatprep.subr.bf16.mxu0 (!%p952_p9), %v9716_v5  ;;  %v1085_v10 = vsub.s32 (!%p952_p9), 1, %v1074_v9  ;;  %v1103_v12 = vsub.s32 (!%p952_p9), 2, %v1074_v9  ;;  %v1075_v15 = vsub.s32 (!%p952_p9), 0, %v1074_v9  ;;  %vm2666_vm10 = vcmask (!%p952_p9), 261127   ;;  %s11178_s11 = sld [smem:[#allocation29_spill]] (!%p952_p9)  ;;  %s11180_s1 = sld [smem:[#allocation25_spill]] (!%p952_p9) }
  0x62   : > { %8605 = vmatprep.mubr.msk.bf16.mxu1 (!%p952_p9), %vm9717_vm0, %v9716_v5  ;;  %8621 = vmatprep.mubr.msk.bf16.mxu0 (!%p952_p9), %vm9717_vm0, %v9716_v5  ;;  %vm2673_vm11 = vcmask (!%p952_p9), 260096   ;;  %s11181_s7 = sld [smem:[#allocation26_spill]] (!%p952_p9) }
  0x64   : > { %8604 = vmatpush3.bf16.msra.mxu1 (!%p952_p9), %v9362_v6  ;;  %8620 = vmatpush3.bf16.msra.mxu0 (!%p952_p9), %v9363_v7  ;;  %v1071_v11 = vld [vmem:[%s11162_s21] sm:$0x7] (!%p952_p9)  ;;  %s11172_s21 = sld [smem:[#allocation6_spill]] (!%p952_p9) }
  0x65   : > { %s9948_s2 = scalar_select %p1047_p10, %s9917_s0, 1  ;;  %8609 = vmatprep.subr.bf16.mxu1 %v9716_v5  ;;  %8631 = vmatprep.subr.bf16.mxu0 %v9716_v5  ;;  %v1086_v14 = vrot.slane %v1071_v11, %v1085_v10  ;;  %v1104_v18 = vrot.slane %v1071_v11, %v1103_v12  ;;  %v1076_v20 = vrot.slane %v1071_v11, %v1075_v15  ;;  %v9365_v10 = vld [vmem:[%s9774_s14 + $0x8] sm:$0xff]   ;;  %v7959_v11 = vld [vmem:[%s11150_s8] ss:$0 sm:$0xff] }
  0x66   : > { %v7957_v41 = vld [vmem:[%s11165_s25] ss:$0 sm:$0xff]  ;;  %s11173_s25 = sld [smem:[#allocation21_spill]] }
  0x67   : > { %s8358_s16 = sshll.u32 %s9948_s2, 4  ;;  %v1107_v21 = vmul.f32 0.0, %v1104_v18  ;;  %v1077_v27 = vmul.f32 0.0, %v1076_v20  ;;  %s11179_s18 = smov %s11178_s11 }
  0x68   : > { %s9952_s22 = scalar_lea.vmem %s11161_s13, %s8358_s16  ;;  %s1051_s23 = scalar_lea.vmem %s11163_s5, %s8358_s16 }
  0x69   : > { %v1068_v1 = vld [vmem:[%s9952_s22] sm:$0xff]  ;;  %v1069_v2 = vld [vmem:[%s9952_s22 + $0x8] sm:$0xff]  ;;  %v1115_v28 = vrot.slane %v1107_v21, 2  ;;  %s1063_s16 = scalar_lea.vmem %s11164_s17, %s9948_s2  ;;  %s11168_s5 = sld [smem:[#allocation16_spill]] }
  0x6a   : > { %1137 = vperm.xlu0 %9358, %v1068_v1   ;;  %v1066_v13 = vld [vmem:[%s1051_s23 + $0x8] sm:$0xff]  ;;  %v1065_v16 = vld [vmem:[%s1051_s23] sm:$0xff]  ;;  %s11166_s23 = sld [smem:[#allocation11_spill]]  ;;  %s11170_s13 = sld [smem:[#allocation20_spill]] }
  0x6b   : > { %v1088_v17 = vmul.f32 %v1086_v14, %v1066_v13  ;;  %v1087_v19 = vmul.f32 %v1086_v14, %v1065_v16  ;;  %v1106_v22 = vmul.f32 %v1104_v18, %v1066_v13  ;;  %v1079_v24 = vmul.f32 %v1076_v20, %v1066_v13  ;;  %v9976_v42 = vld [vmem:[%s1063_s16] ss:$0 sm:$0xff]  ;;  %s11167_s16 = sld [smem:[#allocation18_spill]]  ;;  %s11171_s17 = sld [smem:[#allocation19_spill]] }
  0x6c   : > { %v1105_v26 = vmul.f32 %v1104_v18, %v1065_v16  ;;  %v1078_v29 = vmul.f32 %v1076_v20, %v1065_v16  ;;  %v7967_v13 = vld [vmem:[%s9789_s30] ss:$0 sm:$0xff]  ;;  %s11182_s28 = smov %s11181_s7 }
  0x6d   : > { %v1093_v23 = vrot.slane %v1088_v17, 1  ;;  %v1092_v25 = vrot.slane %v1087_v19, 1  ;;  %v1113_v30 = vrot.slane %v1106_v22, 2 }
  0x6e   : > { %1141 = vperm.xlu0 %9358, %v1069_v2   ;;  %v1112_v33 = vrot.slane %v1105_v26, 2 }
  0x6f   : > { %v1094_v31 = vsel %vm1091_vm1, %v1092_v25, %v1093_v23  ;;  %v1100_v32 = vadd.f32 %v1093_v23, %v1079_v24  ;;  %v1098_v34 = vadd.f32 %v1092_v25, %v1077_v27  ;;  %v1116_v36 = vsel %vm1111_vm2, %v1113_v30, %v1115_v28  ;;  %v7963_v27 = vld [vmem:[%s9779_s19] ss:$0 sm:$0xff] }
  0x70   : > { %v1099_v35 = vadd.f32 %v1094_v31, %v1078_v29  ;;  %v1114_v37 = vsel %vm1111_vm2, %v1112_v33, %v1113_v30  ;;  %vm4367_vm2 = vcmask 523264  }
  0x71   : > { %v1122_v38 = vadd.f32 %v1116_v36, %v1100_v32  ;;  %v1120_v39 = vadd.f32 %v1112_v33, %v1098_v34  ;;  %v9366_v36 = vld [vmem:[%s11152_s3 + $0x10] sm:$0xff]  }
  0x72   : > { %v1121_v40 = vadd.f32 %v1114_v37, %v1099_v35  ;;  %v9367_v37 = vld [vmem:[%s11152_s3 + $0x18] sm:$0xff]  }
  0x73   : > { %v1131_v43 = vadd.f32 %v7957_v41, %v1122_v38  ;;  %v1129_v44 = vadd.f32 %v7957_v41, %v1120_v39  ;;  %v9368_v38 = vld [vmem:[%s9784_s24 + $0x10] sm:$0xff]   ;;  %v9369_v39 = vld [vmem:[%s9784_s24 + $0x18] sm:$0xff]  }
  0x74   : > { %v1130_v45 = vadd.f32 %v7957_v41, %v1121_v40 }
  0x75   : > { %v1134_v48 = vmax.f32 %v1131_v43, 0.0  ;;  %v1132_v50 = vmax.f32 %v1129_v44, 0.0 }
  0x76   : > { %v1133_v49 = vmax.f32 %v1130_v45, 0.0 }
  0xe9   : > { %v1138_v46 = vpop.permute.xlu0 %1137 }
  0xea   : > { %v9979_v47 = vmul.f32 %v9976_v42, %v1138_v46  ;;  %v9981_v51 = vrot.slane %v1138_v46, 1 }
  0xec   : > { %v9997_v56 = vmul.f32 %v9981_v51, %v1132_v50  ;;  %vm1481_vm7 = vcmp.gt.f32.partialorder %v9979_v47, 0.0 }
  0xed   : > { %v9983_v52 = vpop.permute.xlu0 %1141 }
  0xee   : > { %v9986_v53 = vrot.slane %v9983_v52, 1  ;;  %v10052_v40 = vmul.f32 %v9976_v42, %v9983_v52  ;;  %v7973_v52 = vld [vmem:[%s11150_s8 + $0x1] ss:$0 sm:$0xff] }
  0xf0   : > { %v9991_v54 = vsel %vm1091_vm1, %v9981_v51, %v9986_v53  ;;  %v9994_v55 = vmul.f32 %v9986_v53, %v1134_v48  ;;  %vm1482_vm8 = vcmp.gt.f32.partialorder %v10052_v40, 0.0 }
  0xf1   : > { %v10000_v57 = vmul.f32 %v9991_v54, %v1133_v49 }
  0xf2   : > { %v1229_v58 = vpack.c.bf16 %v9994_v55, %v9994_v55 }
  0xf3   : > { %v1228_v59 = vpack.c.bf16 %v10000_v57, %v9997_v56 }
  0xf4   : > { %v1246_v60 = vshrl.u32 %v1229_v58, 16  ;;  %v1249_v61 = vshll.u32 %v1229_v58, 16 }
  0xf5   : > { %v1238_v62 = vshrl.u32 %v1228_v59, 16  ;;  %v1241_v63 = vshll.u32 %v1228_v59, 16 }
  0xf6   : > { %v1248_v1 = vrot.slane %v1246_v60, 3  ;;  %v1251_v2 = vrot.slane %v1249_v61, 4 }
  0xf7   : > { %v1240_v3 = vrot.slane %v1238_v62, 3  ;;  %v1243_v4 = vrot.slane %v1241_v63, 4 }
  0xf8   : > { %v1252_v6 = vor.u32 %v1251_v2, %v1248_v1 }
  0xf9   : > { %v1244_v7 = vor.u32 %v1243_v4, %v1240_v3  ;;  %v7981_v3 = vld [vmem:[%s9789_s30 + $0x1] ss:$0 sm:$0xff] }
  0xfb   : > { %v10008_v9 = vsel %vm1236_vm3, %v1244_v7, %v1252_v6 }
  0xfc   : > { %8606 = vmatmul.mubr.msk.bf16.vlgmr.msra.gmra.mrb[0].mxu1 %vm1266_vm4, %v10008_v9  ;;  %8622 = vmatmul.mubr.msk.bf16.vlgmr.msra.gmra.mrb[0].mxu0 %vm1266_vm4, %v10008_v9 }
  0xfd   : > { %8610 = vmatpush3.bf16.msra.mxu1 %v9364_v8  ;;  %8613 = vmatprep.mubr.msk.bf16.mxu1 %vm9717_vm0, %v9716_v5 }
  0xfe   : > { %8611 = vmatprep.subr.bf16.mxu1 %v9716_v5  ;;  %8633 = vmatprep.mubr.msk.bf16.mxu0 %vm9717_vm0, %v9716_v5 }
 0x101   : > { %8612 = vmatpush3.bf16.msra.mxu1 %v9365_v10 }
 0x102   : > { %8625 = vmatprep.subr.bf16.mxu1 %v9716_v5 }
 0x104   : > { %8614 = vmatmul.mubr.msk.bf16.vlgmr.msra.gmra.mrb[4].mxu1 %vm1266_vm4, %v10008_v9 }
 0x105   : > { %8627 = vmatprep.mubr.msk.bf16.mxu1 %vm9717_vm0, %v9716_v5 }
 0x1cf   : > { %v1304_v12 = vpop.f32.mrb[0].mxu1  ;;  %v1422_v14 = vpop.f32.mrb[0].mxu0 }
 0x1d0   : > { %v8607_v15 = vpop.f32.mrb[1].mxu1  ;;  %v8623_v16 = vpop.f32.mrb[1].mxu0  ;;  %v1305_v19 = vadd.f32 %v7959_v11, %v1304_v12  ;;  %v1423_v20 = vadd.f32 %v7967_v13, %v1422_v14 }
 0x1d1   : > { %v1307_v17 = vpop.f32.mrb[2].mxu1  ;;  %v1425_v18 = vpop.f32.mrb[2].mxu0 }
 0x1d2   : > { %v1308_v21 = vadd.f32 %v7959_v11, %v1307_v17  ;;  %v1426_v22 = vadd.f32 %v7967_v13, %v1425_v18  ;;  %v8608_v23 = vpop.f32.mrb[3].mxu1  ;;  %v8624_v24 = vpop.f32.mrb[3].mxu0 }
 0x1d4   : > { %v1429_v25 = vpack.c.bf16 %v1308_v21, %v1305_v19  ;;  %v1509_v26 = vpack.c.bf16 %v1426_v22, %v1423_v20 }
 0x1d6   : > { %8632 = vmatpush3.bf16.msra.mxu0 %v1509_v26 }
 0x1d7   : > { %v1363_v28 = vpop.f32.mrb[4].mxu1  ;;  %8645 = vmatprep.subr.bf16.mxu0 %v9716_v5 }
 0x1d8   : > { %v8615_v29 = vpop.f32.mrb[5].mxu1  ;;  %v1364_v31 = vadd.f32 %v7963_v27, %v1363_v28 }
 0x1d9   : > { %v1366_v30 = vpop.f32.mrb[6].mxu1  ;;  %v9370_v29 = vld [vmem:[%s9774_s14 + $0x10] sm:$0xff]  }
 0x1da   : > { %v1367_v32 = vadd.f32 %v7963_v27, %v1366_v30  ;;  %v8616_v33 = vpop.f32.mrb[7].mxu1 }
 0x1dc   : > { %v1430_v34 = vpack.c.bf16 %v1367_v32, %v1364_v31  ;;  %v9371_v31 = vld [vmem:[%s9774_s14 + $0x18] sm:$0xff]  }
 0x1de   : > { %v1436_v35 = vsel %vm1431_vm5, %v1430_v34, 0 }
 0x1df   : > { %8626 = vmatpush3.bf16.xpose.msra.mxu1 %v1436_v35 }
 0x1e0   : > { %8637 = vmatprep.subr.bf16.mxu1 %v9716_v5 }
 0x1e6   : > { %8628 = vmatmul.mubr.msk.bf16.vlgmr.msra.gmra.mrb[8].mxu1 %vm1431_vm5, %v1429_v25 }
 0x1e7   : > { %8638 = vmatpush3.bf16.msra.mxu1 %v9366_v36  ;;  %8641 = vmatprep.mubr.msk.bf16.mxu1 %vm9717_vm0, %v9716_v5 }
 0x1e8   : > { %8639 = vmatprep.subr.bf16.mxu1 %v9716_v5 }
 0x1eb   : > { %8640 = vmatpush3.bf16.msra.mxu1 %v9367_v37  ;;  %v7977_v37 = vld [vmem:[%s9779_s19 + $0x1] ss:$0 sm:$0xff] }
 0x1ec   : > { %8653 = vmatprep.subr.bf16.mxu1 %v9716_v5 }
 0x1ee   : > { %8642 = vmatmul.mubr.msk.bf16.vlgmr.msra.gmra.mrb[12].mxu1 %vm1266_vm4, %v10008_v9 }
 0x1ef   : > { %8654 = vmatpush3.bf16.msra.mxu1 %v9368_v38  ;;  %8657 = vmatprep.mubr.msk.bf16.mxu1 %vm9717_vm0, %v9716_v5 }
 0x1f0   : > { %8655 = vmatprep.subr.bf16.mxu1 %v9716_v5 }
 0x1f3   : > { %8656 = vmatpush3.bf16.msra.mxu1 %v9369_v39 }
 0x1f4   : > { %8667 = vmatprep.subr.bf16.mxu1 %v9716_v5 }
 0x1f6   : > { %8658 = vmatmul.mubr.msk.bf16.vlgmr.msra.gmra.mrb[16].mxu1 %vm1266_vm4, %v10008_v9 }
 0x1f7   : > { %8669 = vmatprep.mubr.msk.bf16.mxu1 %vm9717_vm0, %v9716_v5 }
 0x2b9   : > { %v1472_v41 = vpop.f32.mrb[8].mxu1 }
 0x2ba   : > { %v1479_v43 = vmul.f32 0.35355338, %v1472_v41  ;;  %v8629_v44 = vpop.f32.mrb[9].mxu1 }
 0x2bb   : > { %v1475_v45 = vpop.f32.mrb[10].mxu1 }
 0x2bc   : > { %v1480_v46 = vmul.f32 0.35355338, %v1475_v45  ;;  %v8630_v48 = vpop.f32.mrb[11].mxu1  ;;  %v1483_v49 = vsel %vm1481_vm7, %v1479_v43, -1e+30 }
 0x2bd   : > { %v1486_v50 = vsel %vm1485_vm6, %v1483_v49, -inf }
 0x2be   : > { %1487 = vmax.xlane.f32.xlu1 %v1486_v50  ;;  %v1484_v42 = vsel %vm1482_vm8, %v1480_v46, -1e+30 }
 0x2bf   : > { %v1489_v59 = vsel %vm1485_vm6, %v1484_v42, -inf }
 0x2c1   : > { %v1607_v58 = vpop.f32.mrb[12].mxu1 }
 0x2c2   : > { %1490 = vmax.xlane.f32.xlu1 %v1489_v59  ;;  %v8643_v60 = vpop.f32.mrb[13].mxu1  ;;  %v10063_v62 = vadd.f32 %v7973_v52, %v1607_v58 }
 0x2c3   : > { %v1610_v61 = vpop.f32.mrb[14].mxu1 }
 0x2c4   : > { %v10065_v63 = vadd.f32 %v7973_v52, %v1610_v61  ;;  %v8644_v1 = vpop.f32.mrb[15].mxu1 }
 0x2c6   : > { %v1732_v2 = vpack.c.bf16 %v10065_v63, %v10063_v62 }
 0x2c9   : > { %v1725_v4 = vpop.f32.mrb[16].mxu1 }
 0x2ca   : > { %v8659_v6 = vpop.f32.mrb[17].mxu1  ;;  %v1726_v8 = vadd.f32 %v7981_v3, %v1725_v4 }
 0x2cb   : > { %v1728_v7 = vpop.f32.mrb[18].mxu1 }
 0x2cc   : > { %v1729_v10 = vadd.f32 %v7981_v3, %v1728_v7  ;;  %v8660_v11 = vpop.f32.mrb[19].mxu1 }
 0x2ce   : > { %v1808_v12 = vpack.c.bf16 %v1729_v10, %v1726_v8 }
 0x2d0   : > { %8668 = vmatpush3.bf16.msra.mxu1 %v1808_v12 }
 0x2d1   : > { %8679 = vmatprep.subr.bf16.mxu1 %v9716_v5 }
 0x34b   : > { %v1488_v13 = vpop.xlane.xlu1 %1487 }
 0x34c   : > { %v1492_v14 = vsub.f32 %v1483_v49, %v1488_v13  ;;  %v1224_v13 = vld [vmem:[%s11151_s6 + $0x4] sm:$0xf] }
 0x34e   : > { %v1494_v15 = vmul.f32 1.442695, %v1492_v14  ;;  %v1859_v14 = vsel %vm1857_vm9, %v1224_v13, 0 }
 0x34f   : > { %v1491_v16 = vpop.xlane.xlu1 %1490 }
 0x350   : > { %9452 = vpow2.f32 %v1494_v15  ;;  %v1493_v17 = vsub.f32 %v1484_v42, %v1491_v16 }
 0x352   : > { %v1496_v18 = vmul.f32 1.442695, %v1493_v17 }
 0x354   : > { %9454 = vpow2.f32 %v1496_v18 }
 0x35a   : > { %v9453_v19 = vpop.eup %9452 }
 0x35b   : > { %v1498_v20 = vsel %vm1485_vm6, %v9453_v19, 0.0 }
 0x35c   : > { %1499 = vadd.xlane.f32.xlu0 %v1498_v20 }
 0x35e   : > { %v9455_v21 = vpop.eup %9454 }
 0x35f   : > { %v1501_v22 = vsel %vm1485_vm6, %v9455_v21, 0.0 }
 0x360   : > { %1502 = vadd.xlane.f32.xlu1 %v1501_v22 }
 0x3e9   : > { %v1500_v23 = vpop.xlane.xlu0 %1499 }
 0x3ea   : > { %9456 = vrcp.f32 %v1500_v23 }
 0x3ed   : > { %v1503_v24 = vpop.xlane.xlu1 %1502 }
 0x3ee   : > { %9458 = vrcp.f32 %v1503_v24  ;;  %v9372_v24 = vld [vmem:[%s9774_s14 + $0x20] sm:$0xff]  }
 0x3f4   : > { %v9457_v25 = vpop.eup %9456 }
 0x3f5   : > { %v1506_v27 = vmul.f32 %v9457_v25, %v9453_v19  ;;  %v1223_v19 = vld [vmem:[%s11151_s6] sm:$0xf]  ;;  %v9373_v25 = vld [vmem:[%s9774_s14 + $0x28] sm:$0xff]  }
 0x3f6   : > { %v1906_v23 = vsel %vm1857_vm9, %v1223_v19, 0 }
 0x3f8   : > { %v9459_v26 = vpop.eup %9458 }
 0x3f9   : > { %v1507_v28 = vmul.f32 %v9459_v26, %v9455_v21 }
 0x3fb   : > { %v1508_v30 = vpack.c.bf16 %v1507_v28, %v1506_v27 }
 0x3fd   : > { %8634 = vmatmul.mubr.msk.bf16.vlgmr.msra.gmra.mrb[4].mxu0 %vm1485_vm6, %v1508_v30 }
 0x3fe   : > { %8646 = vmatpush3.bf16.msra.mxu0 %v9370_v29  ;;  %8649 = vmatprep.mubr.msk.bf16.mxu0 %vm9717_vm0, %v9716_v5  ;;  %v9374_v29 = vld [vmem:[%s11152_s3 + $0x20] sm:$0xff]  }
 0x3ff   : > { %8647 = vmatprep.subr.bf16.mxu0 %v9716_v5 }
 0x402   : > { %8648 = vmatpush3.bf16.msra.mxu0 %v9371_v31 }
 0x403   : > { %8661 = vmatprep.subr.bf16.mxu0 %v9716_v5 }
 0x405   : > { %8650 = vmatmul.mubr.msk.bf16.vlgmr.msra.gmra.mrb[8].mxu0 %vm1266_vm4, %v10008_v9 }
 0x406   : > { %8663 = vmatprep.mubr.msk.bf16.mxu0 %vm9717_vm0, %v9716_v5 }
 0x4d0   : > { %v10084_v32 = vpop.f32.mrb[4].mxu0 }
 0x4d1   : > { %v8635_v33 = vpop.f32.mrb[5].mxu0 }
 0x4d2   : > { %v10086_v34 = vpop.f32.mrb[6].mxu0 }
 0x4d3   : > { %v1554_v35 = vpack.c.bf16 %v10086_v34, %v10084_v32  ;;  %v8636_v36 = vpop.f32.mrb[7].mxu0  ;;  %v9375_v32 = vld [vmem:[%s11152_s3 + $0x28] sm:$0xff]  }
 0x4d4   : > { %v9376_v36 = vld [vmem:[%s9784_s24 + $0x20] sm:$0xff]  }
 0x4d8   : > { %v1666_v38 = vpop.f32.mrb[8].mxu0 }
 0x4d9   : > { %v8651_v39 = vpop.f32.mrb[9].mxu0  ;;  %v1667_v43 = vadd.f32 %v7977_v37, %v1666_v38  ;;  %v9377_v38 = vld [vmem:[%s9784_s24 + $0x28] sm:$0xff]  }
 0x4da   : > { %v1669_v41 = vpop.f32.mrb[10].mxu0  ;;  %v7993_v39 = vld [vmem:[%s9779_s19 + $0x2] ss:$0 sm:$0xff] }
 0x4db   : > { %v1670_v44 = vadd.f32 %v7977_v37, %v1669_v41  ;;  %v8652_v45 = vpop.f32.mrb[11].mxu0 }
 0x4dd   : > { %v1733_v46 = vpack.c.bf16 %v1670_v44, %v1667_v43 }
 0x4df   : > { %v1738_v48 = vsel %vm1431_vm5, %v1733_v46, 0 }
 0x4e0   : > { %8662 = vmatpush3.bf16.xpose.msra.mxu0 %v1738_v48 }
 0x4e1   : > { %8673 = vmatprep.subr.bf16.mxu0 %v9716_v5 }
 0x4e7   : > { %8664 = vmatmul.mubr.msk.bf16.vlgmr.msra.gmra.mrb[12].mxu0 %vm1431_vm5, %v1732_v2 }
 0x4e8   : > { %8675 = vmatprep.mubr.msk.bf16.mxu0 %vm9717_vm0, %v9716_v5  ;;  %8674 = vmatpush3.bf16.msra.mxu0 %v1859_v14 }
 0x4e9   : > { %8685 = vmatprep.subr.bf16.mxu0 %v9716_v5 }
 0x5ba   : > { %v1774_v49 = vpop.f32.mrb[12].mxu0 }
 0x5bb   : > { %v1781_v50 = vmul.f32 0.35355338, %v1774_v49  ;;  %v8665_v42 = vpop.f32.mrb[13].mxu0 }
 0x5bc   : > { %v1777_v52 = vpop.f32.mrb[14].mxu0 }
 0x5bd   : > { %v1782_v58 = vmul.f32 0.35355338, %v1777_v52  ;;  %v8666_v59 = vpop.f32.mrb[15].mxu0  ;;  %v1783_v60 = vsel %vm1481_vm7, %v1781_v50, -1e+30 }
 0x5be   : > { %v1785_v61 = vsel %vm1485_vm6, %v1783_v60, -inf }
 0x5bf   : > { %1786 = vmax.xlane.f32.xlu1 %v1785_v61  ;;  %v1784_v62 = vsel %vm1482_vm8, %v1782_v58, -1e+30 }
 0x5c0   : > { %v1788_v63 = vsel %vm1485_vm6, %v1784_v62, -inf }
 0x5c3   : > { %1789 = vmax.xlane.f32.xlu1 %v1788_v63 }
 0x64c   : > { %v1787_v1 = vpop.xlane.xlu1 %1786 }
 0x64d   : > { %v1791_v2 = vsub.f32 %v1783_v60, %v1787_v1 }
 0x64f   : > { %v1793_v3 = vmul.f32 1.442695, %v1791_v2 }
 0x650   : > { %v1790_v4 = vpop.xlane.xlu1 %1789 }
 0x651   : > { %9460 = vpow2.f32 %v1793_v3  ;;  %v1792_v6 = vsub.f32 %v1784_v62, %v1790_v4  ;;  %v7989_v62 = vld [vmem:[%s11150_s8 + $0x2] ss:$0 sm:$0xff] }
 0x653   : > { %v1795_v7 = vmul.f32 1.442695, %v1792_v6 }
 0x655   : > { %9462 = vpow2.f32 %v1795_v7 }
 0x65b   : > { %v9461_v8 = vpop.eup %9460 }
 0x65c   : > { %v1797_v10 = vsel %vm1485_vm6, %v9461_v8, 0.0 }
 0x65d   : > { %1798 = vadd.xlane.f32.xlu1 %v1797_v10 }
 0x65f   : > { %v9463_v11 = vpop.eup %9462 }
 0x660   : > { %v1800_v12 = vsel %vm1485_vm6, %v9463_v11, 0.0 }
 0x661   : > { %1801 = vadd.xlane.f32.xlu1 %v1800_v12 }
 0x6ea   : > { %v1799_v15 = vpop.xlane.xlu1 %1798 }
 0x6eb   : > { %9464 = vrcp.f32 %v1799_v15 }
 0x6ee   : > { %v1802_v16 = vpop.xlane.xlu1 %1801 }
 0x6ef   : > { %9466 = vrcp.f32 %v1802_v16 }
 0x6f5   : > { %v9465_v17 = vpop.eup %9464 }
 0x6f6   : > { %v1805_v20 = vmul.f32 %v9465_v17, %v9461_v8  ;;  %v7997_v8 = vld [vmem:[%s9789_s30 + $0x2] ss:$0 sm:$0xff] }
 0x6f9   : > { %v9467_v18 = vpop.eup %9466 }
 0x6fa   : > { %v1806_v21 = vmul.f32 %v9467_v18, %v9463_v11 }
 0x6fc   : > { %v1807_v22 = vpack.c.bf16 %v1806_v21, %v1805_v20 }
 0x6fe   : > { %8670 = vmatmul.mubr.msk.bf16.vlgmr.msra.gmra.mrb[20].mxu1 %vm1485_vm6, %v1807_v22 }
 0x6ff   : > { %8680 = vmatpush3.bf16.msra.mxu1 %v1906_v23  ;;  %8681 = vmatprep.mubr.msk.bf16.mxu1 %vm9717_vm0, %v9716_v5 }
 0x700   : > { %8693 = vmatprep.subr.bf16.mxu1 %v9716_v5 }
 0x706   : > { %8682 = vmatmul.mubr.msk.bf16.vlgmr.msra.gmra.mrb[24].mxu1 %vm1431_vm5, %v1554_v35 }
 0x707   : > { %8694 = vmatpush3.bf16.msra.mxu1 %v9372_v24  ;;  %8697 = vmatprep.mubr.msk.bf16.mxu1 %vm9717_vm0, %v9716_v5 }
 0x708   : > { %8695 = vmatprep.subr.bf16.mxu1 %v9716_v5 }
 0x70b   : > { %8696 = vmatpush3.bf16.msra.mxu1 %v9373_v25 }
 0x70c   : > { %8709 = vmatprep.subr.bf16.mxu1 %v9716_v5 }
 0x70e   : > { %8698 = vmatmul.mubr.msk.bf16.vlgmr.msra.gmra.mrb[28].mxu1 %vm1266_vm4, %v10008_v9 }
 0x70f   : > { %8711 = vmatprep.mubr.msk.bf16.mxu1 %vm9717_vm0, %v9716_v5 }
 0x7d1   : > { %v1846_v26 = vpop.f32.mrb[20].mxu1 }
 0x7d2   : > { %v8671_v27 = vpop.f32.mrb[21].mxu1 }
 0x7d3   : > { %v1849_v28 = vpop.f32.mrb[22].mxu1 }
 0x7d4   : > { %v1853_v30 = vpack.c.bf16 %v1849_v28, %v1846_v26  ;;  %v8672_v31 = vpop.f32.mrb[23].mxu1 }
 0x7d6   : > { %8676 = vmatmul.mubr.msk.bf16.vlgmr.msra.gmra.mrb[16].mxu0 %vm1431_vm5, %v1853_v30 }
 0x7d7   : > { %8686 = vmatpush3.bf16.msra.mxu0 %v9374_v29  ;;  %8689 = vmatprep.mubr.msk.bf16.mxu0 %vm9717_vm0, %v9716_v5 }
 0x7d8   : > { %8687 = vmatprep.subr.bf16.mxu0 %v9716_v5 }
 0x7d9   : > { %v1942_v33 = vpop.f32.mrb[24].mxu1 }
 0x7da   : > { %v8683_v34 = vpop.f32.mrb[25].mxu1 }
 0x7db   : > { %v1945_v35 = vpop.f32.mrb[26].mxu1  ;;  %8688 = vmatpush3.bf16.msra.mxu0 %v9375_v32 }
 0x7dc   : > { %v8684_v37 = vpop.f32.mrb[27].mxu1  ;;  %8701 = vmatprep.subr.bf16.mxu0 %v9716_v5 }
 0x7dd   : > { %v1225_v37 = vld [vmem:[%s11151_s6 + $0x8] sm:$0xf] }
 0x7de   : > { %8690 = vmatmul.mubr.msk.bf16.vlgmr.msra.gmra.mrb[20].mxu0 %vm1266_vm4, %v10008_v9 }
 0x7df   : > { %8702 = vmatpush3.bf16.msra.mxu0 %v9376_v36  ;;  %8705 = vmatprep.mubr.msk.bf16.mxu0 %vm9717_vm0, %v9716_v5 }
 0x7e0   : > { %8703 = vmatprep.subr.bf16.mxu0 %v9716_v5 }
 0x7e1   : > { %v2060_v41 = vpop.f32.mrb[28].mxu1 }
 0x7e2   : > { %v8699_v43 = vpop.f32.mrb[29].mxu1  ;;  %v2061_v45 = vadd.f32 %v7993_v39, %v2060_v41 }
 0x7e3   : > { %v2063_v44 = vpop.f32.mrb[30].mxu1  ;;  %8704 = vmatpush3.bf16.msra.mxu0 %v9377_v38  ;;  %v2252_v38 = vsel %vm1857_vm9, %v1225_v37, 0 }
 0x7e4   : > { %v2064_v46 = vadd.f32 %v7993_v39, %v2063_v44  ;;  %v8700_v48 = vpop.f32.mrb[31].mxu1  ;;  %8715 = vmatprep.subr.bf16.mxu0 %v9716_v5 }
 0x7e5   : > { %v9378_v48 = vld [vmem:[%s11152_s3 + $0x30] sm:$0xff]  }
 0x7e6   : > { %v2127_v49 = vpack.c.bf16 %v2064_v46, %v2061_v45  ;;  %8706 = vmatmul.mubr.msk.bf16.vlgmr.msra.gmra.mrb[24].mxu0 %vm1266_vm4, %v10008_v9 }
 0x7e7   : > { %8717 = vmatprep.mubr.msk.bf16.mxu0 %vm9717_vm0, %v9716_v5 }
 0x7e8   : > { %v2132_v50 = vsel %vm1431_vm5, %v2127_v49, 0 }
 0x7e9   : > { %8710 = vmatpush3.bf16.xpose.msra.mxu1 %v2132_v50  ;;  %v9379_v50 = vld [vmem:[%s11152_s3 + $0x38] sm:$0xff]  }
 0x7ea   : > { %8721 = vmatprep.subr.bf16.mxu1 %v9716_v5 }
 0x8a9   : > { %v1895_v42 = vpop.f32.mrb[16].mxu0 }
 0x8aa   : > { %v10146_v52 = vadd.f32 %v1942_v33, %v1895_v42  ;;  %v8677_v58 = vpop.f32.mrb[17].mxu0  ;;  %v9380_v42 = vld [vmem:[%s9784_s24 + $0x30] sm:$0xff]  }
 0x8ab   : > { %v1898_v59 = vpop.f32.mrb[18].mxu0  ;;  %v9381_v58 = vld [vmem:[%s9784_s24 + $0x38] sm:$0xff]  }
 0x8ac   : > { %v10148_v60 = vadd.f32 %v1945_v35, %v1898_v59  ;;  %v8678_v61 = vpop.f32.mrb[19].mxu0 }
 0x8b1   : > { %v2001_v63 = vpop.f32.mrb[20].mxu0 }
 0x8b2   : > { %v8691_v1 = vpop.f32.mrb[21].mxu0  ;;  %v2002_v3 = vadd.f32 %v7989_v62, %v2001_v63  ;;  %v9382_v63 = vld [vmem:[%s9774_s14 + $0x30] sm:$0xff]  }
 0x8b3   : > { %v2004_v2 = vpop.f32.mrb[22].mxu0 }
 0x8b4   : > { %v2005_v4 = vadd.f32 %v7989_v62, %v2004_v2  ;;  %v8692_v6 = vpop.f32.mrb[23].mxu0 }
 0x8b6   : > { %v2126_v7 = vpack.c.bf16 %v2005_v4, %v2002_v3  ;;  %v9383_v3 = vld [vmem:[%s9774_s14 + $0x38] sm:$0xff]   ;;  %v8004_v4 = vld [vmem:[%s11150_s8 + $0x3] ss:$0 sm:$0xff] }
 0x8b8   : > { %8712 = vmatmul.mubr.msk.bf16.vlgmr.msra.gmra.mrb[32].mxu1 %vm1431_vm5, %v2126_v7 }
 0x8b9   : > { %v2119_v10 = vpop.f32.mrb[24].mxu0  ;;  %8723 = vmatprep.mubr.msk.bf16.mxu1 %vm9717_vm0, %v9716_v5  ;;  %8722 = vmatpush3.bf16.msra.mxu1 %v2252_v38 }
 0x8ba   : > { %v8707_v11 = vpop.f32.mrb[25].mxu0  ;;  %v2120_v13 = vadd.f32 %v7997_v8, %v2119_v10  ;;  %8735 = vmatprep.subr.bf16.mxu1 %v9716_v5 }
 0x8bb   : > { %v2122_v12 = vpop.f32.mrb[26].mxu0 }
 0x8bc   : > { %v2123_v14 = vadd.f32 %v7997_v8, %v2122_v12  ;;  %v8708_v15 = vpop.f32.mrb[27].mxu0 }
 0x8be   : > { %v2202_v16 = vpack.c.bf16 %v2123_v14, %v2120_v13  ;;  %v8012_v14 = vld [vmem:[%s9789_s30 + $0x3] ss:$0 sm:$0xff] }
 0x8c0   : > { %8716 = vmatpush3.bf16.msra.mxu0 %v2202_v16 }
 0x8c1   : > { %8727 = vmatprep.subr.bf16.mxu0 %v9716_v5 }
 0x98b   : > { %v2168_v17 = vpop.f32.mrb[32].mxu1 }
 0x98c   : > { %v2175_v18 = vmul.f32 0.35355338, %v2168_v17  ;;  %v8713_v19 = vpop.f32.mrb[33].mxu1 }
 0x98d   : > { %v2171_v20 = vpop.f32.mrb[34].mxu1 }
 0x98e   : > { %v2176_v21 = vmul.f32 0.35355338, %v2171_v20  ;;  %v8714_v22 = vpop.f32.mrb[35].mxu1  ;;  %v2177_v23 = vsel %vm1481_vm7, %v2175_v18, -1e+30 }
 0x98f   : > { %v2179_v24 = vsel %vm1485_vm6, %v2177_v23, -inf }
 0x990   : > { %2180 = vmax.xlane.f32.xlu1 %v2179_v24  ;;  %v2178_v25 = vsel %vm1482_vm8, %v2176_v21, -1e+30 }
 0x991   : > { %v2182_v26 = vsel %vm1485_vm6, %v2178_v25, -inf }
 0x994   : > { %2183 = vmax.xlane.f32.xlu1 %v2182_v26 }
 0xa1d   : > { %v2181_v27 = vpop.xlane.xlu1 %2180 }
 0xa1e   : > { %v2185_v28 = vsub.f32 %v2177_v23, %v2181_v27  ;;  %v8008_v27 = vld [vmem:[%s9779_s19 + $0x3] ss:$0 sm:$0xff] }
 0xa20   : > { %v2187_v29 = vmul.f32 1.442695, %v2185_v28 }
 0xa21   : > { %v2184_v30 = vpop.xlane.xlu1 %2183 }
 0xa22   : > { %9468 = vpow2.f32 %v2187_v29  ;;  %v2186_v31 = vsub.f32 %v2178_v25, %v2184_v30 }
 0xa24   : > { %v2189_v32 = vmul.f32 1.442695, %v2186_v31 }
 0xa26   : > { %9470 = vpow2.f32 %v2189_v32 }
 0xa2c   : > { %v9469_v33 = vpop.eup %9468 }
 0xa2d   : > { %v2191_v34 = vsel %vm1485_vm6, %v9469_v33, 0.0 }
 0xa2e   : > { %2192 = vadd.xlane.f32.xlu1 %v2191_v34 }
 0xa30   : > { %v9471_v35 = vpop.eup %9470 }
 0xa31   : > { %v2194_v36 = vsel %vm1485_vm6, %v9471_v35, 0.0 }
 0xa32   : > { %2195 = vadd.xlane.f32.xlu0 %v2194_v36 }
 0xabb   : > { %v2193_v39 = vpop.xlane.xlu1 %2192 }
 0xabc   : > { %9472 = vrcp.f32 %v2193_v39 }
 0xabf   : > { %v2196_v41 = vpop.xlane.xlu0 %2195 }
 0xac0   : > { %9474 = vrcp.f32 %v2196_v41 }
 0xac6   : > { %v9473_v43 = vpop.eup %9472 }
 0xac7   : > { %v2199_v45 = vmul.f32 %v9473_v43, %v9469_v33 }
 0xaca   : > { %v9475_v44 = vpop.eup %9474 }
 0xacb   : > { %v2200_v46 = vmul.f32 %v9475_v44, %v9471_v35 }
 0xacd   : > { %v2201_v49 = vpack.c.bf16 %v2200_v46, %v2199_v45 }
 0xacf   : > { %8718 = vmatmul.mubr.msk.bf16.vlgmr.msra.gmra.mrb[28].mxu0 %vm1485_vm6, %v2201_v49 }
 0xad0   : > { %8728 = vmatpush3.bf16.msra.mxu0 %v9378_v48  ;;  %8731 = vmatprep.mubr.msk.bf16.mxu0 %vm9717_vm0, %v9716_v5 }
 0xad1   : > { %8729 = vmatprep.subr.bf16.mxu0 %v9716_v5 }
 0xad4   : > { %8730 = vmatpush3.bf16.msra.mxu0 %v9379_v50 }
 0xad5   : > { %8743 = vmatprep.subr.bf16.mxu0 %v9716_v5 }
 0xad7   : > { %8732 = vmatmul.mubr.msk.bf16.vlgmr.msra.gmra.mrb[32].mxu0 %vm1266_vm4, %v10008_v9 }
 0xad8   : > { %8744 = vmatpush3.bf16.msra.mxu0 %v9380_v42  ;;  %8747 = vmatprep.mubr.msk.bf16.mxu0 %vm9717_vm0, %v9716_v5 }
 0xad9   : > { %8745 = vmatprep.subr.bf16.mxu0 %v9716_v5 }
 0xadc   : > { %8746 = vmatpush3.bf16.msra.mxu0 %v9381_v58 }
 0xadd   : > { %8757 = vmatprep.subr.bf16.mxu0 %v9716_v5 }
 0xadf   : > { %8748 = vmatmul.mubr.msk.bf16.vlgmr.msra.gmra.mrb[36].mxu0 %vm1266_vm4, %v10008_v9 }
 0xae0   : > { %8759 = vmatprep.mubr.msk.bf16.mxu0 %vm9717_vm0, %v9716_v5 }
 0xba2   : > { %v2240_v59 = vpop.f32.mrb[28].mxu0 }
 0xba3   : > { %v8719_v61 = vpop.f32.mrb[29].mxu0 }
 0xba4   : > { %v2243_v62 = vpop.f32.mrb[30].mxu0 }
 0xba5   : > { %v2247_v1 = vpack.c.bf16 %v2243_v62, %v2240_v59  ;;  %v8720_v2 = vpop.f32.mrb[31].mxu0 }
 0xba7   : > { %8724 = vmatmul.mubr.msk.bf16.vlgmr.msra.gmra.mrb[36].mxu1 %vm1431_vm5, %v2247_v1  ;;  %v1226_v1 = vld [vmem:[%s11151_s6 + $0xc] sm:$0xf] }
 0xba8   : > { %8736 = vmatpush3.bf16.msra.mxu1 %v9382_v63  ;;  %8739 = vmatprep.mubr.msk.bf16.mxu1 %vm9717_vm0, %v9716_v5  ;;  %v2600_v2 = vsel %vm1857_vm9, %v1226_v1, 0 }
 0xba9   : > { %8737 = vmatprep.subr.bf16.mxu1 %v9716_v5 }
 0xbaa   : > { %v2349_v6 = vpop.f32.mrb[32].mxu0 }
 0xbab   : > { %v8733_v7 = vpop.f32.mrb[33].mxu0  ;;  %v2350_v10 = vadd.f32 %v8004_v4, %v2349_v6 }
 0xbac   : > { %v2352_v8 = vpop.f32.mrb[34].mxu0  ;;  %8738 = vmatpush3.bf16.msra.mxu1 %v9383_v3 }
 0xbad   : > { %v2353_v11 = vadd.f32 %v8004_v4, %v2352_v8  ;;  %v8734_v12 = vpop.f32.mrb[35].mxu0  ;;  %8751 = vmatprep.subr.bf16.mxu1 %v9716_v5 }
 0xbaf   : > { %v2474_v13 = vpack.c.bf16 %v2353_v11, %v2350_v10  ;;  %8740 = vmatmul.mubr.msk.bf16.vlgmr.msra.gmra.mrb[40].mxu1 %vm1266_vm4, %v10008_v9 }
 0xbb0   : > { %8753 = vmatprep.mubr.msk.bf16.mxu1 %vm9717_vm0, %v9716_v5 }
 0xbb2   : > { %v2467_v15 = vpop.f32.mrb[36].mxu0 }
 0xbb3   : > { %v8749_v16 = vpop.f32.mrb[37].mxu0  ;;  %v2468_v18 = vadd.f32 %v8012_v14, %v2467_v15 }
 0xbb4   : > { %v2470_v17 = vpop.f32.mrb[38].mxu0 }
 0xbb5   : > { %v2471_v19 = vadd.f32 %v8012_v14, %v2470_v17  ;;  %v8750_v20 = vpop.f32.mrb[39].mxu0  ;;  %v8019_v17 = vld [vmem:[%s11148_s12] ss:$0 sm:$0xff] }
 0xbb7   : > { %v2550_v21 = vpack.c.bf16 %v2471_v19, %v2468_v18 }
 0xbb9   : > { %8758 = vmatpush3.bf16.msra.mxu0 %v2550_v21 }
 0xbba   : > { %8769 = vmatprep.subr.bf16.mxu0 %v9716_v5 }
 0xc7a   : > { %v2288_v22 = vpop.f32.mrb[36].mxu1 }
 0xc7b   : > { %v10201_v23 = vadd.f32 %v2288_v22, %v10146_v52  ;;  %v8725_v9 = vpop.f32.mrb[37].mxu1 }
 0xc7c   : > { %v2291_v24 = vpop.f32.mrb[38].mxu1 }
 0xc7d   : > { %v10204_v25 = vadd.f32 %v2291_v24, %v10148_v60  ;;  %v8726_v26 = vpop.f32.mrb[39].mxu1 }
 0xc82   : > { %v2408_v28 = vpop.f32.mrb[40].mxu1 }
 0xc83   : > { %v8741_v29 = vpop.f32.mrb[41].mxu1  ;;  %v2409_v31 = vadd.f32 %v8008_v27, %v2408_v28 }
 0xc84   : > { %v2411_v30 = vpop.f32.mrb[42].mxu1 }
 0xc85   : > { %v2412_v32 = vadd.f32 %v8008_v27, %v2411_v30  ;;  %v8742_v33 = vpop.f32.mrb[43].mxu1 }
 0xc87   : > { %v2475_v34 = vpack.c.bf16 %v2412_v32, %v2409_v31 }
 0xc89   : > { %v2480_v35 = vsel %vm1431_vm5, %v2475_v34, 0 }
 0xc8a   : > { %8752 = vmatpush3.bf16.xpose.msra.mxu1 %v2480_v35 }
 0xc8b   : > { %8763 = vmatprep.subr.bf16.mxu1 %v9716_v5 }
 0xc91   : > { %8754 = vmatmul.mubr.msk.bf16.vlgmr.msra.gmra.mrb[44].mxu1 %vm1431_vm5, %v2474_v13 }
 0xc92   : > { %8765 = vmatprep.mubr.msk.bf16.mxu1 %vm9717_vm0, %v9716_v5  ;;  %8764 = vmatpush3.bf16.msra.mxu1 %v2600_v2 }
 0xc93   : > { %8777 = vmatprep.subr.bf16.mxu1 %v9716_v5 }
 0xd64   : > { %v2516_v52 = vpop.f32.mrb[44].mxu1 }
 0xd65   : > { %v2523_v60 = vmul.f32 0.35355338, %v2516_v52  ;;  %v8755_v36 = vpop.f32.mrb[45].mxu1 }
 0xd66   : > { %v2519_v37 = vpop.f32.mrb[46].mxu1 }
 0xd67   : > { %v2524_v38 = vmul.f32 0.35355338, %v2519_v37  ;;  %v8756_v39 = vpop.f32.mrb[47].mxu1  ;;  %v2525_v41 = vsel %vm1481_vm7, %v2523_v60, -1e+30 }
 0xd68   : > { %v2527_v43 = vsel %vm1485_vm6, %v2525_v41, -inf }
 0xd69   : > { %2528 = vmax.xlane.f32.xlu1 %v2527_v43  ;;  %v2526_v44 = vsel %vm1482_vm8, %v2524_v38, -1e+30 }
 0xd6a   : > { %v2530_v45 = vsel %vm1485_vm6, %v2526_v44, -inf }
 0xd6b   : > { %2531 = vmax.xlane.f32.xlu0 %v2530_v45 }
 0xdf6   : > { %v2529_v46 = vpop.xlane.xlu1 %2528 }
 0xdf7   : > { %v2533_v48 = vsub.f32 %v2525_v41, %v2529_v46  ;;  %v9616_v46 = vld [vmem:[%s9952_s22 + $0x8] sm:$0xff] }
 0xdf8   : > { %v2532_v49 = vpop.xlane.xlu0 %2531  ;;  %vm3020_vm12 = vcmp.gt.f32.partialorder %v9616_v46, 0.0 }
 0xdf9   : > { %v2535_v50 = vmul.f32 1.442695, %v2533_v48  ;;  %v2534_v42 = vsub.f32 %v2526_v44, %v2532_v49  ;;  %v3022_v48 = vsel %vm3020_vm12, 1, %v9715_v0  ;;  %v9384_v49 = vld [vmem:[%s9824_s20] sm:$0xff]  }
 0xdfb   : > { %9476 = vpow2.f32 %v2535_v50  ;;  %v2537_v58 = vmul.f32 1.442695, %v2534_v42  ;;  %v1162_v50 = vld [vmem:[%s11166_s23] sm:$0xff]  ;;  %s11169_s23 = sld [smem:[#allocation17_spill]] }
 0xdfc   : > { %v10246_v42 = vpack.c.bf16 %v1162_v50, %v1162_v50  ;;  %v9387_v50 = vld [vmem:[%s11167_s16 + $0x10] sm:$0xff]  }
 0xdfd   : > { %9478 = vpow2.f32 %v2537_v58  ;;  %v9385_v58 = vld [vmem:[%s11167_s16] sm:$0xff]  }
 0xe05   : > { %v9477_v59 = vpop.eup %9476 }
 0xe06   : > { %v2539_v61 = vsel %vm1485_vm6, %v9477_v59, 0.0 }
 0xe07   : > { %v9479_v62 = vpop.eup %9478  ;;  %2540 = vadd.xlane.f32.xlu1 %v2539_v61 }
 0xe08   : > { %v2542_v63 = vsel %vm1485_vm6, %v9479_v62, 0.0 }
 0xe09   : > { %2543 = vadd.xlane.f32.xlu0 %v2542_v63 }
 0xe94   : > { %v2541_v3 = vpop.xlane.xlu1 %2540 }
 0xe95   : > { %9480 = vrcp.f32 %v2541_v3 }
 0xe96   : > { %v2544_v4 = vpop.xlane.xlu0 %2543 }
 0xe97   : > { %9482 = vrcp.f32 %v2544_v4 }
 0xe9f   : > { %v9481_v6 = vpop.eup %9480 }
 0xea0   : > { %v2547_v8 = vmul.f32 %v9481_v6, %v9477_v59  ;;  %v9386_v59 = vld [vmem:[%s11167_s16 + $0x8] sm:$0xff]  }
 0xea1   : > { %v9483_v7 = vpop.eup %9482 }
 0xea2   : > { %v2548_v10 = vmul.f32 %v9483_v7, %v9479_v62 }
 0xea4   : > { %v2549_v11 = vpack.c.bf16 %v2548_v10, %v2547_v8  ;;  %v8020_v10 = vld [vmem:[%s11168_s5] ss:$0 sm:$0xff] }
 0xea6   : > { %8760 = vmatmul.mubr.msk.bf16.vlgmr.msra.gmra.mrb[40].mxu0 %vm1485_vm6, %v2549_v11 }
 0xea7   : > { %8773 = vmatprep.mubr.msk.bf16.mxu0 %vm9717_vm0, %v9716_v5  ;;  %8770 = vmatpush3.bf16.msra.mxu0 %v9385_v58 }
 0xea8   : > { %8771 = vmatprep.subr.bf16.mxu0 %v9716_v5 }
 0xeab   : > { %8772 = vmatpush3.bf16.msra.mxu0 %v9386_v59  ;;  %v9388_v59 = vld [vmem:[%s11167_s16 + $0x18] sm:$0xff]  }
 0xeac   : > { %8783 = vmatprep.subr.bf16.mxu0 %v9716_v5 }
 0xf79   : > { %v2588_v12 = vpop.f32.mrb[40].mxu0 }
 0xf7a   : > { %v8761_v13 = vpop.f32.mrb[41].mxu0 }
 0xf7b   : > { %v2591_v14 = vpop.f32.mrb[42].mxu0 }
 0xf7c   : > { %v2595_v15 = vpack.c.bf16 %v2591_v14, %v2588_v12  ;;  %v8762_v16 = vpop.f32.mrb[43].mxu0 }
 0xf7d   : > { %v8021_v16 = vld [vmem:[%s11169_s23] ss:$0 sm:$0xff] }
 0xf7e   : > { %8766 = vmatmul.mubr.msk.bf16.vlgmr.msra.gmra.mrb[48].mxu1 %vm1431_vm5, %v2595_v15 }
 0xf7f   : > { %8779 = vmatprep.mubr.msk.bf16.mxu1 %vm9717_vm0, %v9716_v5  ;;  %8778 = vmatpush3.bf16.msra.mxu1 %v9384_v49 }
 0xf80   : > { %8789 = vmatprep.subr.bf16.mxu1 %v9716_v5 }
 0xf86   : > { %8780 = vmatmul.mubr.msk.bf16.vlgmr.msra.gmra.mrb[52].mxu1 %vm1485_vm6, %v10246_v42 }
 0xf87   : > { %8791 = vmatprep.mubr.msk.bf16.mxu1 %vm9717_vm0, %v9716_v5 }
0x1051   : > { %v2636_v18 = vpop.f32.mrb[48].mxu1 }
0x1052   : > { %v2643_v19 = vadd.f32 %v2636_v18, %v10201_v23  ;;  %v8767_v20 = vpop.f32.mrb[49].mxu1 }
0x1053   : > { %v2639_v21 = vpop.f32.mrb[50].mxu1 }
0x1054   : > { %v2651_v22 = vadd.f32 %v8019_v17, %v2643_v19  ;;  %v2644_v9 = vadd.f32 %v2639_v21, %v10204_v25  ;;  %v8768_v24 = vpop.f32.mrb[51].mxu1 }
0x1056   : > { %v2657_v26 = vrot.slane %v2651_v22, 1  ;;  %v2652_v27 = vadd.f32 %v8019_v17, %v2644_v9 }
0x1058   : > { %v2658_v28 = vrot.slane %v2652_v27, 1  ;;  %v2663_v29 = vadd.f32 %v2657_v26, %v9997_v56 }
0x105a   : > { %v2667_v30 = vsel %vm2666_vm10, %v2663_v29, 0.0  ;;  %v2659_v31 = vsel %vm1091_vm1, %v2657_v26, %v2658_v28  ;;  %v2665_v32 = vadd.f32 %v2658_v28, %v9994_v55 }
0x105b   : > { %2668 = vadd.xlane.f32.xlu1 %v2667_v30  ;;  %v2664_v23 = vadd.f32 %v2659_v31, %v10000_v57 }
0x105c   : > { %v2674_v25 = vsel %vm2673_vm11, %v2665_v32, 0.0 }
0x105d   : > { %v2670_v33 = vsel %vm1266_vm4, %v2664_v23, 0.0 }
0x105e   : > { %2671 = vadd.xlane.f32.xlu0 %v2670_v33 }
0x105f   : > { %2675 = vadd.xlane.f32.xlu1 %v2674_v25 }
0x10e8   : > { %v2669_v34 = vpop.xlane.xlu1 %2668 }
0x10e9   : > { %v2678_v35 = vmul.f32 0.03125, %v2669_v34 }
0x10eb   : > { %v2681_v52 = vsub.f32 %v2663_v29, %v2678_v35  ;;  %v2672_v56 = vpop.xlane.xlu0 %2671  ;;  %v8026_v35 = vld [vmem:[%s11170_s13] ss:$0 sm:$0xff] }
0x10ec   : > { %v2679_v60 = vmul.f32 0.03125, %v2672_v56  ;;  %v2676_v36 = vpop.xlane.xlu1 %2675 }
0x10ed   : > { %v2680_v37 = vmul.f32 0.03125, %v2676_v36  ;;  %v2684_v55 = vmul.f32 %v2681_v52, %v2681_v52 }
0x10ee   : > { %v2682_v38 = vsub.f32 %v2664_v23, %v2679_v60 }
0x10ef   : > { %v2683_v57 = vsub.f32 %v2665_v32, %v2680_v37  ;;  %v2687_v39 = vsel %vm2666_vm10, %v2684_v55, 0.0 }
0x10f0   : > { %2688 = vadd.xlane.f32.xlu0 %v2687_v39  ;;  %v2685_v41 = vmul.f32 %v2682_v38, %v2682_v38 }
0x10f1   : > { %v2686_v43 = vmul.f32 %v2683_v57, %v2683_v57 }
0x10f2   : > { %v2690_v44 = vsel %vm1266_vm4, %v2685_v41, 0.0  ;;  %v8022_v41 = vld [vmem:[%s11171_s17] ss:$0 sm:$0xff] }
0x10f3   : > { %2691 = vadd.xlane.f32.xlu1 %v2690_v44  ;;  %v2693_v45 = vsel %vm2673_vm11, %v2686_v43, 0.0 }
0x10f4   : > { %2694 = vadd.xlane.f32.xlu0 %v2693_v45 }
0x110a   : > { %3027 = vperm.xlu0 %9358, %v3022_v48  }
0x117d   : > { %v2689_v61 = vpop.xlane.xlu0 %2688 }
0x117e   : > { %v2696_v62 = vmul.f32 0.03125, %v2689_v61  ;;  %v9389_v61 = vld [vmem:[%s11173_s25] sm:$0xff]  }
0x1180   : > { %v2699_v63 = vadd.f32 1e-05, %v2696_v62  ;;  %v2692_v1 = vpop.xlane.xlu1 %2691 }
0x1181   : > { %v2697_v2 = vmul.f32 0.03125, %v2692_v1  ;;  %v2695_v3 = vpop.xlane.xlu0 %2694 }
0x1182   : > { %9484 = vrsqrt.f32 %v2699_v63  ;;  %v2698_v4 = vmul.f32 0.03125, %v2695_v3 }
0x1183   : > { %v2700_v6 = vadd.f32 1e-05, %v2697_v2 }
0x1184   : > { %v2701_v7 = vadd.f32 1e-05, %v2698_v4 }
0x1185   : > { %9486 = vrsqrt.f32 %v2700_v6 }
0x1186   : > { %9488 = vrsqrt.f32 %v2701_v7 }
0x1189   : > { %v10306_v2 = vpop.permute.xlu0 %3027 }
0x118a   : > { %vm3030_vm15 = vcmp.eq.s32.totalorder %v10306_v2, 1 }
0x118c   : > { %v9485_v8 = vpop.eup %9484 }
0x118d   : > { %v2705_v11 = vmul.f32 %v9485_v8, %v2681_v52  ;;  %v2906_v52 = vpop.f32.mrb[52].mxu1 }
0x118e   : > { %v2907_v56 = vadd.f32 %v8026_v35, %v2906_v52  ;;  %v8781_v60 = vpop.f32.mrb[53].mxu1 }
0x118f   : > { %v9487_v12 = vpop.eup %9486  ;;  %v2714_v14 = vmul.f32 %v8020_v10, %v2705_v11  ;;  %v2909_v36 = vpop.f32.mrb[54].mxu1 }
0x1190   : > { %v9489_v13 = vpop.eup %9488  ;;  %v2706_v15 = vmul.f32 %v9487_v12, %v2682_v38  ;;  %v2969_v37 = vpack.c.bf16 %v2907_v56, %v2907_v56  ;;  %v8782_v55 = vpop.f32.mrb[55].mxu1 }
0x1191   : > { %v2707_v17 = vmul.f32 %v9489_v13, %v2683_v57  ;;  %v10259_v20 = vadd.f32 %v8021_v16, %v2714_v14  ;;  %v9617_v57 = vld [vmem:[%s9952_s22] sm:$0xff]  ;;  %s7954_s22 = sshll.u32 %s9948_s2, 3  ;;  %s11176_s2 = sld [smem:[#allocation24_spill]] }
0x1192   : > { %v2715_v18 = vmul.f32 %v8020_v10, %v2706_v15  ;;  %v2974_v38 = vsel %vm1431_vm5, %v2969_v37, 0  ;;  %vm3019_vm13 = vcmp.gt.f32.partialorder %v9617_v57, 0.0  ;;  %s1055_s26 = scalar_lea.vmem %s11172_s21, %s7954_s22  ;;  %v8034_v14 = vld [vmem:[%s11171_s17 + $0x1] ss:$0 sm:$0xff]  ;;  %s11174_s21 = sld [smem:[#allocation22_spill]] }
0x1193   : > { %v2716_v19 = vmul.f32 %v8020_v10, %v2707_v17  ;;  %8790 = vmatpush3.bf16.xpose.msra.mxu1 %v2974_v38  ;;  %v3021_v39 = vsel %vm3019_vm13, 1, %v9715_v0  ;;  %v1067_v0 = vld [vmem:[%s1055_s26] sm:$0xff]  ;;  %s11175_s26 = sld [smem:[#allocation23_spill]]  ;;  %s11177_s22 = sld [smem:[#allocation27_spill]] }
0x1194   : > { %v10261_v21 = vadd.f32 %v8021_v16, %v2715_v18  ;;  %8801 = vmatprep.subr.bf16.mxu1 %v9716_v5  ;;  %3024 = vperm.xlu1 %9359, %v3021_v39   ;;  %v10296_v62 = vpack.c.bf16 %v1067_v0, %v1067_v0 }
0x1195   : > { %v10263_v22 = vadd.f32 %v8021_v16, %v2716_v19 }
0x1196   : > { %v2775_v9 = vpack.c.bf16 %v10261_v21, %v10259_v20 }
0x1197   : > { %v2776_v24 = vpack.c.bf16 %v10263_v22, %v10263_v22 }
0x1198   : > { %v2784_v26 = vshrl.u32 %v2775_v9, 16  ;;  %v2787_v27 = vshll.u32 %v2775_v9, 16  ;;  %v8029_v60 = vld [vmem:[%s11174_s21] ss:$0 sm:$0xff] }
0x1199   : > { %v2792_v28 = vshrl.u32 %v2776_v24, 16  ;;  %v2795_v29 = vshll.u32 %v2776_v24, 16 }
0x119a   : > { %v2786_v30 = vrot.slane %v2784_v26, 3  ;;  %v2789_v31 = vrot.slane %v2787_v27, 4 }
0x119b   : > { %v2794_v32 = vrot.slane %v2792_v28, 3  ;;  %v2797_v23 = vrot.slane %v2795_v29, 4 }
0x119c   : > { %v2790_v33 = vor.u32 %v2789_v31, %v2786_v30 }
0x119d   : > { %v2798_v25 = vor.u32 %v2797_v23, %v2794_v32 }
0x119f   : > { %v10270_v34 = vsel %vm1236_vm3, %v2790_v33, %v2798_v25 }
0x11a0   : > { %8774 = vmatmul.mubr.msk.bf16.vlgmr.msra.gmra.mrb[44].mxu0 %vm1266_vm4, %v10270_v34 }
0x11a1   : > { %8785 = vmatprep.mubr.msk.bf16.mxu0 %vm9717_vm0, %v9716_v5  ;;  %8784 = vmatpush3.bf16.msra.mxu0 %v9389_v61  ;;  %v8038_v61 = vld [vmem:[%s11170_s13 + $0x1] ss:$0 sm:$0xff] }
0x11a2   : > { %8795 = vmatprep.subr.bf16.mxu0 %v9716_v5 }
0x11a8   : > { %8786 = vmatmul.mubr.msk.bf16.vlgmr.msra.gmra.mrb[48].mxu0 %vm1485_vm6, %v10296_v62 }
0x11a9   : > { %8797 = vmatprep.mubr.msk.bf16.mxu0 %vm9717_vm0, %v9716_v5 }
0x1213   : > { %v10303_v63 = vpop.permute.xlu1 %3024 }
0x1214   : > { %vm3029_vm14 = vcmp.eq.s32.totalorder %v10303_v63, 1 }
0x1273   : > { %v2849_v43 = vpop.f32.mrb[44].mxu0 }
0x1274   : > { %v8775_v44 = vpop.f32.mrb[45].mxu0  ;;  %v2850_v46 = vadd.f32 %v8022_v41, %v2849_v43 }
0x1275   : > { %v2852_v45 = vpop.f32.mrb[46].mxu0 }
0x1276   : > { %v2853_v48 = vadd.f32 %v8022_v41, %v2852_v45  ;;  %v8776_v49 = vpop.f32.mrb[47].mxu0 }
0x1278   : > { %v2968_v58 = vpack.c.bf16 %v2853_v48, %v2850_v46  ;;  %v9390_v46 = vld [vmem:[%s9824_s20 + $0x8] sm:$0xff]  }
0x127a   : > { %8792 = vmatmul.mubr.msk.bf16.vlgmr.msra.gmra.mrb[56].mxu1 %vm1431_vm5, %v2968_v58 }
0x127b   : > { %8802 = vmatpush3.bf16.msra.mxu1 %v9387_v50  ;;  %8805 = vmatprep.mubr.msk.bf16.mxu1 %vm9717_vm0, %v9716_v5  ;;  %v2962_v35 = vpop.f32.mrb[48].mxu0 }
0x127c   : > { %8803 = vmatprep.subr.bf16.mxu1 %v9716_v5  ;;  %v8787_v52 = vpop.f32.mrb[49].mxu0  ;;  %v2963_v37 = vadd.f32 %v8029_v60, %v2962_v35  ;;  %v8041_v60 = vld [vmem:[%s11174_s21 + $0x1] ss:$0 sm:$0xff] }
0x127d   : > { %v2965_v56 = vpop.f32.mrb[50].mxu0 }
0x127e   : > { %v8788_v36 = vpop.f32.mrb[51].mxu0  ;;  %v3056_v55 = vpack.c.bf16 %v2963_v37, %v2963_v37 }
0x127f   : > { %8804 = vmatpush3.bf16.msra.mxu1 %v9388_v59 }
0x1280   : > { %8815 = vmatprep.subr.bf16.mxu1 %v9716_v5  ;;  %v3061_v38 = vsel %vm1857_vm9, %v3056_v55, 0 }
0x1281   : > { %8796 = vmatpush3.bf16.msra.mxu0 %v3061_v38 }
0x1282   : > { %8806 = vmatmul.mubr.msk.bf16.vlgmr.msra.gmra.mrb[60].mxu1 %vm1266_vm4, %v10270_v34  ;;  %8809 = vmatprep.subr.bf16.mxu0 %v9716_v5 }
0x1283   : > { %8817 = vmatprep.mubr.msk.bf16.mxu1 %vm9717_vm0, %v9716_v5 }
0x134d   : > { %v3010_v1 = vpop.f32.mrb[56].mxu1 }
0x134e   : > { %v3017_v3 = vmul.f32 0.35355338, %v3010_v1  ;;  %v8793_v4 = vpop.f32.mrb[57].mxu1 }
0x134f   : > { %v3013_v6 = vpop.f32.mrb[58].mxu1 }
0x1350   : > { %v3018_v7 = vmul.f32 0.35355338, %v3013_v6  ;;  %v8794_v8 = vpop.f32.mrb[59].mxu1  ;;  %v3031_v10 = vsel %vm3029_vm14, %v3017_v3, -1e+30 }
0x1351   : > { %v3033_v11 = vsel %vm1431_vm5, %v3031_v10, -inf }
0x1352   : > { %3034 = vmax.xlane.f32.xlu1 %v3033_v11  ;;  %v3032_v12 = vsel %vm3030_vm15, %v3018_v7, -1e+30  ;;  %v9391_v11 = vld [vmem:[%s11173_s25 + $0x8] sm:$0xff]  }
0x1353   : > { %v3036_v13 = vsel %vm1431_vm5, %v3032_v12, -inf  ;;  %8816 = vmatpush3.bf16.msra.mxu1 %v9391_v11 }
0x1354   : > { %3037 = vmax.xlane.f32.xlu0 %v3036_v13  ;;  %8827 = vmatprep.subr.bf16.mxu1 %v9716_v5 }
0x1355   : > { %v3157_v15 = vpop.f32.mrb[60].mxu1 }
0x1356   : > { %v8807_v16 = vpop.f32.mrb[61].mxu1  ;;  %v3158_v18 = vadd.f32 %v8034_v14, %v3157_v15  ;;  %8818 = vmatmul.mubr.msk.bf16.vlgmr.msra.gmra.mrb[64].mxu1 %vm1485_vm6, %v10296_v62 }
0x1357   : > { %v3160_v17 = vpop.f32.mrb[62].mxu1  ;;  %8829 = vmatprep.mubr.msk.bf16.mxu1 %vm9717_vm0, %v9716_v5 }
0x1358   : > { %v3161_v19 = vadd.f32 %v8034_v14, %v3160_v17  ;;  %v8808_v9 = vpop.f32.mrb[63].mxu1 }
0x135a   : > { %v3268_v24 = vpack.c.bf16 %v3161_v19, %v3158_v18 }
0x13df   : > { %v3035_v26 = vpop.xlane.xlu1 %3034 }
0x13e0   : > { %v3039_v27 = vsub.f32 %v3031_v10, %v3035_v26 }
0x13e1   : > { %v3038_v28 = vpop.xlane.xlu0 %3037 }
0x13e2   : > { %v3041_v29 = vmul.f32 1.442695, %v3039_v27  ;;  %v3040_v30 = vsub.f32 %v3032_v12, %v3038_v28 }
0x13e4   : > { %9490 = vpow2.f32 %v3041_v29  ;;  %v3043_v31 = vmul.f32 1.442695, %v3040_v30 }
0x13e6   : > { %9492 = vpow2.f32 %v3043_v31 }
0x13ee   : > { %v9491_v32 = vpop.eup %9490 }
0x13ef   : > { %v3045_v23 = vsel %vm1431_vm5, %v9491_v32, 0.0 }
0x13f0   : > { %v9493_v33 = vpop.eup %9492  ;;  %3046 = vadd.xlane.f32.xlu1 %v3045_v23 }
0x13f1   : > { %v3048_v25 = vsel %vm1431_vm5, %v9493_v33, 0.0 }
0x13f2   : > { %3049 = vadd.xlane.f32.xlu0 %v3048_v25 }
0x1429   : > { %v3262_v35 = vpop.f32.mrb[64].mxu1 }
0x142a   : > { %v8819_v52 = vpop.f32.mrb[65].mxu1  ;;  %v3263_v37 = vadd.f32 %v8041_v60, %v3262_v35  ;;  %v9395_v60 = vld [vmem:[%s11173_s25 + $0x10] sm:$0xff]  }
0x142b   : > { %v3265_v56 = vpop.f32.mrb[66].mxu1 }
0x142c   : > { %v8820_v36 = vpop.f32.mrb[67].mxu1  ;;  %v3344_v55 = vpack.c.bf16 %v3263_v37, %v3263_v37 }
0x142e   : > { %v3349_v38 = vsel %vm1857_vm9, %v3344_v55, 0 }
0x142f   : > { %8828 = vmatpush3.bf16.msra.mxu1 %v3349_v38 }
0x1430   : > { %8839 = vmatprep.subr.bf16.mxu1 %v9716_v5 }
0x147d   : > { %v3047_v57 = vpop.xlane.xlu1 %3046 }
0x147e   : > { %9494 = vrcp.f32 %v3047_v57  ;;  %v2771_v57 = vld [vmem:[%s11175_s26 + $0x4] sm:$0xf] }
0x147f   : > { %v3050_v39 = vpop.xlane.xlu0 %3049 }
0x1480   : > { %9496 = vrcp.f32 %v3050_v39  ;;  %v3397_v39 = vsel %vm1857_vm9, %v2771_v57, 0 }
0x1488   : > { %v9495_v41 = vpop.eup %9494 }
0x1489   : > { %v3053_v44 = vmul.f32 %v9495_v41, %v9491_v32 }
0x148a   : > { %v9497_v43 = vpop.eup %9496 }
0x148b   : > { %v3054_v45 = vmul.f32 %v9497_v43, %v9493_v33 }
0x148d   : > { %v3055_v48 = vpack.c.bf16 %v3054_v45, %v3053_v44 }
0x148f   : > { %8798 = vmatmul.mubr.msk.bf16.vlgmr.msra.gmra.mrb[52].mxu0 %vm1431_vm5, %v3055_v48 }
0x1490   : > { %8810 = vmatpush3.bf16.msra.mxu0 %v9390_v46  ;;  %8811 = vmatprep.mubr.msk.bf16.mxu0 %vm9717_vm0, %v9716_v5  ;;  %v2770_v46 = vld [vmem:[%s11175_s26] sm:$0xf] }
0x1491   : > { %8821 = vmatprep.subr.bf16.mxu0 %v9716_v5 }
0x1497   : > { %8812 = vmatmul.mubr.msk.bf16.vlgmr.msra.gmra.mrb[56].mxu0 %vm1485_vm6, %v10246_v42 }
0x1498   : > { %8823 = vmatprep.mubr.msk.bf16.mxu0 %vm9717_vm0, %v9716_v5 }
0x1562   : > { %v10330_v49 = vpop.f32.mrb[52].mxu0 }
0x1563   : > { %v8799_v50 = vpop.f32.mrb[53].mxu0 }
0x1564   : > { %v10332_v58 = vpop.f32.mrb[54].mxu0 }
0x1565   : > { %v3104_v59 = vpack.c.bf16 %v10332_v58, %v10330_v49  ;;  %v8800_v0 = vpop.f32.mrb[55].mxu0  ;;  %v9393_v49 = vld [vmem:[%s11167_s16 + $0x20] sm:$0xff]  }
0x156a   : > { %v3210_v1 = vpop.f32.mrb[56].mxu0 }
0x156b   : > { %v3211_v3 = vadd.f32 %v8038_v61, %v3210_v1  ;;  %v8813_v4 = vpop.f32.mrb[57].mxu0  ;;  %v3444_v61 = vsel %vm1857_vm9, %v2770_v46, 0  ;;  %v9392_v1 = vld [vmem:[%s9824_s20 + $0x10] sm:$0xff]  }
0x156c   : > { %v3213_v6 = vpop.f32.mrb[58].mxu0 }
0x156d   : > { %v3269_v7 = vpack.c.bf16 %v3211_v3, %v3211_v3  ;;  %v8814_v8 = vpop.f32.mrb[59].mxu0 }
0x156f   : > { %v3274_v10 = vsel %vm1431_vm5, %v3269_v7, 0  ;;  %v9394_v7 = vld [vmem:[%s11167_s16 + $0x28] sm:$0xff]  }
0x1570   : > { %8822 = vmatpush3.bf16.xpose.msra.mxu0 %v3274_v10 }
0x1571   : > { %8833 = vmatprep.subr.bf16.mxu0 %v9716_v5 }
0x1577   : > { %8824 = vmatmul.mubr.msk.bf16.vlgmr.msra.gmra.mrb[60].mxu0 %vm1431_vm5, %v3268_v24 }
0x1578   : > { %8835 = vmatprep.mubr.msk.bf16.mxu0 %vm9717_vm0, %v9716_v5  ;;  %8834 = vmatpush3.bf16.msra.mxu0 %v3397_v39 }
0x1579   : > { %8845 = vmatprep.subr.bf16.mxu0 %v9716_v5 }
0x164a   : > { %v3310_v12 = vpop.f32.mrb[60].mxu0 }
0x164b   : > { %v3317_v13 = vmul.f32 0.35355338, %v3310_v12  ;;  %v8825_v14 = vpop.f32.mrb[61].mxu0 }
0x164c   : > { %v3313_v15 = vpop.f32.mrb[62].mxu0 }
0x164d   : > { %v3318_v16 = vmul.f32 0.35355338, %v3313_v15  ;;  %v8826_v17 = vpop.f32.mrb[63].mxu0  ;;  %v3319_v18 = vsel %vm3029_vm14, %v3317_v13, -1e+30 }
0x164e   : > { %v3321_v19 = vsel %vm1431_vm5, %v3319_v18, -inf  ;;  %v8052_v13 = vld [vmem:[%s11170_s13 + $0x2] ss:$0 sm:$0xff] }
0x164f   : > { %3322 = vmax.xlane.f32.xlu1 %v3321_v19  ;;  %v3320_v9 = vsel %vm3030_vm15, %v3318_v16, -1e+30 }
0x1650   : > { %v3324_v24 = vsel %vm1431_vm5, %v3320_v9, -inf }
0x1651   : > { %3325 = vmax.xlane.f32.xlu0 %v3324_v24 }
0x16dc   : > { %v3323_v26 = vpop.xlane.xlu1 %3322 }
0x16dd   : > { %v3327_v27 = vsub.f32 %v3319_v18, %v3323_v26 }
0x16de   : > { %v3326_v28 = vpop.xlane.xlu0 %3325 }
0x16df   : > { %v3329_v29 = vmul.f32 1.442695, %v3327_v27  ;;  %v3328_v30 = vsub.f32 %v3320_v9, %v3326_v28 }
0x16e1   : > { %9498 = vpow2.f32 %v3329_v29  ;;  %v3331_v31 = vmul.f32 1.442695, %v3328_v30 }
0x16e3   : > { %9500 = vpow2.f32 %v3331_v31  ;;  %v8048_v31 = vld [vmem:[%s11171_s17 + $0x2] ss:$0 sm:$0xff] }
0x16eb   : > { %v9499_v32 = vpop.eup %9498 }
0x16ec   : > { %v3333_v23 = vsel %vm1431_vm5, %v9499_v32, 0.0 }
0x16ed   : > { %v9501_v33 = vpop.eup %9500  ;;  %3334 = vadd.xlane.f32.xlu1 %v3333_v23 }
0x16ee   : > { %v3336_v25 = vsel %vm1431_vm5, %v9501_v33, 0.0 }
0x16ef   : > { %3337 = vadd.xlane.f32.xlu0 %v3336_v25 }
0x177a   : > { %v3335_v41 = vpop.xlane.xlu1 %3334 }
0x177b   : > { %9502 = vrcp.f32 %v3335_v41 }
0x177c   : > { %v3338_v43 = vpop.xlane.xlu0 %3337 }
0x177d   : > { %9504 = vrcp.f32 %v3338_v43 }
0x1785   : > { %v9503_v44 = vpop.eup %9502 }
0x1786   : > { %v3341_v48 = vmul.f32 %v9503_v44, %v9499_v32 }
0x1787   : > { %v9505_v45 = vpop.eup %9504 }
0x1788   : > { %v3342_v50 = vmul.f32 %v9505_v45, %v9501_v33 }
0x178a   : > { %v3343_v0 = vpack.c.bf16 %v3342_v50, %v3341_v48 }
0x178c   : > { %8830 = vmatmul.mubr.msk.bf16.vlgmr.msra.gmra.mrb[68].mxu1 %vm1431_vm5, %v3343_v0 }
0x178d   : > { %8840 = vmatpush3.bf16.msra.mxu1 %v3444_v61  ;;  %8841 = vmatprep.mubr.msk.bf16.mxu1 %vm9717_vm0, %v9716_v5 }
0x178e   : > { %8853 = vmatprep.subr.bf16.mxu1 %v9716_v5 }
0x1794   : > { %8842 = vmatmul.mubr.msk.bf16.vlgmr.msra.gmra.mrb[72].mxu1 %vm1431_vm5, %v3104_v59 }
0x1795   : > { %8855 = vmatprep.mubr.msk.bf16.mxu1 %vm9717_vm0, %v9716_v5  ;;  %8854 = vmatpush3.bf16.msra.mxu1 %v9392_v1 }
0x1796   : > { %8865 = vmatprep.subr.bf16.mxu1 %v9716_v5 }
0x179c   : > { %8856 = vmatmul.mubr.msk.bf16.vlgmr.msra.gmra.mrb[76].mxu1 %vm1485_vm6, %v10246_v42 }
0x179d   : > { %8867 = vmatprep.mubr.msk.bf16.mxu1 %vm9717_vm0, %v9716_v5 }
0x185f   : > { %v3385_v3 = vpop.f32.mrb[68].mxu1 }
0x1860   : > { %v8831_v4 = vpop.f32.mrb[69].mxu1 }
0x1861   : > { %v3388_v6 = vpop.f32.mrb[70].mxu1 }
0x1862   : > { %v3392_v58 = vpack.c.bf16 %v3388_v6, %v3385_v3  ;;  %v8832_v59 = vpop.f32.mrb[71].mxu1 }
0x1864   : > { %8836 = vmatmul.mubr.msk.bf16.vlgmr.msra.gmra.mrb[64].mxu0 %vm1431_vm5, %v3392_v58 }
0x1865   : > { %8846 = vmatpush3.bf16.msra.mxu0 %v9393_v49  ;;  %8849 = vmatprep.mubr.msk.bf16.mxu0 %vm9717_vm0, %v9716_v5 }
0x1866   : > { %8847 = vmatprep.subr.bf16.mxu0 %v9716_v5 }
0x1867   : > { %v3480_v8 = vpop.f32.mrb[72].mxu1 }
0x1868   : > { %v8843_v10 = vpop.f32.mrb[73].mxu1 }
0x1869   : > { %v3483_v11 = vpop.f32.mrb[74].mxu1  ;;  %8848 = vmatpush3.bf16.msra.mxu0 %v9394_v7 }
0x186a   : > { %v8844_v12 = vpop.f32.mrb[75].mxu1  ;;  %8859 = vmatprep.subr.bf16.mxu0 %v9716_v5 }
0x186c   : > { %8850 = vmatmul.mubr.msk.bf16.vlgmr.msra.gmra.mrb[68].mxu0 %vm1266_vm4, %v10270_v34 }
0x186d   : > { %8861 = vmatprep.mubr.msk.bf16.mxu0 %vm9717_vm0, %v9716_v5  ;;  %8860 = vmatpush3.bf16.msra.mxu0 %v9395_v60 }
0x186e   : > { %8871 = vmatprep.subr.bf16.mxu0 %v9716_v5 }
0x186f   : > { %v3592_v14 = vpop.f32.mrb[76].mxu1 }
0x1870   : > { %v3593_v15 = vadd.f32 %v8052_v13, %v3592_v14  ;;  %v8857_v16 = vpop.f32.mrb[77].mxu1  ;;  %v2772_v14 = vld [vmem:[%s11175_s26 + $0x8] sm:$0xf] }
0x1871   : > { %v3595_v17 = vpop.f32.mrb[78].mxu1 }
0x1872   : > { %v3651_v18 = vpack.c.bf16 %v3593_v15, %v3593_v15  ;;  %v8858_v19 = vpop.f32.mrb[79].mxu1  ;;  %v3779_v15 = vsel %vm1857_vm9, %v2772_v14, 0 }
0x1874   : > { %v3656_v9 = vsel %vm1431_vm5, %v3651_v18, 0  ;;  %8862 = vmatmul.mubr.msk.bf16.vlgmr.msra.gmra.mrb[72].mxu0 %vm1485_vm6, %v10296_v62 }
0x1875   : > { %8866 = vmatpush3.bf16.xpose.msra.mxu1 %v3656_v9  ;;  %8873 = vmatprep.mubr.msk.bf16.mxu0 %vm9717_vm0, %v9716_v5 }
0x1876   : > { %8877 = vmatprep.subr.bf16.mxu1 %v9716_v5 }
0x1937   : > { %v3433_v24 = vpop.f32.mrb[64].mxu0 }
0x1938   : > { %v10394_v26 = vadd.f32 %v3480_v8, %v3433_v24  ;;  %v8837_v27 = vpop.f32.mrb[65].mxu0  ;;  %v8055_v8 = vld [vmem:[%s11174_s21 + $0x2] ss:$0 sm:$0xff] }
0x1939   : > { %v3436_v28 = vpop.f32.mrb[66].mxu0  ;;  %v9396_v27 = vld [vmem:[%s11167_s16 + $0x30] sm:$0xff]  }
0x193a   : > { %v10396_v29 = vadd.f32 %v3483_v11, %v3436_v28  ;;  %v8838_v30 = vpop.f32.mrb[67].mxu0 }
0x193b   : > { %v9397_v30 = vld [vmem:[%s11167_s16 + $0x38] sm:$0xff]  }
0x193f   : > { %v3539_v32 = vpop.f32.mrb[68].mxu0 }
0x1940   : > { %v8851_v23 = vpop.f32.mrb[69].mxu0  ;;  %v3540_v25 = vadd.f32 %v8048_v31, %v3539_v32 }
0x1941   : > { %v3542_v33 = vpop.f32.mrb[70].mxu0 }
0x1942   : > { %v3543_v35 = vadd.f32 %v8048_v31, %v3542_v33  ;;  %v8852_v52 = vpop.f32.mrb[71].mxu0  ;;  %v9398_v33 = vld [vmem:[%s9824_s20 + $0x18] sm:$0xff]  }
0x1943   : > { %v8061_v52 = vld [vmem:[%s11171_s17 + $0x3] ss:$0 sm:$0xff] }
0x1944   : > { %v3650_v56 = vpack.c.bf16 %v3543_v35, %v3540_v25 }
0x1946   : > { %8868 = vmatmul.mubr.msk.bf16.vlgmr.msra.gmra.mrb[80].mxu1 %vm1431_vm5, %v3650_v56 }
0x1947   : > { %8879 = vmatprep.mubr.msk.bf16.mxu1 %vm9717_vm0, %v9716_v5  ;;  %v3644_v58 = vpop.f32.mrb[72].mxu0  ;;  %8878 = vmatpush3.bf16.msra.mxu1 %v3779_v15 }
0x1948   : > { %v8863_v59 = vpop.f32.mrb[73].mxu0  ;;  %v3645_v11 = vadd.f32 %v8055_v8, %v3644_v58  ;;  %8891 = vmatprep.subr.bf16.mxu1 %v9716_v5 }
0x1949   : > { %v3647_v7 = vpop.f32.mrb[74].mxu0 }
0x194a   : > { %v8864_v10 = vpop.f32.mrb[75].mxu0  ;;  %v3726_v12 = vpack.c.bf16 %v3645_v11, %v3645_v11 }
0x194c   : > { %v3731_v13 = vsel %vm1857_vm9, %v3726_v12, 0 }
0x194d   : > { %8872 = vmatpush3.bf16.msra.mxu0 %v3731_v13 }
0x194e   : > { %8883 = vmatprep.subr.bf16.mxu0 %v9716_v5 }
0x1a19   : > { %v3692_v36 = vpop.f32.mrb[80].mxu1 }
0x1a1a   : > { %v3699_v37 = vmul.f32 0.35355338, %v3692_v36  ;;  %v8869_v55 = vpop.f32.mrb[81].mxu1 }
0x1a1b   : > { %v3695_v38 = vpop.f32.mrb[82].mxu1 }
0x1a1c   : > { %v3700_v57 = vmul.f32 0.35355338, %v3695_v38  ;;  %v8870_v39 = vpop.f32.mrb[83].mxu1  ;;  %v3701_v41 = vsel %vm3029_vm14, %v3699_v37, -1e+30 }
0x1a1d   : > { %v3703_v43 = vsel %vm1431_vm5, %v3701_v41, -inf }
0x1a1e   : > { %3704 = vmax.xlane.f32.xlu1 %v3703_v43  ;;  %v3702_v44 = vsel %vm3030_vm15, %v3700_v57, -1e+30 }
0x1a1f   : > { %v3706_v45 = vsel %vm1431_vm5, %v3702_v44, -inf }
0x1a20   : > { %3707 = vmax.xlane.f32.xlu0 %v3706_v45 }
0x1aab   : > { %v3705_v46 = vpop.xlane.xlu1 %3704 }
0x1aac   : > { %v3709_v48 = vsub.f32 %v3701_v41, %v3705_v46  ;;  %v8065_v46 = vld [vmem:[%s11170_s13 + $0x3] ss:$0 sm:$0xff] }
0x1aad   : > { %v3708_v50 = vpop.xlane.xlu0 %3707 }
0x1aae   : > { %v3711_v0 = vmul.f32 1.442695, %v3709_v48  ;;  %v3710_v61 = vsub.f32 %v3702_v44, %v3708_v50 }
0x1ab0   : > { %9506 = vpow2.f32 %v3711_v0  ;;  %v3713_v1 = vmul.f32 1.442695, %v3710_v61 }
0x1ab2   : > { %9508 = vpow2.f32 %v3713_v1 }
0x1aba   : > { %v9507_v3 = vpop.eup %9506 }
0x1abb   : > { %v3715_v4 = vsel %vm1431_vm5, %v9507_v3, 0.0 }
0x1abc   : > { %v9509_v6 = vpop.eup %9508  ;;  %3716 = vadd.xlane.f32.xlu1 %v3715_v4 }
0x1abd   : > { %v3718_v49 = vsel %vm1431_vm5, %v9509_v6, 0.0 }
0x1abe   : > { %3719 = vadd.xlane.f32.xlu0 %v3718_v49 }
0x1b49   : > { %v3717_v16 = vpop.xlane.xlu1 %3716 }
0x1b4a   : > { %9510 = vrcp.f32 %v3717_v16 }
0x1b4b   : > { %v3720_v17 = vpop.xlane.xlu0 %3719 }
0x1b4c   : > { %9512 = vrcp.f32 %v3720_v17 }
0x1b54   : > { %v9511_v18 = vpop.eup %9510 }
0x1b55   : > { %v3723_v9 = vmul.f32 %v9511_v18, %v9507_v3 }
0x1b56   : > { %v9513_v19 = vpop.eup %9512 }
0x1b57   : > { %v3724_v24 = vmul.f32 %v9513_v19, %v9509_v6 }
0x1b59   : > { %v3725_v28 = vpack.c.bf16 %v3724_v24, %v3723_v9 }
0x1b5b   : > { %8874 = vmatmul.mubr.msk.bf16.vlgmr.msra.gmra.mrb[76].mxu0 %vm1431_vm5, %v3725_v28 }
0x1b5c   : > { %8884 = vmatpush3.bf16.msra.mxu0 %v9396_v27  ;;  %8887 = vmatprep.mubr.msk.bf16.mxu0 %vm9717_vm0, %v9716_v5 }
0x1b5d   : > { %8885 = vmatprep.subr.bf16.mxu0 %v9716_v5 }
0x1b60   : > { %8886 = vmatpush3.bf16.msra.mxu0 %v9397_v30 }
0x1b61   : > { %8897 = vmatprep.subr.bf16.mxu0 %v9716_v5 }
0x1b63   : > { %8888 = vmatmul.mubr.msk.bf16.vlgmr.msra.gmra.mrb[80].mxu0 %vm1266_vm4, %v10270_v34 }
0x1b64   : > { %8899 = vmatprep.mubr.msk.bf16.mxu0 %vm9717_vm0, %v9716_v5 }
0x1c2e   : > { %v3767_v31 = vpop.f32.mrb[76].mxu0 }
0x1c2f   : > { %v8875_v32 = vpop.f32.mrb[77].mxu0 }
0x1c30   : > { %v3770_v23 = vpop.f32.mrb[78].mxu0  ;;  %v8068_v32 = vld [vmem:[%s11174_s21 + $0x3] ss:$0 sm:$0xff] }
0x1c31   : > { %v3774_v25 = vpack.c.bf16 %v3770_v23, %v3767_v31  ;;  %v8876_v35 = vpop.f32.mrb[79].mxu0 }
0x1c33   : > { %8880 = vmatmul.mubr.msk.bf16.vlgmr.msra.gmra.mrb[84].mxu1 %vm1431_vm5, %v3774_v25 }
0x1c34   : > { %8892 = vmatpush3.bf16.msra.mxu1 %v9398_v33  ;;  %8893 = vmatprep.mubr.msk.bf16.mxu1 %vm9717_vm0, %v9716_v5 }
0x1c35   : > { %8903 = vmatprep.subr.bf16.mxu1 %v9716_v5 }
0x1c36   : > { %v3876_v34 = vpop.f32.mrb[80].mxu0 }
0x1c37   : > { %v8889_v56 = vpop.f32.mrb[81].mxu0  ;;  %v3877_v36 = vadd.f32 %v8061_v52, %v3876_v34 }
0x1c38   : > { %v3879_v60 = vpop.f32.mrb[82].mxu0 }
0x1c39   : > { %v3880_v37 = vadd.f32 %v8061_v52, %v3879_v60  ;;  %v8890_v55 = vpop.f32.mrb[83].mxu0  ;;  %v2773_v52 = vld [vmem:[%s11175_s26 + $0xc] sm:$0xf] }
0x1c3a   : > { %v4116_v34 = vsel %vm1857_vm9, %v2773_v52, 0 }
0x1c3b   : > { %v3987_v38 = vpack.c.bf16 %v3880_v37, %v3877_v36  ;;  %8894 = vmatmul.mubr.msk.bf16.vlgmr.msra.gmra.mrb[88].mxu1 %vm1485_vm6, %v10246_v42 }
0x1c3c   : > { %8905 = vmatprep.mubr.msk.bf16.mxu1 %vm9717_vm0, %v9716_v5 }
0x1d06   : > { %v3815_v57 = vpop.f32.mrb[84].mxu1 }
0x1d07   : > { %v10444_v39 = vadd.f32 %v3815_v57, %v10394_v26  ;;  %v8881_v41 = vpop.f32.mrb[85].mxu1  ;;  %v9399_v26 = vld [vmem:[%s11173_s25 + $0x18] sm:$0xff]  }
0x1d08   : > { %v3818_v43 = vpop.f32.mrb[86].mxu1  ;;  %8898 = vmatpush3.bf16.msra.mxu0 %v9399_v26 }
0x1d09   : > { %v10447_v44 = vadd.f32 %v3818_v43, %v10396_v29  ;;  %v8882_v45 = vpop.f32.mrb[87].mxu1  ;;  %8909 = vmatprep.subr.bf16.mxu0 %v9716_v5 }
0x1d0b   : > { %8900 = vmatmul.mubr.msk.bf16.vlgmr.msra.gmra.mrb[84].mxu0 %vm1485_vm6, %v10296_v62 }
0x1d0c   : > { %8911 = vmatprep.mubr.msk.bf16.mxu0 %vm9717_vm0, %v9716_v5 }
0x1d0e   : > { %v3929_v48 = vpop.f32.mrb[88].mxu1 }
0x1d0f   : > { %v3930_v50 = vadd.f32 %v8065_v46, %v3929_v48  ;;  %v8895_v0 = vpop.f32.mrb[89].mxu1 }
0x1d10   : > { %v3932_v61 = vpop.f32.mrb[90].mxu1 }
0x1d11   : > { %v3988_v1 = vpack.c.bf16 %v3930_v50, %v3930_v50  ;;  %v8896_v3 = vpop.f32.mrb[91].mxu1  ;;  %v8074_v50 = vld [vmem:[%s11176_s2] ss:$0 sm:$0xff] }
0x1d13   : > { %v3993_v4 = vsel %vm1431_vm5, %v3988_v1, 0 }
0x1d14   : > { %8904 = vmatpush3.bf16.xpose.msra.mxu1 %v3993_v4 }
0x1d15   : > { %8915 = vmatprep.subr.bf16.mxu1 %v9716_v5 }
0x1d1b   : > { %8906 = vmatmul.mubr.msk.bf16.vlgmr.msra.gmra.mrb[92].mxu1 %vm1431_vm5, %v3987_v38 }
0x1d1c   : > { %8917 = vmatprep.mubr.msk.bf16.mxu1 %vm9717_vm0, %v9716_v5  ;;  %8916 = vmatpush3.bf16.msra.mxu1 %v4116_v34 }
0x1d1d   : > { %8929 = vmatprep.subr.bf16.mxu1 %v9716_v5 }
0x1dde   : > { %v3981_v28 = vpop.f32.mrb[84].mxu0 }
0x1ddf   : > { %v8901_v30 = vpop.f32.mrb[85].mxu0  ;;  %v3982_v33 = vadd.f32 %v8068_v32, %v3981_v28  ;;  %v9402_v32 = vld [vmem:[%s11178_s11] sm:$0xff]   ;;  %s11183_s11 = sld [smem:[#allocation28_spill]] }
0x1de0   : > { %v3984_v31 = vpop.f32.mrb[86].mxu0  ;;  %v9400_v30 = vld [vmem:[%s11177_s22] sm:$0xff]  }
0x1de1   : > { %v8902_v23 = vpop.f32.mrb[87].mxu0  ;;  %v4063_v25 = vpack.c.bf16 %v3982_v33, %v3982_v33  ;;  %v9401_v31 = vld [vmem:[%s11177_s22 + $0x8] sm:$0xff]  }
0x1de2   : > { %v9403_v23 = vld [vmem:[%s11179_s18 + $0x8] sm:$0xff]  }
0x1de3   : > { %v4068_v35 = vsel %vm1857_vm9, %v4063_v25, 0 }
0x1de4   : > { %8910 = vmatpush3.bf16.msra.mxu0 %v4068_v35 }
0x1de5   : > { %8921 = vmatprep.subr.bf16.mxu0 %v9716_v5  ;;  %s11184_s4 = smov %s11183_s11 }
0x1dee   : > { %v4029_v29 = vpop.f32.mrb[92].mxu1 }
0x1def   : > { %v4036_v6 = vmul.f32 0.35355338, %v4029_v29  ;;  %v8907_v49 = vpop.f32.mrb[93].mxu1 }
0x1df0   : > { %v4032_v58 = vpop.f32.mrb[94].mxu1 }
0x1df1   : > { %v4037_v59 = vmul.f32 0.35355338, %v4032_v58  ;;  %v8908_v7 = vpop.f32.mrb[95].mxu1  ;;  %v4038_v8 = vsel %vm3029_vm14, %v4036_v6, -1e+30 }
0x1df2   : > { %v4040_v10 = vsel %vm1431_vm5, %v4038_v8, -inf }
0x1df3   : > { %4041 = vmax.xlane.f32.xlu1 %v4040_v10  ;;  %v4039_v11 = vsel %vm3030_vm15, %v4037_v59, -1e+30 }
0x1df4   : > { %v4043_v12 = vsel %vm1431_vm5, %v4039_v11, -inf }
0x1df5   : > { %4044 = vmax.xlane.f32.xlu0 %v4043_v12 }
0x1e80   : > { %v4042_v13 = vpop.xlane.xlu1 %4041 }
0x1e81   : > { %v4046_v14 = vsub.f32 %v4038_v8, %v4042_v13 }
0x1e82   : > { %v4045_v15 = vpop.xlane.xlu0 %4044 }
0x1e83   : > { %v4048_v16 = vmul.f32 1.442695, %v4046_v14  ;;  %v4047_v17 = vsub.f32 %v4039_v11, %v4045_v15 }
0x1e85   : > { %9514 = vpow2.f32 %v4048_v16  ;;  %v4050_v18 = vmul.f32 1.442695, %v4047_v17 }
0x1e87   : > { %9516 = vpow2.f32 %v4050_v18 }
0x1e8f   : > { %v9515_v19 = vpop.eup %9514 }
0x1e90   : > { %v4052_v9 = vsel %vm1431_vm5, %v9515_v19, 0.0 }
0x1e91   : > { %v9517_v24 = vpop.eup %9516  ;;  %4053 = vadd.xlane.f32.xlu1 %v4052_v9 }
0x1e92   : > { %v4055_v27 = vsel %vm1431_vm5, %v9517_v24, 0.0 }
0x1e93   : > { %4056 = vadd.xlane.f32.xlu0 %v4055_v27 }
0x1f1e   : > { %v4054_v56 = vpop.xlane.xlu1 %4053 }
0x1f1f   : > { %9518 = vrcp.f32 %v4054_v56 }
0x1f20   : > { %v4057_v60 = vpop.xlane.xlu0 %4056 }
0x1f21   : > { %9520 = vrcp.f32 %v4057_v60 }
0x1f29   : > { %v9519_v36 = vpop.eup %9518 }
0x1f2a   : > { %v4060_v55 = vmul.f32 %v9519_v36, %v9515_v19 }
0x1f2b   : > { %v9521_v37 = vpop.eup %9520 }
0x1f2c   : > { %v4061_v38 = vmul.f32 %v9521_v37, %v9517_v24 }
0x1f2e   : > { %v4062_v57 = vpack.c.bf16 %v4061_v38, %v4060_v55  ;;  %v8075_v38 = vld [vmem:[%s11180_s1] ss:$0 sm:$0xff] }
0x1f30   : > { %8912 = vmatmul.mubr.msk.bf16.vlgmr.msra.gmra.mrb[88].mxu0 %vm1431_vm5, %v4062_v57 }
0x1f31   : > { %8925 = vmatprep.mubr.msk.bf16.mxu0 %vm9717_vm0, %v9716_v5  ;;  %8922 = vmatpush3.bf16.msra.mxu0 %v9400_v30 }
0x1f32   : > { %8923 = vmatprep.subr.bf16.mxu0 %v9716_v5 }
0x1f35   : > { %8924 = vmatpush3.bf16.msra.mxu0 %v9401_v31 }
0x1f36   : > { %8941 = vmatprep.subr.bf16.mxu0 %v9716_v5 }
0x2003   : > { %v4104_v41 = vpop.f32.mrb[88].mxu0 }
0x2004   : > { %v8913_v43 = vpop.f32.mrb[89].mxu0 }
0x2005   : > { %v4107_v45 = vpop.f32.mrb[90].mxu0 }
0x2006   : > { %v4111_v46 = vpack.c.bf16 %v4107_v45, %v4104_v41  ;;  %v8914_v48 = vpop.f32.mrb[91].mxu0 }
0x2007   : > { %v8076_v48 = vld [vmem:[%s11181_s7] ss:$0 sm:$0xff]  ;;  %s1044_s7 = sand.u32 1, %s9672_s10  }
0x2008   : > { %8918 = vmatmul.mubr.msk.bf16.vlgmr.msra.gmra.mrb[96].mxu1 %vm1431_vm5, %v4111_v46 }
0x2009   : > { %8937 = vmatprep.mubr.msk.bf16.mxu1 %vm9717_vm0, %v9716_v5  ;;  %8930 = vmatpush3.bf16.msra.mxu1 %v9402_v32 }
0x200a   : > { %8931 = vmatprep.subr.bf16.mxu1 %v9716_v5 }
0x200d   : > { %8932 = vmatpush3.bf16.msra.mxu1 %v9403_v23 }
0x200e   : > { %8933 = vmatprep.subr.bf16.mxu1 %v9716_v5 }
0x20db   : > { %v4152_v0 = vpop.f32.mrb[96].mxu1 }
0x20dc   : > { %v4159_v61 = vadd.f32 %v4152_v0, %v10444_v39  ;;  %v8919_v1 = vpop.f32.mrb[97].mxu1 }
0x20dd   : > { %v4155_v3 = vpop.f32.mrb[98].mxu1 }
0x20de   : > { %v4167_v4 = vadd.f32 %v8074_v50, %v4159_v61  ;;  %v4160_v26 = vadd.f32 %v4155_v3, %v10447_v44  ;;  %v8920_v29 = vpop.f32.mrb[99].mxu1 }
0x20e0   : > { %v4173_v6 = vrot.slane %v4167_v4, 1  ;;  %v4168_v49 = vadd.f32 %v8074_v50, %v4160_v26 }
0x20e2   : > { %v4174_v58 = vrot.slane %v4168_v49, 1  ;;  %v4179_v59 = vadd.f32 %v4173_v6, %v10259_v20 }
0x20e4   : > { %v4182_v7 = vsel %vm2666_vm10, %v4179_v59, 0.0  ;;  %v4175_v8 = vsel %vm1091_vm1, %v4173_v6, %v4174_v58  ;;  %v4181_v10 = vadd.f32 %v4174_v58, %v10263_v22 }
0x20e5   : > { %4183 = vadd.xlane.f32.xlu1 %v4182_v7  ;;  %v4180_v39 = vadd.f32 %v4175_v8, %v10261_v21 }
0x20e6   : > { %v4188_v44 = vsel %vm2673_vm11, %v4181_v10, 0.0 }
0x20e7   : > { %v4185_v11 = vsel %vm1266_vm4, %v4180_v39, 0.0 }
0x20e8   : > { %4186 = vadd.xlane.f32.xlu0 %v4185_v11 }
0x20e9   : > { %4189 = vadd.xlane.f32.xlu1 %v4188_v44 }
0x2172   : > { %v4184_v12 = vpop.xlane.xlu1 %4183 }
0x2173   : > { %v4191_v13 = vmul.f32 0.03125, %v4184_v12 }
0x2175   : > { %v4194_v14 = vsub.f32 %v4179_v59, %v4191_v13  ;;  %v4187_v20 = vpop.xlane.xlu0 %4186  ;;  %v9404_v13 = vld [vmem:[%s11179_s18 + $0x10] sm:$0xff]  }
0x2176   : > { %v4192_v15 = vmul.f32 0.03125, %v4187_v20  ;;  %v4190_v16 = vpop.xlane.xlu1 %4189  ;;  %8934 = vmatpush3.bf16.msra.mxu1 %v9404_v13  ;;  %v8077_v20 = vld [vmem:[%s11183_s11] ss:$0 sm:$0xff]  ;;  %s11185_s11 = sld [smem:[#allocation31_spill]] }
0x2177   : > { %v4193_v17 = vmul.f32 0.03125, %v4190_v16  ;;  %v4197_v18 = vmul.f32 %v4194_v14, %v4194_v14  ;;  %8935 = vmatprep.subr.bf16.mxu1 %v9716_v5 }
0x2178   : > { %v4195_v22 = vsub.f32 %v4180_v39, %v4192_v15 }
0x2179   : > { %v4196_v19 = vsub.f32 %v4181_v10, %v4193_v17  ;;  %v4200_v21 = vsel %vm2666_vm10, %v4197_v18, 0.0 }
0x217a   : > { %4201 = vadd.xlane.f32.xlu0 %v4200_v21  ;;  %v4198_v9 = vmul.f32 %v4195_v22, %v4195_v22 }
0x217b   : > { %v4199_v24 = vmul.f32 %v4196_v19, %v4196_v19 }
0x217c   : > { %v4203_v27 = vsel %vm1266_vm4, %v4198_v9, 0.0 }
0x217d   : > { %4204 = vadd.xlane.f32.xlu1 %v4203_v27  ;;  %v4206_v28 = vsel %vm2673_vm11, %v4199_v24, 0.0  ;;  %v8081_v27 = vld [vmem:[%s11149_s9] ss:$0 sm:$0xff] }
0x217e   : > { %4207 = vadd.xlane.f32.xlu0 %v4206_v28 }
0x2207   : > { %v4202_v33 = vpop.xlane.xlu0 %4201 }
0x2208   : > { %v4209_v25 = vmul.f32 0.03125, %v4202_v33 }
0x220a   : > { %v4212_v35 = vadd.f32 1e-05, %v4209_v25  ;;  %v4205_v52 = vpop.xlane.xlu1 %4204 }
0x220b   : > { %v4210_v34 = vmul.f32 0.03125, %v4205_v52  ;;  %v4208_v56 = vpop.xlane.xlu0 %4207 }
0x220c   : > { %9522 = vrsqrt.f32 %v4212_v35  ;;  %v4211_v60 = vmul.f32 0.03125, %v4208_v56 }
0x220d   : > { %v4213_v36 = vadd.f32 1e-05, %v4210_v34 }
0x220e   : > { %v4214_v37 = vadd.f32 1e-05, %v4211_v60 }
0x220f   : > { %9524 = vrsqrt.f32 %v4213_v36 }
0x2210   : > { %9526 = vrsqrt.f32 %v4214_v37 }
0x2216   : > { %v9523_v55 = vpop.eup %9522 }
0x2217   : > { %v4218_v57 = vmul.f32 %v9523_v55, %v4194_v14  ;;  %v9405_v14 = vld [vmem:[%s11179_s18 + $0x18] sm:$0xff]  }
0x2218   : > { %8936 = vmatpush3.bf16.msra.mxu1 %v9405_v14 }
0x2219   : > { %v9525_v41 = vpop.eup %9524  ;;  %v4227_v45 = vmul.f32 %v8075_v38, %v4218_v57  ;;  %8957 = vmatprep.subr.bf16.mxu1 %v9716_v5 }
0x221a   : > { %v9527_v43 = vpop.eup %9526  ;;  %v4219_v46 = vmul.f32 %v9525_v41, %v4195_v22 }
0x221b   : > { %v4220_v50 = vmul.f32 %v9527_v43, %v4196_v19  ;;  %v4236_v1 = vadd.f32 %v8076_v48, %v4227_v45 }
0x221c   : > { %v4228_v0 = vmul.f32 %v8075_v38, %v4219_v46 }
0x221d   : > { %v4229_v61 = vmul.f32 %v8075_v38, %v4220_v50 }
0x221e   : > { %v4237_v3 = vadd.f32 %v8076_v48, %v4228_v0 }
0x221f   : > { %v4238_v4 = vadd.f32 %v8076_v48, %v4229_v61 }
0x2220   : > { %v4243_v26 = vpack.c.bf16 %v4237_v3, %v4236_v1 }
0x2221   : > { %v4244_v29 = vpack.c.bf16 %v4238_v4, %v4238_v4 }
0x2222   : > { %v4253_v6 = vshrl.u32 %v4243_v26, 16  ;;  %v4256_v49 = vshll.u32 %v4243_v26, 16 }
0x2223   : > { %v4261_v58 = vshrl.u32 %v4244_v29, 16  ;;  %v4264_v59 = vshll.u32 %v4244_v29, 16 }
0x2224   : > { %v4255_v7 = vrot.slane %v4253_v6, 3  ;;  %v4258_v8 = vrot.slane %v4256_v49, 4  ;;  %v9406_v6 = vld [vmem:[%s11152_s3 + $0x40] sm:$0xff]  }
0x2225   : > { %v4263_v10 = vrot.slane %v4261_v58, 3  ;;  %v4266_v39 = vrot.slane %v4264_v59, 4  ;;  %v9407_v49 = vld [vmem:[%s9784_s24 + $0x40] sm:$0xff]   ;;  %v9408_v58 = vld [vmem:[%s11152_s3 + $0x48] sm:$0xff]  }
0x2226   : > { %v4259_v11 = vor.u32 %v4258_v8, %v4255_v7  ;;  %v9409_v59 = vld [vmem:[%s9784_s24 + $0x48] sm:$0xff]  }
0x2227   : > { %v4267_v44 = vor.u32 %v4266_v39, %v4263_v10 }
0x2229   : > { %v4268_v12 = vsel %vm1236_vm3, %v4259_v11, %v4267_v44 }
0x222a   : > { %8926 = vmatmul.mubr.msk.bf16.vlgmr.msra.gmra.mrb[92].mxu0 %vm1266_vm4, %v4268_v12 }
0x222b   : > { %8945 = vmatprep.mubr.msk.bf16.mxu0 %vm9717_vm0, %v9716_v5  ;;  %8942 = vmatpush3.bf16.msra.mxu0 %v9406_v6 }
0x222c   : > { %8943 = vmatprep.subr.bf16.mxu0 %v9716_v5 }
0x222f   : > { %8944 = vmatpush3.bf16.msra.mxu0 %v9408_v58 }
0x2230   : > { %8949 = vmatprep.subr.bf16.mxu0 %v9716_v5 }
0x22fd   : > { %v4318_v15 = vpop.f32.mrb[92].mxu0 }
0x22fe   : > { %v4319_v16 = vadd.f32 %v8077_v20, %v4318_v15  ;;  %v8927_v17 = vpop.f32.mrb[93].mxu0  ;;  %v8087_v15 = vld [vmem:[%s9884_s29] ss:$0 sm:$0xff] }
0x22ff   : > { %v4321_v18 = vpop.f32.mrb[94].mxu0 }
0x2300   : > { %v4322_v22 = vadd.f32 %v8077_v20, %v4321_v18  ;;  %v8928_v19 = vpop.f32.mrb[95].mxu0  ;;  %v4325_v21 = vmax.f32 %v4319_v16, 0.0  ;;  %v8088_v18 = vld [vmem:[%s9889_s27] ss:$0 sm:$0xff] }
0x2302   : > { %v4326_v9 = vmax.f32 %v4322_v22, 0.0 }
0x2304   : > { %v4335_v24 = vpack.c.bf16 %v4326_v9, %v4325_v21 }
0x2306   : > { %8938 = vmatmul.mubr.msk.bf16.vlgmr.msra.gmra.mrb[100].mxu1 %vm4367_vm2, %v4335_v24 }
0x2307   : > { %8961 = vmatprep.mubr.msk.bf16.mxu1 %vm9717_vm0, %v9716_v5  ;;  %8958 = vmatpush3.bf16.msra.mxu1 %v9407_v49 }
0x2308   : > { %8959 = vmatprep.subr.bf16.mxu1 %v9716_v5 }
0x230b   : > { %8960 = vmatpush3.bf16.msra.mxu1 %v9409_v59 }
0x230c   : > { %8971 = vmatprep.subr.bf16.mxu1 %v9716_v5 }
0x23d9   : > { %v4405_v28 = vpop.f32.mrb[100].mxu1 }
0x23da   : > { %v4406_v30 = vadd.f32 %v8081_v27, %v4405_v28  ;;  %v8939_v31 = vpop.f32.mrb[101].mxu1 }
0x23db   : > { %v4408_v32 = vpop.f32.mrb[102].mxu1 }
0x23dc   : > { %v4416_v23 = vrot.slane %v4406_v30, 1  ;;  %v4409_v33 = vadd.f32 %v8081_v27, %v4408_v32  ;;  %v8940_v25 = vpop.f32.mrb[103].mxu1 }
0x23de   : > { %v4417_v35 = vrot.slane %v4409_v33, 1  ;;  %v4422_v52 = vadd.f32 %v4416_v23, %v4236_v1 }
0x23e0   : > { %v4425_v34 = vsel %vm2666_vm10, %v4422_v52, 0.0  ;;  %v4418_v56 = vsel %vm1091_vm1, %v4416_v23, %v4417_v35  ;;  %v4424_v60 = vadd.f32 %v4417_v35, %v4238_v4 }
0x23e1   : > { %4426 = vadd.xlane.f32.xlu1 %v4425_v34  ;;  %v4423_v36 = vadd.f32 %v4418_v56, %v4237_v3 }
0x23e2   : > { %v4431_v55 = vsel %vm2673_vm11, %v4424_v60, 0.0 }
0x23e3   : > { %v4428_v37 = vsel %vm1266_vm4, %v4423_v36, 0.0 }
0x23e4   : > { %4429 = vadd.xlane.f32.xlu0 %v4428_v37 }
0x23e5   : > { %4432 = vadd.xlane.f32.xlu1 %v4431_v55 }
0x246e   : > { %v4427_v38 = vpop.xlane.xlu1 %4426 }
0x246f   : > { %v4434_v57 = vmul.f32 0.03125, %v4427_v38 }
0x2471   : > { %v4437_v41 = vsub.f32 %v4422_v52, %v4434_v57  ;;  %v4430_v43 = vpop.xlane.xlu0 %4429 }
0x2472   : > { %v4435_v45 = vmul.f32 0.03125, %v4430_v43  ;;  %v4433_v46 = vpop.xlane.xlu1 %4432  ;;  %v9410_v43 = vld [vmem:[%s9774_s14 + $0x40] sm:$0xff]  }
0x2473   : > { %v4436_v48 = vmul.f32 0.03125, %v4433_v46  ;;  %v4440_v50 = vmul.f32 %v4437_v41, %v4437_v41  ;;  %v9411_v46 = vld [vmem:[%s9774_s14 + $0x48] sm:$0xff]  }
0x2474   : > { %v4438_v0 = vsub.f32 %v4423_v36, %v4435_v45 }
0x2475   : > { %v4439_v61 = vsub.f32 %v4424_v60, %v4436_v48  ;;  %v4443_v1 = vsel %vm2666_vm10, %v4440_v50, 0.0  ;;  %v8154_v48 = vld [vmem:[%s11150_s8 + $0x4] ss:$0 sm:$0xff] }
0x2476   : > { %4444 = vadd.xlane.f32.xlu0 %v4443_v1  ;;  %v4441_v3 = vmul.f32 %v4438_v0, %v4438_v0 }
0x2477   : > { %v4442_v4 = vmul.f32 %v4439_v61, %v4439_v61 }
0x2478   : > { %v4446_v26 = vsel %vm1266_vm4, %v4441_v3, 0.0 }
0x2479   : > { %4447 = vadd.xlane.f32.xlu1 %v4446_v26  ;;  %v4449_v29 = vsel %vm2673_vm11, %v4442_v4, 0.0 }
0x247a   : > { %4450 = vadd.xlane.f32.xlu0 %v4449_v29 }
0x2503   : > { %v4445_v7 = vpop.xlane.xlu0 %4444 }
0x2504   : > { %v4452_v8 = vmul.f32 0.03125, %v4445_v7 }
0x2506   : > { %v4455_v10 = vadd.f32 1e-05, %v4452_v8  ;;  %v4448_v39 = vpop.xlane.xlu1 %4447 }
0x2507   : > { %v4453_v11 = vmul.f32 0.03125, %v4448_v39  ;;  %v4451_v44 = vpop.xlane.xlu0 %4450  ;;  %v8158_v39 = vld [vmem:[%s9779_s19 + $0x4] ss:$0 sm:$0xff] }
0x2508   : > { %9528 = vrsqrt.f32 %v4455_v10  ;;  %v4454_v12 = vmul.f32 0.03125, %v4451_v44 }
0x2509   : > { %v4456_v13 = vadd.f32 1e-05, %v4453_v11 }
0x250a   : > { %v4457_v14 = vadd.f32 1e-05, %v4454_v12 }
0x250b   : > { %9530 = vrsqrt.f32 %v4456_v13 }
0x250c   : > { %9532 = vrsqrt.f32 %v4457_v14 }
0x2512   : > { %v9529_v20 = vpop.eup %9528 }
0x2513   : > { %v4461_v16 = vmul.f32 %v9529_v20, %v4437_v41 }
0x2515   : > { %v9531_v17 = vpop.eup %9530  ;;  %v4470_v22 = vmul.f32 %v8087_v15, %v4461_v16 }
0x2516   : > { %v9533_v19 = vpop.eup %9532  ;;  %v4462_v21 = vmul.f32 %v9531_v17, %v4438_v0  ;;  %v8162_v0 = vld [vmem:[%s9789_s30 + $0x4] ss:$0 sm:$0xff]  ;;  %v9412_v17 = vld [vmem:[%s11152_s3 + $0x50] sm:$0xff]  }
0x2517   : > { %v4463_v9 = vmul.f32 %v9533_v19, %v4439_v61  ;;  %v4479_v24 = vadd.f32 %v8088_v18, %v4470_v22  ;;  %v9414_v22 = vld [vmem:[%s9784_s24 + $0x50] sm:$0xff]   ;;  %v9415_v19 = vld [vmem:[%s9784_s24 + $0x58] sm:$0xff]  }
0x2518   : > { %v4471_v27 = vmul.f32 %v8087_v15, %v4462_v21 }
0x2519   : > { %v4472_v28 = vmul.f32 %v8087_v15, %v4463_v9  ;;  %v10535_v32 = vmul.f32 %v4479_v24, %v9981_v51 }
0x251a   : > { %v4480_v30 = vadd.f32 %v8088_v18, %v4471_v27 }
0x251b   : > { %v4481_v31 = vadd.f32 %v8088_v18, %v4472_v28  ;;  %v9413_v18 = vld [vmem:[%s11152_s3 + $0x58] sm:$0xff]  }
0x251c   : > { %v10538_v23 = vmul.f32 %v4480_v30, %v9991_v54 }
0x251d   : > { %v10541_v33 = vmul.f32 %v4481_v31, %v9986_v53 }
0x251e   : > { %v4558_v25 = vpack.c.bf16 %v10538_v23, %v10535_v32 }
0x251f   : > { %v4559_v35 = vpack.c.bf16 %v10541_v33, %v10541_v33 }
0x2520   : > { %v4567_v52 = vshrl.u32 %v4558_v25, 16  ;;  %v4570_v34 = vshll.u32 %v4558_v25, 16 }
0x2521   : > { %v4575_v56 = vshrl.u32 %v4559_v35, 16  ;;  %v4578_v60 = vshll.u32 %v4559_v35, 16 }
0x2522   : > { %v4569_v36 = vrot.slane %v4567_v52, 3  ;;  %v4572_v37 = vrot.slane %v4570_v34, 4  ;;  %v8168_v34 = vld [vmem:[%s11150_s8 + $0x5] ss:$0 sm:$0xff] }
0x2523   : > { %v4577_v55 = vrot.slane %v4575_v56, 3  ;;  %v4580_v38 = vrot.slane %v4578_v60, 4 }
0x2524   : > { %v4573_v57 = vor.u32 %v4572_v37, %v4569_v36 }
0x2525   : > { %v4581_v41 = vor.u32 %v4580_v38, %v4577_v55 }
0x2527   : > { %v10549_v45 = vsel %vm1236_vm3, %v4573_v57, %v4581_v41  ;;  %v8176_v41 = vld [vmem:[%s9789_s30 + $0x5] ss:$0 sm:$0xff] }
0x2528   : > { %8946 = vmatmul.mubr.msk.bf16.vlgmr.msra.gmra.mrb[96].mxu0 %vm1266_vm4, %v10549_v45  ;;  %8962 = vmatmul.mubr.msk.bf16.vlgmr.msra.gmra.mrb[104].mxu1 %vm1266_vm4, %v10549_v45 }
0x2529   : > { %8950 = vmatpush3.bf16.msra.mxu0 %v9410_v43  ;;  %8953 = vmatprep.mubr.msk.bf16.mxu0 %vm9717_vm0, %v9716_v5 }
0x252a   : > { %8951 = vmatprep.subr.bf16.mxu0 %v9716_v5  ;;  %8973 = vmatprep.mubr.msk.bf16.mxu1 %vm9717_vm0, %v9716_v5 }
0x252d   : > { %8952 = vmatpush3.bf16.msra.mxu0 %v9411_v46 }
0x252e   : > { %8965 = vmatprep.subr.bf16.mxu0 %v9716_v5 }
0x2530   : > { %8954 = vmatmul.mubr.msk.bf16.vlgmr.msra.gmra.mrb[100].mxu0 %vm1266_vm4, %v10549_v45 }
0x2531   : > { %8967 = vmatprep.mubr.msk.bf16.mxu0 %vm9717_vm0, %v9716_v5 }
0x25fb   : > { %v4632_v50 = vpop.f32.mrb[96].mxu0  ;;  %v4750_v61 = vpop.f32.mrb[104].mxu1 }
0x25fc   : > { %v8947_v1 = vpop.f32.mrb[97].mxu0  ;;  %v8963_v3 = vpop.f32.mrb[105].mxu1  ;;  %v4633_v29 = vadd.f32 %v8154_v48, %v4632_v50  ;;  %v4751_v6 = vadd.f32 %v8162_v0, %v4750_v61 }
0x25fd   : > { %v4635_v4 = vpop.f32.mrb[98].mxu0  ;;  %v4753_v26 = vpop.f32.mrb[106].mxu1 }
0x25fe   : > { %v4636_v49 = vadd.f32 %v8154_v48, %v4635_v4  ;;  %v4754_v58 = vadd.f32 %v8162_v0, %v4753_v26  ;;  %v8948_v59 = vpop.f32.mrb[99].mxu0  ;;  %v8964_v7 = vpop.f32.mrb[107].mxu1 }
0x2600   : > { %v4757_v8 = vpack.c.bf16 %v4636_v49, %v4633_v29  ;;  %v4833_v10 = vpack.c.bf16 %v4754_v58, %v4751_v6 }
0x2602   : > { %8972 = vmatpush3.bf16.msra.mxu1 %v4833_v10 }
0x2603   : > { %v4691_v11 = vpop.f32.mrb[100].mxu0  ;;  %8985 = vmatprep.subr.bf16.mxu1 %v9716_v5 }
0x2604   : > { %v8955_v44 = vpop.f32.mrb[101].mxu0  ;;  %v4692_v13 = vadd.f32 %v8158_v39, %v4691_v11 }
0x2605   : > { %v4694_v12 = vpop.f32.mrb[102].mxu0 }
0x2606   : > { %v4695_v14 = vadd.f32 %v8158_v39, %v4694_v12  ;;  %v8956_v20 = vpop.f32.mrb[103].mxu0 }
0x2608   : > { %v4758_v15 = vpack.c.bf16 %v4695_v14, %v4692_v13  ;;  %v9416_v14 = vld [vmem:[%s9774_s14 + $0x50] sm:$0xff]  }
0x260a   : > { %v4763_v16 = vsel %vm1431_vm5, %v4758_v15, 0  ;;  %v9417_v15 = vld [vmem:[%s9774_s14 + $0x58] sm:$0xff]  }
0x260b   : > { %8966 = vmatpush3.bf16.xpose.msra.mxu0 %v4763_v16 }
0x260c   : > { %8977 = vmatprep.subr.bf16.mxu0 %v9716_v5 }
0x2612   : > { %8968 = vmatmul.mubr.msk.bf16.vlgmr.msra.gmra.mrb[104].mxu0 %vm1431_vm5, %v4757_v8 }
0x2613   : > { %8978 = vmatpush3.bf16.msra.mxu0 %v9412_v17  ;;  %8981 = vmatprep.mubr.msk.bf16.mxu0 %vm9717_vm0, %v9716_v5 }
0x2614   : > { %8979 = vmatprep.subr.bf16.mxu0 %v9716_v5 }
0x2617   : > { %8980 = vmatpush3.bf16.msra.mxu0 %v9413_v18 }
0x2618   : > { %8993 = vmatprep.subr.bf16.mxu0 %v9716_v5 }
0x261a   : > { %8982 = vmatmul.mubr.msk.bf16.vlgmr.msra.gmra.mrb[108].mxu0 %vm1266_vm4, %v10549_v45 }
0x261b   : > { %8994 = vmatpush3.bf16.msra.mxu0 %v9414_v22  ;;  %8997 = vmatprep.mubr.msk.bf16.mxu0 %vm9717_vm0, %v9716_v5 }
0x261c   : > { %8995 = vmatprep.subr.bf16.mxu0 %v9716_v5 }
0x261f   : > { %8996 = vmatpush3.bf16.msra.mxu0 %v9415_v19 }
0x2620   : > { %9007 = vmatprep.subr.bf16.mxu0 %v9716_v5 }
0x2622   : > { %8998 = vmatmul.mubr.msk.bf16.vlgmr.msra.gmra.mrb[112].mxu0 %vm1266_vm4, %v10549_v45 }
0x2623   : > { %9009 = vmatprep.mubr.msk.bf16.mxu0 %vm9717_vm0, %v9716_v5 }
0x26e5   : > { %v4799_v21 = vpop.f32.mrb[104].mxu0 }
0x26e6   : > { %v4806_v9 = vmul.f32 0.35355338, %v4799_v21  ;;  %v8969_v24 = vpop.f32.mrb[105].mxu0  ;;  %v8172_v21 = vld [vmem:[%s9779_s19 + $0x5] ss:$0 sm:$0xff] }
0x26e7   : > { %v4802_v27 = vpop.f32.mrb[106].mxu0 }
0x26e8   : > { %v4807_v28 = vmul.f32 0.35355338, %v4802_v27  ;;  %v8970_v30 = vpop.f32.mrb[107].mxu0  ;;  %v4808_v31 = vsel %vm1481_vm7, %v4806_v9, -1e+30 }
0x26e9   : > { %v4810_v25 = vsel %vm1485_vm6, %v4808_v31, -inf }
0x26ea   : > { %4811 = vmax.xlane.f32.xlu1 %v4810_v25  ;;  %v4809_v35 = vsel %vm1482_vm8, %v4807_v28, -1e+30 }
0x26eb   : > { %v4813_v52 = vsel %vm1485_vm6, %v4809_v35, -inf }
0x26ec   : > { %4814 = vmax.xlane.f32.xlu0 %v4813_v52 }
0x26ed   : > { %v4931_v56 = vpop.f32.mrb[108].mxu0 }
0x26ee   : > { %v8983_v60 = vpop.f32.mrb[109].mxu0  ;;  %v10598_v37 = vadd.f32 %v8168_v34, %v4931_v56 }
0x26ef   : > { %v4934_v36 = vpop.f32.mrb[110].mxu0 }
0x26f0   : > { %v10600_v55 = vadd.f32 %v8168_v34, %v4934_v36  ;;  %v8984_v38 = vpop.f32.mrb[111].mxu0 }
0x26f2   : > { %v5056_v57 = vpack.c.bf16 %v10600_v55, %v10598_v37 }
0x26f5   : > { %v5049_v43 = vpop.f32.mrb[112].mxu0 }
0x26f6   : > { %v8999_v46 = vpop.f32.mrb[113].mxu0  ;;  %v5050_v50 = vadd.f32 %v8176_v41, %v5049_v43 }
0x26f7   : > { %v5052_v48 = vpop.f32.mrb[114].mxu0 }
0x26f8   : > { %v5053_v0 = vadd.f32 %v8176_v41, %v5052_v48  ;;  %v9000_v61 = vpop.f32.mrb[115].mxu0 }
0x26fa   : > { %v5132_v1 = vpack.c.bf16 %v5053_v0, %v5050_v50 }
0x26fc   : > { %9008 = vmatpush3.bf16.msra.mxu0 %v5132_v1 }
0x26fd   : > { %9019 = vmatprep.subr.bf16.mxu0 %v9716_v5 }
0x2777   : > { %v4812_v3 = vpop.xlane.xlu1 %4811 }
0x2778   : > { %v4816_v4 = vsub.f32 %v4808_v31, %v4812_v3 }
0x2779   : > { %v4815_v26 = vpop.xlane.xlu0 %4814 }
0x277a   : > { %v4818_v29 = vmul.f32 1.442695, %v4816_v4  ;;  %v4817_v6 = vsub.f32 %v4809_v35, %v4815_v26 }
0x277c   : > { %9534 = vpow2.f32 %v4818_v29  ;;  %v4820_v49 = vmul.f32 1.442695, %v4817_v6  ;;  %v8150_v29 = vld [vmem:[%s11151_s6 + $0x14] sm:$0xf] }
0x277d   : > { %v5182_v6 = vsel %vm1857_vm9, %v8150_v29, 0 }
0x277e   : > { %9536 = vpow2.f32 %v4820_v49 }
0x2786   : > { %v9535_v58 = vpop.eup %9534 }
0x2787   : > { %v4822_v59 = vsel %vm1485_vm6, %v9535_v58, 0.0 }
0x2788   : > { %v9537_v7 = vpop.eup %9536  ;;  %4823 = vadd.xlane.f32.xlu1 %v4822_v59 }
0x2789   : > { %v4825_v8 = vsel %vm1485_vm6, %v9537_v7, 0.0 }
0x278a   : > { %4826 = vadd.xlane.f32.xlu0 %v4825_v8  ;;  %v8149_v8 = vld [vmem:[%s11151_s6 + $0x10] sm:$0xf] }
0x2815   : > { %v4824_v10 = vpop.xlane.xlu1 %4823 }
0x2816   : > { %9538 = vrcp.f32 %v4824_v10 }
0x2817   : > { %v4827_v39 = vpop.xlane.xlu0 %4826 }
0x2818   : > { %9540 = vrcp.f32 %v4827_v39 }
0x2820   : > { %v9539_v11 = vpop.eup %9538 }
0x2821   : > { %v4830_v12 = vmul.f32 %v9539_v11, %v9535_v58 }
0x2822   : > { %v9541_v44 = vpop.eup %9540 }
0x2823   : > { %v4831_v13 = vmul.f32 %v9541_v44, %v9537_v7  ;;  %v5229_v44 = vsel %vm1857_vm9, %v8149_v8, 0 }
0x2825   : > { %v4832_v20 = vpack.c.bf16 %v4831_v13, %v4830_v12  ;;  %v9418_v12 = vld [vmem:[%s9774_s14 + $0x60] sm:$0xff]   ;;  %v9419_v13 = vld [vmem:[%s9774_s14 + $0x68] sm:$0xff]  }
0x2827   : > { %8974 = vmatmul.mubr.msk.bf16.vlgmr.msra.gmra.mrb[108].mxu1 %vm1485_vm6, %v4832_v20 }
0x2828   : > { %8986 = vmatpush3.bf16.msra.mxu1 %v9416_v14  ;;  %8989 = vmatprep.mubr.msk.bf16.mxu1 %vm9717_vm0, %v9716_v5 }
0x2829   : > { %8987 = vmatprep.subr.bf16.mxu1 %v9716_v5 }
0x282c   : > { %8988 = vmatpush3.bf16.msra.mxu1 %v9417_v15 }
0x282d   : > { %9001 = vmatprep.subr.bf16.mxu1 %v9716_v5 }
0x282f   : > { %8990 = vmatmul.mubr.msk.bf16.vlgmr.msra.gmra.mrb[112].mxu1 %vm1266_vm4, %v10549_v45 }
0x2830   : > { %9003 = vmatprep.mubr.msk.bf16.mxu1 %vm9717_vm0, %v9716_v5 }
0x28fa   : > { %v10619_v16 = vpop.f32.mrb[108].mxu1 }
0x28fb   : > { %v8975_v17 = vpop.f32.mrb[109].mxu1 }
0x28fc   : > { %v10621_v18 = vpop.f32.mrb[110].mxu1 }
0x28fd   : > { %v4878_v22 = vpack.c.bf16 %v10621_v18, %v10619_v16  ;;  %v8976_v19 = vpop.f32.mrb[111].mxu1  ;;  %v9420_v16 = vld [vmem:[%s11152_s3 + $0x60] sm:$0xff]  }
0x2902   : > { %v4990_v9 = vpop.f32.mrb[112].mxu1 }
0x2903   : > { %v8991_v24 = vpop.f32.mrb[113].mxu1  ;;  %v4991_v28 = vadd.f32 %v8172_v21, %v4990_v9 }
0x2904   : > { %v4993_v27 = vpop.f32.mrb[114].mxu1  ;;  %v9422_v24 = vld [vmem:[%s9784_s24 + $0x60] sm:$0xff]  }
0x2905   : > { %v4994_v30 = vadd.f32 %v8172_v21, %v4993_v27  ;;  %v8992_v31 = vpop.f32.mrb[115].mxu1 }
0x2907   : > { %v5057_v25 = vpack.c.bf16 %v4994_v30, %v4991_v28  ;;  %v9423_v28 = vld [vmem:[%s9784_s24 + $0x68] sm:$0xff]   ;;  %v8188_v30 = vld [vmem:[%s9779_s19 + $0x6] ss:$0 sm:$0xff] }
0x2909   : > { %v5062_v35 = vsel %vm1431_vm5, %v5057_v25, 0 }
0x290a   : > { %9002 = vmatpush3.bf16.xpose.msra.mxu1 %v5062_v35 }
0x290b   : > { %9013 = vmatprep.subr.bf16.mxu1 %v9716_v5 }
0x2911   : > { %9004 = vmatmul.mubr.msk.bf16.vlgmr.msra.gmra.mrb[116].mxu1 %vm1431_vm5, %v5056_v57 }
0x2912   : > { %9015 = vmatprep.mubr.msk.bf16.mxu1 %vm9717_vm0, %v9716_v5  ;;  %9014 = vmatpush3.bf16.msra.mxu1 %v5182_v6 }
0x2913   : > { %9025 = vmatprep.subr.bf16.mxu1 %v9716_v5 }
0x29e4   : > { %v5098_v52 = vpop.f32.mrb[116].mxu1 }
0x29e5   : > { %v5105_v34 = vmul.f32 0.35355338, %v5098_v52  ;;  %v9005_v56 = vpop.f32.mrb[117].mxu1 }
0x29e6   : > { %v5101_v60 = vpop.f32.mrb[118].mxu1 }
0x29e7   : > { %v5106_v36 = vmul.f32 0.35355338, %v5101_v60  ;;  %v9006_v37 = vpop.f32.mrb[119].mxu1  ;;  %v5107_v55 = vsel %vm1481_vm7, %v5105_v34, -1e+30 }
0x29e8   : > { %v5109_v38 = vsel %vm1485_vm6, %v5107_v55, -inf }
0x29e9   : > { %5110 = vmax.xlane.f32.xlu1 %v5109_v38  ;;  %v5108_v41 = vsel %vm1482_vm8, %v5106_v36, -1e+30 }
0x29ea   : > { %v5112_v57 = vsel %vm1485_vm6, %v5108_v41, -inf }
0x29eb   : > { %5113 = vmax.xlane.f32.xlu0 %v5112_v57 }
0x2a76   : > { %v5111_v43 = vpop.xlane.xlu1 %5110 }
0x2a77   : > { %v5115_v46 = vsub.f32 %v5107_v55, %v5111_v43 }
0x2a78   : > { %v5114_v48 = vpop.xlane.xlu0 %5113 }
0x2a79   : > { %v5117_v50 = vmul.f32 1.442695, %v5115_v46  ;;  %v5116_v0 = vsub.f32 %v5108_v41, %v5114_v48  ;;  %v8184_v46 = vld [vmem:[%s11150_s8 + $0x6] ss:$0 sm:$0xff] }
0x2a7b   : > { %9542 = vpow2.f32 %v5117_v50  ;;  %v5119_v61 = vmul.f32 1.442695, %v5116_v0 }
0x2a7d   : > { %9544 = vpow2.f32 %v5119_v61 }
0x2a85   : > { %v9543_v1 = vpop.eup %9542 }
0x2a86   : > { %v5121_v3 = vsel %vm1485_vm6, %v9543_v1, 0.0 }
0x2a87   : > { %v9545_v4 = vpop.eup %9544  ;;  %5122 = vadd.xlane.f32.xlu1 %v5121_v3 }
0x2a88   : > { %v5124_v26 = vsel %vm1485_vm6, %v9545_v4, 0.0 }
0x2a89   : > { %5125 = vadd.xlane.f32.xlu0 %v5124_v26  ;;  %v8192_v26 = vld [vmem:[%s9789_s30 + $0x6] ss:$0 sm:$0xff] }
0x2b14   : > { %v5123_v49 = vpop.xlane.xlu1 %5122 }
0x2b15   : > { %9546 = vrcp.f32 %v5123_v49 }
0x2b16   : > { %v5126_v58 = vpop.xlane.xlu0 %5125 }
0x2b17   : > { %9548 = vrcp.f32 %v5126_v58 }
0x2b1f   : > { %v9547_v59 = vpop.eup %9546 }
0x2b20   : > { %v5129_v10 = vmul.f32 %v9547_v59, %v9543_v1 }
0x2b21   : > { %v9549_v7 = vpop.eup %9548 }
0x2b22   : > { %v5130_v39 = vmul.f32 %v9549_v7, %v9545_v4 }
0x2b24   : > { %v5131_v11 = vpack.c.bf16 %v5130_v39, %v5129_v10 }
0x2b26   : > { %9010 = vmatmul.mubr.msk.bf16.vlgmr.msra.gmra.mrb[116].mxu0 %vm1485_vm6, %v5131_v11 }
0x2b27   : > { %9020 = vmatpush3.bf16.msra.mxu0 %v5229_v44  ;;  %9021 = vmatprep.mubr.msk.bf16.mxu0 %vm9717_vm0, %v9716_v5 }
0x2b28   : > { %9033 = vmatprep.subr.bf16.mxu0 %v9716_v5 }
0x2b2e   : > { %9022 = vmatmul.mubr.msk.bf16.vlgmr.msra.gmra.mrb[120].mxu0 %vm1431_vm5, %v4878_v22  ;;  %v9421_v22 = vld [vmem:[%s11152_s3 + $0x68] sm:$0xff]  }
0x2b2f   : > { %9034 = vmatpush3.bf16.msra.mxu0 %v9418_v12  ;;  %9037 = vmatprep.mubr.msk.bf16.mxu0 %vm9717_vm0, %v9716_v5 }
0x2b30   : > { %9035 = vmatprep.subr.bf16.mxu0 %v9716_v5 }
0x2b33   : > { %9036 = vmatpush3.bf16.msra.mxu0 %v9419_v13 }
0x2b34   : > { %9049 = vmatprep.subr.bf16.mxu0 %v9716_v5 }
0x2b36   : > { %9038 = vmatmul.mubr.msk.bf16.vlgmr.msra.gmra.mrb[124].mxu0 %vm1266_vm4, %v10549_v45 }
0x2b37   : > { %9051 = vmatprep.mubr.msk.bf16.mxu0 %vm9717_vm0, %v9716_v5 }
0x2bf9   : > { %v5170_v14 = vpop.f32.mrb[116].mxu0 }
0x2bfa   : > { %v9011_v20 = vpop.f32.mrb[117].mxu0 }
0x2bfb   : > { %v5173_v15 = vpop.f32.mrb[118].mxu0 }
0x2bfc   : > { %v5177_v17 = vpack.c.bf16 %v5173_v15, %v5170_v14  ;;  %v9012_v18 = vpop.f32.mrb[119].mxu0 }
0x2bfe   : > { %9016 = vmatmul.mubr.msk.bf16.vlgmr.msra.gmra.mrb[120].mxu1 %vm1431_vm5, %v5177_v17 }
0x2bff   : > { %9026 = vmatpush3.bf16.msra.mxu1 %v9420_v16  ;;  %9029 = vmatprep.mubr.msk.bf16.mxu1 %vm9717_vm0, %v9716_v5 }
0x2c00   : > { %9027 = vmatprep.subr.bf16.mxu1 %v9716_v5 }
0x2c01   : > { %v5265_v19 = vpop.f32.mrb[120].mxu0 }
0x2c02   : > { %v9023_v21 = vpop.f32.mrb[121].mxu0 }
0x2c03   : > { %v5268_v9 = vpop.f32.mrb[122].mxu0  ;;  %9028 = vmatpush3.bf16.msra.mxu1 %v9421_v22 }
0x2c04   : > { %v9024_v27 = vpop.f32.mrb[123].mxu0  ;;  %9041 = vmatprep.subr.bf16.mxu1 %v9716_v5 }
0x2c06   : > { %9030 = vmatmul.mubr.msk.bf16.vlgmr.msra.gmra.mrb[124].mxu1 %vm1266_vm4, %v10549_v45 }
0x2c07   : > { %9042 = vmatpush3.bf16.msra.mxu1 %v9422_v24  ;;  %9045 = vmatprep.mubr.msk.bf16.mxu1 %vm9717_vm0, %v9716_v5 }
0x2c08   : > { %9043 = vmatprep.subr.bf16.mxu1 %v9716_v5 }
0x2c09   : > { %v5383_v31 = vpop.f32.mrb[124].mxu0 }
0x2c0a   : > { %v9039_v25 = vpop.f32.mrb[125].mxu0  ;;  %v5384_v52 = vadd.f32 %v8188_v30, %v5383_v31  ;;  %v8151_v31 = vld [vmem:[%s11151_s6 + $0x18] sm:$0xf] }
0x2c0b   : > { %v5386_v35 = vpop.f32.mrb[126].mxu0  ;;  %9044 = vmatpush3.bf16.msra.mxu1 %v9423_v28  ;;  %v5575_v25 = vsel %vm1857_vm9, %v8151_v31, 0 }
0x2c0c   : > { %v5387_v34 = vadd.f32 %v8188_v30, %v5386_v35  ;;  %v9040_v56 = vpop.f32.mrb[127].mxu0  ;;  %9055 = vmatprep.subr.bf16.mxu1 %v9716_v5 }
0x2c0e   : > { %v5450_v60 = vpack.c.bf16 %v5387_v34, %v5384_v52  ;;  %9046 = vmatmul.mubr.msk.bf16.vlgmr.msra.gmra.mrb[128].mxu1 %vm1266_vm4, %v10549_v45 }
0x2c0f   : > { %9057 = vmatprep.mubr.msk.bf16.mxu1 %vm9717_vm0, %v9716_v5 }
0x2c10   : > { %v5455_v36 = vsel %vm1431_vm5, %v5450_v60, 0 }
0x2c11   : > { %9050 = vmatpush3.bf16.xpose.msra.mxu0 %v5455_v36 }
0x2c12   : > { %9061 = vmatprep.subr.bf16.mxu0 %v9716_v5 }
0x2cd1   : > { %v5218_v37 = vpop.f32.mrb[120].mxu1 }
0x2cd2   : > { %v10681_v55 = vadd.f32 %v5265_v19, %v5218_v37  ;;  %v9017_v38 = vpop.f32.mrb[121].mxu1  ;;  %v9424_v37 = vld [vmem:[%s11152_s3 + $0x70] sm:$0xff]  }
0x2cd3   : > { %v5221_v41 = vpop.f32.mrb[122].mxu1 }
0x2cd4   : > { %v10683_v57 = vadd.f32 %v5268_v9, %v5221_v41  ;;  %v9018_v43 = vpop.f32.mrb[123].mxu1  ;;  %v9425_v41 = vld [vmem:[%s11152_s3 + $0x78] sm:$0xff]  }
0x2cd5   : > { %v9426_v43 = vld [vmem:[%s9784_s24 + $0x70] sm:$0xff]  }
0x2cd9   : > { %v5324_v48 = vpop.f32.mrb[124].mxu1 }
0x2cda   : > { %v9031_v50 = vpop.f32.mrb[125].mxu1  ;;  %v5325_v61 = vadd.f32 %v8184_v46, %v5324_v48 }
0x2cdb   : > { %v5327_v0 = vpop.f32.mrb[126].mxu1 }
0x2cdc   : > { %v5328_v1 = vadd.f32 %v8184_v46, %v5327_v0  ;;  %v9032_v3 = vpop.f32.mrb[127].mxu1  ;;  %v9427_v46 = vld [vmem:[%s9784_s24 + $0x78] sm:$0xff]  }
0x2cde   : > { %v5449_v4 = vpack.c.bf16 %v5328_v1, %v5325_v61  ;;  %v9428_v61 = vld [vmem:[%s9774_s14 + $0x70] sm:$0xff]  }
0x2ce0   : > { %9052 = vmatmul.mubr.msk.bf16.vlgmr.msra.gmra.mrb[128].mxu0 %vm1431_vm5, %v5449_v4  ;;  %v9429_v4 = vld [vmem:[%s9774_s14 + $0x78] sm:$0xff]  }
0x2ce1   : > { %v5442_v29 = vpop.f32.mrb[128].mxu1  ;;  %9063 = vmatprep.mubr.msk.bf16.mxu0 %vm9717_vm0, %v9716_v5  ;;  %9062 = vmatpush3.bf16.msra.mxu0 %v5575_v25 }
0x2ce2   : > { %v9047_v6 = vpop.f32.mrb[129].mxu1  ;;  %v5443_v58 = vadd.f32 %v8192_v26, %v5442_v29  ;;  %9075 = vmatprep.subr.bf16.mxu0 %v9716_v5 }
0x2ce3   : > { %v5445_v49 = vpop.f32.mrb[130].mxu1 }
0x2ce4   : > { %v5446_v59 = vadd.f32 %v8192_v26, %v5445_v49  ;;  %v9048_v7 = vpop.f32.mrb[131].mxu1  ;;  %v8199_v26 = vld [vmem:[%s11150_s8 + $0x7] ss:$0 sm:$0xff] }
0x2ce6   : > { %v5525_v8 = vpack.c.bf16 %v5446_v59, %v5443_v58 }
0x2ce8   : > { %9056 = vmatpush3.bf16.msra.mxu1 %v5525_v8 }
0x2ce9   : > { %9067 = vmatprep.subr.bf16.mxu1 %v9716_v5 }
0x2db3   : > { %v5491_v10 = vpop.f32.mrb[128].mxu0 }
0x2db4   : > { %v5498_v39 = vmul.f32 0.35355338, %v5491_v10  ;;  %v9053_v11 = vpop.f32.mrb[129].mxu0  ;;  %v8207_v10 = vld [vmem:[%s9789_s30 + $0x7] ss:$0 sm:$0xff] }
0x2db5   : > { %v5494_v44 = vpop.f32.mrb[130].mxu0 }
0x2db6   : > { %v5499_v12 = vmul.f32 0.35355338, %v5494_v44  ;;  %v9054_v13 = vpop.f32.mrb[131].mxu0  ;;  %v5500_v14 = vsel %vm1481_vm7, %v5498_v39, -1e+30 }
0x2db7   : > { %v5502_v20 = vsel %vm1485_vm6, %v5500_v14, -inf }
0x2db8   : > { %5503 = vmax.xlane.f32.xlu1 %v5502_v20  ;;  %v5501_v15 = vsel %vm1482_vm8, %v5499_v12, -1e+30 }
0x2db9   : > { %v5505_v16 = vsel %vm1485_vm6, %v5501_v15, -inf }
0x2dba   : > { %5506 = vmax.xlane.f32.xlu0 %v5505_v16 }
0x2e45   : > { %v5504_v17 = vpop.xlane.xlu1 %5503 }
0x2e46   : > { %v5508_v18 = vsub.f32 %v5500_v14, %v5504_v17 }
0x2e47   : > { %v5507_v22 = vpop.xlane.xlu0 %5506 }
0x2e48   : > { %v5510_v19 = vmul.f32 1.442695, %v5508_v18  ;;  %v5509_v21 = vsub.f32 %v5501_v15, %v5507_v22 }
0x2e4a   : > { %9550 = vpow2.f32 %v5510_v19  ;;  %v5512_v9 = vmul.f32 1.442695, %v5509_v21  ;;  %v8203_v19 = vld [vmem:[%s9779_s19 + $0x7] ss:$0 sm:$0xff] }
0x2e4c   : > { %9552 = vpow2.f32 %v5512_v9 }
0x2e54   : > { %v9551_v24 = vpop.eup %9550 }
0x2e55   : > { %v5514_v27 = vsel %vm1485_vm6, %v9551_v24, 0.0 }
0x2e56   : > { %v9553_v28 = vpop.eup %9552  ;;  %5515 = vadd.xlane.f32.xlu1 %v5514_v27 }
0x2e57   : > { %v5517_v30 = vsel %vm1485_vm6, %v9553_v28, 0.0 }
0x2e58   : > { %5518 = vadd.xlane.f32.xlu0 %v5517_v30 }
0x2ee3   : > { %v5516_v35 = vpop.xlane.xlu1 %5515 }
0x2ee4   : > { %9554 = vrcp.f32 %v5516_v35 }
0x2ee5   : > { %v5519_v52 = vpop.xlane.xlu0 %5518 }
0x2ee6   : > { %9556 = vrcp.f32 %v5519_v52 }
0x2eee   : > { %v9555_v34 = vpop.eup %9554 }
0x2eef   : > { %v5522_v60 = vmul.f32 %v9555_v34, %v9551_v24 }
0x2ef0   : > { %v9557_v56 = vpop.eup %9556 }
0x2ef1   : > { %v5523_v36 = vmul.f32 %v9557_v56, %v9553_v28 }
0x2ef3   : > { %v5524_v38 = vpack.c.bf16 %v5523_v36, %v5522_v60 }
0x2ef5   : > { %9058 = vmatmul.mubr.msk.bf16.vlgmr.msra.gmra.mrb[132].mxu1 %vm1485_vm6, %v5524_v38 }
0x2ef6   : > { %9068 = vmatpush3.bf16.msra.mxu1 %v9424_v37  ;;  %9071 = vmatprep.mubr.msk.bf16.mxu1 %vm9717_vm0, %v9716_v5 }
0x2ef7   : > { %9069 = vmatprep.subr.bf16.mxu1 %v9716_v5 }
0x2efa   : > { %9070 = vmatpush3.bf16.msra.mxu1 %v9425_v41 }
0x2efb   : > { %9083 = vmatprep.subr.bf16.mxu1 %v9716_v5 }
0x2efd   : > { %9072 = vmatmul.mubr.msk.bf16.vlgmr.msra.gmra.mrb[136].mxu1 %vm1266_vm4, %v10549_v45 }
0x2efe   : > { %9084 = vmatpush3.bf16.msra.mxu1 %v9426_v43  ;;  %9087 = vmatprep.mubr.msk.bf16.mxu1 %vm9717_vm0, %v9716_v5 }
0x2eff   : > { %9085 = vmatprep.subr.bf16.mxu1 %v9716_v5 }
0x2f02   : > { %9086 = vmatpush3.bf16.msra.mxu1 %v9427_v46 }
0x2f03   : > { %9097 = vmatprep.subr.bf16.mxu1 %v9716_v5 }
0x2f05   : > { %9088 = vmatmul.mubr.msk.bf16.vlgmr.msra.gmra.mrb[140].mxu1 %vm1266_vm4, %v10549_v45 }
0x2f06   : > { %9099 = vmatprep.mubr.msk.bf16.mxu1 %vm9717_vm0, %v9716_v5 }
0x2fc8   : > { %v5563_v48 = vpop.f32.mrb[132].mxu1 }
0x2fc9   : > { %v9059_v50 = vpop.f32.mrb[133].mxu1 }
0x2fca   : > { %v5566_v0 = vpop.f32.mrb[134].mxu1 }
0x2fcb   : > { %v5570_v1 = vpack.c.bf16 %v5566_v0, %v5563_v48  ;;  %v9060_v3 = vpop.f32.mrb[135].mxu1 }
0x2fcc   : > { %v8152_v3 = vld [vmem:[%s11151_s6 + $0x1c] sm:$0xf] }
0x2fcd   : > { %9064 = vmatmul.mubr.msk.bf16.vlgmr.msra.gmra.mrb[132].mxu0 %vm1431_vm5, %v5570_v1 }
0x2fce   : > { %9076 = vmatpush3.bf16.msra.mxu0 %v9428_v61  ;;  %9079 = vmatprep.mubr.msk.bf16.mxu0 %vm9717_vm0, %v9716_v5 }
0x2fcf   : > { %9077 = vmatprep.subr.bf16.mxu0 %v9716_v5 }
0x2fd0   : > { %v5672_v29 = vpop.f32.mrb[136].mxu1 }
0x2fd1   : > { %v9073_v6 = vpop.f32.mrb[137].mxu1  ;;  %v5673_v58 = vadd.f32 %v8199_v26, %v5672_v29 }
0x2fd2   : > { %v5675_v49 = vpop.f32.mrb[138].mxu1  ;;  %9078 = vmatpush3.bf16.msra.mxu0 %v9429_v4  ;;  %v5923_v4 = vsel %vm1857_vm9, %v8152_v3, 0 }
0x2fd3   : > { %v5676_v59 = vadd.f32 %v8199_v26, %v5675_v49  ;;  %v9074_v7 = vpop.f32.mrb[139].mxu1  ;;  %9091 = vmatprep.subr.bf16.mxu0 %v9716_v5 }
0x2fd5   : > { %v5797_v8 = vpack.c.bf16 %v5676_v59, %v5673_v58  ;;  %9080 = vmatmul.mubr.msk.bf16.vlgmr.msra.gmra.mrb[136].mxu0 %vm1266_vm4, %v10549_v45 }
0x2fd6   : > { %9093 = vmatprep.mubr.msk.bf16.mxu0 %vm9717_vm0, %v9716_v5 }
0x2fd8   : > { %v5790_v39 = vpop.f32.mrb[140].mxu1 }
0x2fd9   : > { %v9089_v11 = vpop.f32.mrb[141].mxu1  ;;  %v5791_v12 = vadd.f32 %v8207_v10, %v5790_v39 }
0x2fda   : > { %v5793_v44 = vpop.f32.mrb[142].mxu1 }
0x2fdb   : > { %v5794_v13 = vadd.f32 %v8207_v10, %v5793_v44  ;;  %v9090_v14 = vpop.f32.mrb[143].mxu1 }
0x2fdd   : > { %v5873_v20 = vpack.c.bf16 %v5794_v13, %v5791_v12  ;;  %v8214_v12 = vld [vmem:[%s11148_s12 + $0x1] ss:$0 sm:$0xff] }
0x2fdf   : > { %9098 = vmatpush3.bf16.msra.mxu1 %v5873_v20 }
0x2fe0   : > { %9109 = vmatprep.subr.bf16.mxu1 %v9716_v5 }
0x30a0   : > { %v5611_v15 = vpop.f32.mrb[132].mxu0 }
0x30a1   : > { %v10736_v16 = vadd.f32 %v5611_v15, %v10681_v55  ;;  %v9065_v45 = vpop.f32.mrb[133].mxu0 }
0x30a2   : > { %v5614_v17 = vpop.f32.mrb[134].mxu0 }
0x30a3   : > { %v10739_v18 = vadd.f32 %v5614_v17, %v10683_v57  ;;  %v9066_v22 = vpop.f32.mrb[135].mxu0 }
0x30a8   : > { %v5731_v21 = vpop.f32.mrb[136].mxu0 }
0x30a9   : > { %v9081_v9 = vpop.f32.mrb[137].mxu0  ;;  %v5732_v27 = vadd.f32 %v8203_v19, %v5731_v21 }
0x30aa   : > { %v5734_v24 = vpop.f32.mrb[138].mxu0 }
0x30ab   : > { %v5735_v28 = vadd.f32 %v8203_v19, %v5734_v24  ;;  %v9082_v30 = vpop.f32.mrb[139].mxu0 }
0x30ad   : > { %v5798_v31 = vpack.c.bf16 %v5735_v28, %v5732_v27 }
0x30af   : > { %v5803_v25 = vsel %vm1431_vm5, %v5798_v31, 0 }
0x30b0   : > { %9092 = vmatpush3.bf16.xpose.msra.mxu0 %v5803_v25 }
0x30b1   : > { %9103 = vmatprep.subr.bf16.mxu0 %v9716_v5 }
0x30b7   : > { %9094 = vmatmul.mubr.msk.bf16.vlgmr.msra.gmra.mrb[140].mxu0 %vm1431_vm5, %v5797_v8 }
0x30b8   : > { %9105 = vmatprep.mubr.msk.bf16.mxu0 %vm9717_vm0, %v9716_v5  ;;  %9104 = vmatpush3.bf16.msra.mxu0 %v5923_v4 }
0x30b9   : > { %9117 = vmatprep.subr.bf16.mxu0 %v9716_v5 }
0x318a   : > { %v5839_v55 = vpop.f32.mrb[140].mxu0 }
0x318b   : > { %v5846_v57 = vmul.f32 0.35355338, %v5839_v55  ;;  %v9095_v35 = vpop.f32.mrb[141].mxu0 }
0x318c   : > { %v5842_v52 = vpop.f32.mrb[142].mxu0 }
0x318d   : > { %v5847_v34 = vmul.f32 0.35355338, %v5842_v52  ;;  %v9096_v56 = vpop.f32.mrb[143].mxu0  ;;  %v5848_v60 = vsel %vm1481_vm7, %v5846_v57, -1e+30 }
0x318e   : > { %v5850_v36 = vsel %vm1485_vm6, %v5848_v60, -inf }
0x318f   : > { %5851 = vmax.xlane.f32.xlu1 %v5850_v36  ;;  %v5849_v37 = vsel %vm1482_vm8, %v5847_v34, -1e+30 }
0x3190   : > { %v5853_v38 = vsel %vm1485_vm6, %v5849_v37, -inf }
0x3191   : > { %5854 = vmax.xlane.f32.xlu0 %v5853_v38 }
0x321c   : > { %v5852_v41 = vpop.xlane.xlu1 %5851 }
0x321d   : > { %v5856_v43 = vsub.f32 %v5848_v60, %v5852_v41 }
0x321e   : > { %v5855_v46 = vpop.xlane.xlu0 %5854 }
0x321f   : > { %v5858_v48 = vmul.f32 1.442695, %v5856_v43  ;;  %v5857_v50 = vsub.f32 %v5849_v37, %v5855_v46  ;;  %v9430_v43 = vld [vmem:[%s9824_s20 + $0x20] sm:$0xff]  }
0x3220   : > { %v9431_v46 = vld [vmem:[%s11167_s16 + $0x40] sm:$0xff]  }
0x3221   : > { %9558 = vpow2.f32 %v5858_v48  ;;  %v5860_v0 = vmul.f32 1.442695, %v5857_v50  ;;  %v9432_v48 = vld [vmem:[%s11167_s16 + $0x48] sm:$0xff]  }
0x3223   : > { %9560 = vpow2.f32 %v5860_v0 }
0x322b   : > { %v9559_v47 = vpop.eup %9558 }
0x322c   : > { %v5862_v61 = vsel %vm1485_vm6, %v9559_v47, 0.0 }
0x322d   : > { %v9561_v1 = vpop.eup %9560  ;;  %5863 = vadd.xlane.f32.xlu1 %v5862_v61 }
0x322e   : > { %v5865_v40 = vsel %vm1485_vm6, %v9561_v1, 0.0 }
0x322f   : > { %5866 = vadd.xlane.f32.xlu0 %v5865_v40 }
0x32ba   : > { %v5864_v26 = vpop.xlane.xlu1 %5863 }
0x32bb   : > { %9562 = vrcp.f32 %v5864_v26 }
0x32bc   : > { %v5867_v29 = vpop.xlane.xlu0 %5866 }
0x32bd   : > { %9564 = vrcp.f32 %v5867_v29 }
0x32c5   : > { %v9563_v6 = vpop.eup %9562 }
0x32c6   : > { %v5870_v58 = vmul.f32 %v9563_v6, %v9559_v47  ;;  %v8217_v6 = vld [vmem:[%s11168_s5 + $0x1] ss:$0 sm:$0xff] }
0x32c7   : > { %v9565_v49 = vpop.eup %9564 }
0x32c8   : > { %v5871_v59 = vmul.f32 %v9565_v49, %v9561_v1 }
0x32ca   : > { %v5872_v7 = vpack.c.bf16 %v5871_v59, %v5870_v58 }
0x32cc   : > { %9100 = vmatmul.mubr.msk.bf16.vlgmr.msra.gmra.mrb[144].mxu1 %vm1485_vm6, %v5872_v7 }
0x32cd   : > { %9113 = vmatprep.mubr.msk.bf16.mxu1 %vm9717_vm0, %v9716_v5  ;;  %9110 = vmatpush3.bf16.msra.mxu1 %v9431_v46  ;;  %v9435_v46 = vld [vmem:[%s11173_s25 + $0x20] sm:$0xff]  }
0x32ce   : > { %9111 = vmatprep.subr.bf16.mxu1 %v9716_v5 }
0x32d1   : > { %9112 = vmatpush3.bf16.msra.mxu1 %v9432_v48 }
0x32d2   : > { %9123 = vmatprep.subr.bf16.mxu1 %v9716_v5 }
0x339f   : > { %v5911_v8 = vpop.f32.mrb[144].mxu1 }
0x33a0   : > { %v9101_v10 = vpop.f32.mrb[145].mxu1 }
0x33a1   : > { %v5914_v39 = vpop.f32.mrb[146].mxu1  ;;  %v8218_v10 = vld [vmem:[%s11169_s23 + $0x1] ss:$0 sm:$0xff] }
0x33a2   : > { %v5918_v11 = vpack.c.bf16 %v5914_v39, %v5911_v8  ;;  %v9102_v44 = vpop.f32.mrb[147].mxu1 }
0x33a4   : > { %9106 = vmatmul.mubr.msk.bf16.vlgmr.msra.gmra.mrb[144].mxu0 %vm1431_vm5, %v5918_v11 }
0x33a5   : > { %9119 = vmatprep.mubr.msk.bf16.mxu0 %vm9717_vm0, %v9716_v5  ;;  %9118 = vmatpush3.bf16.msra.mxu0 %v9430_v43  ;;  %v9434_v43 = vld [vmem:[%s11167_s16 + $0x58] sm:$0xff]  }
0x33a6   : > { %9129 = vmatprep.subr.bf16.mxu0 %v9716_v5 }
0x33ac   : > { %9120 = vmatmul.mubr.msk.bf16.vlgmr.msra.gmra.mrb[148].mxu0 %vm1485_vm6, %v10246_v42 }
0x33ad   : > { %9131 = vmatprep.mubr.msk.bf16.mxu0 %vm9717_vm0, %v9716_v5 }
0x3477   : > { %v5959_v13 = vpop.f32.mrb[144].mxu0 }
0x3478   : > { %v5966_v14 = vadd.f32 %v5959_v13, %v10736_v16  ;;  %v9107_v20 = vpop.f32.mrb[145].mxu0 }
0x3479   : > { %v5962_v15 = vpop.f32.mrb[146].mxu0 }
0x347a   : > { %v5974_v45 = vadd.f32 %v8214_v12, %v5966_v14  ;;  %v5967_v17 = vadd.f32 %v5962_v15, %v10739_v18  ;;  %v9108_v22 = vpop.f32.mrb[147].mxu0 }
0x347c   : > { %v5982_v19 = vrot.slane %v5974_v45, 1  ;;  %v5975_v21 = vadd.f32 %v8214_v12, %v5967_v17 }
0x347e   : > { %v5983_v9 = vrot.slane %v5975_v21, 1  ;;  %v5988_v24 = vadd.f32 %v5982_v19, %v10535_v32 }
0x3480   : > { %v5991_v27 = vsel %vm2666_vm10, %v5988_v24, 0.0  ;;  %v5984_v28 = vsel %vm1091_vm1, %v5982_v19, %v5983_v9  ;;  %v5990_v30 = vadd.f32 %v5983_v9, %v10541_v33 }
0x3481   : > { %5992 = vadd.xlane.f32.xlu1 %v5991_v27  ;;  %v5989_v16 = vadd.f32 %v5984_v28, %v10538_v23 }
0x3482   : > { %v5997_v18 = vsel %vm2673_vm11, %v5990_v30, 0.0 }
0x3483   : > { %v5994_v31 = vsel %vm1266_vm4, %v5989_v16, 0.0 }
0x3484   : > { %5995 = vadd.xlane.f32.xlu0 %v5994_v31  ;;  %v8272_v31 = vld [vmem:[%s11170_s13 + $0x4] ss:$0 sm:$0xff] }
0x3485   : > { %5998 = vadd.xlane.f32.xlu1 %v5997_v18  ;;  %v6232_v18 = vpop.f32.mrb[148].mxu0 }
0x350e   : > { %v5993_v25 = vpop.xlane.xlu1 %5992 }
0x350f   : > { %v6000_v55 = vmul.f32 0.03125, %v5993_v25  ;;  %v6233_v25 = vadd.f32 %v8272_v31, %v6232_v18 }
0x3511   : > { %v6003_v57 = vsub.f32 %v5988_v24, %v6000_v55  ;;  %v5996_v32 = vpop.xlane.xlu0 %5995  ;;  %v9121_v55 = vpop.f32.mrb[149].mxu0 }
0x3512   : > { %v6001_v35 = vmul.f32 0.03125, %v5996_v32  ;;  %v5999_v52 = vpop.xlane.xlu1 %5998  ;;  %v6291_v32 = vpack.c.bf16 %v6233_v25, %v6233_v25 }
0x3513   : > { %v6002_v34 = vmul.f32 0.03125, %v5999_v52  ;;  %v6006_v56 = vmul.f32 %v6003_v57, %v6003_v57 }
0x3514   : > { %v6004_v33 = vsub.f32 %v5989_v16, %v6001_v35  ;;  %v6296_v52 = vsel %vm1431_vm5, %v6291_v32, 0 }
0x3515   : > { %v6005_v60 = vsub.f32 %v5990_v30, %v6002_v34  ;;  %v6009_v23 = vsel %vm2666_vm10, %v6006_v56, 0.0  ;;  %9130 = vmatpush3.bf16.xpose.msra.mxu0 %v6296_v52  ;;  %v8268_v34 = vld [vmem:[%s11171_s17 + $0x4] ss:$0 sm:$0xff] }
0x3516   : > { %6010 = vadd.xlane.f32.xlu0 %v6009_v23  ;;  %v6007_v36 = vmul.f32 %v6004_v33, %v6004_v33  ;;  %9141 = vmatprep.subr.bf16.mxu0 %v9716_v5 }
0x3517   : > { %v6008_v37 = vmul.f32 %v6005_v60, %v6005_v60 }
0x3518   : > { %v6012_v38 = vsel %vm1266_vm4, %v6007_v36, 0.0 }
0x3519   : > { %6013 = vadd.xlane.f32.xlu1 %v6012_v38  ;;  %v6015_v41 = vsel %vm2673_vm11, %v6008_v37, 0.0  ;;  %v9433_v38 = vld [vmem:[%s11167_s16 + $0x50] sm:$0xff]  }
0x351a   : > { %6016 = vadd.xlane.f32.xlu0 %v6015_v41 }
0x35a3   : > { %v6011_v50 = vpop.xlane.xlu0 %6010 }
0x35a4   : > { %v6018_v0 = vmul.f32 0.03125, %v6011_v50 }
0x35a6   : > { %v6021_v47 = vadd.f32 1e-05, %v6018_v0  ;;  %v6014_v61 = vpop.xlane.xlu1 %6013 }
0x35a7   : > { %v6019_v1 = vmul.f32 0.03125, %v6014_v61  ;;  %v6017_v40 = vpop.xlane.xlu0 %6016 }
0x35a8   : > { %9566 = vrsqrt.f32 %v6021_v47  ;;  %v6020_v3 = vmul.f32 0.03125, %v6017_v40 }
0x35a9   : > { %v6022_v4 = vadd.f32 1e-05, %v6019_v1 }
0x35aa   : > { %v6023_v26 = vadd.f32 1e-05, %v6020_v3 }
0x35ab   : > { %9568 = vrsqrt.f32 %v6022_v4 }
0x35ac   : > { %9570 = vrsqrt.f32 %v6023_v26 }
0x35b2   : > { %v9567_v29 = vpop.eup %9566 }
0x35b3   : > { %v6027_v49 = vmul.f32 %v9567_v29, %v6003_v57  ;;  %v6235_v57 = vpop.f32.mrb[150].mxu0  ;;  %v8280_v29 = vld [vmem:[%s11171_s17 + $0x5] ss:$0 sm:$0xff] }
0x35b4   : > { %v9122_v35 = vpop.f32.mrb[151].mxu0 }
0x35b5   : > { %v9569_v58 = vpop.eup %9568  ;;  %v6036_v7 = vmul.f32 %v8217_v6, %v6027_v49 }
0x35b6   : > { %v9571_v59 = vpop.eup %9570  ;;  %v6028_v8 = vmul.f32 %v9569_v58, %v6004_v33 }
0x35b7   : > { %v6029_v39 = vmul.f32 %v9571_v59, %v6005_v60  ;;  %v10789_v12 = vadd.f32 %v8218_v10, %v6036_v7 }
0x35b8   : > { %v6037_v11 = vmul.f32 %v8217_v6, %v6028_v8 }
0x35b9   : > { %v6038_v44 = vmul.f32 %v8217_v6, %v6029_v39 }
0x35ba   : > { %v10791_v13 = vadd.f32 %v8218_v10, %v6037_v11 }
0x35bb   : > { %v10793_v14 = vadd.f32 %v8218_v10, %v6038_v44 }
0x35bc   : > { %v6105_v20 = vpack.c.bf16 %v10791_v13, %v10789_v12 }
0x35bd   : > { %v6106_v15 = vpack.c.bf16 %v10793_v14, %v10793_v14 }
0x35be   : > { %v6114_v45 = vshrl.u32 %v6105_v20, 16  ;;  %v6117_v17 = vshll.u32 %v6105_v20, 16 }
0x35bf   : > { %v6122_v22 = vshrl.u32 %v6106_v15, 16  ;;  %v6125_v19 = vshll.u32 %v6106_v15, 16 }
0x35c0   : > { %v6116_v21 = vrot.slane %v6114_v45, 3  ;;  %v6119_v9 = vrot.slane %v6117_v17, 4 }
0x35c1   : > { %v6124_v24 = vrot.slane %v6122_v22, 3  ;;  %v6127_v27 = vrot.slane %v6125_v19, 4 }
0x35c2   : > { %v6120_v28 = vor.u32 %v6119_v9, %v6116_v21 }
0x35c3   : > { %v6128_v30 = vor.u32 %v6127_v27, %v6124_v24 }
0x35c5   : > { %v10800_v16 = vsel %vm1236_vm3, %v6120_v28, %v6128_v30  ;;  %v8275_v28 = vld [vmem:[%s11174_s21 + $0x4] ss:$0 sm:$0xff] }
0x35c6   : > { %9114 = vmatmul.mubr.msk.bf16.vlgmr.msra.gmra.mrb[148].mxu1 %vm1266_vm4, %v10800_v16 }
0x35c7   : > { %9125 = vmatprep.mubr.msk.bf16.mxu1 %vm9717_vm0, %v9716_v5  ;;  %9124 = vmatpush3.bf16.msra.mxu1 %v9435_v46 }
0x35c8   : > { %9135 = vmatprep.subr.bf16.mxu1 %v9716_v5 }
0x35ce   : > { %9126 = vmatmul.mubr.msk.bf16.vlgmr.msra.gmra.mrb[152].mxu1 %vm1485_vm6, %v10296_v62 }
0x35cf   : > { %9137 = vmatprep.mubr.msk.bf16.mxu1 %vm9717_vm0, %v9716_v5 }
0x3699   : > { %v6179_v56 = vpop.f32.mrb[148].mxu1 }
0x369a   : > { %v9115_v33 = vpop.f32.mrb[149].mxu1  ;;  %v6180_v23 = vadd.f32 %v8268_v34, %v6179_v56  ;;  %v9436_v56 = vld [vmem:[%s9824_s20 + $0x28] sm:$0xff]  }
0x369b   : > { %v6182_v60 = vpop.f32.mrb[150].mxu1 }
0x369c   : > { %v6183_v36 = vadd.f32 %v8268_v34, %v6182_v60  ;;  %v9116_v37 = vpop.f32.mrb[151].mxu1 }
0x369e   : > { %v6290_v41 = vpack.c.bf16 %v6183_v36, %v6180_v23 }
0x36a0   : > { %9132 = vmatmul.mubr.msk.bf16.vlgmr.msra.gmra.mrb[152].mxu0 %vm1431_vm5, %v6290_v41  ;;  %v8284_v41 = vld [vmem:[%s11170_s13 + $0x5] ss:$0 sm:$0xff] }
0x36a1   : > { %9142 = vmatpush3.bf16.msra.mxu0 %v9433_v38  ;;  %9145 = vmatprep.mubr.msk.bf16.mxu0 %vm9717_vm0, %v9716_v5  ;;  %v6284_v9 = vpop.f32.mrb[152].mxu1 }
0x36a2   : > { %9143 = vmatprep.subr.bf16.mxu0 %v9716_v5  ;;  %v9127_v24 = vpop.f32.mrb[153].mxu1  ;;  %v6285_v31 = vadd.f32 %v8275_v28, %v6284_v9 }
0x36a3   : > { %v6287_v27 = vpop.f32.mrb[154].mxu1  ;;  %v8287_v24 = vld [vmem:[%s11174_s21 + $0x5] ss:$0 sm:$0xff] }
0x36a4   : > { %v9128_v30 = vpop.f32.mrb[155].mxu1  ;;  %v6366_v18 = vpack.c.bf16 %v6285_v31, %v6285_v31 }
0x36a5   : > { %9144 = vmatpush3.bf16.msra.mxu0 %v9434_v43 }
0x36a6   : > { %9155 = vmatprep.subr.bf16.mxu0 %v9716_v5  ;;  %v6371_v25 = vsel %vm1857_vm9, %v6366_v18, 0  ;;  %v8264_v18 = vld [vmem:[%s11175_s26 + $0x14] sm:$0xf] }
0x36a7   : > { %9136 = vmatpush3.bf16.msra.mxu1 %v6371_v25  ;;  %v6707_v25 = vsel %vm1857_vm9, %v8264_v18, 0 }
0x36a8   : > { %9146 = vmatmul.mubr.msk.bf16.vlgmr.msra.gmra.mrb[156].mxu0 %vm1266_vm4, %v10800_v16  ;;  %9149 = vmatprep.subr.bf16.mxu1 %v9716_v5 }
0x36a9   : > { %9157 = vmatprep.mubr.msk.bf16.mxu0 %vm9717_vm0, %v9716_v5 }
0x3773   : > { %v6332_v48 = vpop.f32.mrb[152].mxu0 }
0x3774   : > { %v6339_v50 = vmul.f32 0.35355338, %v6332_v48  ;;  %v9133_v0 = vpop.f32.mrb[153].mxu0 }
0x3775   : > { %v6335_v47 = vpop.f32.mrb[154].mxu0 }
0x3776   : > { %v6340_v61 = vmul.f32 0.35355338, %v6335_v47  ;;  %v9134_v1 = vpop.f32.mrb[155].mxu0  ;;  %v6341_v40 = vsel %vm3029_vm14, %v6339_v50, -1e+30 }
0x3777   : > { %v6343_v3 = vsel %vm1431_vm5, %v6341_v40, -inf  ;;  %v9437_v1 = vld [vmem:[%s11173_s25 + $0x28] sm:$0xff]  }
0x3778   : > { %6344 = vmax.xlane.f32.xlu1 %v6343_v3  ;;  %v6342_v4 = vsel %vm3030_vm15, %v6340_v61, -1e+30  ;;  %9156 = vmatpush3.bf16.msra.mxu0 %v9437_v1  ;;  %v8298_v1 = vld [vmem:[%s11170_s13 + $0x6] ss:$0 sm:$0xff] }
0x3779   : > { %v6346_v26 = vsel %vm1431_vm5, %v6342_v4, -inf  ;;  %9167 = vmatprep.subr.bf16.mxu0 %v9716_v5 }
0x377a   : > { %6347 = vmax.xlane.f32.xlu0 %v6346_v26 }
0x377b   : > { %v6467_v6 = vpop.f32.mrb[156].mxu0  ;;  %9158 = vmatmul.mubr.msk.bf16.vlgmr.msra.gmra.mrb[160].mxu0 %vm1485_vm6, %v10296_v62 }
0x377c   : > { %v9147_v49 = vpop.f32.mrb[157].mxu0  ;;  %v6468_v59 = vadd.f32 %v8280_v29, %v6467_v6  ;;  %9169 = vmatprep.mubr.msk.bf16.mxu0 %vm9717_vm0, %v9716_v5 }
0x377d   : > { %v6470_v58 = vpop.f32.mrb[158].mxu0 }
0x377e   : > { %v6471_v7 = vadd.f32 %v8280_v29, %v6470_v58  ;;  %v9148_v8 = vpop.f32.mrb[159].mxu0 }
0x3780   : > { %v6578_v10 = vpack.c.bf16 %v6471_v7, %v6468_v59 }
0x3805   : > { %v6345_v39 = vpop.xlane.xlu1 %6344 }
0x3806   : > { %v6349_v11 = vsub.f32 %v6341_v40, %v6345_v39 }
0x3807   : > { %v6348_v44 = vpop.xlane.xlu0 %6347 }
0x3808   : > { %v6351_v20 = vmul.f32 1.442695, %v6349_v11  ;;  %v6350_v15 = vsub.f32 %v6342_v4, %v6348_v44 }
0x380a   : > { %9572 = vpow2.f32 %v6351_v20  ;;  %v6353_v45 = vmul.f32 1.442695, %v6350_v15 }
0x380c   : > { %9574 = vpow2.f32 %v6353_v45 }
0x3814   : > { %v9573_v17 = vpop.eup %9572 }
0x3815   : > { %v6355_v22 = vsel %vm1431_vm5, %v9573_v17, 0.0 }
0x3816   : > { %v9575_v19 = vpop.eup %9574  ;;  %6356 = vadd.xlane.f32.xlu1 %v6355_v22 }
0x3817   : > { %v6358_v21 = vsel %vm1431_vm5, %v9575_v19, 0.0 }
0x3818   : > { %6359 = vadd.xlane.f32.xlu0 %v6358_v21 }
0x38a3   : > { %v6357_v55 = vpop.xlane.xlu1 %6356 }
0x38a4   : > { %9576 = vrcp.f32 %v6357_v55 }
0x38a5   : > { %v6360_v57 = vpop.xlane.xlu0 %6359 }
0x38a6   : > { %9578 = vrcp.f32 %v6360_v57 }
0x38ae   : > { %v9577_v32 = vpop.eup %9576 }
0x38af   : > { %v6363_v52 = vmul.f32 %v9577_v32, %v9573_v17 }
0x38b0   : > { %v9579_v35 = vpop.eup %9578 }
0x38b1   : > { %v6364_v34 = vmul.f32 %v9579_v35, %v9575_v19  ;;  %v6572_v19 = vpop.f32.mrb[160].mxu0 }
0x38b2   : > { %v9159_v21 = vpop.f32.mrb[161].mxu0  ;;  %v6573_v28 = vadd.f32 %v8287_v24, %v6572_v19 }
0x38b3   : > { %v6365_v33 = vpack.c.bf16 %v6364_v34, %v6363_v52  ;;  %v6575_v9 = vpop.f32.mrb[162].mxu0  ;;  %v8263_v52 = vld [vmem:[%s11175_s26 + $0x10] sm:$0xf] }
0x38b4   : > { %v9160_v27 = vpop.f32.mrb[163].mxu0  ;;  %v6654_v30 = vpack.c.bf16 %v6573_v28, %v6573_v28  ;;  %v9441_v21 = vld [vmem:[%s11173_s25 + $0x30] sm:$0xff]  }
0x38b5   : > { %9138 = vmatmul.mubr.msk.bf16.vlgmr.msra.gmra.mrb[156].mxu1 %vm1431_vm5, %v6365_v33 }
0x38b6   : > { %9150 = vmatpush3.bf16.msra.mxu1 %v9436_v56  ;;  %9151 = vmatprep.mubr.msk.bf16.mxu1 %vm9717_vm0, %v9716_v5  ;;  %v6659_v31 = vsel %vm1857_vm9, %v6654_v30, 0 }
0x38b7   : > { %9161 = vmatprep.subr.bf16.mxu1 %v9716_v5  ;;  %9168 = vmatpush3.bf16.msra.mxu0 %v6659_v31 }
0x38b8   : > { %9179 = vmatprep.subr.bf16.mxu0 %v9716_v5 }
0x38bd   : > { %9152 = vmatmul.mubr.msk.bf16.vlgmr.msra.gmra.mrb[160].mxu1 %vm1485_vm6, %v10246_v42 }
0x38be   : > { %9163 = vmatprep.mubr.msk.bf16.mxu1 %vm9717_vm0, %v9716_v5 }
0x3988   : > { %v10848_v60 = vpop.f32.mrb[156].mxu1 }
0x3989   : > { %v9139_v23 = vpop.f32.mrb[157].mxu1 }
0x398a   : > { %v10850_v36 = vpop.f32.mrb[158].mxu1  ;;  %v6754_v23 = vsel %vm1857_vm9, %v8263_v52, 0 }
0x398b   : > { %v6414_v37 = vpack.c.bf16 %v10850_v36, %v10848_v60  ;;  %v9140_v38 = vpop.f32.mrb[159].mxu1  ;;  %v9439_v60 = vld [vmem:[%s11167_s16 + $0x60] sm:$0xff]  }
0x398c   : > { %v9438_v38 = vld [vmem:[%s9824_s20 + $0x30] sm:$0xff]  }
0x3990   : > { %v6520_v43 = vpop.f32.mrb[160].mxu1 }
0x3991   : > { %v6521_v46 = vadd.f32 %v8284_v41, %v6520_v43  ;;  %v9153_v48 = vpop.f32.mrb[161].mxu1 }
0x3992   : > { %v6523_v50 = vpop.f32.mrb[162].mxu1  ;;  %v9440_v48 = vld [vmem:[%s11167_s16 + $0x68] sm:$0xff]  }
0x3993   : > { %v6579_v0 = vpack.c.bf16 %v6521_v46, %v6521_v46  ;;  %v9154_v47 = vpop.f32.mrb[163].mxu1 }
0x3995   : > { %v6584_v61 = vsel %vm1431_vm5, %v6579_v0, 0 }
0x3996   : > { %9162 = vmatpush3.bf16.xpose.msra.mxu1 %v6584_v61 }
0x3997   : > { %9173 = vmatprep.subr.bf16.mxu1 %v9716_v5 }
0x399d   : > { %9164 = vmatmul.mubr.msk.bf16.vlgmr.msra.gmra.mrb[164].mxu1 %vm1431_vm5, %v6578_v10 }
0x399e   : > { %9175 = vmatprep.mubr.msk.bf16.mxu1 %vm9717_vm0, %v9716_v5  ;;  %9174 = vmatpush3.bf16.msra.mxu1 %v6707_v25 }
0x399f   : > { %9185 = vmatprep.subr.bf16.mxu1 %v9716_v5 }
0x3a70   : > { %v6620_v40 = vpop.f32.mrb[164].mxu1 }
0x3a71   : > { %v6627_v3 = vmul.f32 0.35355338, %v6620_v40  ;;  %v9165_v4 = vpop.f32.mrb[165].mxu1 }
0x3a72   : > { %v6623_v26 = vpop.f32.mrb[166].mxu1 }
0x3a73   : > { %v6628_v29 = vmul.f32 0.35355338, %v6623_v26  ;;  %v9166_v6 = vpop.f32.mrb[167].mxu1  ;;  %v6629_v49 = vsel %vm3029_vm14, %v6627_v3, -1e+30 }
0x3a74   : > { %v6631_v58 = vsel %vm1431_vm5, %v6629_v49, -inf }
0x3a75   : > { %6632 = vmax.xlane.f32.xlu1 %v6631_v58  ;;  %v6630_v59 = vsel %vm3030_vm15, %v6628_v29, -1e+30 }
0x3a76   : > { %v6634_v7 = vsel %vm1431_vm5, %v6630_v59, -inf }
0x3a77   : > { %6635 = vmax.xlane.f32.xlu0 %v6634_v7 }
0x3b02   : > { %v6633_v8 = vpop.xlane.xlu1 %6632 }
0x3b03   : > { %v6637_v10 = vsub.f32 %v6629_v49, %v6633_v8 }
0x3b04   : > { %v6636_v39 = vpop.xlane.xlu0 %6635 }
0x3b05   : > { %v6639_v11 = vmul.f32 1.442695, %v6637_v10  ;;  %v6638_v44 = vsub.f32 %v6630_v59, %v6636_v39 }
0x3b07   : > { %9580 = vpow2.f32 %v6639_v11  ;;  %v6641_v20 = vmul.f32 1.442695, %v6638_v44  ;;  %v8294_v11 = vld [vmem:[%s11171_s17 + $0x6] ss:$0 sm:$0xff] }
0x3b09   : > { %9582 = vpow2.f32 %v6641_v20 }
0x3b11   : > { %v9581_v15 = vpop.eup %9580 }
0x3b12   : > { %v6643_v45 = vsel %vm1431_vm5, %v9581_v15, 0.0 }
0x3b13   : > { %v9583_v17 = vpop.eup %9582  ;;  %6644 = vadd.xlane.f32.xlu1 %v6643_v45 }
0x3b14   : > { %v6646_v22 = vsel %vm1431_vm5, %v9583_v17, 0.0 }
0x3b15   : > { %6647 = vadd.xlane.f32.xlu0 %v6646_v22 }
0x3ba0   : > { %v6645_v55 = vpop.xlane.xlu1 %6644 }
0x3ba1   : > { %9584 = vrcp.f32 %v6645_v55 }
0x3ba2   : > { %v6648_v57 = vpop.xlane.xlu0 %6647 }
0x3ba3   : > { %9586 = vrcp.f32 %v6648_v57 }
0x3bab   : > { %v9585_v32 = vpop.eup %9584 }
0x3bac   : > { %v6651_v34 = vmul.f32 %v9585_v32, %v9581_v15 }
0x3bad   : > { %v9587_v35 = vpop.eup %9586 }
0x3bae   : > { %v6652_v56 = vmul.f32 %v9587_v35, %v9583_v17 }
0x3bb0   : > { %v6653_v33 = vpack.c.bf16 %v6652_v56, %v6651_v34 }
0x3bb2   : > { %9170 = vmatmul.mubr.msk.bf16.vlgmr.msra.gmra.mrb[164].mxu0 %vm1431_vm5, %v6653_v33 }
0x3bb3   : > { %9180 = vmatpush3.bf16.msra.mxu0 %v6754_v23  ;;  %9181 = vmatprep.mubr.msk.bf16.mxu0 %vm9717_vm0, %v9716_v5 }
0x3bb4   : > { %9193 = vmatprep.subr.bf16.mxu0 %v9716_v5 }
0x3bba   : > { %9182 = vmatmul.mubr.msk.bf16.vlgmr.msra.gmra.mrb[168].mxu0 %vm1431_vm5, %v6414_v37 }
0x3bbb   : > { %9195 = vmatprep.mubr.msk.bf16.mxu0 %vm9717_vm0, %v9716_v5  ;;  %9194 = vmatpush3.bf16.msra.mxu0 %v9438_v38 }
0x3bbc   : > { %9205 = vmatprep.subr.bf16.mxu0 %v9716_v5 }
0x3bc2   : > { %9196 = vmatmul.mubr.msk.bf16.vlgmr.msra.gmra.mrb[172].mxu0 %vm1485_vm6, %v10246_v42 }
0x3bc3   : > { %9207 = vmatprep.mubr.msk.bf16.mxu0 %vm9717_vm0, %v9716_v5 }
0x3c85   : > { %v6695_v41 = vpop.f32.mrb[164].mxu0 }
0x3c86   : > { %v9171_v43 = vpop.f32.mrb[165].mxu0 }
0x3c87   : > { %v6698_v46 = vpop.f32.mrb[166].mxu0 }
0x3c88   : > { %v6702_v36 = vpack.c.bf16 %v6698_v46, %v6695_v41  ;;  %v9172_v37 = vpop.f32.mrb[167].mxu0 }
0x3c89   : > { %v8301_v37 = vld [vmem:[%s11174_s21 + $0x6] ss:$0 sm:$0xff] }
0x3c8a   : > { %9176 = vmatmul.mubr.msk.bf16.vlgmr.msra.gmra.mrb[168].mxu1 %vm1431_vm5, %v6702_v36 }
0x3c8b   : > { %9186 = vmatpush3.bf16.msra.mxu1 %v9439_v60  ;;  %9189 = vmatprep.mubr.msk.bf16.mxu1 %vm9717_vm0, %v9716_v5 }
0x3c8c   : > { %9187 = vmatprep.subr.bf16.mxu1 %v9716_v5 }
0x3c8d   : > { %v6790_v50 = vpop.f32.mrb[168].mxu0 }
0x3c8e   : > { %v9183_v0 = vpop.f32.mrb[169].mxu0 }
0x3c8f   : > { %v6793_v47 = vpop.f32.mrb[170].mxu0  ;;  %9188 = vmatpush3.bf16.msra.mxu1 %v9440_v48 }
0x3c90   : > { %v9184_v61 = vpop.f32.mrb[171].mxu0  ;;  %9199 = vmatprep.subr.bf16.mxu1 %v9716_v5 }
0x3c91   : > { %v8265_v61 = vld [vmem:[%s11175_s26 + $0x18] sm:$0xf] }
0x3c92   : > { %9190 = vmatmul.mubr.msk.bf16.vlgmr.msra.gmra.mrb[172].mxu1 %vm1266_vm4, %v10800_v16 }
0x3c93   : > { %9201 = vmatprep.mubr.msk.bf16.mxu1 %vm9717_vm0, %v9716_v5  ;;  %9200 = vmatpush3.bf16.msra.mxu1 %v9441_v21 }
0x3c94   : > { %9211 = vmatprep.subr.bf16.mxu1 %v9716_v5 }
0x3c95   : > { %v6902_v40 = vpop.f32.mrb[172].mxu0 }
0x3c96   : > { %v6903_v3 = vadd.f32 %v8298_v1, %v6902_v40  ;;  %v9197_v4 = vpop.f32.mrb[173].mxu0  ;;  %v7089_v1 = vsel %vm1857_vm9, %v8265_v61, 0 }
0x3c97   : > { %v6905_v26 = vpop.f32.mrb[174].mxu0 }
0x3c98   : > { %v6961_v29 = vpack.c.bf16 %v6903_v3, %v6903_v3  ;;  %v9198_v6 = vpop.f32.mrb[175].mxu0 }
0x3c9a   : > { %v6966_v49 = vsel %vm1431_vm5, %v6961_v29, 0  ;;  %9202 = vmatmul.mubr.msk.bf16.vlgmr.msra.gmra.mrb[176].mxu1 %vm1485_vm6, %v10296_v62 }
0x3c9b   : > { %9206 = vmatpush3.bf16.xpose.msra.mxu0 %v6966_v49  ;;  %9213 = vmatprep.mubr.msk.bf16.mxu1 %vm9717_vm0, %v9716_v5  ;;  %v9442_v49 = vld [vmem:[%s11167_s16 + $0x70] sm:$0xff]  }
0x3c9c   : > { %9217 = vmatprep.subr.bf16.mxu0 %v9716_v5 }
0x3d5d   : > { %v6743_v58 = vpop.f32.mrb[168].mxu1 }
0x3d5e   : > { %v10912_v59 = vadd.f32 %v6790_v50, %v6743_v58  ;;  %v9177_v7 = vpop.f32.mrb[169].mxu1 }
0x3d5f   : > { %v6746_v8 = vpop.f32.mrb[170].mxu1  ;;  %v9443_v7 = vld [vmem:[%s11167_s16 + $0x78] sm:$0xff]  }
0x3d60   : > { %v10914_v10 = vadd.f32 %v6793_v47, %v6746_v8  ;;  %v9178_v39 = vpop.f32.mrb[171].mxu1 }
0x3d65   : > { %v6849_v44 = vpop.f32.mrb[172].mxu1 }
0x3d66   : > { %v9191_v20 = vpop.f32.mrb[173].mxu1  ;;  %v6850_v45 = vadd.f32 %v8294_v11, %v6849_v44  ;;  %v9444_v44 = vld [vmem:[%s9824_s20 + $0x38] sm:$0xff]  }
0x3d67   : > { %v6852_v15 = vpop.f32.mrb[174].mxu1 }
0x3d68   : > { %v6853_v17 = vadd.f32 %v8294_v11, %v6852_v15  ;;  %v9192_v22 = vpop.f32.mrb[175].mxu1 }
0x3d6a   : > { %v6960_v19 = vpack.c.bf16 %v6853_v17, %v6850_v45  ;;  %v8307_v45 = vld [vmem:[%s11171_s17 + $0x7] ss:$0 sm:$0xff] }
0x3d6c   : > { %9208 = vmatmul.mubr.msk.bf16.vlgmr.msra.gmra.mrb[176].mxu0 %vm1431_vm5, %v6960_v19 }
0x3d6d   : > { %9219 = vmatprep.mubr.msk.bf16.mxu0 %vm9717_vm0, %v9716_v5  ;;  %v6954_v46 = vpop.f32.mrb[176].mxu1  ;;  %9218 = vmatpush3.bf16.msra.mxu0 %v7089_v1 }
0x3d6e   : > { %v9203_v60 = vpop.f32.mrb[177].mxu1  ;;  %v6955_v50 = vadd.f32 %v8301_v37, %v6954_v46  ;;  %9231 = vmatprep.subr.bf16.mxu0 %v9716_v5 }
0x3d6f   : > { %v6957_v36 = vpop.f32.mrb[178].mxu1 }
0x3d70   : > { %v9204_v48 = vpop.f32.mrb[179].mxu1  ;;  %v7036_v0 = vpack.c.bf16 %v6955_v50, %v6955_v50 }
0x3d72   : > { %v7041_v47 = vsel %vm1857_vm9, %v7036_v0, 0 }
0x3d73   : > { %9212 = vmatpush3.bf16.msra.mxu1 %v7041_v47 }
0x3d74   : > { %9223 = vmatprep.subr.bf16.mxu1 %v9716_v5 }
0x3e3f   : > { %v7002_v9 = vpop.f32.mrb[176].mxu0 }
0x3e40   : > { %v7009_v24 = vmul.f32 0.35355338, %v7002_v9  ;;  %v9209_v27 = vpop.f32.mrb[177].mxu0 }
0x3e41   : > { %v7005_v28 = vpop.f32.mrb[178].mxu0 }
0x3e42   : > { %v7010_v30 = vmul.f32 0.35355338, %v7005_v28  ;;  %v9210_v31 = vpop.f32.mrb[179].mxu0  ;;  %v7011_v18 = vsel %vm3029_vm14, %v7009_v24, -1e+30 }
0x3e43   : > { %v7013_v25 = vsel %vm1431_vm5, %v7011_v18, -inf }
0x3e44   : > { %7014 = vmax.xlane.f32.xlu1 %v7013_v25  ;;  %v7012_v55 = vsel %vm3030_vm15, %v7010_v30, -1e+30 }
0x3e45   : > { %v7016_v57 = vsel %vm1431_vm5, %v7012_v55, -inf }
0x3e46   : > { %7017 = vmax.xlane.f32.xlu0 %v7016_v57 }
0x3ed1   : > { %v7015_v32 = vpop.xlane.xlu1 %7014 }
0x3ed2   : > { %v7019_v35 = vsub.f32 %v7011_v18, %v7015_v32 }
0x3ed3   : > { %v7018_v52 = vpop.xlane.xlu0 %7017 }
0x3ed4   : > { %v7021_v34 = vmul.f32 1.442695, %v7019_v35  ;;  %v7020_v56 = vsub.f32 %v7012_v55, %v7018_v52  ;;  %v8311_v55 = vld [vmem:[%s11170_s13 + $0x7] ss:$0 sm:$0xff] }
0x3ed6   : > { %9588 = vpow2.f32 %v7021_v34  ;;  %v7023_v33 = vmul.f32 1.442695, %v7020_v56 }
0x3ed8   : > { %9590 = vpow2.f32 %v7023_v33 }
0x3ee0   : > { %v9589_v23 = vpop.eup %9588 }
0x3ee1   : > { %v7025_v38 = vsel %vm1431_vm5, %v9589_v23, 0.0 }
0x3ee2   : > { %v9591_v41 = vpop.eup %9590  ;;  %7026 = vadd.xlane.f32.xlu1 %v7025_v38 }
0x3ee3   : > { %v7028_v43 = vsel %vm1431_vm5, %v9591_v41, 0.0 }
0x3ee4   : > { %7029 = vadd.xlane.f32.xlu0 %v7028_v43 }
0x3f6f   : > { %v7027_v40 = vpop.xlane.xlu1 %7026 }
0x3f70   : > { %9592 = vrcp.f32 %v7027_v40 }
0x3f71   : > { %v7030_v3 = vpop.xlane.xlu0 %7029 }
0x3f72   : > { %9594 = vrcp.f32 %v7030_v3 }
0x3f7a   : > { %v9593_v4 = vpop.eup %9592 }
0x3f7b   : > { %v7033_v29 = vmul.f32 %v9593_v4, %v9589_v23 }
0x3f7c   : > { %v9595_v26 = vpop.eup %9594 }
0x3f7d   : > { %v7034_v6 = vmul.f32 %v9595_v26, %v9591_v41 }
0x3f7f   : > { %v7035_v58 = vpack.c.bf16 %v7034_v6, %v7033_v29  ;;  %v8314_v29 = vld [vmem:[%s11174_s21 + $0x7] ss:$0 sm:$0xff] }
0x3f81   : > { %9214 = vmatmul.mubr.msk.bf16.vlgmr.msra.gmra.mrb[180].mxu1 %vm1431_vm5, %v7035_v58 }
0x3f82   : > { %9224 = vmatpush3.bf16.msra.mxu1 %v9442_v49  ;;  %9227 = vmatprep.mubr.msk.bf16.mxu1 %vm9717_vm0, %v9716_v5 }
0x3f83   : > { %9225 = vmatprep.subr.bf16.mxu1 %v9716_v5 }
0x3f86   : > { %9226 = vmatpush3.bf16.msra.mxu1 %v9443_v7 }
0x3f87   : > { %9237 = vmatprep.subr.bf16.mxu1 %v9716_v5 }
0x3f89   : > { %9228 = vmatmul.mubr.msk.bf16.vlgmr.msra.gmra.mrb[184].mxu1 %vm1266_vm4, %v10800_v16 }
0x3f8a   : > { %9239 = vmatprep.mubr.msk.bf16.mxu1 %vm9717_vm0, %v9716_v5 }
0x4054   : > { %v7077_v8 = vpop.f32.mrb[180].mxu1 }
0x4055   : > { %v9215_v39 = vpop.f32.mrb[181].mxu1 }
0x4056   : > { %v7080_v11 = vpop.f32.mrb[182].mxu1 }
0x4057   : > { %v7084_v20 = vpack.c.bf16 %v7080_v11, %v7077_v8  ;;  %v9216_v15 = vpop.f32.mrb[183].mxu1  ;;  %v8266_v8 = vld [vmem:[%s11175_s26 + $0x1c] sm:$0xf] }
0x4058   : > { %v7426_v39 = vsel %vm1857_vm9, %v8266_v8, 0 }
0x4059   : > { %9220 = vmatmul.mubr.msk.bf16.vlgmr.msra.gmra.mrb[180].mxu0 %vm1431_vm5, %v7084_v20 }
0x405a   : > { %9232 = vmatpush3.bf16.msra.mxu0 %v9444_v44  ;;  %9233 = vmatprep.mubr.msk.bf16.mxu0 %vm9717_vm0, %v9716_v5 }
0x405b   : > { %9243 = vmatprep.subr.bf16.mxu0 %v9716_v5 }
0x405c   : > { %v7186_v16 = vpop.f32.mrb[184].mxu1 }
0x405d   : > { %v9229_v17 = vpop.f32.mrb[185].mxu1  ;;  %v7187_v19 = vadd.f32 %v8307_v45, %v7186_v16 }
0x405e   : > { %v7189_v22 = vpop.f32.mrb[186].mxu1 }
0x405f   : > { %v7190_v21 = vadd.f32 %v8307_v45, %v7189_v22  ;;  %v9230_v9 = vpop.f32.mrb[187].mxu1 }
0x4061   : > { %v7297_v24 = vpack.c.bf16 %v7190_v21, %v7187_v19  ;;  %9234 = vmatmul.mubr.msk.bf16.vlgmr.msra.gmra.mrb[184].mxu0 %vm1485_vm6, %v10246_v42 }
0x4062   : > { %9245 = vmatprep.mubr.msk.bf16.mxu0 %vm9717_vm0, %v9716_v5 }
0x412c   : > { %v7125_v27 = vpop.f32.mrb[180].mxu0 }
0x412d   : > { %v10962_v28 = vadd.f32 %v7125_v27, %v10912_v59  ;;  %v9221_v30 = vpop.f32.mrb[181].mxu0  ;;  %v9445_v59 = vld [vmem:[%s11173_s25 + $0x38] sm:$0xff]   ;;  %v8320_v27 = vld [vmem:[%s11176_s2 + $0x1] ss:$0 sm:$0xff]  ;;  %s7951_s2 = sshll.u32 %s1044_s7, 4 }
0x412e   : > { %v7128_v31 = vpop.f32.mrb[182].mxu0  ;;  %9238 = vmatpush3.bf16.msra.mxu1 %v9445_v59  ;;  %s1046_s5 = scalar_lea.vmem [#allocation2], %s7951_s2 }
0x412f   : > { %v10965_v18 = vadd.f32 %v7128_v31, %v10914_v10  ;;  %v9222_v25 = vpop.f32.mrb[183].mxu0  ;;  %9249 = vmatprep.subr.bf16.mxu1 %v9716_v5  ;;  %s7819_s6 = sshll.u32 %s1046_s5, 4  ;;  %s11046_s6 = int_to_ptr.vmem [resolvable:$true] %s7819_s6 }
0x4130   : > { %s9618_s2 = scalar_lea.vmem %s11046_s6, 256 }
0x4131   : > { %9240 = vmatmul.mubr.msk.bf16.vlgmr.msra.gmra.mrb[188].mxu1 %vm1485_vm6, %v10296_v62  ;;  %p9619_p11 = scmp.ne.s32.totalorder %s11046_s6, %s9618_s2 }
0x4132   : > { %9251 = vmatprep.mubr.msk.bf16.mxu1 %vm9717_vm0, %v9716_v5 }
0x4133   : > { %p9620_p12 = pnand %p9619_p11, %p9934_p5 }
0x4134   : > { %v7239_v57 = vpop.f32.mrb[184].mxu0 }
0x4135   : > { %v7240_v32 = vadd.f32 %v8311_v55, %v7239_v57  ;;  %v9235_v35 = vpop.f32.mrb[185].mxu0  ;;  %p9621_p13 = pneg %p9620_p12 }
0x4136   : > { %v7242_v52 = vpop.f32.mrb[186].mxu0 }
0x4137   : > { %v7298_v42 = vpack.c.bf16 %v7240_v32, %v7240_v32  ;;  %v9236_v34 = vpop.f32.mrb[187].mxu0 }
0x4139   : > { %v7303_v56 = vsel %vm1431_vm5, %v7298_v42, 0 }
0x413a   : > { %9244 = vmatpush3.bf16.xpose.msra.mxu0 %v7303_v56 }
0x413b   : > { %9255 = vmatprep.subr.bf16.mxu0 %v9716_v5 }
0x4141   : > { %9246 = vmatmul.mubr.msk.bf16.vlgmr.msra.gmra.mrb[188].mxu0 %vm1431_vm5, %v7297_v24 }
0x4142   : > { %9257 = vmatprep.mubr.msk.bf16.mxu0 %vm9717_vm0, %v9716_v5  ;;  %9256 = vmatpush3.bf16.msra.mxu0 %v7426_v39  ;;  %v8323_v39 = vld [vmem:[%s11180_s1 + $0x1] ss:$0 sm:$0xff]  ;;  %s11186_s1 = smov %s11185_s11 }
0x4143   : > { %9269 = vmatprep.subr.bf16.mxu0 %v9716_v5 }
0x4204   : > { %v7291_v3 = vpop.f32.mrb[188].mxu1 }
0x4205   : > { %v9241_v4 = vpop.f32.mrb[189].mxu1  ;;  %v7292_v49 = vadd.f32 %v8314_v29, %v7291_v3 }
0x4206   : > { %v7294_v26 = vpop.f32.mrb[190].mxu1 }
0x4207   : > { %v9242_v6 = vpop.f32.mrb[191].mxu1  ;;  %v7373_v58 = vpack.c.bf16 %v7292_v49, %v7292_v49 }
0x4209   : > { %v7378_v7 = vsel %vm1857_vm9, %v7373_v58, 0 }
0x420a   : > { %9250 = vmatpush3.bf16.msra.mxu1 %v7378_v7 }
0x420b   : > { %9261 = vmatprep.subr.bf16.mxu1 %v9716_v5 }
0x4214   : > { %v7339_v10 = vpop.f32.mrb[188].mxu0 }
0x4215   : > { %v7346_v33 = vmul.f32 0.35355338, %v7339_v10  ;;  %v9247_v23 = vpop.f32.mrb[189].mxu0 }
0x4216   : > { %v7342_v38 = vpop.f32.mrb[190].mxu0 }
0x4217   : > { %v7347_v41 = vmul.f32 0.35355338, %v7342_v38  ;;  %v9248_v43 = vpop.f32.mrb[191].mxu0  ;;  %v7348_v46 = vsel %vm3029_vm14, %v7346_v33, -1e+30 }
0x4218   : > { %v7350_v60 = vsel %vm1431_vm5, %v7348_v46, -inf }
0x4219   : > { %7351 = vmax.xlane.f32.xlu1 %v7350_v60  ;;  %v7349_v36 = vsel %vm3030_vm15, %v7347_v41, -1e+30 }
0x421a   : > { %v7353_v62 = vsel %vm1431_vm5, %v7349_v36, -inf }
0x421b   : > { %7354 = vmax.xlane.f32.xlu0 %v7353_v62 }
0x42a6   : > { %v7352_v37 = vpop.xlane.xlu1 %7351 }
0x42a7   : > { %v7356_v48 = vsub.f32 %v7348_v46, %v7352_v37 }
0x42a8   : > { %v7355_v50 = vpop.xlane.xlu0 %7354 }
0x42a9   : > { %v7358_v0 = vmul.f32 1.442695, %v7356_v48  ;;  %v7357_v47 = vsub.f32 %v7349_v36, %v7355_v50 }
0x42ab   : > { %9596 = vpow2.f32 %v7358_v0  ;;  %v7360_v61 = vmul.f32 1.442695, %v7357_v47 }
0x42ad   : > { %9598 = vpow2.f32 %v7360_v61  ;;  %v9446_v61 = vld [vmem:[%s11177_s22 + $0x10] sm:$0xff]  }
0x42b5   : > { %v9597_v63 = vpop.eup %9596 }
0x42b6   : > { %v7362_v1 = vsel %vm1431_vm5, %v9597_v63, 0.0 }
0x42b7   : > { %v9599_v40 = vpop.eup %9598  ;;  %7363 = vadd.xlane.f32.xlu1 %v7362_v1  ;;  %v9448_v1 = vld [vmem:[%s11179_s18 + $0x20] sm:$0xff]  }
0x42b8   : > { %v7365_v2 = vsel %vm1431_vm5, %v9599_v40, 0.0 }
0x42b9   : > { %7366 = vadd.xlane.f32.xlu0 %v7365_v2 }
0x4344   : > { %v7364_v11 = vpop.xlane.xlu1 %7363 }
0x4345   : > { %9600 = vrcp.f32 %v7364_v11 }
0x4346   : > { %v7367_v44 = vpop.xlane.xlu0 %7366 }
0x4347   : > { %9602 = vrcp.f32 %v7367_v44 }
0x434f   : > { %v9601_v20 = vpop.eup %9600 }
0x4350   : > { %v7370_v45 = vmul.f32 %v9601_v20, %v9597_v63  ;;  %v9447_v63 = vld [vmem:[%s11177_s22 + $0x18] sm:$0xff]  }
0x4351   : > { %v9603_v15 = vpop.eup %9602 }
0x4352   : > { %v7371_v16 = vmul.f32 %v9603_v15, %v9599_v40  ;;  %v9449_v40 = vld [vmem:[%s11179_s18 + $0x28] sm:$0xff]  }
0x4354   : > { %v7372_v17 = vpack.c.bf16 %v7371_v16, %v7370_v45  ;;  %v8324_v16 = vld [vmem:[%s11182_s28 + $0x1] ss:$0 sm:$0xff] }
0x4356   : > { %9252 = vmatmul.mubr.msk.bf16.vlgmr.msra.gmra.mrb[192].mxu1 %vm1431_vm5, %v7372_v17 }
0x4357   : > { %9265 = vmatprep.mubr.msk.bf16.mxu1 %vm9717_vm0, %v9716_v5  ;;  %9262 = vmatpush3.bf16.msra.mxu1 %v9446_v61 }
0x4358   : > { %9263 = vmatprep.subr.bf16.mxu1 %v9716_v5 }
0x435b   : > { %9264 = vmatpush3.bf16.msra.mxu1 %v9447_v63 }
0x4429   : > { %v7414_v22 = vpop.f32.mrb[192].mxu1 }
0x442a   : > { %v9253_v19 = vpop.f32.mrb[193].mxu1 }
0x442b   : > { %v7417_v21 = vpop.f32.mrb[194].mxu1 }
0x442c   : > { %v7421_v9 = vpack.c.bf16 %v7417_v21, %v7414_v22  ;;  %v9254_v24 = vpop.f32.mrb[195].mxu1 }
0x442e   : > { %9258 = vmatmul.mubr.msk.bf16.vlgmr.msra.gmra.mrb[192].mxu0 %vm1431_vm5, %v7421_v9 }
0x442f   : > { %9277 = vmatprep.mubr.msk.bf16.mxu0 %vm9717_vm0, %v9716_v5  ;;  %9270 = vmatpush3.bf16.msra.mxu0 %v9448_v1 }
0x4430   : > { %9271 = vmatprep.subr.bf16.mxu0 %v9716_v5 }
0x4433   : > { %9272 = vmatpush3.bf16.msra.mxu0 %v9449_v40 }
0x4434   : > { %9273 = vmatprep.subr.bf16.mxu0 %v9716_v5 }
0x4501   : > { %v7462_v30 = vpop.f32.mrb[192].mxu0 }
0x4502   : > { %v7469_v31 = vadd.f32 %v7462_v30, %v10962_v28  ;;  %v9259_v25 = vpop.f32.mrb[193].mxu0 }
0x4503   : > { %v7465_v55 = vpop.f32.mrb[194].mxu0 }
0x4504   : > { %v7477_v57 = vadd.f32 %v8320_v27, %v7469_v31  ;;  %v7470_v32 = vadd.f32 %v7465_v55, %v10965_v18  ;;  %v9260_v35 = vpop.f32.mrb[195].mxu0 }
0x4506   : > { %v7485_v52 = vrot.slane %v7477_v57, 1  ;;  %v7478_v42 = vadd.f32 %v8320_v27, %v7470_v32 }
0x4508   : > { %v7486_v34 = vrot.slane %v7478_v42, 1  ;;  %v7491_v56 = vadd.f32 %v7485_v52, %v10789_v12 }
0x450a   : > { %v7494_v59 = vsel %vm2666_vm10, %v7491_v56, 0.0  ;;  %v7487_v10 = vsel %vm1091_vm1, %v7485_v52, %v7486_v34  ;;  %v7493_v33 = vadd.f32 %v7486_v34, %v10793_v14 }
0x450b   : > { %7495 = vadd.xlane.f32.xlu1 %v7494_v59  ;;  %v7492_v28 = vadd.f32 %v7487_v10, %v10791_v13  ;;  %v9450_v10 = vld [vmem:[%s11179_s18 + $0x30] sm:$0xff]  }
0x450c   : > { %v7500_v18 = vsel %vm2673_vm11, %v7493_v33, 0.0  ;;  %9274 = vmatpush3.bf16.msra.mxu0 %v9450_v10 }
0x450d   : > { %v7497_v23 = vsel %vm1266_vm4, %v7492_v28, 0.0  ;;  %9275 = vmatprep.subr.bf16.mxu0 %v9716_v5 }
0x450e   : > { %7498 = vadd.xlane.f32.xlu0 %v7497_v23 }
0x450f   : > { %7501 = vadd.xlane.f32.xlu1 %v7500_v18 }
0x4598   : > { %v7496_v38 = vpop.xlane.xlu1 %7495 }
0x4599   : > { %v7503_v41 = vmul.f32 0.03125, %v7496_v38 }
0x459b   : > { %v7506_v43 = vsub.f32 %v7491_v56, %v7503_v41  ;;  %v7499_v12 = vpop.xlane.xlu0 %7498 }
0x459c   : > { %v7504_v46 = vmul.f32 0.03125, %v7499_v12  ;;  %v7502_v60 = vpop.xlane.xlu1 %7501 }
0x459d   : > { %v7505_v36 = vmul.f32 0.03125, %v7502_v60  ;;  %v7509_v62 = vmul.f32 %v7506_v43, %v7506_v43 }
0x459e   : > { %v7507_v14 = vsub.f32 %v7492_v28, %v7504_v46  ;;  %v8330_v28 = vld [vmem:[%s11184_s4 + $0x1] ss:$0 sm:$0xff]  ;;  %s8360_s4 = sshll.u32 %s9917_s0, 8  ;;  %s11051_s0 = scalar_lea.sflag [#allocation3], %s1044_s7 }
0x459f   : > { %v7508_v37 = vsub.f32 %v7493_v33, %v7505_v36  ;;  %v7512_v13 = vsel %vm2666_vm10, %v7509_v62, 0.0  ;;  %v9451_v33 = vld [vmem:[%s11179_s18 + $0x38] sm:$0xff]   ;;  %v8343_v62 = vld [vmem:[%s11149_s9 + $0x1] ss:$0 sm:$0xff]  ;;  %s11044_s8 = scalar_lea.hbm %s11185_s11, %s8360_s4  ;;  %s9718_s4 = smov [#allocation2]  }
0x45a0   : > { %7513 = vadd.xlane.f32.xlu0 %v7512_v13  ;;  %v7510_v48 = vmul.f32 %v7507_v14, %v7507_v14  ;;  %9276 = vmatpush3.bf16.msra.mxu0 %v9451_v33  ;;  %s9622_s11 = sshll.u32 %s9718_s4, 4  ;;  %s9623_s11 = int_to_ptr.vmem [resolvable:$false] %s9622_s11 }
0x45a1   : > { %v7511_v50 = vmul.f32 %v7508_v37, %v7508_v37  ;;  %s9624_s9 = scalar_lea.vmem %s9623_s11, 512  ;;  %p9625_p0 = scmp.lt.s32.totalorder %s11046_s6, %s9623_s11 }
0x45a2   : > { %v7515_v0 = vsel %vm1266_vm4, %v7510_v48, 0.0  ;;  %p9626_p1 = scmp.lt.s32.totalorder %s9624_s9, %s9618_s2 }
0x45a3   : > { %7516 = vadd.xlane.f32.xlu1 %v7515_v0  ;;  %v7518_v47 = vsel %vm2673_vm11, %v7511_v50, 0.0 }
0x45a4   : > { %7519 = vadd.xlane.f32.xlu0 %v7518_v47  ;;  %p9627_p2 = por %p9626_p1, %p9625_p0 }
0x45a6   : > { %p9628_p3 = pnand %p9627_p2, %p9621_p13 }
0x462d   : > { %v7514_v2 = vpop.xlane.xlu0 %7513 }
0x462e   : > { %v7521_v3 = vmul.f32 0.03125, %v7514_v2 }
0x4630   : > { %v7524_v4 = vadd.f32 1e-05, %v7521_v3  ;;  %v7517_v26 = vpop.xlane.xlu1 %7516 }
0x4631   : > { %v7522_v29 = vmul.f32 0.03125, %v7517_v26  ;;  %v7520_v6 = vpop.xlane.xlu0 %7519 }
0x4632   : > { %9604 = vrsqrt.f32 %v7524_v4  ;;  %v7523_v49 = vmul.f32 0.03125, %v7520_v6 }
0x4633   : > { %v7525_v58 = vadd.f32 1e-05, %v7522_v29 }
0x4634   : > { %v7526_v7 = vadd.f32 1e-05, %v7523_v49 }
0x4635   : > { %9606 = vrsqrt.f32 %v7525_v58 }
0x4636   : > { %9608 = vrsqrt.f32 %v7526_v7 }
0x463c   : > { %v9605_v8 = vpop.eup %9604 }
0x463d   : > { %v7530_v11 = vmul.f32 %v9605_v8, %v7506_v43 }
0x463f   : > { %v9607_v44 = vpop.eup %9606  ;;  %v7539_v15 = vmul.f32 %v8323_v39, %v7530_v11 }
0x4640   : > { %v9609_v20 = vpop.eup %9608  ;;  %v7531_v45 = vmul.f32 %v9607_v44, %v7507_v14 }
0x4641   : > { %v7532_v17 = vmul.f32 %v9609_v20, %v7508_v37  ;;  %v7548_v21 = vadd.f32 %v8324_v16, %v7539_v15 }
0x4642   : > { %v7540_v22 = vmul.f32 %v8323_v39, %v7531_v45 }
0x4643   : > { %v7541_v19 = vmul.f32 %v8323_v39, %v7532_v17 }
0x4644   : > { %v7549_v9 = vadd.f32 %v8324_v16, %v7540_v22 }
0x4645   : > { %v7550_v24 = vadd.f32 %v8324_v16, %v7541_v19 }
0x4646   : > { %v7556_v27 = vpack.c.bf16 %v7549_v9, %v7548_v21 }
0x4647   : > { %v7557_v30 = vpack.c.bf16 %v7550_v24, %v7550_v24 }
0x4648   : > { %v7567_v31 = vshrl.u32 %v7556_v27, 16  ;;  %v7570_v25 = vshll.u32 %v7556_v27, 16 }
0x4649   : > { %v7575_v55 = vshrl.u32 %v7557_v30, 16  ;;  %v7578_v57 = vshll.u32 %v7557_v30, 16 }
0x464a   : > { %v7569_v32 = vrot.slane %v7567_v31, 3  ;;  %v7572_v35 = vrot.slane %v7570_v25, 4 }
0x464b   : > { %v7577_v52 = vrot.slane %v7575_v55, 3  ;;  %v7580_v42 = vrot.slane %v7578_v57, 4  ;;  %v8351_v57 = vld [vmem:[%s9884_s29 + $0x1] ss:$0 sm:$0xff] }
0x464c   : > { %v7573_v34 = vor.u32 %v7572_v35, %v7569_v32  ;;  %v8352_v35 = vld [vmem:[%s9889_s27 + $0x1] ss:$0 sm:$0xff] }
0x464d   : > { %v7581_v56 = vor.u32 %v7580_v42, %v7577_v52 }
0x464f   : > { %v7582_v59 = vsel %vm1236_vm3, %v7573_v34, %v7581_v56 }
0x4650   : > { %9266 = vmatmul.mubr.msk.bf16.vlgmr.msra.gmra.mrb[196].mxu1 %vm1266_vm4, %v7582_v59 }
0x4723   : > { %v7632_v23 = vpop.f32.mrb[196].mxu1 }
0x4724   : > { %v7633_v18 = vadd.f32 %v8330_v28, %v7632_v23  ;;  %v9267_v38 = vpop.f32.mrb[197].mxu1 }
0x4725   : > { %v7635_v41 = vpop.f32.mrb[198].mxu1 }
0x4726   : > { %v7636_v43 = vadd.f32 %v8330_v28, %v7635_v41  ;;  %v9268_v12 = vpop.f32.mrb[199].mxu1  ;;  %v7639_v46 = vmax.f32 %v7633_v18, 0.0 }
0x4728   : > { %v7640_v60 = vmax.f32 %v7636_v43, 0.0 }
0x472a   : > { %v7650_v36 = vpack.c.bf16 %v7640_v60, %v7639_v46 }
0x472c   : > { %9278 = vmatmul.mubr.msk.bf16.vlgmr.msra.gmra.mrb[196].mxu0 %vm4367_vm2, %v7650_v36 }
0x47ff   : > { %v7720_v14 = vpop.f32.mrb[196].mxu0 }
0x4800   : > { %v7721_v37 = vadd.f32 %v8343_v62, %v7720_v14  ;;  %v9279_v13 = vpop.f32.mrb[197].mxu0 }
0x4801   : > { %v7723_v48 = vpop.f32.mrb[198].mxu0 }
0x4802   : > { %v7733_v5 = vrot.slane %v7721_v37, 1  ;;  %v7724_v50 = vadd.f32 %v8343_v62, %v7723_v48  ;;  %v9280_v0 = vpop.f32.mrb[199].mxu0 }
0x4804   : > { %v7739_v47 = vadd.f32 %v7733_v5, %v7548_v21  ;;  %v7734_v61 = vrot.slane %v7724_v50, 1 }
0x4806   : > { %v7741_v63 = vadd.f32 %v7734_v61, %v7550_v24  ;;  %v7742_v1 = vsel %vm2666_vm10, %v7739_v47, 0.0  ;;  %v7735_v40 = vsel %vm1091_vm1, %v7733_v5, %v7734_v61 }
0x4807   : > { %7743 = vadd.xlane.f32.xlu1 %v7742_v1  ;;  %v7740_v2 = vadd.f32 %v7735_v40, %v7549_v9 }
0x4808   : > { %v7748_v4 = vsel %vm2673_vm11, %v7741_v63, 0.0 }
0x4809   : > { %v7745_v3 = vsel %vm1266_vm4, %v7740_v2, 0.0 }
0x480a   : > { %7746 = vadd.xlane.f32.xlu0 %v7745_v3 }
0x480b   : > { %7749 = vadd.xlane.f32.xlu1 %v7748_v4 }
0x4894   : > { %v7744_v26 = vpop.xlane.xlu1 %7743 }
0x4895   : > { %v7751_v29 = vmul.f32 0.03125, %v7744_v26 }
0x4897   : > { %v7754_v6 = vsub.f32 %v7739_v47, %v7751_v29  ;;  %v7747_v49 = vpop.xlane.xlu0 %7746 }
0x4898   : > { %v7752_v58 = vmul.f32 0.03125, %v7747_v49  ;;  %v7750_v7 = vpop.xlane.xlu1 %7749 }
0x4899   : > { %v7753_v8 = vmul.f32 0.03125, %v7750_v7  ;;  %v7757_v39 = vmul.f32 %v7754_v6, %v7754_v6 }
0x489a   : > { %v7755_v11 = vsub.f32 %v7740_v2, %v7752_v58 }
0x489b   : > { %v7756_v44 = vsub.f32 %v7741_v63, %v7753_v8  ;;  %v7760_v20 = vsel %vm2666_vm10, %v7757_v39, 0.0 }
0x489c   : > { %7761 = vadd.xlane.f32.xlu0 %v7760_v20  ;;  %v7758_v15 = vmul.f32 %v7755_v11, %v7755_v11 }
0x489d   : > { %v7759_v45 = vmul.f32 %v7756_v44, %v7756_v44 }
0x489e   : > { %v7763_v16 = vsel %vm1266_vm4, %v7758_v15, 0.0 }
0x489f   : > { %7764 = vadd.xlane.f32.xlu1 %v7763_v16  ;;  %v7766_v17 = vsel %vm2673_vm11, %v7759_v45, 0.0 }
0x48a0   : > { %7767 = vadd.xlane.f32.xlu0 %v7766_v17 }
0x4929   : > { %v7762_v22 = vpop.xlane.xlu0 %7761 }
0x492a   : > { %v7769_v19 = vmul.f32 0.03125, %v7762_v22 }
0x492c   : > { %v7772_v21 = vadd.f32 1e-05, %v7769_v19  ;;  %v7765_v9 = vpop.xlane.xlu1 %7764 }
0x492d   : > { %v7770_v24 = vmul.f32 0.03125, %v7765_v9  ;;  %v7768_v27 = vpop.xlane.xlu0 %7767 }
0x492e   : > { %9610 = vrsqrt.f32 %v7772_v21  ;;  %v7771_v30 = vmul.f32 0.03125, %v7768_v27 }
0x492f   : > { %v7773_v31 = vadd.f32 1e-05, %v7770_v24 }
0x4930   : > { %v7774_v25 = vadd.f32 1e-05, %v7771_v30 }
0x4931   : > { %9612 = vrsqrt.f32 %v7773_v31 }
0x4932   : > { %9614 = vrsqrt.f32 %v7774_v25 }
0x4938   : > { %v9611_v55 = vpop.eup %9610 }
0x4939   : > { %v7778_v32 = vmul.f32 %v9611_v55, %v7754_v6 }
0x493b   : > { %v9613_v52 = vpop.eup %9612  ;;  %v7787_v42 = vmul.f32 %v8351_v57, %v7778_v32 }
0x493c   : > { %v9615_v34 = vpop.eup %9614  ;;  %v7779_v56 = vmul.f32 %v9613_v52, %v7755_v11 }
0x493d   : > { %v7796_v59 = vadd.f32 %v8352_v35, %v7787_v42  ;;  %v7780_v10 = vmul.f32 %v9615_v34, %v7756_v44 }
0x493e   : > { %v7788_v33 = vmul.f32 %v8351_v57, %v7779_v56 }
0x493f   : > { %v7799_v28 = vmul.f32 %v7796_v59, %v9981_v51  ;;  %v7789_v23 = vmul.f32 %v8351_v57, %v7780_v10 }
0x4940   : > { %v7797_v18 = vadd.f32 %v8352_v35, %v7788_v33 }
0x4941   : > { %v7798_v38 = vadd.f32 %v8352_v35, %v7789_v23  ;;  %7802 = vst.msk [vmem:[%s1046_s5 - $0x7] sm:$0x80] %vm2666_vm10, %v7799_v28 }
0x4942   : > { %v7800_v41 = vmul.f32 %v7797_v18, %v9991_v54 }
0x4943   : > { %v7801_v51 = vmul.f32 %v7798_v38, %v9986_v53 }
0x4944   : > { %7803 = vst.msk [vmem:[%s1046_s5 + $0x1] sm:$0xff] %vm1266_vm4, %v7800_v41 }
0x4945   : > { %7804 = vst.msk [vmem:[%s1046_s5 + $0x9] sm:$0x7f] %vm2673_vm11, %v7801_v51 }
0x4946   : > { %9631 = shalt.err (!%p9628_p3)
}
0x4947   : > { %s9632_s5 = scalar_lea.hbm %s11044_s8, 256  ;;  %s9636_s7 = scalar_lea.hbm %s11186_s1, 512 }
0x4948   : > { %p9633_p4 = scmp.ne.s32.totalorder %s11044_s8, %s9632_s5  ;;  %p9637_p9 = scmp.lt.u32.totalorder %s11044_s8, %s11186_s1 }
0x4949   : > { %p9638_p10 = scmp.lt.u32.totalorder %s9636_s7, %s9632_s5  ;;  %p9640_p12 = scmp.lt.u32.totalorder %s9632_s5, %s11044_s8 }
0x494a   : > { %p9634_p7 = pnand %p9633_p4, %p9934_p5 }
0x494b   : > { %p9639_p11 = por %p9638_p10, %p9637_p9 }
0x494c   : > { %p9635_p8 = pneg %p9634_p7 }
0x494d   : > { %p9641_p0 = por %p9640_p12, %p9639_p11 }
0x494f   : > { %p9642_p13 = pnand %p9641_p0, %p9635_p8 }
0x4951   : > { %9645 = shalt.err (!%p9642_p13)
}
0x4952   : > { %s9719_s9 = smov 128   ;;  %s9720_s2 = smov 8  }
0x4953   : > { %9281 = dma.vmem_to_hbm [thread:$0]  (%p9934_p5), %s11046_s6, 256, %s11044_s8, %s11051_s0, %s9719_s9, %s9719_s9, %s9720_s2  }
0x4954 PF: > { %s11188_s4 = sld [smem:[#allocation32_spill]]  ;;  %p9287_p1 = scmp.ge.s32.totalorder %s9680_s15, 2 }
0x4956   : > { %p9284_p2 = pnand %p9287_p1, %p9938_p6 }
0x495a   : > { %s7834_s1 = sand.u32 1, %s11188_s4  }
0x495b   : > { %s7835_s5 = scalar_lea.sflag [#allocation3], %s7834_s1 }
0x495c   : > { %9663 = dma.done.wait (!%p9284_p2), %s7835_s5, 256  }
0x495d   : > { %9665 = vsyncadd (!%p9284_p2), %s7835_s5, 4294967040  ;;  %s11190_s15 = sld [smem:[#allocation34_spill]]  ;;  %s11191_s12 = sld [smem:[#allocation33_spill]] }
0x495e   : > { %s11192_s11 = sld [smem:[#allocation35_spill]]  ;;  %s11193_s7 = smov %s9672_s10 }
0x4963   : > { %p77_p3 = scmp.ge.s32.totalorder %s11190_s15, 4   ;;  %s11194_s10 = smov %s11191_s12 }
0x4965   :  { %79 = sbr.rel (!%p77_p3) target bundleno = 76 (0x4c), region = 255 }
0x496c   :  { %7840 = vsyncpa [#allocation3], 1 }
0x496d   :  { %7842 = vsyncpa [#allocation3 + $0x1], 1 }

</bundles_post_ra>
